<compile_context>
chip_gen: v7x
topology: tpu7x:2x2x1
jax: 0.10.0
libtpu: 0.0.40
codegen_flags: <defaults>
</compile_context>

<pallas_src>
import jax
import jax.numpy as jnp
import numpy as np
from jax.experimental import pallas as pl
from jax.experimental.pallas import tpu as pltpu

EPS = 1e-5


def _make_bottleneck_kernel(H, W, Cp, Hb, add):
    WP = W + 2            # 1-pixel column halo
    HP4 = H + 4           # 2-row halo (cv1 is recomputed 1 row past each band edge)
    RB1 = (Hb + 2) * W    # cv1 rows per band (with 1-row halo each side)
    RB2 = Hb * W          # cv2 rows per band

    def kernel(x_ref, w1_ref, s1_ref, b1_ref, w2_ref, s2_ref, b2_ref,
               out_ref, xp_ref, col_ref, y1p_ref):
        b = pl.program_id(1)
        nb = pl.num_programs(1)
        r0 = pl.multiple_of(b * Hb, Hb)    # first output row of this band

        # ---- build padded bf16 input once per image -------------------------
        # Band axis is the inner, sequential ("arbitrary") axis and the x block
        # index does not depend on it, so the scratch built at b==0 is valid
        # for every band of this image.  Only the halo border is zeroed.
        @pl.when(b == 0)
        def _():
            xp_ref[0:2, :, :] = jnp.zeros((2, WP, Cp), jnp.bfloat16)
            xp_ref[H + 2:H + 4, :, :] = jnp.zeros((2, WP, Cp), jnp.bfloat16)
            xp_ref[:, 0:1, :] = jnp.zeros((HP4, 1, Cp), jnp.bfloat16)
            xp_ref[:, W + 1:W + 2, :] = jnp.zeros((HP4, 1, Cp), jnp.bfloat16)
            xp_ref[2:H + 2, 1:W + 1, :] = x_ref[0].astype(jnp.bfloat16)

        # ---- cv1: im2col (bf16 staged) + one MXU matmul over Hb+2 rows -------
        # col[:, k*Cp:(k+1)*Cp] = tap k (k = 3*dy + dx) of the band + 1-row halo
        for k in range(9):
            dy, dx = divmod(k, 3)
            col_ref[:, k * Cp:(k + 1) * Cp] = (
                xp_ref[pl.ds(r0 + dy, Hb + 2), dx:dx + W, :].reshape(RB1, Cp))

        acc1 = jnp.dot(col_ref[...], w1_ref[...],
                       preferred_element_type=jnp.float32)
        y1 = acc1 * s1_ref[...] + b1_ref[...]          # fused BN (f32)
        y1 = y1 * jax.nn.sigmoid(y1)                   # SiLU (f32)

        # ---- stage cv1 band (+halo rows) into padded bf16 scratch for cv2 ----
        y1p_ref[:, 0:1, :] = jnp.zeros((Hb + 2, 1, Cp), jnp.bfloat16)
        y1p_ref[:, W + 1:W + 2, :] = jnp.zeros((Hb + 2, 1, Cp), jnp.bfloat16)
        y1p_ref[:, 1:W + 1, :] = y1.reshape(Hb + 2, W, Cp).astype(jnp.bfloat16)

        # cv1 "rows" outside the image must act as zero padding for cv2
        @pl.when(b == 0)
        def _():
            y1p_ref[0:1, :, :] = jnp.zeros((1, WP, Cp), jnp.bfloat16)

        @pl.when(b == nb - 1)
        def _():
            y1p_ref[Hb + 1:Hb + 2, :, :] = jnp.zeros((1, WP, Cp), jnp.bfloat16)

        # ---- cv2: same im2col + single matmul over the Hb band rows ----------
        for k in range(9):
            dy, dx = divmod(k, 3)
            col_ref[0:RB2, k * Cp:(k + 1) * Cp] = (
                y1p_ref[dy:dy + Hb, dx:dx + W, :].reshape(RB2, Cp))

        acc2 = jnp.dot(col_ref[0:RB2, :], w2_ref[...],
                       preferred_element_type=jnp.float32)
        y2 = acc2 * s2_ref[...] + b2_ref[...]
        y2 = y2 * jax.nn.sigmoid(y2)

        y2 = y2.reshape(Hb, W, Cp)
        if add:  # residual in (Hb, W, Cp) layout, exact f32 x
            y2 = y2 + x_ref[0, pl.ds(r0, Hb), :, :]

        out_ref[0] = y2.astype(out_ref.dtype)          # lane-dense (Cp) store

    return kernel


def bottleneck_forward(x_nchw, params, add):
    """x_nchw: (N, C, H, W) float32  ->  (N, C, H, W) float32."""
    N, C, H, W = x_nchw.shape
    Cp = ((C + 127) // 128) * 128        # lane-dense channel padding
    for cand in (8, 16, 4, 2, 1):        # 8-16 output rows per band preferred
        if H % cand == 0:
            Hb = cand
            break
    nb = H // Hb

    # NCHW -> NHWC (channels on the lane axis) + zero-pad channels to Cp.
    # No spatial pad here: the 1-pixel halo is built inside the kernel.
    x = jnp.transpose(x_nchw, (0, 2, 3, 1))
    if Cp > C:
        x = jnp.pad(x, ((0, 0), (0, 0), (0, 0), (0, Cp - C)))

    def fuse(w_pt, gamma, beta, mean, var):
        # (Cout, Cin, 3, 3) -> (3, 3, Cin, Cout), zero-pad channels, then
        # (9*Cp, Cp) with row index (3*kh + kw)*Cp + cin — matches the
        # in-kernel im2col ordering.  Padded Cout columns get scale=bias=0 so
        # those outputs are SiLU(0)=0 and the (zero) residual keeps them 0.
        w = jnp.transpose(w_pt, (2, 3, 1, 0))
        w = jnp.pad(w, ((0, 0), (0, 0), (0, Cp - C), (0, Cp - C)))
        w = w.reshape(9 * Cp, Cp).astype(jnp.bfloat16)        # bf16 MXU feed
        scale = gamma / jnp.sqrt(var + EPS)
        bias = beta - mean * scale
        scale = jnp.pad(scale, (0, Cp - C)).reshape(1, Cp).astype(jnp.float32)
        bias = jnp.pad(bias, (0, Cp - C)).reshape(1, Cp).astype(jnp.float32)
        return w, scale, bias

    w1, s1, b1 = fuse(*params["cv1"])
    w2, s2, b2 = fuse(*params["cv2"])

    kernel = _make_bottleneck_kernel(H, W, Cp, Hb, add)

    flops = N * nb * 2 * 9 * Cp * Cp * W * ((Hb + 2) + Hb)     # two convs
    transcendentals = N * nb * W * Cp * ((Hb + 2) + Hb)        # sigmoids
    bytes_accessed = (N * H * W * Cp * 4 * 2                   # x + out
                      + 2 * 9 * Cp * Cp * 2 + 4 * Cp * 4)      # weights + bn

    out_nhwc = pl.pallas_call(
        kernel,
        out_shape=jax.ShapeDtypeStruct((N, H, W, Cp), jnp.float32),
        grid_spec=pltpu.PrefetchScalarGridSpec(
            num_scalar_prefetch=0,
            grid=(N, nb),
            in_specs=[
                pl.BlockSpec((1, H, W, Cp), lambda n, b: (n, 0, 0, 0)),
                pl.BlockSpec((9 * Cp, Cp), lambda n, b: (0, 0)),
                pl.BlockSpec((1, Cp), lambda n, b: (0, 0)),
                pl.BlockSpec((1, Cp), lambda n, b: (0, 0)),
                pl.BlockSpec((9 * Cp, Cp), lambda n, b: (0, 0)),
                pl.BlockSpec((1, Cp), lambda n, b: (0, 0)),
                pl.BlockSpec((1, Cp), lambda n, b: (0, 0)),
            ],
            out_specs=pl.BlockSpec((1, Hb, W, Cp), lambda n, b: (n, b, 0, 0)),
            scratch_shapes=[
                pltpu.VMEM((H + 4, W + 2, Cp), jnp.bfloat16),       # padded x
                pltpu.VMEM(((Hb + 2) * W, 9 * Cp), jnp.bfloat16),   # im2col (shared)
                pltpu.VMEM((Hb + 2, W + 2, Cp), jnp.bfloat16),      # padded cv1 band
            ],
        ),
        compiler_params=pltpu.CompilerParams(
            dimension_semantics=("parallel", "arbitrary"),
            vmem_limit_bytes=32 * 1024 * 1024),   # re-derive per band size for real shapes
        cost_estimate=pl.CostEstimate(
            flops=flops, transcendentals=transcendentals,
            bytes_accessed=bytes_accessed),
    )(x, w1, s1, b1, w2, s2, b2)

    out_nhwc = out_nhwc[..., :C]                       # drop padded channels
    return jnp.transpose(out_nhwc, (0, 3, 1, 2))       # back to NCHW


def reference_forward(x_nchw, params, add, mxu_bf16=False):
    """Plain-JAX reference (NCHW).  mxu_bf16=True emulates the kernel's bf16
    MXU inputs (round conv inputs/weights to bf16, accumulate in f32)."""
    def q(a):
        return a.astype(jnp.bfloat16).astype(jnp.float32) if mxu_bf16 else a

    def conv_block(x, w_pt, gamma, beta, mean, var):
        y = jax.lax.conv_general_dilated(
            q(x), q(w_pt), window_strides=(1, 1), padding=((1, 1), (1, 1)),
            dimension_numbers=("NCHW", "OIHW", "NCHW"),
            precision=jax.lax.Precision.HIGHEST)
        scale = (gamma / jnp.sqrt(var + EPS)).reshape(1, -1, 1, 1)
        bias = beta.reshape(1, -1, 1, 1) - mean.reshape(1, -1, 1, 1) * scale
        y = y * scale + bias
        return y * jax.nn.sigmoid(y)

    y = conv_block(x_nchw, *params["cv1"])
    y = conv_block(y, *params["cv2"])
    return x_nchw + y if add else y


def make_params(key, C):
    ks = jax.random.split(key, 10)

    def conv_bn(k0, k1, k2, k3, k4):
        w = jax.random.normal(k0, (C, C, 3, 3), jnp.float32) * 0.2
        gamma = jax.random.uniform(k1, (C,), jnp.float32, 0.5, 1.5)
        beta = jax.random.normal(k2, (C,), jnp.float32) * 0.1
        mean = jax.random.normal(k3, (C,), jnp.float32) * 0.1
        var = jax.random.uniform(k4, (C,), jnp.float32, 0.5, 1.5)
        return (w, gamma, beta, mean, var)

    return {"cv1": conv_bn(*ks[:5]), "cv2": conv_bn(*ks[5:])}


if __name__ == "__main__":
    N, C, H, W = 2, 4, 16, 16
    ADD = True  # Bottleneck(channels=C, add=True)

    key = jax.random.PRNGKey(0)
    kx, kp = jax.random.split(key)
    x = jax.random.normal(kx, (N, C, H, W), jnp.float32)
    params = make_params(kp, C)

    out = jax.block_until_ready(bottleneck_forward(x, params, ADD))

    # The kernel feeds the MXU in bf16 (per perf guidance); validate against a
    # reference that applies the same bf16 rounding (f32 accumulation in both),
    # so the tolerance can stay tight.
    ref = jax.block_until_ready(reference_forward(x, params, ADD, mxu_bf16=True))
    np.testing.assert_allclose(np.asarray(out), np.asarray(ref),
                               rtol=2e-3, atol=2e-3)
    assert out.shape == (N, C, H, W)
    print("KERNEL_OK")
</pallas_src>

<mosaic_0001>
module attributes {stable_mosaic.version = 11 : i64} {
  func.func @kernel(%arg0: i32, %arg1: i32, %arg2: memref<1x16x16x128xf32, #tpu.memory_space<vmem>>, %arg3: memref<1152x128xbf16, #tpu.memory_space<vmem>>, %arg4: memref<1x128xf32, #tpu.memory_space<vmem>>, %arg5: memref<1x128xf32, #tpu.memory_space<vmem>>, %arg6: memref<1152x128xbf16, #tpu.memory_space<vmem>>, %arg7: memref<1x128xf32, #tpu.memory_space<vmem>>, %arg8: memref<1x128xf32, #tpu.memory_space<vmem>>, %arg9: memref<1x8x16x128xf32, #tpu.memory_space<vmem>>, %arg10: memref<20x18x128xbf16, #tpu.memory_space<vmem>>, %arg11: memref<160x1152xbf16, #tpu.memory_space<vmem>>, %arg12: memref<10x18x128xbf16, #tpu.memory_space<vmem>>) attributes {dimension_semantics = [#tpu.dimension_semantics<parallel>, #tpu.dimension_semantics<arbitrary>], iteration_bounds = array<i64: 2, 2>, scalar_prefetch = 0 : i64, scratch_operands = 3 : i64, tpu.core_type = #tpu.core_type<tc>, window_params = [{transform_indices = @transform_0, window_bounds = array<i64: 1, 16, 16, 128>}, {pipeline_mode = #tpu.pipeline_mode<synchronous>, transform_indices = @transform_1, window_bounds = array<i64: 1152, 128>}, {pipeline_mode = #tpu.pipeline_mode<synchronous>, transform_indices = @transform_2, window_bounds = array<i64: 1, 128>}, {pipeline_mode = #tpu.pipeline_mode<synchronous>, transform_indices = @transform_3, window_bounds = array<i64: 1, 128>}, {pipeline_mode = #tpu.pipeline_mode<synchronous>, transform_indices = @transform_4, window_bounds = array<i64: 1152, 128>}, {pipeline_mode = #tpu.pipeline_mode<synchronous>, transform_indices = @transform_5, window_bounds = array<i64: 1, 128>}, {pipeline_mode = #tpu.pipeline_mode<synchronous>, transform_indices = @transform_6, window_bounds = array<i64: 1, 128>}, {transform_indices = @transform_7, window_bounds = array<i64: 1, 8, 16, 128>}]} {
    %c8_i32 = arith.constant 8 : i32
    %0 = arith.muli %arg1, %c8_i32 : i32
    %1 = tpu.assume_multiple %0, 8 : i32
    %c0_i32 = arith.constant 0 : i32
    %2 = arith.cmpi eq, %arg1, %c0_i32 : i32
    %3 = arith.extui %2 : i1 to i32
    %c0_i32_0 = arith.constant 0 : i32
    %4 = arith.cmpi ne, %3, %c0_i32_0 : i32
    scf.if %4 {
      %cst_118 = arith.constant 0.000000e+00 : bf16
      %128 = vector.broadcast %cst_118 : bf16 to vector<2x18x128xbf16>
      %c0_119 = arith.constant 0 : index
      %c0_120 = arith.constant 0 : index
      %c0_121 = arith.constant 0 : index
      %129 = vector.load %arg10[%c0_119, %c0_120, %c0_121] : memref<20x18x128xbf16, #tpu.memory_space<vmem>>, vector<2x18x128xbf16>
      tpu.vector_store %arg10[%c0_119, %c0_120, %c0_121], %128 {strides = array<i32>} : memref<20x18x128xbf16, #tpu.memory_space<vmem>>, vector<2x18x128xbf16>,
      %cst_122 = arith.constant 0.000000e+00 : bf16
      %130 = vector.broadcast %cst_122 : bf16 to vector<2x18x128xbf16>
      %c18 = arith.constant 18 : index
      %c0_123 = arith.constant 0 : index
      %c0_124 = arith.constant 0 : index
      %131 = vector.load %arg10[%c18, %c0_123, %c0_124] : memref<20x18x128xbf16, #tpu.memory_space<vmem>>, vector<2x18x128xbf16>
      tpu.vector_store %arg10[%c18, %c0_123, %c0_124], %130 {strides = array<i32>} : memref<20x18x128xbf16, #tpu.memory_space<vmem>>, vector<2x18x128xbf16>,
      %cst_125 = arith.constant 0.000000e+00 : bf16
      %132 = vector.broadcast %cst_125 : bf16 to vector<20x1x128xbf16>
      %c0_126 = arith.constant 0 : index
      %c0_127 = arith.constant 0 : index
      %c0_128 = arith.constant 0 : index
      %133 = vector.load %arg10[%c0_126, %c0_127, %c0_128] : memref<20x18x128xbf16, #tpu.memory_space<vmem>>, vector<20x1x128xbf16>
      tpu.vector_store %arg10[%c0_126, %c0_127, %c0_128], %132 {strides = array<i32>} : memref<20x18x128xbf16, #tpu.memory_space<vmem>>, vector<20x1x128xbf16>,
      %cst_129 = arith.constant 0.000000e+00 : bf16
      %134 = vector.broadcast %cst_129 : bf16 to vector<20x1x128xbf16>
      %c0_130 = arith.constant 0 : index
      %c17_131 = arith.constant 17 : index
      %c0_132 = arith.constant 0 : index
      %135 = vector.load %arg10[%c0_130, %c17_131, %c0_132] : memref<20x18x128xbf16, #tpu.memory_space<vmem>>, vector<20x1x128xbf16>
      tpu.vector_store %arg10[%c0_130, %c17_131, %c0_132], %134 {strides = array<i32>} : memref<20x18x128xbf16, #tpu.memory_space<vmem>>, vector<20x1x128xbf16>,
      %c0_133 = arith.constant 0 : index
      %c0_134 = arith.constant 0 : index
      %c0_135 = arith.constant 0 : index
      %c0_136 = arith.constant 0 : index
      %136 = vector.load %arg2[%c0_133, %c0_134, %c0_135, %c0_136] : memref<1x16x16x128xf32, #tpu.memory_space<vmem>>, vector<1x16x16x128xf32>
      %137 = vector.shape_cast %136 : vector<1x16x16x128xf32> to vector<16x16x128xf32>
      %138 = arith.truncf %137 : vector<16x16x128xf32> to vector<16x16x128xbf16>
      %c2_137 = arith.constant 2 : index
      %c1_138 = arith.constant 1 : index
      %c0_139 = arith.constant 0 : index
      %139 = vector.load %arg10[%c2_137, %c1_138, %c0_139] : memref<20x18x128xbf16, #tpu.memory_space<vmem>>, vector<16x16x128xbf16>
      tpu.vector_store %arg10[%c2_137, %c1_138, %c0_139], %138 {strides = array<i32>} : memref<20x18x128xbf16, #tpu.memory_space<vmem>>, vector<16x16x128xbf16>,
    } else {
    }
    %c0_i32_1 = arith.constant 0 : i32
    %5 = arith.addi %1, %c0_i32_1 : i32
    %6 = arith.index_cast %5 : i32 to index
    %c0 = arith.constant 0 : index
    %c0_2 = arith.constant 0 : index
    %7 = vector.load %arg10[%6, %c0, %c0_2] : memref<20x18x128xbf16, #tpu.memory_space<vmem>>, vector<10x16x128xbf16>
    %8 = vector.shape_cast %7 : vector<10x16x128xbf16> to vector<160x128xbf16>
    %c0_3 = arith.constant 0 : index
    %c0_4 = arith.constant 0 : index
    %9 = vector.load %arg11[%c0_3, %c0_4] : memref<160x1152xbf16, #tpu.memory_space<vmem>>, vector<160x128xbf16>
    tpu.vector_store %arg11[%c0_3, %c0_4], %8 {strides = array<i32>} : memref<160x1152xbf16, #tpu.memory_space<vmem>>, vector<160x128xbf16>,
    %c0_i32_5 = arith.constant 0 : i32
    %10 = arith.addi %1, %c0_i32_5 : i32
    %11 = arith.index_cast %10 : i32 to index
    %c1 = arith.constant 1 : index
    %c0_6 = arith.constant 0 : index
    %12 = vector.load %arg10[%11, %c1, %c0_6] : memref<20x18x128xbf16, #tpu.memory_space<vmem>>, vector<10x16x128xbf16>
    %13 = vector.shape_cast %12 : vector<10x16x128xbf16> to vector<160x128xbf16>
    %c0_7 = arith.constant 0 : index
    %c128 = arith.constant 128 : index
    %14 = vector.load %arg11[%c0_7, %c128] : memref<160x1152xbf16, #tpu.memory_space<vmem>>, vector<160x128xbf16>
    tpu.vector_store %arg11[%c0_7, %c128], %13 {strides = array<i32>} : memref<160x1152xbf16, #tpu.memory_space<vmem>>, vector<160x128xbf16>,
    %c0_i32_8 = arith.constant 0 : i32
    %15 = arith.addi %1, %c0_i32_8 : i32
    %16 = arith.index_cast %15 : i32 to index
    %c2 = arith.constant 2 : index
    %c0_9 = arith.constant 0 : index
    %17 = vector.load %arg10[%16, %c2, %c0_9] : memref<20x18x128xbf16, #tpu.memory_space<vmem>>, vector<10x16x128xbf16>
    %18 = vector.shape_cast %17 : vector<10x16x128xbf16> to vector<160x128xbf16>
    %c0_10 = arith.constant 0 : index
    %c256 = arith.constant 256 : index
    %19 = vector.load %arg11[%c0_10, %c256] : memref<160x1152xbf16, #tpu.memory_space<vmem>>, vector<160x128xbf16>
    tpu.vector_store %arg11[%c0_10, %c256], %18 {strides = array<i32>} : memref<160x1152xbf16, #tpu.memory_space<vmem>>, vector<160x128xbf16>,
    %c1_i32 = arith.constant 1 : i32
    %20 = arith.addi %1, %c1_i32 : i32
    %21 = arith.index_cast %20 : i32 to index
    %c0_11 = arith.constant 0 : index
    %c0_12 = arith.constant 0 : index
    %22 = vector.load %arg10[%21, %c0_11, %c0_12] : memref<20x18x128xbf16, #tpu.memory_space<vmem>>, vector<10x16x128xbf16>
    %23 = vector.shape_cast %22 : vector<10x16x128xbf16> to vector<160x128xbf16>
    %c0_13 = arith.constant 0 : index
    %c384 = arith.constant 384 : index
    %24 = vector.load %arg11[%c0_13, %c384] : memref<160x1152xbf16, #tpu.memory_space<vmem>>, vector<160x128xbf16>
    tpu.vector_store %arg11[%c0_13, %c384], %23 {strides = array<i32>} : memref<160x1152xbf16, #tpu.memory_space<vmem>>, vector<160x128xbf16>,
    %c1_i32_14 = arith.constant 1 : i32
    %25 = arith.addi %1, %c1_i32_14 : i32
    %26 = arith.index_cast %25 : i32 to index
    %c1_15 = arith.constant 1 : index
    %c0_16 = arith.constant 0 : index
    %27 = vector.load %arg10[%26, %c1_15, %c0_16] : memref<20x18x128xbf16, #tpu.memory_space<vmem>>, vector<10x16x128xbf16>
    %28 = vector.shape_cast %27 : vector<10x16x128xbf16> to vector<160x128xbf16>
    %c0_17 = arith.constant 0 : index
    %c512 = arith.constant 512 : index
    %29 = vector.load %arg11[%c0_17, %c512] : memref<160x1152xbf16, #tpu.memory_space<vmem>>, vector<160x128xbf16>
    tpu.vector_store %arg11[%c0_17, %c512], %28 {strides = array<i32>} : memref<160x1152xbf16, #tpu.memory_space<vmem>>, vector<160x128xbf16>,
    %c1_i32_18 = arith.constant 1 : i32
    %30 = arith.addi %1, %c1_i32_18 : i32
    %31 = arith.index_cast %30 : i32 to index
    %c2_19 = arith.constant 2 : index
    %c0_20 = arith.constant 0 : index
    %32 = vector.load %arg10[%31, %c2_19, %c0_20] : memref<20x18x128xbf16, #tpu.memory_space<vmem>>, vector<10x16x128xbf16>
    %33 = vector.shape_cast %32 : vector<10x16x128xbf16> to vector<160x128xbf16>
    %c0_21 = arith.constant 0 : index
    %c640 = arith.constant 640 : index
    %34 = vector.load %arg11[%c0_21, %c640] : memref<160x1152xbf16, #tpu.memory_space<vmem>>, vector<160x128xbf16>
    tpu.vector_store %arg11[%c0_21, %c640], %33 {strides = array<i32>} : memref<160x1152xbf16, #tpu.memory_space<vmem>>, vector<160x128xbf16>,
    %c2_i32 = arith.constant 2 : i32
    %35 = arith.addi %1, %c2_i32 : i32
    %36 = arith.index_cast %35 : i32 to index
    %c0_22 = arith.constant 0 : index
    %c0_23 = arith.constant 0 : index
    %37 = vector.load %arg10[%36, %c0_22, %c0_23] : memref<20x18x128xbf16, #tpu.memory_space<vmem>>, vector<10x16x128xbf16>
    %38 = vector.shape_cast %37 : vector<10x16x128xbf16> to vector<160x128xbf16>
    %c0_24 = arith.constant 0 : index
    %c768 = arith.constant 768 : index
    %39 = vector.load %arg11[%c0_24, %c768] : memref<160x1152xbf16, #tpu.memory_space<vmem>>, vector<160x128xbf16>
    tpu.vector_store %arg11[%c0_24, %c768], %38 {strides = array<i32>} : memref<160x1152xbf16, #tpu.memory_space<vmem>>, vector<160x128xbf16>,
    %c2_i32_25 = arith.constant 2 : i32
    %40 = arith.addi %1, %c2_i32_25 : i32
    %41 = arith.index_cast %40 : i32 to index
    %c1_26 = arith.constant 1 : index
    %c0_27 = arith.constant 0 : index
    %42 = vector.load %arg10[%41, %c1_26, %c0_27] : memref<20x18x128xbf16, #tpu.memory_space<vmem>>, vector<10x16x128xbf16>
    %43 = vector.shape_cast %42 : vector<10x16x128xbf16> to vector<160x128xbf16>
    %c0_28 = arith.constant 0 : index
    %c896 = arith.constant 896 : index
    %44 = vector.load %arg11[%c0_28, %c896] : memref<160x1152xbf16, #tpu.memory_space<vmem>>, vector<160x128xbf16>
    tpu.vector_store %arg11[%c0_28, %c896], %43 {strides = array<i32>} : memref<160x1152xbf16, #tpu.memory_space<vmem>>, vector<160x128xbf16>,
    %c2_i32_29 = arith.constant 2 : i32
    %45 = arith.addi %1, %c2_i32_29 : i32
    %46 = arith.index_cast %45 : i32 to index
    %c2_30 = arith.constant 2 : index
    %c0_31 = arith.constant 0 : index
    %47 = vector.load %arg10[%46, %c2_30, %c0_31] : memref<20x18x128xbf16, #tpu.memory_space<vmem>>, vector<10x16x128xbf16>
    %48 = vector.shape_cast %47 : vector<10x16x128xbf16> to vector<160x128xbf16>
    %c0_32 = arith.constant 0 : index
    %c1024 = arith.constant 1024 : index
    %49 = vector.load %arg11[%c0_32, %c1024] : memref<160x1152xbf16, #tpu.memory_space<vmem>>, vector<160x128xbf16>
    tpu.vector_store %arg11[%c0_32, %c1024], %48 {strides = array<i32>} : memref<160x1152xbf16, #tpu.memory_space<vmem>>, vector<160x128xbf16>,
    %c0_33 = arith.constant 0 : index
    %c0_34 = arith.constant 0 : index
    %50 = vector.load %arg11[%c0_33, %c0_34] : memref<160x1152xbf16, #tpu.memory_space<vmem>>, vector<160x1152xbf16>
    %c0_35 = arith.constant 0 : index
    %c0_36 = arith.constant 0 : index
    %51 = vector.load %arg3[%c0_35, %c0_36] : memref<1152x128xbf16, #tpu.memory_space<vmem>>, vector<1152x128xbf16>
    %cst = arith.constant dense<0.000000e+00> : vector<160x128xf32>
    %52 = tpu.matmul %50, %51, %cst {dimension_numbers = #tpu.dot_dimension_numbers<[1], [0], [0], [1], [0, 0, 1, 1], [], []>} : vector<160x1152xbf16>, vector<1152x128xbf16>, vector<160x128xf32> -> vector<160x128xf32>
    %c0_37 = arith.constant 0 : index
    %c0_38 = arith.constant 0 : index
    %53 = vector.load %arg4[%c0_37, %c0_38] : memref<1x128xf32, #tpu.memory_space<vmem>>, vector<1x128xf32>
    %54 = vector.broadcast %53 : vector<1x128xf32> to vector<160x128xf32>
    %55 = arith.mulf %52, %54 : vector<160x128xf32>
    %c0_39 = arith.constant 0 : index
    %c0_40 = arith.constant 0 : index
    %56 = vector.load %arg5[%c0_39, %c0_40] : memref<1x128xf32, #tpu.memory_space<vmem>>, vector<1x128xf32>
    %57 = vector.broadcast %56 : vector<1x128xf32> to vector<160x128xf32>
    %58 = arith.addf %55, %57 : vector<160x128xf32>
    %59 = arith.negf %58 : vector<160x128xf32>
    %60 = math.exp %59 : vector<160x128xf32>
    %cst_41 = arith.constant 1.000000e+00 : f32
    %61 = vector.broadcast %cst_41 : f32 to vector<160x128xf32>
    %62 = arith.addf %61, %60 : vector<160x128xf32>
    %63 = arith.divf %61, %62 : vector<160x128xf32>
    %64 = arith.mulf %58, %63 : vector<160x128xf32>
    %cst_42 = arith.constant 0.000000e+00 : bf16
    %65 = vector.broadcast %cst_42 : bf16 to vector<10x1x128xbf16>
    %c0_43 = arith.constant 0 : index
    %c0_44 = arith.constant 0 : index
    %c0_45 = arith.constant 0 : index
    %66 = vector.load %arg12[%c0_43, %c0_44, %c0_45] : memref<10x18x128xbf16, #tpu.memory_space<vmem>>, vector<10x1x128xbf16>
    tpu.vector_store %arg12[%c0_43, %c0_44, %c0_45], %65 {strides = array<i32>} : memref<10x18x128xbf16, #tpu.memory_space<vmem>>, vector<10x1x128xbf16>,
    %cst_46 = arith.constant 0.000000e+00 : bf16
    %67 = vector.broadcast %cst_46 : bf16 to vector<10x1x128xbf16>
    %c0_47 = arith.constant 0 : index
    %c17 = arith.constant 17 : index
    %c0_48 = arith.constant 0 : index
    %68 = vector.load %arg12[%c0_47, %c17, %c0_48] : memref<10x18x128xbf16, #tpu.memory_space<vmem>>, vector<10x1x128xbf16>
    tpu.vector_store %arg12[%c0_47, %c17, %c0_48], %67 {strides = array<i32>} : memref<10x18x128xbf16, #tpu.memory_space<vmem>>, vector<10x1x128xbf16>,
    %69 = vector.shape_cast %64 : vector<160x128xf32> to vector<10x16x128xf32>
    %70 = arith.truncf %69 : vector<10x16x128xf32> to vector<10x16x128xbf16>
    %c0_49 = arith.constant 0 : index
    %c1_50 = arith.constant 1 : index
    %c0_51 = arith.constant 0 : index
    %71 = vector.load %arg12[%c0_49, %c1_50, %c0_51] : memref<10x18x128xbf16, #tpu.memory_space<vmem>>, vector<10x16x128xbf16>
    tpu.vector_store %arg12[%c0_49, %c1_50, %c0_51], %70 {strides = array<i32>} : memref<10x18x128xbf16, #tpu.memory_space<vmem>>, vector<10x16x128xbf16>,
    %c0_i32_52 = arith.constant 0 : i32
    %72 = arith.cmpi eq, %arg1, %c0_i32_52 : i32
    %73 = arith.extui %72 : i1 to i32
    %c0_i32_53 = arith.constant 0 : i32
    %74 = arith.cmpi ne, %73, %c0_i32_53 : i32
    scf.if %74 {
      %cst_118 = arith.constant 0.000000e+00 : bf16
      %128 = vector.broadcast %cst_118 : bf16 to vector<1x18x128xbf16>
      %c0_119 = arith.constant 0 : index
      %c0_120 = arith.constant 0 : index
      %c0_121 = arith.constant 0 : index
      %129 = vector.load %arg12[%c0_119, %c0_120, %c0_121] : memref<10x18x128xbf16, #tpu.memory_space<vmem>>, vector<1x18x128xbf16>
      tpu.vector_store %arg12[%c0_119, %c0_120, %c0_121], %128 {strides = array<i32>} : memref<10x18x128xbf16, #tpu.memory_space<vmem>>, vector<1x18x128xbf16>,
    } else {
    }
    %c1_i32_54 = arith.constant 1 : i32
    %75 = arith.cmpi eq, %arg1, %c1_i32_54 : i32
    %76 = arith.extui %75 : i1 to i32
    %c0_i32_55 = arith.constant 0 : i32
    %77 = arith.cmpi ne, %76, %c0_i32_55 : i32
    scf.if %77 {
      %cst_118 = arith.constant 0.000000e+00 : bf16
      %128 = vector.broadcast %cst_118 : bf16 to vector<1x18x128xbf16>
      %c9 = arith.constant 9 : index
      %c0_119 = arith.constant 0 : index
      %c0_120 = arith.constant 0 : index
      %129 = vector.load %arg12[%c9, %c0_119, %c0_120] : memref<10x18x128xbf16, #tpu.memory_space<vmem>>, vector<1x18x128xbf16>
      tpu.vector_store %arg12[%c9, %c0_119, %c0_120], %128 {strides = array<i32>} : memref<10x18x128xbf16, #tpu.memory_space<vmem>>, vector<1x18x128xbf16>,
    } else {
    }
    %c0_56 = arith.constant 0 : index
    %c0_57 = arith.constant 0 : index
    %c0_58 = arith.constant 0 : index
    %78 = vector.load %arg12[%c0_56, %c0_57, %c0_58] : memref<10x18x128xbf16, #tpu.memory_space<vmem>>, vector<8x16x128xbf16>
    %79 = vector.shape_cast %78 : vector<8x16x128xbf16> to vector<128x128xbf16>
    %c0_59 = arith.constant 0 : index
    %c0_60 = arith.constant 0 : index
    %80 = vector.load %arg11[%c0_59, %c0_60] : memref<160x1152xbf16, #tpu.memory_space<vmem>>, vector<128x128xbf16>
    tpu.vector_store %arg11[%c0_59, %c0_60], %79 {strides = array<i32>} : memref<160x1152xbf16, #tpu.memory_space<vmem>>, vector<128x128xbf16>,
    %c0_61 = arith.constant 0 : index
    %c1_62 = arith.constant 1 : index
    %c0_63 = arith.constant 0 : index
    %81 = vector.load %arg12[%c0_61, %c1_62, %c0_63] : memref<10x18x128xbf16, #tpu.memory_space<vmem>>, vector<8x16x128xbf16>
    %82 = vector.shape_cast %81 : vector<8x16x128xbf16> to vector<128x128xbf16>
    %c0_64 = arith.constant 0 : index
    %c128_65 = arith.constant 128 : index
    %83 = vector.load %arg11[%c0_64, %c128_65] : memref<160x1152xbf16, #tpu.memory_space<vmem>>, vector<128x128xbf16>
    tpu.vector_store %arg11[%c0_64, %c128_65], %82 {strides = array<i32>} : memref<160x1152xbf16, #tpu.memory_space<vmem>>, vector<128x128xbf16>,
    %c0_66 = arith.constant 0 : index
    %c2_67 = arith.constant 2 : index
    %c0_68 = arith.constant 0 : index
    %84 = vector.load %arg12[%c0_66, %c2_67, %c0_68] : memref<10x18x128xbf16, #tpu.memory_space<vmem>>, vector<8x16x128xbf16>
    %85 = vector.shape_cast %84 : vector<8x16x128xbf16> to vector<128x128xbf16>
    %c0_69 = arith.constant 0 : index
    %c256_70 = arith.constant 256 : index
    %86 = vector.load %arg11[%c0_69, %c256_70] : memref<160x1152xbf16, #tpu.memory_space<vmem>>, vector<128x128xbf16>
    tpu.vector_store %arg11[%c0_69, %c256_70], %85 {strides = array<i32>} : memref<160x1152xbf16, #tpu.memory_space<vmem>>, vector<128x128xbf16>,
    %c1_71 = arith.constant 1 : index
    %c0_72 = arith.constant 0 : index
    %c0_73 = arith.constant 0 : index
    %87 = vector.load %arg12[%c1_71, %c0_72, %c0_73] : memref<10x18x128xbf16, #tpu.memory_space<vmem>>, vector<8x16x128xbf16>
    %88 = vector.shape_cast %87 : vector<8x16x128xbf16> to vector<128x128xbf16>
    %c0_74 = arith.constant 0 : index
    %c384_75 = arith.constant 384 : index
    %89 = vector.load %arg11[%c0_74, %c384_75] : memref<160x1152xbf16, #tpu.memory_space<vmem>>, vector<128x128xbf16>
    tpu.vector_store %arg11[%c0_74, %c384_75], %88 {strides = array<i32>} : memref<160x1152xbf16, #tpu.memory_space<vmem>>, vector<128x128xbf16>,
    %c1_76 = arith.constant 1 : index
    %c1_77 = arith.constant 1 : index
    %c0_78 = arith.constant 0 : index
    %90 = vector.load %arg12[%c1_76, %c1_77, %c0_78] : memref<10x18x128xbf16, #tpu.memory_space<vmem>>, vector<8x16x128xbf16>
    %91 = vector.shape_cast %90 : vector<8x16x128xbf16> to vector<128x128xbf16>
    %c0_79 = arith.constant 0 : index
    %c512_80 = arith.constant 512 : index
    %92 = vector.load %arg11[%c0_79, %c512_80] : memref<160x1152xbf16, #tpu.memory_space<vmem>>, vector<128x128xbf16>
    tpu.vector_store %arg11[%c0_79, %c512_80], %91 {strides = array<i32>} : memref<160x1152xbf16, #tpu.memory_space<vmem>>, vector<128x128xbf16>,
    %c1_81 = arith.constant 1 : index
    %c2_82 = arith.constant 2 : index
    %c0_83 = arith.constant 0 : index
    %93 = vector.load %arg12[%c1_81, %c2_82, %c0_83] : memref<10x18x128xbf16, #tpu.memory_space<vmem>>, vector<8x16x128xbf16>
    %94 = vector.shape_cast %93 : vector<8x16x128xbf16> to vector<128x128xbf16>
    %c0_84 = arith.constant 0 : index
    %c640_85 = arith.constant 640 : index
    %95 = vector.load %arg11[%c0_84, %c640_85] : memref<160x1152xbf16, #tpu.memory_space<vmem>>, vector<128x128xbf16>
    tpu.vector_store %arg11[%c0_84, %c640_85], %94 {strides = array<i32>} : memref<160x1152xbf16, #tpu.memory_space<vmem>>, vector<128x128xbf16>,
    %c2_86 = arith.constant 2 : index
    %c0_87 = arith.constant 0 : index
    %c0_88 = arith.constant 0 : index
    %96 = vector.load %arg12[%c2_86, %c0_87, %c0_88] : memref<10x18x128xbf16, #tpu.memory_space<vmem>>, vector<8x16x128xbf16>
    %97 = vector.shape_cast %96 : vector<8x16x128xbf16> to vector<128x128xbf16>
    %c0_89 = arith.constant 0 : index
    %c768_90 = arith.constant 768 : index
    %98 = vector.load %arg11[%c0_89, %c768_90] : memref<160x1152xbf16, #tpu.memory_space<vmem>>, vector<128x128xbf16>
    tpu.vector_store %arg11[%c0_89, %c768_90], %97 {strides = array<i32>} : memref<160x1152xbf16, #tpu.memory_space<vmem>>, vector<128x128xbf16>,
    %c2_91 = arith.constant 2 : index
    %c1_92 = arith.constant 1 : index
    %c0_93 = arith.constant 0 : index
    %99 = vector.load %arg12[%c2_91, %c1_92, %c0_93] : memref<10x18x128xbf16, #tpu.memory_space<vmem>>, vector<8x16x128xbf16>
    %100 = vector.shape_cast %99 : vector<8x16x128xbf16> to vector<128x128xbf16>
    %c0_94 = arith.constant 0 : index
    %c896_95 = arith.constant 896 : index
    %101 = vector.load %arg11[%c0_94, %c896_95] : memref<160x1152xbf16, #tpu.memory_space<vmem>>, vector<128x128xbf16>
    tpu.vector_store %arg11[%c0_94, %c896_95], %100 {strides = array<i32>} : memref<160x1152xbf16, #tpu.memory_space<vmem>>, vector<128x128xbf16>,
    %c2_96 = arith.constant 2 : index
    %c2_97 = arith.constant 2 : index
    %c0_98 = arith.constant 0 : index
    %102 = vector.load %arg12[%c2_96, %c2_97, %c0_98] : memref<10x18x128xbf16, #tpu.memory_space<vmem>>, vector<8x16x128xbf16>
    %103 = vector.shape_cast %102 : vector<8x16x128xbf16> to vector<128x128xbf16>
    %c0_99 = arith.constant 0 : index
    %c1024_100 = arith.constant 1024 : index
    %104 = vector.load %arg11[%c0_99, %c1024_100] : memref<160x1152xbf16, #tpu.memory_space<vmem>>, vector<128x128xbf16>
    tpu.vector_store %arg11[%c0_99, %c1024_100], %103 {strides = array<i32>} : memref<160x1152xbf16, #tpu.memory_space<vmem>>, vector<128x128xbf16>,
    %c0_101 = arith.constant 0 : index
    %c0_102 = arith.constant 0 : index
    %105 = vector.load %arg11[%c0_101, %c0_102] : memref<160x1152xbf16, #tpu.memory_space<vmem>>, vector<128x1152xbf16>
    %c0_103 = arith.constant 0 : index
    %c0_104 = arith.constant 0 : index
    %106 = vector.load %arg6[%c0_103, %c0_104] : memref<1152x128xbf16, #tpu.memory_space<vmem>>, vector<1152x128xbf16>
    %cst_105 = arith.constant dense<0.000000e+00> : vector<128x128xf32>
    %107 = tpu.matmul %105, %106, %cst_105 {dimension_numbers = #tpu.dot_dimension_numbers<[1], [0], [0], [1], [0, 0, 1, 1], [], []>} : vector<128x1152xbf16>, vector<1152x128xbf16>, vector<128x128xf32> -> vector<128x128xf32>
    %c0_106 = arith.constant 0 : index
    %c0_107 = arith.constant 0 : index
    %108 = vector.load %arg7[%c0_106, %c0_107] : memref<1x128xf32, #tpu.memory_space<vmem>>, vector<1x128xf32>
    %109 = vector.broadcast %108 : vector<1x128xf32> to vector<128x128xf32>
    %110 = arith.mulf %107, %109 : vector<128x128xf32>
    %c0_108 = arith.constant 0 : index
    %c0_109 = arith.constant 0 : index
    %111 = vector.load %arg8[%c0_108, %c0_109] : memref<1x128xf32, #tpu.memory_space<vmem>>, vector<1x128xf32>
    %112 = vector.broadcast %111 : vector<1x128xf32> to vector<128x128xf32>
    %113 = arith.addf %110, %112 : vector<128x128xf32>
    %114 = arith.negf %113 : vector<128x128xf32>
    %115 = math.exp %114 : vector<128x128xf32>
    %cst_110 = arith.constant 1.000000e+00 : f32
    %116 = vector.broadcast %cst_110 : f32 to vector<128x128xf32>
    %117 = arith.addf %116, %115 : vector<128x128xf32>
    %118 = arith.divf %116, %117 : vector<128x128xf32>
    %119 = arith.mulf %113, %118 : vector<128x128xf32>
    %120 = vector.shape_cast %119 : vector<128x128xf32> to vector<8x16x128xf32>
    %c0_111 = arith.constant 0 : index
    %121 = arith.index_cast %1 : i32 to index
    %c0_112 = arith.constant 0 : index
    %c0_113 = arith.constant 0 : index
    %122 = vector.load %arg2[%c0_111, %121, %c0_112, %c0_113] : memref<1x16x16x128xf32, #tpu.memory_space<vmem>>, vector<1x8x16x128xf32>
    %123 = vector.shape_cast %122 : vector<1x8x16x128xf32> to vector<8x16x128xf32>
    %124 = arith.addf %120, %123 : vector<8x16x128xf32>
    %c0_114 = arith.constant 0 : index
    %c0_115 = arith.constant 0 : index
    %c0_116 = arith.constant 0 : index
    %c0_117 = arith.constant 0 : index
    %125 = vector.load %arg9[%c0_114, %c0_115, %c0_116, %c0_117] : memref<1x8x16x128xf32, #tpu.memory_space<vmem>>, vector<1x8x16x128xf32>
    %126 = vector.shape_cast %125 : vector<1x8x16x128xf32> to vector<8x16x128xf32>
    %127 = vector.shape_cast %124 : vector<8x16x128xf32> to vector<1x8x16x128xf32>
    tpu.vector_store %arg9[%c0_114, %c0_115, %c0_116, %c0_117], %127 {strides = array<i32>} : memref<1x8x16x128xf32, #tpu.memory_space<vmem>>, vector<1x8x16x128xf32>,
    return
  }
  func.func @transform_0(%arg0: i32, %arg1: i32) -> (i32, i32, i32, i32) {
    %c0_i32 = arith.constant 0 : i32
    %c0_i32_0 = arith.constant 0 : i32
    %c0_i32_1 = arith.constant 0 : i32
    %c0_i32_2 = arith.constant 0 : i32
    return %arg0, %c0_i32, %c0_i32_0, %c0_i32_1 : i32, i32, i32, i32
  }
  func.func @transform_1(%arg0: i32, %arg1: i32) -> (i32, i32) {
    %c0_i32 = arith.constant 0 : i32
    %c0_i32_0 = arith.constant 0 : i32
    %c0_i32_1 = arith.constant 0 : i32
    return %c0_i32, %c0_i32_0 : i32, i32
  }
  func.func @transform_2(%arg0: i32, %arg1: i32) -> (i32, i32) {
    %c0_i32 = arith.constant 0 : i32
    %c0_i32_0 = arith.constant 0 : i32
    %c0_i32_1 = arith.constant 0 : i32
    return %c0_i32, %c0_i32_0 : i32, i32
  }
  func.func @transform_3(%arg0: i32, %arg1: i32) -> (i32, i32) {
    %c0_i32 = arith.constant 0 : i32
    %c0_i32_0 = arith.constant 0 : i32
    %c0_i32_1 = arith.constant 0 : i32
    return %c0_i32, %c0_i32_0 : i32, i32
  }
  func.func @transform_4(%arg0: i32, %arg1: i32) -> (i32, i32) {
    %c0_i32 = arith.constant 0 : i32
    %c0_i32_0 = arith.constant 0 : i32
    %c0_i32_1 = arith.constant 0 : i32
    return %c0_i32, %c0_i32_0 : i32, i32
  }
  func.func @transform_5(%arg0: i32, %arg1: i32) -> (i32, i32) {
    %c0_i32 = arith.constant 0 : i32
    %c0_i32_0 = arith.constant 0 : i32
    %c0_i32_1 = arith.constant 0 : i32
    return %c0_i32, %c0_i32_0 : i32, i32
  }
  func.func @transform_6(%arg0: i32, %arg1: i32) -> (i32, i32) {
    %c0_i32 = arith.constant 0 : i32
    %c0_i32_0 = arith.constant 0 : i32
    %c0_i32_1 = arith.constant 0 : i32
    return %c0_i32, %c0_i32_0 : i32, i32
  }
  func.func @transform_7(%arg0: i32, %arg1: i32) -> (i32, i32, i32, i32) {
    %c0_i32 = arith.constant 0 : i32
    %c0_i32_0 = arith.constant 0 : i32
    %c0_i32_1 = arith.constant 0 : i32
    return %arg0, %arg1, %c0_i32, %c0_i32_0 : i32, i32, i32, i32
  }
}

</mosaic_0001>

<bundles_post_ra>
// kernel: tpu_custom_call.1
= control target key start
LH: loop header
LB: loop body
LE: loop exit
PB: predicated region body
PF: predicated region fallthrough
CT: control target
= control target key end

     0   :  { %s11574_s0 = inlined_call_operand.hbm [shape: f32[2,16,16,128], index: 0, kind: input, shape index: {}]   ;;  %s11575_s1 = inlined_call_operand.hbm [shape: bf16[1152,128], index: 1, kind: input, shape index: {}]   ;;  %s11576_s2 = inlined_call_operand.vmem [shape: f32[1,128], index: 2, kind: input, shape index: {}]   ;;  %s11577_s3 = inlined_call_operand.vmem [shape: f32[1,128], index: 3, kind: input, shape index: {}]   ;;  %s11578_s4 = inlined_call_operand.hbm [shape: bf16[1152,128], index: 4, kind: input, shape index: {}]   ;;  %s11579_s5 = inlined_call_operand.vmem [shape: f32[1,128], index: 5, kind: input, shape index: {}]   ;;  %s11580_s6 = inlined_call_operand.vmem [shape: f32[1,128], index: 6, kind: input, shape index: {}]   ;;  %s11581_s7 = inlined_call_operand.hbm [shape: f32[2,16,16,128], index: 7, kind: output, shape index: {}]  }
   0x1   :  { %11594 = sst [smem:[#allocation21_spill]] %s11575_s1 }
   0x2   :  { %11595 = sst [smem:[#allocation22_spill]] %s11578_s4 }
   0x3   :  { %11596 = sst [smem:[#allocation23_spill]] %s11580_s6 }
   0x4   :  { %11597 = sst [smem:[#allocation24_spill]] %s11581_s7 }
   0x5   :  { %12 = vsyncpa [#allocation6], 0 }
   0x6   :  { %14 = vsyncpa [#allocation6 + $0x1], 0 }
   0x7   :  { %15 = vsyncpa [#allocation9], 0 }
   0x8   :  { %16 = vsyncpa [#allocation7], 0 }
   0x9   :  { %18 = vsyncpa [#allocation7 + $0x1], 0  ;;  %s9672_s24 = smov 0   ;;  %s9674_s25 = smov 0  }
   0xa   :  { %s9676_s26 = smov 0   ;;  %s9678_s27 = smov 0  }
   0xb   :  { %s9680_s28 = smov 0   ;;  %s9682_s29 = smov 0  }
   0xc   :  { %s9684_s30 = smov 0   ;;  %s9686_s8 = smov 0  }
   0xd   :  { %s9688_s9 = smov 0   ;;  %s9690_s10 = smov 0  }
   0xe   :  { %s9692_s11 = smov 0  }
   0xf LB: > { %11598 = sst [smem:[#allocation15_spill]] %s9577_s24  ;;  %s7569_s12 = sadd.s32 4294967295, %s9617_s11   ;;  %s9617_s11 = sphi %s9692_s11, %s24_s11   ;;  %s9613_s10 = sphi %s9690_s10, %s11655_s10   ;;  %s9609_s9 = sphi %s9688_s9, %s11647_s9   ;;  %s9605_s8 = sphi %s9686_s8, %s11654_s8   ;;  %s9601_s30 = sphi %s9684_s30, %s11646_s30   ;;  %s9597_s29 = sphi %s9682_s29, %s11653_s29   ;;  %s9593_s28 = sphi %s9680_s28, %s11652_s28   ;;  %s9589_s27 = sphi %s9678_s27, %s11651_s27   ;;  %s9585_s26 = sphi %s9676_s26, %s11650_s26   ;;  %s9581_s25 = sphi %s9674_s25, %s11649_s25   ;;  %s9577_s24 = sphi %s9672_s24, %s11648_s24  }
  0x10   : > { %11599 = sst [smem:[#allocation16_spill]] %s9605_s8  ;;  %s7570_s13 = sadd.s32 4294967294, %s9617_s11  }
  0x11   : > { %11600 = sst [smem:[#allocation17_spill]] %s9609_s9  ;;  %p56_p0 = scmp.ne.s32.totalorder %s9593_s28, %s9589_s27 }
  0x12   : > { %p9728_p1 = scmp.eq.s32.totalorder %s7569_s12, 0  ;;  %p207_p2 = scmp.ne.s32.totalorder %s9585_s26, %s9581_s25 }
  0x13   : > { %p208_p4 = scmp.eq.s32.totalorder %s7569_s12, 3  ;;  %p213_p5 = scmp.ne.s32.totalorder %s9581_s25, %s9577_s24 }
  0x14   : > { %s11601_s14 = scalar_select %p9728_p1, 1, 0 }
  0x15   : > { %p9737_p3 = por %p9728_p1, %p56_p0  ;;  %p214_p6 = scmp.eq.s32.totalorder %s7570_s13, 3 }
  0x16   : > { %p9743_p7 = por %p208_p4, %p207_p2  ;;  %p7571_p8 = scmp.ge.s32.totalorder %s9617_s11, 1 }
  0x17   : > { %s11602_s16 = scalar_select %p9737_p3, 1, 0 }
  0x18   : > { %s11603_s17 = scalar_select %p9743_p7, 1, 0 }
  0x19   : > { %p9748_p9 = por %p214_p6, %p213_p5  ;;  %p221_p10 = scmp.lt.s32.totalorder %s9617_s11, 5 }
  0x1a   : > { %11604 = sst [smem:[#allocation18_spill]] %s11603_s17  ;;  %s9619_s20 = smov [#allocation8]  }
  0x1b   : > { %s11605_s18 = scalar_select %p9748_p9, 1, 0 }
  0x1c   : > { %p9753_p11 = pnand %p7571_p8, %p221_p10  ;;  %s233_s21 = sshll.u32 %s9619_s20, 4  ;;  %s234_s21 = int_to_ptr.vmem [resolvable:$true] %s233_s21 }
  0x1d   : > { %11606 = sst [smem:[#allocation19_spill]] %s11605_s18  ;;  %s9620_s23 = smov [#allocation10]  }
  0x1e   : > { %s11607_s19 = scalar_select %p9753_p11, 1, 0 }
  0x1f   : > { %p8943_p12 = pneg %p9753_p11  ;;  %s252_s27 = sshll.u32 %s9620_s23, 4  ;;  %s9765_s27 = int_to_ptr.vmem [resolvable:$true] %s252_s27 }
  0x20   : > { %s11609_s1 = sld [smem:[#allocation21_spill]] }
  0x21   : > { %p9761_p13 = pnand %p8943_p12, %p9728_p1 }
  0x23   : > { %p9407_p2 = pneg %p9761_p13 }
  0x26   : > { %s9405_s15 = scalar_lea.hbm %s11609_s1, 9216 }
  0x27   : > { %p9406_p0 = scmp.ne.s32.totalorder %s11609_s1, %s9405_s15  ;;  %p9412_p6 = scmp.lt.u32.totalorder %s9405_s15, %s11609_s1 }
  0x29   : > { %p9408_p4 = pnand %p9407_p2, %p9406_p0 }
  0x2b   : > { %p9409_p5 = pneg %p9408_p4 }
  0x2d   : > { %p9414_p8 = pnand %p9412_p6, %p9409_p5 }
  0x2f   : > { %9417 = shalt.err (!%p9414_p8)
}
  0x30   : > { %s9418_s23 = scalar_lea.vmem %s234_s21, 9216  ;;  %p9426_p7 = scmp.lt.s32.totalorder %s234_s21, %s234_s21 }
  0x31   : > { %p9419_p10 = scmp.ne.s32.totalorder %s234_s21, %s9418_s23  ;;  %p9427_p1 = scmp.lt.s32.totalorder %s9418_s23, %s9418_s23 }
  0x33   : > { %p9421_p12 = pnand %p9419_p10, %p9407_p2  ;;  %p9428_p3 = por %p9427_p1, %p9426_p7 }
  0x35   : > { %p9422_p9 = pneg %p9421_p12 }
  0x37   : > { %p9429_p11 = pnand %p9428_p3, %p9422_p9 }
  0x39   : > { %9432 = shalt.err (!%p9429_p11)
}
  0x3a   : > { %s9621_s18 = smov 64   ;;  %s9622_s12 = smov 4  }
  0x3b   : > { %8946 = dma.hbm_to_vmem [thread:$0]  (!%p9761_p13), %s11609_s1, 9216, %s234_s21, [#allocation9], %s9621_s18, %s9621_s18, %s9622_s12  }
  0x3c   : > { %s11610_s4 = sld [smem:[#allocation22_spill]] }
  0x42   : > { %s9433_s20 = scalar_lea.hbm %s11610_s4, 9216 }
  0x43   : > { %p9434_p0 = scmp.ne.s32.totalorder %s11610_s4, %s9433_s20  ;;  %p9440_p7 = scmp.lt.u32.totalorder %s9433_s20, %s11610_s4 }
  0x45   : > { %p9436_p1 = pnand %p9434_p0, %p9407_p2 }
  0x47   : > { %p9437_p3 = pneg %p9436_p1 }
  0x49   : > { %p9442_p9 = pnand %p9440_p7, %p9437_p3 }
  0x4b   : > { %9445 = shalt.err (!%p9442_p9)
}
  0x4c   : > { %s9446_s21 = scalar_lea.vmem %s9765_s27, 9216  ;;  %p9454_p6 = scmp.lt.s32.totalorder %s9765_s27, %s9765_s27 }
  0x4d   : > { %p9447_p11 = scmp.ne.s32.totalorder %s9765_s27, %s9446_s21  ;;  %p9455_p8 = scmp.lt.s32.totalorder %s9446_s21, %s9446_s21 }
  0x4f   : > { %p9449_p4 = pnand %p9447_p11, %p9407_p2  ;;  %p9456_p10 = por %p9455_p8, %p9454_p6 }
  0x51   : > { %p9450_p5 = pneg %p9449_p4 }
  0x53   : > { %p9457_p12 = pnand %p9456_p10, %p9450_p5 }
  0x55   : > { %9460 = shalt.err (!%p9457_p12)
}
  0x56   : > { %8949 = dma.hbm_to_vmem [thread:$0]  (!%p9761_p13), %s11610_s4, 9216, %s9765_s27, [#allocation9], %s9621_s18, %s9621_s18, %s9622_s12  }
  0x57   : > { %s33_s17 = sadd.s32 1, %s9609_s9  ;;  %s36_s7 = sadd.s32 1, %s9613_s10 }
  0x58   : > { %p34_p2 = scmp.ge.s32.totalorder %s33_s17, 2  ;;  %s43_s22 = sadd.s32 1, %s9597_s29 }
  0x59   : > { %p50_p0 = scmp.ne.s32.totalorder %s9597_s29, %s9593_s28  ;;  %p51_p1 = scmp.eq.s32.totalorder %s9617_s11, 0 }
  0x5a   : > { %s11657_s17 = smov (%p34_p2, %s33_s17), 0  ;;  %s11659_s7 = smov (!%p34_p2, %s36_s7), %s9613_s10 }
  0x5b   : > { %11611 = sst [smem:[#allocation20_spill]] %s11657_s17  ;;  %p9823_p3 = por %p51_p1, %p50_p0 }
  0x5c   : > { %s193_s15 = ssub.s32 %s9609_s9, %s11657_s17  ;;  %p38_p13 = scmp.ge.s32.totalorder %s11659_s7, 2 }
  0x5d   : > { %p8960_p7 = scmp.lt.s32.totalorder %s9617_s11, 4  ;;  %s272_s27 = sand.u32 1, %s9597_s29  }
  0x5e   : > { %s8213_s18 = sshll.u32 %s9613_s10, 12  ;;  %s11661_s7 = smov (%p38_p13, %s11659_s7), 0 }
  0x5f   : > { %s7575_s12 = sshll.u32 %s272_s27, 8  ;;  %s40_s13 = ssub.s32 %s9613_s10, %s11661_s7 }
  0x60   : > { %p41_p9 = scmp.eq.s32.totalorder %s40_s13, 0  ;;  %s194_s20 = sor.u32 %s193_s15, %s40_s13 }
  0x61   : > { %p195_p11 = scmp.eq.s32.totalorder %s194_s20, 0  ;;  %s9839_s6 = scalar_lea.hbm %s11574_s0, %s8213_s18 }
  0x62   : > { %s9842_s8 = scalar_select %p41_p9, %s9597_s29, %s43_s22  }
  0x63   : > { %s11613_s1 = sadd.s32 1, %s9585_s26  ;;  %s276_s17 = scalar_lea.vmem [#allocation5], %s7575_s12 }
  0x64   : > { %s9847_s4 = scalar_select %p195_p11, %s9585_s26, %s11613_s1  }
  0x65   : > { %s283_s9 = sshll.u32 %s276_s17, 4  ;;  %p9853_p4 = pnand %p8960_p7, %p9823_p3  ;;  %s9857_s9 = int_to_ptr.vmem [resolvable:$true] %s283_s9 }
  0x66   : > { %s9859_s18 = scalar_lea.sflag [#allocation6], %s272_s27  ;;  %s9461_s22 = scalar_lea.hbm %s9839_s6, 4096 }
  0x67   : > { %p9462_p5 = scmp.ne.s32.totalorder %s9839_s6, %s9461_s22  ;;  %p9463_p6 = pneg %p9853_p4 }
  0x68   : > { %s9466_s24 = scalar_lea.hbm %s11574_s0, 8192  ;;  %p9467_p12 = scmp.lt.u32.totalorder %s9839_s6, %s11574_s0 }
  0x69   : > { %p9464_p8 = pnand %p9463_p6, %p9462_p5  ;;  %p9468_p2 = scmp.lt.u32.totalorder %s9466_s24, %s9461_s22 }
  0x6a   : > { %p9470_p1 = scmp.lt.u32.totalorder %s9461_s22, %s9839_s6 }
  0x6b   : > { %p9465_p10 = pneg %p9464_p8  ;;  %p9469_p0 = por %p9468_p2, %p9467_p12 }
  0x6d   : > { %p9471_p3 = por %p9470_p1, %p9469_p0 }
  0x6f   : > { %p9472_p13 = pnand %p9471_p3, %p9465_p10 }
  0x71   : > { %9475 = shalt.err (!%p9472_p13)
}
  0x72   : > { %s9476_s27 = scalar_lea.vmem %s9857_s9, 4096  ;;  %s9623_s20 = smov [#allocation5]  }
  0x73   : > { %p9477_p7 = scmp.ne.s32.totalorder %s9857_s9, %s9476_s27  ;;  %s9481_s23 = sshll.u32 %s9623_s20, 4  ;;  %s9482_s23 = int_to_ptr.vmem [resolvable:$false] %s9481_s23 }
  0x74   : > { %s9483_s21 = scalar_lea.vmem %s9482_s23, 8192  ;;  %p9484_p5 = scmp.lt.s32.totalorder %s9857_s9, %s9482_s23 }
  0x75   : > { %p9479_p9 = pnand %p9477_p7, %p9463_p6  ;;  %p9485_p8 = scmp.lt.s32.totalorder %s9483_s21, %s9476_s27 }
  0x77   : > { %p9480_p11 = pneg %p9479_p9  ;;  %p9486_p12 = por %p9485_p8, %p9484_p5 }
  0x79   : > { %p9487_p2 = pnand %p9486_p12, %p9480_p11 }
  0x7b   : > { %9490 = shalt.err (!%p9487_p2)
}
  0x7c   : > { %s9624_s22 = smov 128   ;;  %s9625_s1 = smov 8  }
  0x7d   : > { %8953 = dma.hbm_to_vmem [thread:$0]  (!%p9853_p4), %s9839_s6, 4096, %s9857_s9, %s9859_s18, %s9624_s22, %s9624_s22, %s9625_s1  }
  0x7e   : > { %p11615_p6 = scmp.ne.s32.totalorder %s11607_s19, 0 }
  0x7f   : > { %s297_s17 = sand.u32 (!%p11615_p6), 1, %s9593_s28   ;;  %p11616_p10 = scmp.ne.s32.totalorder (!%p11615_p6), %s11602_s16, 0 }
  0x80   : > { %295 = sbr.rel (%p11615_p6) target bundleno = 1233 (0x4d1), region = 48  ;;  %s7579_s24 = sshll.u32 (!%p11615_p6), %s297_s17, 8 }
  0x81   : > { %s298_s12 = scalar_lea.sflag (!%p11615_p6), [#allocation6], %s297_s17  ;;  %s9890_s13 = scalar_lea.vmem (!%p11615_p6), [#allocation5], %s7579_s24 }
  0x87   : > { %9564 = dma.done.wait (%p11616_p10), %s298_s12, 4096  }
  0x88   : > { %9566 = vsyncadd (%p11616_p10), %s298_s12, 4294963200  ;;  %p11617_p0 = scmp.ne.s32.totalorder %s11601_s14, 0 }
  0x8a   : > { %9568 = dma.done.wait (%p11617_p0), [#allocation9], 18432  }
  0x8b   : > { %9570 = vsyncadd (%p11617_p0), [#allocation9], 4294948864  ;;  %s337_s9 = sand.u32 1, %s9581_s25   ;;  %p7584_p4 = scmp.ne.s32.totalorder %s9601_s30, 0 }
  0x8c   : > { %s7582_s19 = sshll.u32 %s337_s9, 7  ;;  %vm360_vm0 = vcmask (!%p7584_p4), 1040384   ;;  %vm361_vm1 = vsmask.f32 (!%p7584_p4), 256  ;;  %v369_v0 = vld [vmem:[#allocation2 + $0x18] sm:$0x1] (!%p7584_p4) }
  0x8d   : > { %s9903_s6 = scalar_lea.vmem [#allocation11], %s7582_s19  ;;  %346 = sbr.rel (%p7584_p4) target bundleno = 244 (0xf4), region = 64  ;;  %v9626_v1 = vmov (!%p7584_p4), 0   ;;  %vm9910_vm2 = vmand (!%p7584_p4), %vm360_vm0, %vm361_vm1  ;;  %v372_v3 = vld [vmem:[#allocation2 + $0x24] sm:$0x1] (!%p7584_p4)  ;;  %v485_v49 = vld [vmem:[%s9890_s13] sm:$0xff] (!%p7584_p4) }
  0x8e   : > { %347 = vst [vmem:[#allocation2] sm:$0xf] (!%p7584_p4), %v9626_v1  ;;  %348 = vst [vmem:[#allocation2 + $0x4] sm:$0xf] (!%p7584_p4), %v9626_v1  ;;  %v375_v4 = vld [vmem:[#allocation2 + $0x30] sm:$0x1] (!%p7584_p4) }
  0x8f   : > { %349 = vst [vmem:[#allocation2 + $0x8] sm:$0x1] (!%p7584_p4), %v9626_v1  ;;  %350 = vst [vmem:[#allocation2 + $0xc] sm:$0xf] (!%p7584_p4), %v9626_v1  ;;  %vm423_vm3 = vsmask.f32 (!%p7584_p4), 7938 }
  0x90   : > { %351 = vst [vmem:[#allocation2 + $0x10] sm:$0xf] (!%p7584_p4), %v9626_v1  ;;  %352 = vst [vmem:[#allocation2 + $0x14] sm:$0x1] (!%p7584_p4), %v9626_v1  ;;  %v370_v5 = vsel (!%p7584_p4), %vm9910_vm2, 0, %v369_v0  ;;  %v373_v6 = vsel (!%p7584_p4), %vm9910_vm2, 0, %v372_v3 }
  0x91   : > { %354 = vst [vmem:[#allocation2 + $0xd8] sm:$0xf] (!%p7584_p4), %v9626_v1  ;;  %355 = vst [vmem:[#allocation2 + $0xdc] sm:$0xf] (!%p7584_p4), %v9626_v1  ;;  %v376_v7 = vsel (!%p7584_p4), %vm9910_vm2, 0, %v375_v4  ;;  %vm936_vm5 = vcmask (!%p7584_p4), 1043456  }
  0x92   : > { %356 = vst [vmem:[#allocation2 + $0xe0] sm:$0x1] (!%p7584_p4), %v9626_v1  ;;  %357 = vst [vmem:[#allocation2 + $0xe4] sm:$0xf] (!%p7584_p4), %v9626_v1  ;;  %v378_v8 = vld [vmem:[#allocation2 + $0x3c] sm:$0x1] (!%p7584_p4) }
  0x93   : > { %358 = vst [vmem:[#allocation2 + $0xe8] sm:$0xf] (!%p7584_p4), %v9626_v1  ;;  %359 = vst [vmem:[#allocation2 + $0xec] sm:$0x1] (!%p7584_p4), %v9626_v1  ;;  %v379_v9 = vsel (!%p7584_p4), %vm9910_vm2, 0, %v378_v8 }
  0x94   : > { %371 = vst [vmem:[#allocation2 + $0x18] sm:$0x1] %v370_v5  ;;  %374 = vst [vmem:[#allocation2 + $0x24] sm:$0x1] %v373_v6  ;;  %v381_v10 = vld [vmem:[#allocation2 + $0x48] sm:$0x1] }
  0x95   : > { %377 = vst [vmem:[#allocation2 + $0x30] sm:$0x1] %v376_v7  ;;  %v384_v11 = vld [vmem:[#allocation2 + $0x54] sm:$0x1]  ;;  %380 = vst [vmem:[#allocation2 + $0x3c] sm:$0x1] %v379_v9  ;;  %v8214_v7 = vpack.c.bf16 %v485_v49, %v485_v49 }
  0x96   : > { %v382_v12 = vsel %vm9910_vm2, 0, %v381_v10  ;;  %v385_v13 = vsel %vm9910_vm2, 0, %v384_v11  ;;  %v387_v14 = vld [vmem:[#allocation2 + $0x60] sm:$0x1]  ;;  %v390_v15 = vld [vmem:[#allocation2 + $0x6c] sm:$0x1]  ;;  %vm9940_vm4 = vmand %vm360_vm0, %vm423_vm3 }
  0x97   : > { %383 = vst [vmem:[#allocation2 + $0x48] sm:$0x1] %v382_v12  ;;  %386 = vst [vmem:[#allocation2 + $0x54] sm:$0x1] %v385_v13  ;;  %v388_v16 = vsel %vm9910_vm2, 0, %v387_v14  ;;  %v391_v17 = vsel %vm9910_vm2, 0, %v390_v15 }
  0x98   : > { %v393_v18 = vld [vmem:[#allocation2 + $0x78] sm:$0x1]  ;;  %v396_v19 = vld [vmem:[#allocation2 + $0x84] sm:$0x1]  ;;  %389 = vst [vmem:[#allocation2 + $0x60] sm:$0x1] %v388_v16  ;;  %vm10006_vm6 = vmand %vm936_vm5, %vm423_vm3 }
  0x99   : > { %392 = vst [vmem:[#allocation2 + $0x6c] sm:$0x1] %v391_v17  ;;  %v394_v20 = vsel %vm9910_vm2, 0, %v393_v18  ;;  %v397_v21 = vsel %vm9910_vm2, 0, %v396_v19  ;;  %v399_v22 = vld [vmem:[#allocation2 + $0x90] sm:$0x1] }
  0x9a   : > { %v402_v23 = vld [vmem:[#allocation2 + $0x9c] sm:$0x1]  ;;  %395 = vst [vmem:[#allocation2 + $0x78] sm:$0x1] %v394_v20  ;;  %398 = vst [vmem:[#allocation2 + $0x84] sm:$0x1] %v397_v21 }
  0x9b   : > { %v400_v24 = vsel %vm9910_vm2, 0, %v399_v22  ;;  %v403_v25 = vsel %vm9910_vm2, 0, %v402_v23  ;;  %v405_v26 = vld [vmem:[#allocation2 + $0xa8] sm:$0x1]  ;;  %v408_v27 = vld [vmem:[#allocation2 + $0xb4] sm:$0x1] }
  0x9c   : > { %401 = vst [vmem:[#allocation2 + $0x90] sm:$0x1] %v400_v24  ;;  %404 = vst [vmem:[#allocation2 + $0x9c] sm:$0x1] %v403_v25  ;;  %v406_v29 = vsel %vm9910_vm2, 0, %v405_v26  ;;  %v409_v30 = vsel %vm9910_vm2, 0, %v408_v27 }
  0x9d   : > { %v411_v31 = vld [vmem:[#allocation2 + $0xc0] sm:$0x1]  ;;  %v414_v32 = vld [vmem:[#allocation2 + $0xcc] sm:$0x1]  ;;  %407 = vst [vmem:[#allocation2 + $0xa8] sm:$0x1] %v406_v29 }
  0x9e   : > { %410 = vst [vmem:[#allocation2 + $0xb4] sm:$0x1] %v409_v30  ;;  %v412_v33 = vsel %vm9910_vm2, 0, %v411_v31  ;;  %v415_v34 = vsel %vm9910_vm2, 0, %v414_v32  ;;  %v431_v35 = vld [vmem:[#allocation2 + $0x20] sm:$0x1] }
  0x9f   : > { %v434_v36 = vld [vmem:[#allocation2 + $0x2c] sm:$0x1]  ;;  %413 = vst [vmem:[#allocation2 + $0xc0] sm:$0x1] %v412_v33  ;;  %416 = vst [vmem:[#allocation2 + $0xcc] sm:$0x1] %v415_v34 }
  0xa0   : > { %v432_v37 = vsel %vm9940_vm4, 0, %v431_v35  ;;  %v435_v38 = vsel %vm9940_vm4, 0, %v434_v36  ;;  %v437_v39 = vld [vmem:[#allocation2 + $0x38] sm:$0x1]  ;;  %v440_v40 = vld [vmem:[#allocation2 + $0x44] sm:$0x1] }
  0xa1   : > { %433 = vst [vmem:[#allocation2 + $0x20] sm:$0x1] %v432_v37  ;;  %436 = vst [vmem:[#allocation2 + $0x2c] sm:$0x1] %v435_v38  ;;  %v438_v41 = vsel %vm9940_vm4, 0, %v437_v39  ;;  %v441_v42 = vsel %vm9940_vm4, 0, %v440_v40 }
  0xa2   : > { %v443_v43 = vld [vmem:[#allocation2 + $0x50] sm:$0x1]  ;;  %v446_v44 = vld [vmem:[#allocation2 + $0x5c] sm:$0x1]  ;;  %439 = vst [vmem:[#allocation2 + $0x38] sm:$0x1] %v438_v41 }
  0xa3   : > { %442 = vst [vmem:[#allocation2 + $0x44] sm:$0x1] %v441_v42  ;;  %v444_v45 = vsel %vm9940_vm4, 0, %v443_v43  ;;  %v447_v46 = vsel %vm9940_vm4, 0, %v446_v44  ;;  %v449_v47 = vld [vmem:[#allocation2 + $0x68] sm:$0x1] }
  0xa4   : > { %v452_v48 = vld [vmem:[#allocation2 + $0x74] sm:$0x1]  ;;  %445 = vst [vmem:[#allocation2 + $0x50] sm:$0x1] %v444_v45  ;;  %448 = vst [vmem:[#allocation2 + $0x5c] sm:$0x1] %v447_v46 }
  0xa5   : > { %v450_v50 = vsel %vm9940_vm4, 0, %v449_v47  ;;  %v453_v51 = vsel %vm9940_vm4, 0, %v452_v48  ;;  %v455_v52 = vld [vmem:[#allocation2 + $0x80] sm:$0x1]  ;;  %v458_v53 = vld [vmem:[#allocation2 + $0x8c] sm:$0x1] }
  0xa6   : > { %451 = vst [vmem:[#allocation2 + $0x68] sm:$0x1] %v450_v50  ;;  %454 = vst [vmem:[#allocation2 + $0x74] sm:$0x1] %v453_v51  ;;  %v456_v54 = vsel %vm9940_vm4, 0, %v455_v52  ;;  %v459_v55 = vsel %vm9940_vm4, 0, %v458_v53 }
  0xa7   : > { %v461_v56 = vld [vmem:[#allocation2 + $0x98] sm:$0x1]  ;;  %v464_v57 = vld [vmem:[#allocation2 + $0xa4] sm:$0x1]  ;;  %457 = vst [vmem:[#allocation2 + $0x80] sm:$0x1] %v456_v54 }
  0xa8   : > { %460 = vst [vmem:[#allocation2 + $0x8c] sm:$0x1] %v459_v55  ;;  %v462_v58 = vsel %vm9940_vm4, 0, %v461_v56  ;;  %v465_v59 = vsel %vm9940_vm4, 0, %v464_v57  ;;  %v467_v60 = vld [vmem:[#allocation2 + $0xb0] sm:$0x1] }
  0xa9   : > { %v470_v61 = vld [vmem:[#allocation2 + $0xbc] sm:$0x1]  ;;  %463 = vst [vmem:[#allocation2 + $0x98] sm:$0x1] %v462_v58  ;;  %466 = vst [vmem:[#allocation2 + $0xa4] sm:$0x1] %v465_v59 }
  0xaa   : > { %v468_v62 = vsel %vm9940_vm4, 0, %v467_v60  ;;  %v471_v63 = vsel %vm9940_vm4, 0, %v470_v61  ;;  %v473_v0 = vld [vmem:[#allocation2 + $0xc8] sm:$0x1]  ;;  %v476_v1 = vld [vmem:[#allocation2 + $0xd4] sm:$0x1] }
  0xab   : > { %469 = vst [vmem:[#allocation2 + $0xb0] sm:$0x1] %v468_v62  ;;  %472 = vst [vmem:[#allocation2 + $0xbc] sm:$0x1] %v471_v63  ;;  %v474_v3 = vsel %vm9940_vm4, 0, %v473_v0  ;;  %v477_v4 = vsel %vm9940_vm4, 0, %v476_v1 }
  0xac   : > { %v363_v5 = vld [vmem:[#allocation2] sm:$0x1]  ;;  %v366_v6 = vld [vmem:[#allocation2 + $0xc] sm:$0x1]  ;;  %475 = vst [vmem:[#allocation2 + $0xc8] sm:$0x1] %v474_v3 }
  0xad   : > { %478 = vst [vmem:[#allocation2 + $0xd4] sm:$0x1] %v477_v4  ;;  %v364_v8 = vsel %vm9910_vm2, 0, %v363_v5  ;;  %v367_v9 = vsel %vm9910_vm2, 0, %v366_v6  ;;  %v417_v10 = vld [vmem:[#allocation2 + $0xd8] sm:$0x1] }
  0xae   : > { %v420_v11 = vld [vmem:[#allocation2 + $0xe4] sm:$0x1]  ;;  %365 = vst [vmem:[#allocation2] sm:$0x1] %v364_v8  ;;  %368 = vst [vmem:[#allocation2 + $0xc] sm:$0x1] %v367_v9 }
  0xaf   : > { %v418_v12 = vsel %vm9910_vm2, 0, %v417_v10  ;;  %v421_v13 = vsel %vm9910_vm2, 0, %v420_v11  ;;  %v425_v14 = vld [vmem:[#allocation2 + $0x8] sm:$0x1]  ;;  %v428_v15 = vld [vmem:[#allocation2 + $0x14] sm:$0x1] }
  0xb0   : > { %419 = vst [vmem:[#allocation2 + $0xd8] sm:$0x1] %v418_v12  ;;  %422 = vst [vmem:[#allocation2 + $0xe4] sm:$0x1] %v421_v13  ;;  %v426_v16 = vsel %vm9940_vm4, 0, %v425_v14  ;;  %v429_v17 = vsel %vm9940_vm4, 0, %v428_v15 }
  0xb1   : > { %v479_v18 = vld [vmem:[#allocation2 + $0xe0] sm:$0x1]  ;;  %v482_v19 = vld [vmem:[#allocation2 + $0xec] sm:$0x1]  ;;  %427 = vst [vmem:[#allocation2 + $0x8] sm:$0x1] %v426_v16 }
  0xb2   : > { %430 = vst [vmem:[#allocation2 + $0x14] sm:$0x1] %v429_v17  ;;  %v480_v20 = vsel %vm9940_vm4, 0, %v479_v18  ;;  %v483_v21 = vsel %vm9940_vm4, 0, %v482_v19  ;;  %v616_v22 = vshrl.u32 %v8214_v7, 16  ;;  %v619_v23 = vshll.u32 %v8214_v7, 16 }
  0xb3   : > { %481 = vst [vmem:[#allocation2 + $0xe0] sm:$0x1] %v480_v20  ;;  %484 = vst [vmem:[#allocation2 + $0xec] sm:$0x1] %v483_v21  ;;  %v486_v24 = vld [vmem:[%s9890_s13 + $0x8] sm:$0xff]  ;;  %v487_v25 = vld [vmem:[%s9890_s13 + $0x10] sm:$0xff] }
  0xb4   : > { %v618_v26 = vrot.slane %v616_v22, 7  ;;  %v8215_v27 = vpack.c.bf16 %v486_v24, %v486_v24  ;;  %v8216_v29 = vpack.c.bf16 %v487_v25, %v487_v25  ;;  %v488_v30 = vld [vmem:[%s9890_s13 + $0x18] sm:$0xff]  ;;  %v938_v28 = vld [vmem:[#allocation2 + $0x18] sm:$0xf]  ;;  %vm613_vm7 = vsmask.f32 4368 }
  0xb5   : > { %v8217_v32 = vpack.c.bf16 %v488_v30, %v488_v30  ;;  %v489_v33 = vld [vmem:[%s9890_s13 + $0x20] sm:$0xff]  ;;  %v490_v38 = vld [vmem:[%s9890_s13 + $0x28] sm:$0xff]  ;;  %v491_v43 = vld [vmem:[%s9890_s13 + $0x30] sm:$0xff] }
  0xb6   : > { %v621_v34 = vor.u32 %v619_v23, %v618_v26  ;;  %v622_v35 = vrot.slane %v618_v26, 4  ;;  %v624_v36 = vshrl.u32 %v8215_v27, 16  ;;  %v627_v37 = vshll.u32 %v8215_v27, 16  ;;  %v492_v44 = vld [vmem:[%s9890_s13 + $0x38] sm:$0xff]  ;;  %vm10018_vm8 = vmor %vm361_vm1, %vm613_vm7  ;;  %v949_v58 = vld [vmem:[#allocation2 + $0x2c] sm:$0x1] }
  0xb7   : > { %v633_v39 = vshrl.u32 %v8216_v29, 16  ;;  %v636_v40 = vshll.u32 %v8216_v29, 16  ;;  %v641_v41 = vshrl.u32 %v8217_v32, 16  ;;  %v644_v42 = vshll.u32 %v8217_v32, 16  ;;  %v942_v50 = vld [vmem:[#allocation2 + $0x20] sm:$0x1] }
  0xb8   : > { %v939_v45 = vsel %vm10006_vm6, %v621_v34, %v938_v28  ;;  %v626_v46 = vrot.slane %v624_v36, 7  ;;  %v8218_v47 = vpack.c.bf16 %v489_v33, %v489_v33  ;;  %v8219_v48 = vpack.c.bf16 %v490_v38, %v490_v38  ;;  %v945_v52 = vld [vmem:[#allocation2 + $0x24] sm:$0xf]  ;;  %v493_v6 = vld [vmem:[%s9890_s13 + $0x40] sm:$0xff]  ;;  %v952_v10 = vld [vmem:[#allocation2 + $0x30] sm:$0xf] }
  0xb9   : > { %940 = vst [vmem:[#allocation2 + $0x18] sm:$0xf] %v939_v45  ;;  %v635_v51 = vrot.slane %v633_v39, 7  ;;  %v643_v53 = vrot.slane %v641_v41, 7  ;;  %v8220_v54 = vpack.c.bf16 %v491_v43, %v491_v43  ;;  %v8221_v55 = vpack.c.bf16 %v492_v44, %v492_v44  ;;  %v494_v16 = vld [vmem:[%s9890_s13 + $0x48] sm:$0xff]  ;;  %v495_v32 = vld [vmem:[%s9890_s13 + $0x50] sm:$0xff] }
  0xba   : > { %v629_v56 = vor.u32 %v627_v37, %v626_v46  ;;  %v631_v57 = vrot.slane %v626_v46, 4  ;;  %v650_v59 = vshrl.u32 %v8218_v47, 16  ;;  %v653_v60 = vshll.u32 %v8218_v47, 16  ;;  %v956_v17 = vld [vmem:[#allocation2 + $0x38] sm:$0x1]  ;;  %v496_v33 = vld [vmem:[%s9890_s13 + $0x58] sm:$0xff] }
  0xbb   : > { %v638_v61 = vor.u32 %v636_v40, %v635_v51  ;;  %v639_v62 = vrot.slane %v635_v51, 4  ;;  %v646_v63 = vor.u32 %v644_v42, %v643_v53  ;;  %v648_v0 = vrot.slane %v643_v53, 4  ;;  %v959_v26 = vld [vmem:[#allocation2 + $0x3c] sm:$0xf]  ;;  %v963_v38 = vld [vmem:[#allocation2 + $0x44] sm:$0x1] }
  0xbc   : > { %v630_v1 = vsel %vm10018_vm8, %v622_v35, %v629_v56  ;;  %v943_v3 = vsel %vm9910_vm2, %v631_v57, %v942_v50  ;;  %v652_v4 = vrot.slane %v650_v59, 7  ;;  %v658_v5 = vshrl.u32 %v8219_v48, 16  ;;  %v966_v44 = vld [vmem:[#allocation2 + $0x48] sm:$0xf]  ;;  %v498_v50 = vld [vmem:[%s9890_s13 + $0x68] sm:$0xff] }
  0xbd   : > { %941 = vst [vmem:[#allocation2 + $0x1c] sm:$0xf] %v630_v1  ;;  %944 = vst [vmem:[#allocation2 + $0x20] sm:$0x1] %v943_v3  ;;  %v946_v7 = vsel %vm10006_vm6, %v638_v61, %v945_v52  ;;  %v647_v8 = vsel %vm10018_vm8, %v639_v62, %v646_v63  ;;  %v950_v9 = vsel %vm9910_vm2, %v648_v0, %v949_v58  ;;  %v661_v11 = vshll.u32 %v8219_v48, 16  ;;  %v497_v48 = vld [vmem:[%s9890_s13 + $0x60] sm:$0xff] }
  0xbe   : > { %947 = vst [vmem:[#allocation2 + $0x24] sm:$0xf] %v946_v7  ;;  %948 = vst [vmem:[#allocation2 + $0x28] sm:$0xf] %v647_v8  ;;  %v655_v12 = vor.u32 %v653_v60, %v652_v4  ;;  %v656_v13 = vrot.slane %v652_v4, 4  ;;  %v660_v14 = vrot.slane %v658_v5, 7  ;;  %v8222_v21 = vpack.c.bf16 %v493_v6, %v493_v6 }
  0xbf   : > { %951 = vst [vmem:[#allocation2 + $0x2c] sm:$0x1] %v950_v9  ;;  %v667_v15 = vshrl.u32 %v8220_v54, 16  ;;  %v670_v18 = vshll.u32 %v8220_v54, 16  ;;  %v675_v19 = vshrl.u32 %v8221_v55, 16  ;;  %v678_v20 = vshll.u32 %v8221_v55, 16 }
  0xc0   : > { %v953_v22 = vsel %vm10006_vm6, %v655_v12, %v952_v10  ;;  %v663_v23 = vor.u32 %v661_v11, %v660_v14  ;;  %v665_v24 = vrot.slane %v660_v14, 4  ;;  %v684_v29 = vshrl.u32 %v8222_v21, 16  ;;  %v970_v60 = vld [vmem:[#allocation2 + $0x50] sm:$0x1]  ;;  %v973_v4 = vld [vmem:[#allocation2 + $0x54] sm:$0xf] }
  0xc1   : > { %v669_v25 = vrot.slane %v667_v15, 7  ;;  %954 = vst [vmem:[#allocation2 + $0x30] sm:$0xf] %v953_v22  ;;  %v677_v27 = vrot.slane %v675_v19, 7  ;;  %v687_v30 = vshll.u32 %v8222_v21, 16  ;;  %v8223_v28 = vpack.c.bf16 %v494_v16, %v494_v16  ;;  %v499_v6 = vld [vmem:[%s9890_s13 + $0x70] sm:$0xff] }
  0xc2   : > { %v664_v34 = vsel %vm10018_vm8, %v656_v13, %v663_v23  ;;  %v957_v35 = vsel %vm9910_vm2, %v665_v24, %v956_v17  ;;  %v686_v41 = vrot.slane %v684_v29, 7  ;;  %v8224_v46 = vpack.c.bf16 %v495_v32, %v495_v32  ;;  %v500_v11 = vld [vmem:[%s9890_s13 + $0x78] sm:$0xff]  ;;  %v501_v12 = vld [vmem:[%s9890_s13 + $0x80] sm:$0xff]  ;;  %v977_v17 = vld [vmem:[#allocation2 + $0x5c] sm:$0x1] }
  0xc3   : > { %v672_v36 = vor.u32 %v670_v18, %v669_v25  ;;  %v673_v37 = vrot.slane %v669_v25, 4  ;;  %955 = vst [vmem:[#allocation2 + $0x34] sm:$0xf] %v664_v34  ;;  %958 = vst [vmem:[#allocation2 + $0x38] sm:$0x1] %v957_v35  ;;  %v680_v39 = vor.u32 %v678_v20, %v677_v27  ;;  %v682_v40 = vrot.slane %v677_v27, 4 }
  0xc4   : > { %v692_v42 = vshrl.u32 %v8223_v28, 16  ;;  %v695_v45 = vshll.u32 %v8223_v28, 16  ;;  %v8225_v47 = vpack.c.bf16 %v496_v33, %v496_v33  ;;  %v689_v53 = vor.u32 %v687_v30, %v686_v41  ;;  %v980_v23 = vld [vmem:[#allocation2 + $0x60] sm:$0xf]  ;;  %v984_v32 = vld [vmem:[#allocation2 + $0x68] sm:$0x1] }
  0xc5   : > { %v960_v43 = vsel %vm10006_vm6, %v672_v36, %v959_v26  ;;  %v681_v51 = vsel %vm10018_vm8, %v673_v37, %v680_v39  ;;  %v964_v52 = vsel %vm9910_vm2, %v682_v40, %v963_v38  ;;  %v690_v54 = vrot.slane %v686_v41, 4  ;;  %v502_v37 = vld [vmem:[%s9890_s13 + $0x88] sm:$0xff]  ;;  %v503_v38 = vld [vmem:[%s9890_s13 + $0x90] sm:$0xff] }
  0xc6   : > { %961 = vst [vmem:[#allocation2 + $0x3c] sm:$0xf] %v960_v43  ;;  %962 = vst [vmem:[#allocation2 + $0x40] sm:$0xf] %v681_v51  ;;  %v694_v55 = vrot.slane %v692_v42, 7  ;;  %v701_v56 = vshrl.u32 %v8224_v46, 16  ;;  %v967_v59 = vsel %vm10006_vm6, %v689_v53, %v966_v44  ;;  %v8226_v62 = vpack.c.bf16 %v497_v48, %v497_v48 }
  0xc7   : > { %965 = vst [vmem:[#allocation2 + $0x44] sm:$0x1] %v964_v52  ;;  %v704_v57 = vshll.u32 %v8224_v46, 16  ;;  %v709_v58 = vshrl.u32 %v8225_v47, 16  ;;  %v712_v61 = vshll.u32 %v8225_v47, 16  ;;  %v8227_v63 = vpack.c.bf16 %v498_v50, %v498_v50  ;;  %v504_v43 = vld [vmem:[%s9890_s13 + $0x98] sm:$0xff] }
  0xc8   : > { %968 = vst [vmem:[#allocation2 + $0x48] sm:$0xf] %v967_v59  ;;  %v697_v0 = vor.u32 %v695_v45, %v694_v55  ;;  %v699_v1 = vrot.slane %v694_v55, 4  ;;  %v703_v3 = vrot.slane %v701_v56, 7  ;;  %v718_v7 = vshrl.u32 %v8226_v62, 16  ;;  %v505_v44 = vld [vmem:[%s9890_s13 + $0xa0] sm:$0xff] }
  0xc9   : > { %v711_v5 = vrot.slane %v709_v58, 7  ;;  %v721_v8 = vshll.u32 %v8226_v62, 16  ;;  %v726_v9 = vshrl.u32 %v8227_v63, 16  ;;  %v729_v10 = vshll.u32 %v8227_v63, 16  ;;  %v987_v50 = vld [vmem:[#allocation2 + $0x6c] sm:$0xf] }
  0xca   : > { %v698_v13 = vsel %vm10018_vm8, %v690_v54, %v697_v0  ;;  %v971_v14 = vsel %vm9910_vm2, %v699_v1, %v970_v60  ;;  %v706_v15 = vor.u32 %v704_v57, %v703_v3  ;;  %v707_v16 = vrot.slane %v703_v3, 4  ;;  %v991_v57 = vld [vmem:[#allocation2 + $0x74] sm:$0x1]  ;;  %v994_v58 = vld [vmem:[#allocation2 + $0x78] sm:$0xf] }
  0xcb   : > { %969 = vst [vmem:[#allocation2 + $0x4c] sm:$0xf] %v698_v13  ;;  %972 = vst [vmem:[#allocation2 + $0x50] sm:$0x1] %v971_v14  ;;  %v714_v18 = vor.u32 %v712_v61, %v711_v5  ;;  %v716_v19 = vrot.slane %v711_v5, 4  ;;  %v720_v20 = vrot.slane %v718_v7, 7  ;;  %v8228_v24 = vpack.c.bf16 %v499_v6, %v499_v6 }
  0xcc   : > { %v728_v21 = vrot.slane %v726_v9, 7  ;;  %v974_v22 = vsel %vm10006_vm6, %v706_v15, %v973_v4  ;;  %v8229_v25 = vpack.c.bf16 %v500_v11, %v500_v11  ;;  %v8230_v26 = vpack.c.bf16 %v501_v12, %v501_v12  ;;  %v506_v6 = vld [vmem:[%s9890_s13 + $0xa8] sm:$0xff]  ;;  %v507_v7 = vld [vmem:[%s9890_s13 + $0xb0] sm:$0xff] }
  0xcd   : > { %975 = vst [vmem:[#allocation2 + $0x54] sm:$0xf] %v974_v22  ;;  %v715_v27 = vsel %vm10018_vm8, %v707_v16, %v714_v18  ;;  %v978_v29 = vsel %vm9910_vm2, %v716_v19, %v977_v17  ;;  %v723_v30 = vor.u32 %v721_v8, %v720_v20  ;;  %v724_v28 = vrot.slane %v720_v20, 4  ;;  %v998_v16 = vld [vmem:[#allocation2 + $0x80] sm:$0x1] }
  0xce   : > { %976 = vst [vmem:[#allocation2 + $0x58] sm:$0xf] %v715_v27  ;;  %979 = vst [vmem:[#allocation2 + $0x5c] sm:$0x1] %v978_v29  ;;  %v731_v33 = vor.u32 %v729_v10, %v728_v21  ;;  %v733_v34 = vrot.slane %v728_v21, 4  ;;  %v735_v35 = vshrl.u32 %v8228_v24, 16  ;;  %v8231_v53 = vpack.c.bf16 %v502_v37, %v502_v37 }
  0xcf   : > { %v738_v36 = vshll.u32 %v8228_v24, 16  ;;  %v981_v39 = vsel %vm10006_vm6, %v723_v30, %v980_v23  ;;  %v743_v40 = vshrl.u32 %v8229_v25, 16  ;;  %v746_v41 = vshll.u32 %v8229_v25, 16  ;;  %v1001_v17 = vld [vmem:[#allocation2 + $0x84] sm:$0xf] }
  0xd0   : > { %v752_v42 = vshrl.u32 %v8230_v26, 16  ;;  %982 = vst [vmem:[#allocation2 + $0x60] sm:$0xf] %v981_v39  ;;  %v732_v45 = vsel %vm10018_vm8, %v724_v28, %v731_v33  ;;  %v985_v46 = vsel %vm9910_vm2, %v733_v34, %v984_v32  ;;  %v737_v47 = vrot.slane %v735_v35, 7  ;;  %v508_v28 = vld [vmem:[%s9890_s13 + $0xb8] sm:$0xff] }
  0xd1   : > { %v755_v48 = vshll.u32 %v8230_v26, 16  ;;  %983 = vst [vmem:[#allocation2 + $0x64] sm:$0xf] %v732_v45  ;;  %986 = vst [vmem:[#allocation2 + $0x68] sm:$0x1] %v985_v46  ;;  %v745_v51 = vrot.slane %v743_v40, 7  ;;  %v8232_v54 = vpack.c.bf16 %v503_v38, %v503_v38  ;;  %v8233_v59 = vpack.c.bf16 %v504_v43, %v504_v43 }
  0xd2   : > { %v754_v52 = vrot.slane %v752_v42, 7  ;;  %v740_v55 = vor.u32 %v738_v36, %v737_v47  ;;  %v741_v56 = vrot.slane %v737_v47, 4  ;;  %v8234_v60 = vpack.c.bf16 %v505_v44, %v505_v44  ;;  %v1005_v35 = vld [vmem:[#allocation2 + $0x8c] sm:$0x1]  ;;  %v1008_v36 = vld [vmem:[#allocation2 + $0x90] sm:$0xf] }
  0xd3   : > { %v748_v61 = vor.u32 %v746_v41, %v745_v51  ;;  %v750_v62 = vrot.slane %v745_v51, 4  ;;  %v760_v3 = vshrl.u32 %v8231_v53, 16  ;;  %v763_v4 = vshll.u32 %v8231_v53, 16  ;;  %v509_v38 = vld [vmem:[%s9890_s13 + $0xc0] sm:$0xff]  ;;  %v1012_v51 = vld [vmem:[#allocation2 + $0x98] sm:$0x1] }
  0xd4   : > { %v757_v63 = vor.u32 %v755_v48, %v754_v52  ;;  %v758_v0 = vrot.slane %v754_v52, 4  ;;  %v988_v1 = vsel %vm10006_vm6, %v740_v55, %v987_v50  ;;  %v769_v5 = vshrl.u32 %v8232_v54, 16  ;;  %v1015_v52 = vld [vmem:[#allocation2 + $0x9c] sm:$0xf] }
  0xd5   : > { %989 = vst [vmem:[#allocation2 + $0x6c] sm:$0xf] %v988_v1  ;;  %v749_v8 = vsel %vm10018_vm8, %v741_v56, %v748_v61  ;;  %v992_v9 = vsel %vm9910_vm2, %v750_v62, %v991_v57  ;;  %v772_v11 = vshll.u32 %v8232_v54, 16  ;;  %v762_v12 = vrot.slane %v760_v3, 7  ;;  %v510_v54 = vld [vmem:[%s9890_s13 + $0xc8] sm:$0xff]  ;;  %v513_v1 = vld [vmem:[%s9890_s13 + $0xe0] sm:$0xff] }
  0xd6   : > { %v995_v10 = vsel %vm10006_vm6, %v757_v63, %v994_v58  ;;  %990 = vst [vmem:[#allocation2 + $0x70] sm:$0xf] %v749_v8  ;;  %993 = vst [vmem:[#allocation2 + $0x74] sm:$0x1] %v992_v9  ;;  %v771_v13 = vrot.slane %v769_v5, 7  ;;  %v777_v14 = vshrl.u32 %v8233_v59, 16  ;;  %v8235_v20 = vpack.c.bf16 %v506_v6, %v506_v6 }
  0xd7   : > { %996 = vst [vmem:[#allocation2 + $0x78] sm:$0xf] %v995_v10  ;;  %v780_v15 = vshll.u32 %v8233_v59, 16  ;;  %v786_v18 = vshrl.u32 %v8234_v60, 16  ;;  %v789_v19 = vshll.u32 %v8234_v60, 16  ;;  %v8236_v21 = vpack.c.bf16 %v507_v7, %v507_v7  ;;  %v511_v59 = vld [vmem:[%s9890_s13 + $0xd0] sm:$0xff] }
  0xd8   : > { %v765_v22 = vor.u32 %v763_v4, %v762_v12  ;;  %v767_v23 = vrot.slane %v762_v12, 4  ;;  %v774_v24 = vor.u32 %v772_v11, %v771_v13  ;;  %v775_v25 = vrot.slane %v771_v13, 4  ;;  %v512_v60 = vld [vmem:[%s9890_s13 + $0xd8] sm:$0xff]  ;;  %v514_v3 = vld [vmem:[%s9890_s13 + $0xe8] sm:$0xff]  ;;  %v1022_v13 = vld [vmem:[#allocation2 + $0xa8] sm:$0xf] }
  0xd9   : > { %v779_v26 = vrot.slane %v777_v14, 7  ;;  %v788_v27 = vrot.slane %v786_v18, 7  ;;  %v794_v29 = vshrl.u32 %v8235_v20, 16  ;;  %v797_v30 = vshll.u32 %v8235_v20, 16  ;;  %v1019_v12 = vld [vmem:[#allocation2 + $0xa4] sm:$0x1] }
  0xda   : > { %v766_v32 = vsel %vm10018_vm8, %v758_v0, %v765_v22  ;;  %v999_v33 = vsel %vm9910_vm2, %v767_v23, %v998_v16  ;;  %v1002_v34 = vsel %vm10006_vm6, %v774_v24, %v1001_v17  ;;  %v803_v37 = vshrl.u32 %v8236_v21, 16 }
  0xdb   : > { %997 = vst [vmem:[#allocation2 + $0x7c] sm:$0xf] %v766_v32  ;;  %1000 = vst [vmem:[#allocation2 + $0x80] sm:$0x1] %v999_v33  ;;  %v782_v39 = vor.u32 %v780_v15, %v779_v26  ;;  %v784_v40 = vrot.slane %v779_v26, 4  ;;  %v791_v41 = vor.u32 %v789_v19, %v788_v27  ;;  %v792_v42 = vrot.slane %v788_v27, 4 }
  0xdc   : > { %1003 = vst [vmem:[#allocation2 + $0x84] sm:$0xf] %v1002_v34  ;;  %v796_v43 = vrot.slane %v794_v29, 7  ;;  %v805_v44 = vrot.slane %v803_v37, 7  ;;  %v806_v45 = vshll.u32 %v8236_v21, 16  ;;  %v8237_v46 = vpack.c.bf16 %v508_v28, %v508_v28 }
  0xdd   : > { %v783_v47 = vsel %vm10018_vm8, %v775_v25, %v782_v39  ;;  %v1006_v48 = vsel %vm9910_vm2, %v784_v40, %v1005_v35  ;;  %v1009_v50 = vsel %vm10006_vm6, %v791_v41, %v1008_v36  ;;  %v8238_v53 = vpack.c.bf16 %v509_v38, %v509_v38  ;;  %v1029_v35 = vld [vmem:[#allocation2 + $0xb4] sm:$0xf]  ;;  %v515_v41 = vld [vmem:[%s9890_s13 + $0xf0] sm:$0xff] }
  0xde   : > { %1004 = vst [vmem:[#allocation2 + $0x88] sm:$0xf] %v783_v47  ;;  %1007 = vst [vmem:[#allocation2 + $0x8c] sm:$0x1] %v1006_v48  ;;  %v799_v55 = vor.u32 %v797_v30, %v796_v43  ;;  %v801_v56 = vrot.slane %v796_v43, 4  ;;  %v808_v57 = vor.u32 %v806_v45, %v805_v44  ;;  %v809_v58 = vrot.slane %v805_v44, 4 }
  0xdf   : > { %1010 = vst [vmem:[#allocation2 + $0x90] sm:$0xf] %v1009_v50  ;;  %v811_v61 = vshrl.u32 %v8237_v46, 16  ;;  %v814_v62 = vshll.u32 %v8237_v46, 16  ;;  %v820_v63 = vshrl.u32 %v8238_v53, 16  ;;  %v823_v0 = vshll.u32 %v8238_v53, 16 }
  0xe0   : > { %v800_v4 = vsel %vm10018_vm8, %v792_v42, %v799_v55  ;;  %v1013_v5 = vsel %vm9910_vm2, %v801_v56, %v1012_v51  ;;  %v1016_v6 = vsel %vm10006_vm6, %v808_v57, %v1015_v52  ;;  %v8239_v7 = vpack.c.bf16 %v510_v54, %v510_v54  ;;  %v1026_v30 = vld [vmem:[#allocation2 + $0xb0] sm:$0x1]  ;;  %v516_v42 = vld [vmem:[%s9890_s13 + $0xf8] sm:$0xff]  ;;  %v1033_v47 = vld [vmem:[#allocation2 + $0xbc] sm:$0x1] }
  0xe1   : > { %1011 = vst [vmem:[#allocation2 + $0x94] sm:$0xf] %v800_v4  ;;  %1014 = vst [vmem:[#allocation2 + $0x98] sm:$0x1] %v1013_v5  ;;  %v813_v8 = vrot.slane %v811_v61, 7  ;;  %v822_v9 = vrot.slane %v820_v63, 7  ;;  %v8240_v10 = vpack.c.bf16 %v511_v59, %v511_v59  ;;  %v8241_v11 = vpack.c.bf16 %v512_v60, %v512_v60 }
  0xe2   : > { %1017 = vst [vmem:[#allocation2 + $0x9c] sm:$0xf] %v1016_v6  ;;  %v828_v14 = vshrl.u32 %v8239_v7, 16  ;;  %v831_v15 = vshll.u32 %v8239_v7, 16  ;;  %v8242_v16 = vpack.c.bf16 %v513_v1, %v513_v1  ;;  %v8243_v17 = vpack.c.bf16 %v514_v3, %v514_v3  ;;  %v1036_v54 = vld [vmem:[#allocation2 + $0xc0] sm:$0xf] }
  0xe3   : > { %v816_v18 = vor.u32 %v814_v62, %v813_v8  ;;  %v818_v19 = vrot.slane %v813_v8, 4  ;;  %v825_v20 = vor.u32 %v823_v0, %v822_v9  ;;  %v826_v21 = vrot.slane %v822_v9, 4  ;;  %v1040_v61 = vld [vmem:[#allocation2 + $0xc8] sm:$0x1]  ;;  %v1043_v9 = vld [vmem:[#allocation2 + $0xcc] sm:$0xf] }
  0xe4   : > { %v830_v22 = vrot.slane %v828_v14, 7  ;;  %v837_v23 = vshrl.u32 %v8240_v10, 16  ;;  %v840_v24 = vshll.u32 %v8240_v10, 16  ;;  %v845_v25 = vshrl.u32 %v8241_v11, 16 }
  0xe5   : > { %v817_v26 = vsel %vm10018_vm8, %v809_v58, %v816_v18  ;;  %v1020_v27 = vsel %vm9910_vm2, %v818_v19, %v1019_v12  ;;  %v1023_v29 = vsel %vm10006_vm6, %v825_v20, %v1022_v13  ;;  %v848_v28 = vshll.u32 %v8241_v11, 16  ;;  %v1047_v13 = vld [vmem:[#allocation2 + $0xd4] sm:$0x1] }
  0xe6   : > { %1018 = vst [vmem:[#allocation2 + $0xa0] sm:$0xf] %v817_v26  ;;  %1021 = vst [vmem:[#allocation2 + $0xa4] sm:$0x1] %v1020_v27  ;;  %v833_v32 = vor.u32 %v831_v15, %v830_v22  ;;  %v835_v33 = vrot.slane %v830_v22, 4  ;;  %v839_v34 = vrot.slane %v837_v23, 7  ;;  %v8244_v55 = vpack.c.bf16 %v515_v41, %v515_v41 }
  0xe7   : > { %1024 = vst [vmem:[#allocation2 + $0xa8] sm:$0xf] %v1023_v29  ;;  %v847_v36 = vrot.slane %v845_v25, 7  ;;  %v854_v37 = vshrl.u32 %v8242_v16, 16  ;;  %v857_v38 = vshll.u32 %v8242_v16, 16  ;;  %v862_v39 = vshrl.u32 %v8243_v17, 16 }
  0xe8   : > { %v865_v40 = vshll.u32 %v8243_v17, 16  ;;  %v834_v43 = vsel %vm10018_vm8, %v826_v21, %v833_v32  ;;  %v1027_v44 = vsel %vm9910_vm2, %v835_v33, %v1026_v30  ;;  %v842_v45 = vor.u32 %v840_v24, %v839_v34 }
  0xe9   : > { %v843_v46 = vrot.slane %v839_v34, 4  ;;  %1025 = vst [vmem:[#allocation2 + $0xac] sm:$0xf] %v834_v43  ;;  %1028 = vst [vmem:[#allocation2 + $0xb0] sm:$0x1] %v1027_v44  ;;  %v850_v48 = vor.u32 %v848_v28, %v847_v36  ;;  %v852_v50 = vrot.slane %v847_v36, 4  ;;  %v8245_v56 = vpack.c.bf16 %v516_v42, %v516_v42 }
  0xea   : > { %v856_v51 = vrot.slane %v854_v37, 7  ;;  %v864_v52 = vrot.slane %v862_v39, 7  ;;  %v1030_v53 = vsel %vm10006_vm6, %v842_v45, %v1029_v35  ;;  %v871_v0 = vshrl.u32 %v8244_v55, 16 }
  0xeb   : > { %1031 = vst [vmem:[#allocation2 + $0xb4] sm:$0xf] %v1030_v53  ;;  %v851_v57 = vsel %vm10018_vm8, %v843_v46, %v850_v48  ;;  %v1034_v58 = vsel %vm9910_vm2, %v852_v50, %v1033_v47  ;;  %v874_v1 = vshll.u32 %v8244_v55, 16  ;;  %v879_v4 = vshrl.u32 %v8245_v56, 16 }
  0xec   : > { %v859_v59 = vor.u32 %v857_v38, %v856_v51  ;;  %v860_v60 = vrot.slane %v856_v51, 4  ;;  %1032 = vst [vmem:[#allocation2 + $0xb8] sm:$0xf] %v851_v57  ;;  %1035 = vst [vmem:[#allocation2 + $0xbc] sm:$0x1] %v1034_v58  ;;  %v867_v62 = vor.u32 %v865_v40, %v864_v52  ;;  %v869_v63 = vrot.slane %v864_v52, 4 }
  0xed   : > { %v882_v5 = vshll.u32 %v8245_v56, 16  ;;  %v873_v8 = vrot.slane %v871_v0, 7  ;;  %v881_v10 = vrot.slane %v879_v4, 7 }
  0xee   : > { %v1037_v3 = vsel %vm10006_vm6, %v859_v59, %v1036_v54  ;;  %v868_v6 = vsel %vm10018_vm8, %v860_v60, %v867_v62  ;;  %v1041_v7 = vsel %vm9910_vm2, %v869_v63, %v1040_v61 }
  0xef   : > { %1038 = vst [vmem:[#allocation2 + $0xc0] sm:$0xf] %v1037_v3  ;;  %1039 = vst [vmem:[#allocation2 + $0xc4] sm:$0xf] %v868_v6  ;;  %v876_v11 = vor.u32 %v874_v1, %v873_v8  ;;  %v877_v12 = vrot.slane %v873_v8, 4  ;;  %v884_v14 = vor.u32 %v882_v5, %v881_v10  ;;  %v886_v15 = vrot.slane %v881_v10, 4 }
  0xf0   : > { %1042 = vst [vmem:[#allocation2 + $0xc8] sm:$0x1] %v1041_v7 }
  0xf1   : > { %v1044_v16 = vsel %vm10006_vm6, %v876_v11, %v1043_v9  ;;  %v885_v17 = vsel %vm10018_vm8, %v877_v12, %v884_v14  ;;  %v1048_v18 = vsel %vm9910_vm2, %v886_v15, %v1047_v13 }
  0xf2   : > { %1045 = vst [vmem:[#allocation2 + $0xcc] sm:$0xf] %v1044_v16  ;;  %1046 = vst [vmem:[#allocation2 + $0xd0] sm:$0xf] %v885_v17 }
  0xf3   : > { %1049 = vst [vmem:[#allocation2 + $0xd4] sm:$0x1] %v1048_v18 }
  0xf4 PF: > { %v9063_v19 = vld [vmem:[#allocation8 + $0x40] sm:$0xff]   ;;  %v9067_v23 = vld [vmem:[#allocation8 + $0x48] sm:$0xff]   ;;  %v9071_v2 = vld [vmem:[#allocation8 + $0x50] sm:$0xff]   ;;  %s8246_s14 = smul.u32 96, %s9601_s30  ;;  %vm1526_vm9 = vcmask 1042432   ;;  %vm1527_vm10 = vcmask 1046532  }
  0xf5   : > { %v9064_v20 = vld [vmem:[#allocation8 + $0xc0] sm:$0xff]   ;;  %8269 = vmatprep.subr.bf16.mxu0 %v9063_v19  ;;  %v9068_v31 = vld [vmem:[#allocation8 + $0xc8] sm:$0xff]   ;;  %v9072_v25 = vld [vmem:[#allocation8 + $0xd0] sm:$0xff]   ;;  %vm1173_vm11 = vsmask.f32 3328  ;;  %vm4262_vm15 = vcmask 1040384  }
  0xf6   : > { %v9065_v21 = vld [vmem:[#allocation8] sm:$0xff]   ;;  %8345 = vmatprep.subr.bf16.mxu1 %v9064_v20  ;;  %v9069_v24 = vld [vmem:[#allocation8 + $0x8] sm:$0xff]   ;;  %v9073_v26 = vld [vmem:[#allocation8 + $0x10] sm:$0xff]   ;;  %s10141_s16 = scalar_lea.vmem [#allocation2], %s8246_s14  ;;  %vm1174_vm12 = vsmask.f32 7440 }
  0xf7   : > { %v9066_v22 = vld [vmem:[#allocation8 + $0x80] sm:$0xff]   ;;  %8270 = vmatpush3.bf16.msra.mxu0 %v9065_v21  ;;  %v9070_v49 = vld [vmem:[#allocation8 + $0x88] sm:$0xff]   ;;  %v9074_v27 = vld [vmem:[#allocation8 + $0x90] sm:$0xff]   ;;  %vm4263_vm0 = vsmask.f32 256  ;;  %vm4589_vm4 = vcmask 1043456  }
  0xf8   : > { %8346 = vmatpush3.bf16.msra.mxu1 %v9066_v22  ;;  %8271 = vmatprep.subr.bf16.mxu0 %v9067_v23  ;;  %v9075_v29 = vld [vmem:[#allocation8 + $0x58] sm:$0xff]   ;;  %v9079_v33 = vld [vmem:[#allocation8 + $0x60] sm:$0xff]   ;;  %v9083_v37 = vld [vmem:[#allocation8 + $0x68] sm:$0xff]   ;;  %vm4295_vm2 = vsmask.f32 7938 }
  0xf9   : > { %8347 = vmatprep.subr.bf16.mxu1 %v9068_v31  ;;  %v9076_v30 = vld [vmem:[#allocation8 + $0xd8] sm:$0xff]   ;;  %v9080_v34 = vld [vmem:[#allocation8 + $0xe0] sm:$0xff]   ;;  %v9084_v38 = vld [vmem:[#allocation8 + $0xe8] sm:$0xff]   ;;  %vm4387_vm5 = vsmask.f32 4368 }
  0xfa   : > { %v9077_v28 = vld [vmem:[#allocation8 + $0x18] sm:$0xff]   ;;  %v9081_v35 = vld [vmem:[#allocation8 + $0x20] sm:$0xff]   ;;  %v9085_v39 = vld [vmem:[#allocation8 + $0x28] sm:$0xff]  }
  0xfb   : > { %8272 = vmatpush3.bf16.msra.mxu0 %v9069_v24  ;;  %v9078_v32 = vld [vmem:[#allocation8 + $0x98] sm:$0xff]   ;;  %v9082_v36 = vld [vmem:[#allocation8 + $0xa0] sm:$0xff]   ;;  %v9086_v40 = vld [vmem:[#allocation8 + $0xa8] sm:$0xff]  }
  0xfc   : > { %8348 = vmatpush3.bf16.msra.mxu1 %v9070_v49  ;;  %8273 = vmatprep.subr.bf16.mxu0 %v9071_v2  ;;  %v9087_v41 = vld [vmem:[#allocation8 + $0x70] sm:$0xff]   ;;  %v9091_v45 = vld [vmem:[#allocation8 + $0x78] sm:$0xff]   ;;  %v1145_v52 = vld [vmem:[%s10141_s16 + $0x8] sm:$0x1] }
  0xfd   : > { %8349 = vmatprep.subr.bf16.mxu1 %v9072_v25  ;;  %v9088_v42 = vld [vmem:[#allocation8 + $0xf0] sm:$0xff]   ;;  %v9092_v46 = vld [vmem:[#allocation8 + $0xf8] sm:$0xff]   ;;  %v1196_v57 = vshll.u32 %v1145_v52, 16  ;;  %v9095_v58 = vld [vmem:[%s10141_s16 + $0xc] sm:$0xff]  }
  0xfe   : > { %v9089_v43 = vld [vmem:[#allocation8 + $0x30] sm:$0xff]   ;;  %v9093_v47 = vld [vmem:[#allocation8 + $0x38] sm:$0xff]   ;;  %3648 = vmatprep.mubr.bf16.mxu1 %v9095_v58  ;;  %vm10150_vm13 = vmor %vm1526_vm9, %vm1527_vm10 }
  0xff   : > { %8274 = vmatpush3.bf16.msra.mxu0 %v9073_v26  ;;  %v9090_v44 = vld [vmem:[#allocation8 + $0xb0] sm:$0xff]   ;;  %v9094_v48 = vld [vmem:[#allocation8 + $0xb8] sm:$0xff]   ;;  %v1198_v63 = vrot.slane %v1196_v57, 5  ;;  %v1468_v6 = vld [vmem:[%s10141_s16 + $0x8] sm:$0x1] }
 0x100   : > { %8350 = vmatpush3.bf16.msra.mxu1 %v9074_v27  ;;  %8275 = vmatprep.subr.bf16.mxu0 %v9075_v29  ;;  %v1143_v50 = vld [vmem:[%s10141_s16] sm:$0xf]  ;;  %v1144_v51 = vld [vmem:[%s10141_s16 + $0x4] sm:$0xf]  ;;  %vm10159_vm14 = vmor %vm1173_vm11, %vm1174_vm12  ;;  %v1534_v11 = vrot.slane %v1468_v6, 5 }
 0x101   : > { %8351 = vmatprep.subr.bf16.mxu1 %v9076_v30  ;;  %v1177_v53 = vshrl.u32 %v1143_v50, 16  ;;  %v1180_v54 = vshll.u32 %v1143_v50, 16  ;;  %v1186_v55 = vshll.u32 %v1144_v51, 16  ;;  %v1190_v56 = vshrl.u32 %v1144_v51, 16  ;;  %v9096_v0 = vld [vmem:[%s10141_s16] sm:$0xff]   ;;  %v9097_v12 = vld [vmem:[#allocation8 + $0x140] sm:$0xff]   ;;  %vm10678_vm1 = vmand %vm4262_vm15, %vm4263_vm0 }
 0x102   : > { %v1466_v4 = vld [vmem:[%s10141_s16] sm:$0xe]  ;;  %v1467_v5 = vld [vmem:[%s10141_s16 + $0x4] sm:$0xf]  ;;  %v1146_v17 = vld [vmem:[%s10141_s16 + $0xc] sm:$0xf] }
 0x103   : > { %8276 = vmatpush3.bf16.msra.mxu0 %v9077_v28  ;;  %v1179_v59 = vrot.slane %v1177_v53, 4  ;;  %v1182_v60 = vrot.slane %v1180_v54, 5  ;;  %v1188_v61 = vrot.slane %v1186_v55, 5  ;;  %v1192_v62 = vrot.slane %v1190_v56, 4  ;;  %v9098_v19 = vld [vmem:[#allocation8 + $0x100] sm:$0xff]   ;;  %v9099_v30 = vld [vmem:[%s10141_s16 + $0x18] sm:$0xff]   ;;  %vm10685_vm3 = vmand %vm4262_vm15, %vm4295_vm2 }
 0x104   : > { %8352 = vmatpush3.bf16.msra.mxu1 %v9078_v32  ;;  %8277 = vmatprep.subr.bf16.mxu0 %v9079_v33  ;;  %v7639_v9 = vrot.slane %v1466_v4, 9  ;;  %v1531_v10 = vrot.slane %v1467_v5, 5  ;;  %v1147_v20 = vld [vmem:[%s10141_s16 + $0x10] sm:$0xf]  ;;  %v1148_v21 = vld [vmem:[%s10141_s16 + $0x14] sm:$0x1]  ;;  %vm10910_vm6 = vmand %vm4589_vm4, %vm4295_vm2 }
 0x105   : > { %8353 = vmatprep.subr.bf16.mxu1 %v9080_v34  ;;  %v1183_v3 = vor.u32 %v1182_v60, %v1179_v59  ;;  %v1193_v8 = vor.u32 %v1192_v62, %v1188_v61  ;;  %v1201_v22 = vshrl.u32 %v1146_v17, 16  ;;  %v1204_v23 = vshll.u32 %v1146_v17, 16  ;;  %v9100_v28 = vld [vmem:[%s10141_s16 + $0xc] sm:$0xff]   ;;  %v1149_v51 = vld [vmem:[%s10141_s16 + $0x18] sm:$0xf]  ;;  %vm10917_vm7 = vmor %vm4263_vm0, %vm4387_vm5 }
 0x106   : > { %v1532_v15 = vsel %vm10150_vm13, %v7639_v9, %v1531_v10  ;;  %v1533_v16 = vrot.slane %v1531_v10, 4  ;;  %v1210_v49 = vshll.u32 %v1147_v20, 16  ;;  %v1214_v2 = vshrl.u32 %v1147_v20, 16  ;;  %v1150_v53 = vld [vmem:[%s10141_s16 + $0x1c] sm:$0xf] }
 0x107   : > { %8278 = vmatpush3.bf16.msra.mxu0 %v9081_v35  ;;  %v1184_v13 = vrot.slane %v1183_v3, 4  ;;  %v1194_v14 = vrot.slane %v1193_v8, 4  ;;  %v1203_v27 = vrot.slane %v1201_v22, 4  ;;  %v1206_v29 = vrot.slane %v1204_v23, 5  ;;  %v9101_v35 = vld [vmem:[#allocation8 + $0x148] sm:$0xff]   ;;  %v9103_v3 = vld [vmem:[%s10141_s16 + $0x24] sm:$0xff]  }
 0x108   : > { %8354 = vmatpush3.bf16.msra.mxu1 %v9082_v36  ;;  %8279 = vmatprep.subr.bf16.mxu0 %v9083_v37  ;;  %v1535_v24 = vsel %vm10150_vm13, %v1533_v16, %v1534_v11  ;;  %v1212_v32 = vrot.slane %v1210_v49, 5  ;;  %v1216_v33 = vrot.slane %v1214_v2, 4  ;;  %v1220_v34 = vshll.u32 %v1148_v21, 16  ;;  %v1469_v37 = vld [vmem:[%s10141_s16 + $0xc] sm:$0xe]  ;;  %v9104_v4 = vld [vmem:[%s10141_s16 + $0x18] sm:$0xff]  }
 0x109   : > { %8355 = vmatprep.subr.bf16.mxu1 %v9084_v38  ;;  %v1189_v18 = vsel %vm10159_vm14, %v1184_v13, %v1188_v61  ;;  %v1199_v31 = vsel %vm10159_vm14, %v1194_v14, %v1198_v63  ;;  %v7649_v26 = vcombine.low %v1532_v15, %v1535_v24  ;;  %v1207_v36 = vor.u32 %v1206_v29, %v1203_v27  ;;  %v1470_v38 = vld [vmem:[%s10141_s16 + $0x10] sm:$0xf]  ;;  %v1151_v54 = vld [vmem:[%s10141_s16 + $0x20] sm:$0x1]  ;;  %v9105_v9 = vld [vmem:[#allocation8 + $0x150] sm:$0xff]  }
 0x10a   : > { %v7629_v25 = vcombine.low %v1189_v18, %v1199_v31  ;;  %v1225_v55 = vshrl.u32 %v1149_v51, 16  ;;  %v1228_v56 = vshll.u32 %v1149_v51, 16  ;;  %v1234_v59 = vshll.u32 %v1150_v53, 16  ;;  %v1472_v11 = vld [vmem:[%s10141_s16 + $0x18] sm:$0xe]  ;;  %v9110_v51 = vld [vmem:[%s10141_s16 + $0x3c] sm:$0xff]  }
 0x10b   : > { %8280 = vmatpush3.bf16.msra.mxu0 %v9085_v39  ;;  %v1471_v39 = vld [vmem:[%s10141_s16 + $0x14] sm:$0x1]  ;;  %v1238_v60 = vshrl.u32 %v1150_v53, 16  ;;  %v1244_v8 = vshll.u32 %v1151_v54, 16  ;;  %v1474_v13 = vld [vmem:[%s10141_s16 + $0x20] sm:$0x1] }
 0x10c   : > { %8356 = vmatpush3.bf16.msra.mxu1 %v9086_v40  ;;  %8281 = vmatprep.subr.bf16.mxu0 %v9087_v41  ;;  %v1217_v40 = vor.u32 %v1216_v33, %v1212_v32  ;;  %v1222_v41 = vrot.slane %v1220_v34, 5  ;;  %v1227_v63 = vrot.slane %v1225_v55, 4  ;;  %v1236_v5 = vrot.slane %v1234_v59, 5  ;;  %v9106_v18 = vld [vmem:[#allocation8 + $0x110] sm:$0xff]   ;;  %v1152_v31 = vld [vmem:[%s10141_s16 + $0x24] sm:$0xf] }
 0x10d   : > { %8357 = vmatprep.subr.bf16.mxu1 %v9088_v42  ;;  %3535 = vmatprep.mubr.bf16.mxu0 %v7629_v25  ;;  %v7640_v42 = vrot.slane %v1469_v37, 9  ;;  %v1240_v6 = vrot.slane %v1238_v60, 4  ;;  %v1246_v15 = vrot.slane %v1244_v8, 5  ;;  %v7641_v16 = vrot.slane %v1472_v11, 9  ;;  %v1153_v49 = vld [vmem:[%s10141_s16 + $0x28] sm:$0xf] }
 0x10e   : > { %v1548_v20 = vrot.slane %v1474_v13, 5  ;;  %v1154_v2 = vld [vmem:[%s10141_s16 + $0x2c] sm:$0x1]  ;;  %v1249_v25 = vshrl.u32 %v1152_v31, 16  ;;  %v9108_v37 = vld [vmem:[%s10141_s16 + $0x24] sm:$0xff]  }
 0x10f   : > { %8282 = vmatpush3.bf16.msra.mxu0 %v9089_v43  ;;  %v1538_v43 = vrot.slane %v1470_v38, 5  ;;  %v1241_v14 = vor.u32 %v1240_v6, %v1236_v5  ;;  %v1155_v54 = vld [vmem:[%s10141_s16 + $0x30] sm:$0xf]  ;;  %v1157_v59 = vld [vmem:[%s10141_s16 + $0x38] sm:$0x1] }
 0x110   : > { %8358 = vmatpush3.bf16.msra.mxu1 %v9090_v44  ;;  %8283 = vmatprep.subr.bf16.mxu0 %v9091_v45  ;;  %v9102_v44 = vld [vmem:[#allocation8 + $0x108] sm:$0xff]   ;;  %v1208_v45 = vrot.slane %v1207_v36, 4  ;;  %v1251_v34 = vrot.slane %v1249_v25, 4  ;;  %v1292_v6 = vshll.u32 %v1157_v59, 16 }
 0x111   : > { %8359 = vmatprep.subr.bf16.mxu1 %v9092_v46  ;;  %v1541_v46 = vrot.slane %v1471_v39, 5  ;;  %v1540_v50 = vrot.slane %v1538_v43, 4  ;;  %v1242_v21 = vrot.slane %v1241_v14, 4  ;;  %v9107_v36 = vld [vmem:[%s10141_s16 + $0x30] sm:$0xff]  }
 0x112   : > { %v1213_v52 = vsel %vm10159_vm14, %v1208_v45, %v1212_v32  ;;  %v1477_v45 = vld [vmem:[%s10141_s16 + $0x2c] sm:$0x1]  ;;  %v1294_v14 = vrot.slane %v1292_v6, 5 }
 0x113   : > { %8284 = vmatpush3.bf16.msra.mxu0 %v9093_v47  ;;  %v1218_v47 = vrot.slane %v1217_v40, 4  ;;  %v1542_v58 = vsel %vm10150_vm13, %v1540_v50, %v1541_v46  ;;  %v1247_v27 = vsel %vm10159_vm14, %v1242_v21, %v1246_v15  ;;  %v1268_v40 = vshll.u32 %v1154_v2, 16  ;;  %v9112_v15 = vld [vmem:[%s10141_s16 + $0x30] sm:$0xff]   ;;  %v1162_v6 = vld [vmem:[%s10141_s16 + $0x4c] sm:$0xf] }
 0x114   : > { %8360 = vmatpush3.bf16.msra.mxu1 %v9094_v48  ;;  %8421 = vmatprep.subr.bf16.mxu0 %v9097_v12  ;;  %v1539_v48 = vsel %vm10150_vm13, %v7640_v42, %v1538_v43  ;;  %v1473_v12 = vld [vmem:[%s10141_s16 + $0x1c] sm:$0xf]  ;;  %v1475_v43 = vld [vmem:[%s10141_s16 + $0x24] sm:$0xe]  ;;  %v1555_v53 = vrot.slane %v1477_v45, 5 }
 0x115   : > { %v1223_v57 = vsel %vm10159_vm14, %v1218_v47, %v1222_v41  ;;  %v7650_v62 = vcombine.low %v1539_v48, %v1542_v58  ;;  %v1545_v17 = vrot.slane %v1473_v12, 5  ;;  %v9109_v41 = vld [vmem:[#allocation8 + $0x158] sm:$0xff]   ;;  %v1270_v47 = vrot.slane %v1268_v40, 5  ;;  %v1156_v58 = vld [vmem:[%s10141_s16 + $0x34] sm:$0xf] }
 0x116   : > { %3536 = vmatmul.mubr.bf16.vlgmr.msra.gmra.mrb[0].mxu0 %v9096_v0  ;;  %v7630_v61 = vcombine.low %v1213_v52, %v1223_v57  ;;  %v1230_v0 = vrot.slane %v1228_v56, 5  ;;  %v7642_v48 = vrot.slane %v1475_v43, 9  ;;  %v9116_v43 = vld [vmem:[%s10141_s16 + $0x3c] sm:$0xff]  }
 0x117   : > { %3649 = vmatmul.mubr.bf16.vlgmr.msra.gmra.mrb[0].mxu1 %v7649_v26  ;;  %8422 = vmatpush3.bf16.msra.mxu0 %v9098_v19  ;;  %v1546_v22 = vsel %vm10150_vm13, %v7641_v16, %v1545_v17  ;;  %v1547_v23 = vrot.slane %v1545_v17, 4  ;;  %v1252_v26 = vshll.u32 %v1152_v31, 16  ;;  %v1478_v17 = vld [vmem:[%s10141_s16 + $0x30] sm:$0xe]  ;;  %v9113_v31 = vld [vmem:[#allocation8 + $0x1c0] sm:$0xff]  }
 0x118   : > { %3656 = vmatprep.mubr.bf16.mxu1 %v9099_v30  ;;  %8423 = vmatprep.subr.bf16.mxu0 %v9101_v35  ;;  %v1231_v10 = vor.u32 %v1230_v0, %v1227_v63  ;;  %v1258_v30 = vshll.u32 %v1153_v49, 16  ;;  %v1282_v63 = vshll.u32 %v1156_v58, 16  ;;  %v9111_v0 = vld [vmem:[#allocation8 + $0x118] sm:$0xff]   ;;  %v7643_v21 = vrot.slane %v1478_v17, 9 }
 0x119   : > { %3543 = vmatprep.mubr.bf16.mxu0 %v7630_v61  ;;  %v1549_v29 = vsel %vm10150_vm13, %v1547_v23, %v1548_v20  ;;  %v1254_v35 = vrot.slane %v1252_v26, 5  ;;  %v1273_v61 = vshrl.u32 %v1155_v54, 16  ;;  %8497 = vmatprep.subr.bf16.mxu1 %v9113_v31 }
 0x11a   : > { %v1232_v19 = vrot.slane %v1231_v10, 4  ;;  %v7651_v33 = vcombine.low %v1546_v22, %v1549_v29  ;;  %v1260_v38 = vrot.slane %v1258_v30, 5  ;;  %v1284_v12 = vrot.slane %v1282_v63, 5  ;;  %v1159_v30 = vld [vmem:[%s10141_s16 + $0x40] sm:$0xf] }
 0x11b   : > { %8424 = vmatpush3.bf16.msra.mxu0 %v9102_v44  ;;  %v1255_v42 = vor.u32 %v1254_v35, %v1251_v34  ;;  %v1476_v44 = vld [vmem:[%s10141_s16 + $0x28] sm:$0xf]  ;;  %v1275_v10 = vrot.slane %v1273_v61, 4 }
 0x11c   : > { %8425 = vmatprep.subr.bf16.mxu0 %v9105_v9  ;;  %v1237_v24 = vsel %vm10159_vm14, %v1232_v19, %v1236_v5  ;;  %v1552_v50 = vrot.slane %v1476_v44, 5  ;;  %v1286_v5 = vshrl.u32 %v1156_v58, 16  ;;  %v1480_v19 = vld [vmem:[%s10141_s16 + $0x38] sm:$0x1] }
 0x11d   : > { %v7631_v32 = vcombine.low %v1237_v24, %v1247_v27  ;;  %v1256_v52 = vrot.slane %v1255_v42, 4  ;;  %v1562_v23 = vrot.slane %v1480_v19, 5  ;;  %v1158_v27 = vld [vmem:[%s10141_s16 + $0x3c] sm:$0xf]  ;;  %v9115_v42 = vld [vmem:[%s10141_s16 + $0x48] sm:$0xff]  }
 0x11e   : > { %3544 = vmatmul.mubr.bf16.gmra.mrb[4].mxu0 %v9100_v28  ;;  %v1262_v28 = vshrl.u32 %v1153_v49, 16  ;;  %v1553_v56 = vsel %vm10150_vm13, %v7642_v48, %v1552_v50  ;;  %v1554_v57 = vrot.slane %v1552_v50, 4  ;;  %v1288_v13 = vrot.slane %v1286_v5, 4  ;;  %v9114_v49 = vld [vmem:[#allocation8 + $0x180] sm:$0xff]   ;;  %v1481_v50 = vld [vmem:[%s10141_s16 + $0x3c] sm:$0xe] }
 0x11f   : > { %3657 = vmatmul.mubr.bf16.gmra.mrb[4].mxu1 %v7650_v62  ;;  %8426 = vmatpush3.bf16.msra.mxu0 %v9106_v18  ;;  %v1261_v60 = vsel %vm10159_vm14, %v1256_v52, %v1260_v38  ;;  %v1276_v62 = vshll.u32 %v1155_v54, 16  ;;  %v1479_v18 = vld [vmem:[%s10141_s16 + $0x34] sm:$0xf]  ;;  %v1483_v52 = vld [vmem:[%s10141_s16 + $0x44] sm:$0x1] }
 0x120   : > { %3664 = vmatprep.mubr.bf16.mxu1 %v9103_v3  ;;  %v1264_v39 = vrot.slane %v1262_v28, 4  ;;  %3551 = vmatprep.mubr.bf16.mxu0 %v7631_v32  ;;  %v1289_v20 = vor.u32 %v1288_v13, %v1284_v12  ;;  %v1559_v22 = vrot.slane %v1479_v18, 5  ;;  %v1160_v28 = vld [vmem:[%s10141_s16 + $0x44] sm:$0x1]  ;;  %v1297_v32 = vshrl.u32 %v1158_v27, 16  ;;  %v9120_v18 = vld [vmem:[%s10141_s16 + $0x54] sm:$0xff]  }
 0x121   : > { %8427 = vmatprep.subr.bf16.mxu0 %v9109_v41  ;;  %v1278_v11 = vrot.slane %v1276_v62, 5  ;;  %8498 = vmatpush3.bf16.msra.mxu1 %v9114_v49  ;;  %v1569_v59 = vrot.slane %v1483_v52, 5  ;;  %v1330_v13 = vshll.u32 %v1162_v6, 16 }
 0x122   : > { %v1265_v46 = vor.u32 %v1264_v39, %v1260_v38  ;;  %v1290_v2 = vrot.slane %v1289_v20, 4  ;;  %v1560_v25 = vsel %vm10150_vm13, %v7643_v21, %v1559_v22  ;;  %v1561_v26 = vrot.slane %v1559_v22, 4  ;;  %v9121_v21 = vld [vmem:[#allocation8 + $0x188] sm:$0xff]   ;;  %v9122_v22 = vld [vmem:[%s10141_s16 + $0x48] sm:$0xff]  }
 0x123   : > { %8428 = vmatpush3.bf16.msra.mxu0 %v9111_v0  ;;  %v1279_v16 = vor.u32 %v1278_v11, %v1275_v10  ;;  %v1299_v40 = vrot.slane %v1297_v32, 4  ;;  %v9119_v0 = vld [vmem:[#allocation8 + $0x1c8] sm:$0xff]   ;;  %v1332_v19 = vrot.slane %v1330_v13, 5 }
 0x124   : > { %v1266_v55 = vrot.slane %v1265_v46, 4  ;;  %v1295_v34 = vsel %vm10159_vm14, %v1290_v2, %v1294_v14  ;;  %v1563_v35 = vsel %vm10150_vm13, %v1561_v26, %v1562_v23  ;;  %v1316_v46 = vshll.u32 %v1160_v28, 16  ;;  %8499 = vmatprep.subr.bf16.mxu1 %v9119_v0  ;;  %v1484_v2 = vld [vmem:[%s10141_s16 + $0x48] sm:$0xe]  ;;  %v1486_v26 = vld [vmem:[%s10141_s16 + $0x50] sm:$0x1] }
 0x125   : > { %v1280_v24 = vrot.slane %v1279_v16, 4  ;;  %v7653_v39 = vcombine.low %v1560_v25, %v1563_v35  ;;  %v1334_v14 = vshrl.u32 %v1162_v6, 16  ;;  %8500 = vmatpush3.bf16.msra.mxu1 %v9121_v21  ;;  %v1485_v25 = vld [vmem:[%s10141_s16 + $0x4c] sm:$0xf]  ;;  %v1576_v28 = vrot.slane %v1486_v26, 5 }
 0x126   : > { %3552 = vmatmul.mubr.bf16.gmra.mrb[8].mxu0 %v9104_v4  ;;  %v1271_v3 = vsel %vm10159_vm14, %v1266_v55, %v1270_v47  ;;  %v1556_v4 = vsel %vm10150_vm13, %v1554_v57, %v1555_v53  ;;  %v9117_v47 = vld [vmem:[#allocation8 + $0x160] sm:$0xff]   ;;  %v1318_v54 = vrot.slane %v1316_v46, 5  ;;  %v7644_v55 = vrot.slane %v1481_v50, 9 }
 0x127   : > { %3665 = vmatmul.mubr.bf16.gmra.mrb[8].mxu1 %v7651_v33  ;;  %v7632_v8 = vcombine.low %v1261_v60, %v1271_v3  ;;  %v7652_v9 = vcombine.low %v1553_v56, %v1556_v4  ;;  %v1285_v29 = vsel %vm10159_vm14, %v1280_v24, %v1284_v12  ;;  %v1300_v33 = vshll.u32 %v1158_v27, 16  ;;  %v9118_v57 = vld [vmem:[#allocation8 + $0x120] sm:$0xff]   ;;  %8429 = vmatprep.subr.bf16.mxu0 %v9117_v47  ;;  %v9123_v24 = vld [vmem:[#allocation8 + $0x168] sm:$0xff]  }
 0x128   : > { %3672 = vmatprep.mubr.bf16.mxu1 %v9107_v36  ;;  %v1306_v36 = vshll.u32 %v1159_v30, 16  ;;  %v7633_v38 = vcombine.low %v1285_v29, %v1295_v34  ;;  %8430 = vmatpush3.bf16.msra.mxu0 %v9118_v57  ;;  %v1161_v3 = vld [vmem:[%s10141_s16 + $0x48] sm:$0xf]  ;;  %v1336_v20 = vrot.slane %v1334_v14, 4  ;;  %v7645_v29 = vrot.slane %v1484_v2, 9  ;;  %v9130_v14 = vld [vmem:[#allocation8 + $0x130] sm:$0xff]  }
 0x129   : > { %3559 = vmatprep.mubr.bf16.mxu0 %v7632_v8  ;;  %v1302_v41 = vrot.slane %v1300_v33, 5  ;;  %v1163_v8 = vld [vmem:[%s10141_s16 + $0x50] sm:$0x1]  ;;  %v1324_v10 = vshll.u32 %v1161_v3, 16  ;;  %8431 = vmatprep.subr.bf16.mxu0 %v9123_v24 }
 0x12a   : > { %v1308_v44 = vrot.slane %v1306_v36, 5  ;;  %v1340_v17 = vshll.u32 %v1163_v8, 16  ;;  %v1337_v49 = vor.u32 %v1336_v20, %v1332_v19  ;;  %v9124_v33 = vld [vmem:[#allocation8 + $0x128] sm:$0xff]   ;;  %v1169_v20 = vld [vmem:[%s10141_s16 + $0x68] sm:$0x1] }
 0x12b   : > { %v1303_v48 = vor.u32 %v1302_v41, %v1299_v40  ;;  %v1326_v16 = vrot.slane %v1324_v10, 5  ;;  %v1165_v40 = vld [vmem:[%s10141_s16 + $0x58] sm:$0xf]  ;;  %v1166_v41 = vld [vmem:[%s10141_s16 + $0x5c] sm:$0x1]  ;;  %v1388_v24 = vshll.u32 %v1169_v20, 16 }
 0x12c   : > { %v1342_v31 = vrot.slane %v1340_v17, 5  ;;  %v1338_v32 = vrot.slane %v1337_v49, 4  ;;  %8432 = vmatpush3.bf16.msra.mxu0 %v9124_v33  ;;  %v1354_v46 = vshll.u32 %v1165_v40, 16  ;;  %v1358_v47 = vshrl.u32 %v1165_v40, 16  ;;  %v9129_v10 = vld [vmem:[#allocation8 + $0x170] sm:$0xff]   ;;  %v9131_v17 = vld [vmem:[#allocation8 + $0x1d8] sm:$0xff]  }
 0x12d   : > { %v1304_v58 = vrot.slane %v1303_v48, 4  ;;  %v1364_v52 = vshll.u32 %v1166_v41, 16  ;;  %8433 = vmatprep.subr.bf16.mxu0 %v9129_v10  ;;  %v9132_v49 = vld [vmem:[%s10141_s16 + $0x6c] sm:$0xff]   ;;  %v9134_v33 = vld [vmem:[%s10141_s16 + $0x60] sm:$0xff]   ;;  %v9143_v20 = vld [vmem:[#allocation8 + $0x1f0] sm:$0xff]  }
 0x12e   : > { %3560 = vmatmul.mubr.bf16.gmra.mrb[12].mxu0 %v9108_v37  ;;  %v1310_v37 = vshrl.u32 %v1159_v30, 16  ;;  %v1573_v30 = vrot.slane %v1485_v25, 5 }
 0x12f   : > { %3673 = vmatmul.mubr.bf16.gmra.mrb[12].mxu1 %v7652_v9  ;;  %3567 = vmatprep.mubr.bf16.mxu0 %v7633_v38  ;;  %v1309_v63 = vsel %vm10159_vm14, %v1304_v58, %v1308_v44  ;;  %v1321_v9 = vshrl.u32 %v1161_v3, 16  ;;  %v9125_v38 = vld [vmem:[%s10141_s16 + $0x60] sm:$0xff]   ;;  %v1366_v58 = vrot.slane %v1364_v52, 5  ;;  %v9138_v52 = vld [vmem:[#allocation8 + $0x1e8] sm:$0xff]  }
 0x130   : > { %3680 = vmatprep.mubr.bf16.mxu1 %v9110_v51  ;;  %v1312_v45 = vrot.slane %v1310_v37, 4  ;;  %v1482_v51 = vld [vmem:[%s10141_s16 + $0x40] sm:$0xf]  ;;  %v1574_v35 = vsel %vm10150_vm13, %v7645_v29, %v1573_v30  ;;  %v1575_v36 = vrot.slane %v1573_v30, 4  ;;  %v1164_v37 = vld [vmem:[%s10141_s16 + $0x54] sm:$0xf]  ;;  %8434 = vmatpush3.bf16.msra.mxu0 %v9130_v14 }
 0x131   : > { %v1566_v56 = vrot.slane %v1482_v51, 5  ;;  %v9133_v29 = vld [vmem:[#allocation8 + $0x198] sm:$0xff]   ;;  %v1494_v14 = vld [vmem:[%s10141_s16 + $0x70] sm:$0xf] }
 0x132   : > { %v1313_v53 = vor.u32 %v1312_v45, %v1308_v44  ;;  %v1577_v45 = vsel %vm10150_vm13, %v1575_v36, %v1576_v28  ;;  %v1492_v36 = vld [vmem:[%s10141_s16 + $0x68] sm:$0x1] }
 0x133   : > { %v1567_v61 = vsel %vm10150_vm13, %v7644_v55, %v1566_v56  ;;  %v1568_v62 = vrot.slane %v1566_v56, 4  ;;  %v7655_v48 = vcombine.low %v1574_v35, %v1577_v45  ;;  %v1360_v55 = vrot.slane %v1358_v47, 4  ;;  %v1487_v56 = vld [vmem:[%s10141_s16 + $0x54] sm:$0xe]  ;;  %v1491_v35 = vld [vmem:[%s10141_s16 + $0x64] sm:$0xf] }
 0x134   : > { %v1314_v60 = vrot.slane %v1313_v53, 4  ;;  %v9126_v53 = vld [vmem:[%s10141_s16 + $0x54] sm:$0xff]   ;;  %v1587_v41 = vrot.slane %v1491_v35, 5  ;;  %v9136_v47 = vld [vmem:[#allocation8 + $0x1a0] sm:$0xff]  }
 0x135   : > { %v1570_v5 = vsel %vm10150_vm13, %v1568_v62, %v1569_v59  ;;  %v1488_v59 = vld [vmem:[%s10141_s16 + $0x58] sm:$0xf]  ;;  %v7691_v35 = vld [vmem:[%s10141_s16 + $0xc] sm:$0xf] }
 0x136   : > { %3568 = vmatmul.mubr.bf16.gmra.mrb[16].mxu0 %v9112_v15  ;;  %v1319_v4 = vsel %vm10159_vm14, %v1314_v60, %v1318_v54  ;;  %v7654_v12 = vcombine.low %v1567_v61, %v1570_v5  ;;  %v1323_v15 = vrot.slane %v1321_v9, 4  ;;  %v1356_v54 = vrot.slane %v1354_v46, 5  ;;  %v1489_v60 = vld [vmem:[%s10141_s16 + $0x5c] sm:$0x1] }
 0x137   : > { %3681 = vmatmul.mubr.bf16.gmra.mrb[16].mxu1 %v7653_v39  ;;  %v7634_v11 = vcombine.low %v1309_v63, %v1319_v4  ;;  %v1343_v39 = vsel %vm10159_vm14, %v1338_v32, %v1342_v31  ;;  %v7646_v61 = vrot.slane %v1487_v56, 9  ;;  %v1580_v63 = vrot.slane %v1488_v59, 5  ;;  %v9127_v4 = vld [vmem:[#allocation8 + $0x1d0] sm:$0xff]   ;;  %v1172_v56 = vld [vmem:[%s10141_s16 + $0x74] sm:$0x1] }
 0x138   : > { %3688 = vmatprep.mubr.bf16.mxu1 %v9115_v42  ;;  %v1327_v23 = vor.u32 %v1326_v16, %v1323_v15  ;;  %v1345_v42 = vshrl.u32 %v1164_v37, 16  ;;  %v1361_v62 = vor.u32 %v1360_v55, %v1356_v54  ;;  %v1583_v0 = vrot.slane %v1489_v60, 5  ;;  %v9128_v9 = vld [vmem:[#allocation8 + $0x190] sm:$0xff]   ;;  %8501 = vmatprep.subr.bf16.mxu1 %v9127_v4  ;;  %v9140_v4 = vld [vmem:[#allocation8 + $0x138] sm:$0xff]  }
 0x139   : > { %3575 = vmatprep.mubr.bf16.mxu0 %v7634_v11  ;;  %v1581_v6 = vsel %vm10150_vm13, %v7646_v61, %v1580_v63  ;;  %v1582_v8 = vrot.slane %v1580_v63, 4  ;;  %8502 = vmatpush3.bf16.msra.mxu1 %v9128_v9  ;;  %v1390_v32 = vrot.slane %v1388_v24, 5  ;;  %v1589_v46 = vrot.slane %v1587_v41, 4  ;;  %v9139_v60 = vld [vmem:[%s10141_s16 + $0x78] sm:$0xff]  }
 0x13a   : > { %v1328_v27 = vrot.slane %v1327_v23, 4  ;;  %v1347_v50 = vrot.slane %v1345_v42, 4  ;;  %v1362_v5 = vrot.slane %v1361_v62, 4  ;;  %8503 = vmatprep.subr.bf16.mxu1 %v9131_v17  ;;  %v1590_v42 = vrot.slane %v1492_v36, 5  ;;  %v9144_v24 = vld [vmem:[#allocation8 + $0x1b0] sm:$0xff]  }
 0x13b   : > { %v1584_v13 = vsel %vm10150_vm13, %v1582_v8, %v1583_v0  ;;  %v1412_v62 = vshll.u32 %v1172_v56, 16  ;;  %v9141_v8 = vld [vmem:[#allocation8 + $0x1a8] sm:$0xff]  }
 0x13c   : > { %v1333_v34 = vsel %vm10159_vm14, %v1328_v27, %v1332_v19  ;;  %v7656_v16 = vcombine.low %v1581_v6, %v1584_v13  ;;  %v1168_v19 = vld [vmem:[%s10141_s16 + $0x64] sm:$0xf] }
 0x13d   : > { %v7635_v44 = vcombine.low %v1333_v34, %v1343_v39  ;;  %v1378_v23 = vshll.u32 %v1168_v19, 16  ;;  %v1382_v31 = vshrl.u32 %v1168_v19, 16  ;;  %v1490_v34 = vld [vmem:[%s10141_s16 + $0x60] sm:$0xe]  ;;  %8504 = vmatpush3.bf16.msra.mxu1 %v9133_v29  ;;  %v1414_v10 = vrot.slane %v1412_v62, 5 }
 0x13e   : > { %3576 = vmatmul.mubr.bf16.gmra.mrb[20].mxu0 %v9116_v43  ;;  %v1348_v43 = vshll.u32 %v1164_v37, 16  ;;  %v7647_v37 = vrot.slane %v1490_v34, 9  ;;  %v7733_v29 = vld [vmem:[%s10141_s16 + $0x14] sm:$0x1]  ;;  %v9146_v34 = vld [vmem:[#allocation8 + $0x1b8] sm:$0xff]  }
 0x13f   : > { %3689 = vmatmul.mubr.bf16.gmra.mrb[20].mxu1 %v7654_v12  ;;  %3583 = vmatprep.mubr.bf16.mxu0 %v7635_v44  ;;  %v1367_v12 = vsel %vm10159_vm14, %v1362_v5, %v1366_v58  ;;  %v1380_v26 = vrot.slane %v1378_v23, 5  ;;  %v1384_v27 = vrot.slane %v1382_v31, 4 }
 0x140   : > { %3696 = vmatprep.mubr.bf16.mxu1 %v9120_v18  ;;  %v1350_v51 = vrot.slane %v1348_v43, 5  ;;  %v1167_v18 = vld [vmem:[%s10141_s16 + $0x60] sm:$0xf]  ;;  %v1588_v45 = vsel %vm10150_vm13, %v7647_v37, %v1587_v41  ;;  %v1777_v41 = vshll.u32 %v7691_v35, 16 }
 0x141   : > { %v1369_v21 = vshrl.u32 %v1167_v18, 16  ;;  %v1385_v28 = vor.u32 %v1384_v27, %v1380_v26 }
 0x142   : > { %v1351_v57 = vor.u32 %v1350_v51, %v1347_v50  ;;  %v9137_v50 = vld [vmem:[#allocation8 + $0x178] sm:$0xff]   ;;  %v1591_v51 = vsel %vm10150_vm13, %v1589_v46, %v1590_v42 }
 0x143   : > { %v1371_v2 = vrot.slane %v1369_v21, 4  ;;  %v1386_v40 = vrot.slane %v1385_v28, 4  ;;  %v7657_v55 = vcombine.low %v1588_v45, %v1591_v51  ;;  %8435 = vmatprep.subr.bf16.mxu0 %v9137_v50  ;;  %v1779_v51 = vrot.slane %v1777_v41, 5 }
 0x144   : > { %v1352_v3 = vrot.slane %v1351_v57, 4  ;;  %8436 = vmatpush3.bf16.msra.mxu0 %v9140_v4 }
 0x145   : > { %v1391_v44 = vsel %vm10159_vm14, %v1386_v40, %v1390_v32  ;;  %v1774_v40 = vshrl.u32 %v7691_v35, 16 }
 0x146   : > { %3584 = vmatmul.mubr.bf16.gmra.mrb[24].mxu0 %v9122_v22  ;;  %v1357_v11 = vsel %vm10159_vm14, %v1352_v3, %v1356_v54  ;;  %v1372_v22 = vshll.u32 %v1167_v18, 16  ;;  %v1171_v54 = vld [vmem:[%s10141_s16 + $0x70] sm:$0xf]  ;;  %v1594_v18 = vrot.slane %v1494_v14, 5 }
 0x147   : > { %3697 = vmatmul.mubr.bf16.gmra.mrb[24].mxu1 %v7655_v48  ;;  %v7636_v15 = vcombine.low %v1357_v11, %v1367_v12  ;;  %v1402_v59 = vshll.u32 %v1171_v54, 16  ;;  %v1406_v61 = vshrl.u32 %v1171_v54, 16  ;;  %v9142_v11 = vld [vmem:[%s10141_s16 + $0x6c] sm:$0xff]   ;;  %v1776_v46 = vrot.slane %v1774_v40, 4  ;;  %v7814_v54 = vld [vmem:[%s10141_s16 + $0x1c] sm:$0xf] }
 0x148   : > { %3704 = vmatprep.mubr.bf16.mxu1 %v9125_v38  ;;  %v1374_v25 = vrot.slane %v1372_v22, 5  ;;  %v9135_v38 = vld [vmem:[#allocation8 + $0x1e0] sm:$0xff]   ;;  %v1596_v31 = vrot.slane %v1594_v18, 4 }
 0x149   : > { %3591 = vmatprep.mubr.bf16.mxu0 %v7636_v15  ;;  %8505 = vmatprep.subr.bf16.mxu1 %v9135_v38  ;;  %v1404_v3 = vrot.slane %v1402_v59, 5  ;;  %v1408_v5 = vrot.slane %v1406_v61, 4  ;;  %v1493_v12 = vld [vmem:[%s10141_s16 + $0x6c] sm:$0xe]  ;;  %v1495_v15 = vld [vmem:[%s10141_s16 + $0x74] sm:$0x1]  ;;  %v1780_v61 = vor.u32 %v1779_v51, %v1776_v46 }
 0x14a   : > { %v1375_v30 = vor.u32 %v1374_v25, %v1371_v2  ;;  %8506 = vmatpush3.bf16.msra.mxu1 %v9136_v47  ;;  %v1597_v19 = vrot.slane %v1495_v15, 5  ;;  %v9145_v2 = vld [vmem:[#allocation8 + $0x1f8] sm:$0xff]   ;;  %v7731_v25 = vld [vmem:[%s10141_s16 + $0xc] sm:$0xe]  ;;  %v7692_v38 = vld [vmem:[%s10141_s16 + $0x10] sm:$0xf] }
 0x14b   : > { %8507 = vmatprep.subr.bf16.mxu1 %v9138_v52  ;;  %v1409_v9 = vor.u32 %v1408_v5, %v1404_v3  ;;  %v1783_v42 = vshll.u32 %v7692_v38, 16  ;;  %v9147_v47 = vld [vmem:[#allocation8 + $0x200] sm:$0xff]   ;;  %v7736_v15 = vld [vmem:[%s10141_s16 + $0x20] sm:$0x1] }
 0x14c   : > { %v1376_v39 = vrot.slane %v1375_v30, 4  ;;  %v1598_v27 = vsel %vm10150_vm13, %v1596_v31, %v1597_v19  ;;  %v7761_v30 = vrot.slane %v7731_v25, 9  ;;  %8863 = vmatprep.subr.bf16.mxu0 %v9147_v47  ;;  %v7696_v31 = vld [vmem:[%s10141_s16 + $0x20] sm:$0x1] }
 0x14d   : > { %v1410_v17 = vrot.slane %v1409_v9, 4  ;;  %v1785_v52 = vrot.slane %v1783_v42, 5  ;;  %v1781_v9 = vrot.slane %v1780_v61, 4 }
 0x14e   : > { %3592 = vmatmul.mubr.bf16.gmra.mrb[28].mxu0 %v9126_v53  ;;  %v1381_v43 = vsel %vm10159_vm14, %v1376_v39, %v1380_v26  ;;  %v1170_v53 = vld [vmem:[%s10141_s16 + $0x6c] sm:$0xf]  ;;  %8508 = vmatpush3.bf16.msra.mxu1 %v9141_v8  ;;  %v7732_v26 = vld [vmem:[%s10141_s16 + $0x10] sm:$0xf]  ;;  %v7693_v39 = vld [vmem:[%s10141_s16 + $0x14] sm:$0x1] }
 0x14f   : > { %3705 = vmatmul.mubr.bf16.gmra.mrb[28].mxu1 %v7656_v16  ;;  %v7637_v48 = vcombine.low %v1381_v43, %v1391_v44  ;;  %v1393_v57 = vshrl.u32 %v1170_v53, 16  ;;  %v1396_v58 = vshll.u32 %v1170_v53, 16  ;;  %v7648_v16 = vrot.slane %v1493_v12, 9  ;;  %8509 = vmatprep.subr.bf16.mxu1 %v9143_v20  ;;  %v10333_v8 = vld [vmem:[%s10141_s16 + $0x24] sm:$0xff]  }
 0x150   : > { %3712 = vmatprep.mubr.bf16.mxu1 %v9132_v49  ;;  %v1415_v22 = vsel %vm10159_vm14, %v1410_v17, %v1414_v10  ;;  %v2125_v28 = vrot.slane %v7732_v26, 5  ;;  %v1787_v43 = vshrl.u32 %v7692_v38, 16  ;;  %v1793_v44 = vshll.u32 %v7693_v39, 16 }
 0x151   : > { %3599 = vmatprep.mubr.bf16.mxu0 %v7637_v48  ;;  %v1395_v63 = vrot.slane %v1393_v57, 4  ;;  %v1398_v0 = vrot.slane %v1396_v58, 5  ;;  %v1595_v23 = vsel %vm10150_vm13, %v7648_v16, %v1594_v18  ;;  %v7813_v48 = vld [vmem:[%s10141_s16 + $0x18] sm:$0xf]  ;;  %v7815_v57 = vld [vmem:[%s10141_s16 + $0x20] sm:$0x1]  ;;  %v1786_v19 = vsel %vm10159_vm14, %v1781_v9, %v1785_v52 }
 0x152   : > { %8510 = vmatpush3.bf16.msra.mxu1 %v9144_v24  ;;  %v7658_v32 = vcombine.low %v1595_v23, %v1598_v27  ;;  %v2126_v36 = vsel %vm10150_vm13, %v7761_v30, %v2125_v28  ;;  %v2127_v37 = vrot.slane %v2125_v28, 4  ;;  %v1789_v53 = vrot.slane %v1787_v43, 4  ;;  %v7694_v18 = vld [vmem:[%s10141_s16 + $0x18] sm:$0xf]  ;;  %v7695_v23 = vld [vmem:[%s10141_s16 + $0x1c] sm:$0xf] }
 0x153   : > { %v1399_v6 = vor.u32 %v1398_v0, %v1395_v63  ;;  %8511 = vmatprep.subr.bf16.mxu1 %v9145_v2  ;;  %v1795_v56 = vrot.slane %v1793_v44, 5  ;;  %v2368_v58 = vshrl.u32 %v7813_v48, 16  ;;  %v2371_v59 = vshll.u32 %v7813_v48, 16  ;;  %v9150_v24 = vld [vmem:[#allocation8 + $0x208] sm:$0xff]   ;;  %v7816_v27 = vld [vmem:[%s10141_s16 + $0x24] sm:$0xf] }
 0x154   : > { %v1790_v62 = vor.u32 %v1789_v53, %v1785_v52  ;;  %v2381_v63 = vshrl.u32 %v7814_v54, 16  ;;  %v2387_v0 = vshll.u32 %v7815_v57, 16  ;;  %v1798_v28 = vshrl.u32 %v7694_v18, 16  ;;  %v7737_v48 = vld [vmem:[%s10141_s16 + $0x24] sm:$0xe] }
 0x155   : > { %v1400_v13 = vrot.slane %v1399_v6, 4  ;;  %v2373_v4 = vrot.slane %v2371_v59, 5  ;;  %v7734_v6 = vld [vmem:[%s10141_s16 + $0x18] sm:$0xe]  ;;  %v1817_v38 = vshll.u32 %v7696_v31, 16  ;;  %v2392_v52 = vshrl.u32 %v7816_v27, 16 }
 0x156   : > { %3600 = vmatmul.mubr.bf16.gmra.mrb[32].mxu0 %v9134_v33  ;;  %v2128_v33 = vrot.slane %v7733_v29, 5  ;;  %8512 = vmatpush3.bf16.msra.mxu1 %v9146_v34  ;;  %v1791_v10 = vrot.slane %v1790_v62, 4  ;;  %v2389_v12 = vrot.slane %v2387_v0, 5  ;;  %v7762_v16 = vrot.slane %v7734_v6, 9  ;;  %v7817_v29 = vld [vmem:[%s10141_s16 + $0x28] sm:$0xf] }
 0x157   : > { %3713 = vmatmul.mubr.bf16.gmra.mrb[32].mxu1 %v7657_v55  ;;  %v1405_v21 = vsel %vm10159_vm14, %v1400_v13, %v1404_v3  ;;  %v10328_v55 = vld [vmem:[%s10141_s16 + $0x18] sm:$0xff]   ;;  %v2370_v3 = vrot.slane %v2368_v58, 4  ;;  %v7818_v34 = vld [vmem:[%s10141_s16 + $0x2c] sm:$0x1]  ;;  %v1800_v41 = vrot.slane %v1798_v28, 4  ;;  %v1819_v46 = vrot.slane %v1817_v38, 5 }
 0x158   : > { %3720 = vmatprep.mubr.bf16.mxu1 %v9139_v60  ;;  %v7638_v49 = vcombine.low %v1405_v21, %v1415_v22  ;;  %v2129_v45 = vsel %vm10150_vm13, %v2127_v37, %v2128_v33  ;;  %v2377_v60 = vshll.u32 %v7814_v54, 16  ;;  %v7735_v13 = vld [vmem:[%s10141_s16 + $0x1c] sm:$0xf]  ;;  %v1796_v20 = vsel %vm10159_vm14, %v1791_v10, %v1795_v56  ;;  %v7821_v28 = vld [vmem:[%s10141_s16 + $0x38] sm:$0x1] }
 0x159   : > { %v7771_v50 = vcombine.low %v2126_v36, %v2129_v45  ;;  %v2374_v14 = vor.u32 %v2373_v4, %v2370_v3  ;;  %v2132_v17 = vrot.slane %v7735_v13, 5  ;;  %v2135_v22 = vrot.slane %v7736_v15, 5  ;;  %v9152_v56 = vld [vmem:[#allocation8 + $0x210] sm:$0xff]  }
 0x15a   : > { %3607 = vmatprep.mubr.bf16.mxu0 %v7638_v49  ;;  %v2379_v5 = vrot.slane %v2377_v60, 5  ;;  %v7721_v49 = vcombine.low %v1786_v19, %v1796_v20  ;;  %v1807_v33 = vshll.u32 %v7695_v23, 16  ;;  %v1811_v37 = vshrl.u32 %v7695_v23, 16  ;;  %v7739_v60 = vld [vmem:[%s10141_s16 + $0x2c] sm:$0x1]  ;;  %v10362_v62 = vld [vmem:[%s10141_s16 + $0x3c] sm:$0xff]  }
 0x15b   : > { %v2375_v2 = vrot.slane %v2374_v14, 4  ;;  %v2133_v25 = vsel %vm10150_vm13, %v7762_v16, %v2132_v17  ;;  %v2134_v26 = vrot.slane %v2132_v17, 4  ;;  %v2395_v53 = vshll.u32 %v7816_v27, 16  ;;  %v7699_v20 = vld [vmem:[%s10141_s16 + $0x2c] sm:$0x1] }
 0x15c   : > { %v1809_v44 = vrot.slane %v1807_v33, 5  ;;  %v1813_v45 = vrot.slane %v1811_v37, 4  ;;  %v2401_v54 = vshll.u32 %v7817_v29, 16  ;;  %v2405_v58 = vshrl.u32 %v7817_v29, 16 }
 0x15d   : > { %v2380_v35 = vsel %vm10159_vm14, %v2375_v2, %v2379_v5  ;;  %v2136_v36 = vsel %vm10150_vm13, %v2134_v26, %v2135_v22  ;;  %v2411_v59 = vshll.u32 %v7818_v34, 16  ;;  %v7763_v61 = vrot.slane %v7737_v48, 9  ;;  %v9154_v22 = vld [vmem:[#allocation8 + $0x218] sm:$0xff]   ;;  %v7820_v2 = vld [vmem:[%s10141_s16 + $0x34] sm:$0xf] }
 0x15e   : > { %3608 = vmatmul.mubr.bf16.gmra.mrb[36].mxu0 %v9142_v11  ;;  %v2383_v11 = vrot.slane %v2381_v63, 4  ;;  %v7772_v40 = vcombine.low %v2133_v25, %v2136_v36  ;;  %v1814_v57 = vor.u32 %v1813_v45, %v1809_v44  ;;  %v2394_v0 = vrot.slane %v2392_v52, 4  ;;  %v10377_v25 = vld [vmem:[%s10141_s16 + $0x48] sm:$0xff]   ;;  %v7741_v48 = vld [vmem:[%s10141_s16 + $0x34] sm:$0xf] }
 0x15f   : > { %3721 = vmatmul.mubr.bf16.gmra.mrb[36].mxu1 %v7658_v32  ;;  %3761 = vmatprep.mubr.bf16.mxu0 %v7771_v50  ;;  %v1801_v32 = vshll.u32 %v7694_v18, 16  ;;  %v10357_v50 = vld [vmem:[%s10141_s16 + $0x30] sm:$0xff]   ;;  %v2397_v3 = vrot.slane %v2395_v53, 5  ;;  %v2403_v4 = vrot.slane %v2401_v54, 5  ;;  %v2407_v9 = vrot.slane %v2405_v58, 4 }
 0x160   : > { %v2384_v21 = vor.u32 %v2383_v11, %v2379_v5  ;;  %v7697_v5 = vld [vmem:[%s10141_s16 + $0x24] sm:$0xf]  ;;  %v1815_v6 = vrot.slane %v1814_v57, 4  ;;  %v2413_v10 = vrot.slane %v2411_v59, 5  ;;  %v2142_v14 = vrot.slane %v7739_v60, 5 }
 0x161   : > { %v1803_v42 = vrot.slane %v1801_v32, 5  ;;  %v2398_v13 = vor.u32 %v2397_v3, %v2394_v0  ;;  %v1822_v15 = vshrl.u32 %v7697_v5, 16  ;;  %v2408_v17 = vor.u32 %v2407_v9, %v2403_v4  ;;  %v9156_v32 = vld [vmem:[#allocation8 + $0x220] sm:$0xff]  }
 0x162   : > { %v2385_v30 = vrot.slane %v2384_v21, 4  ;;  %v1820_v16 = vsel %vm10159_vm14, %v1815_v6, %v1819_v46  ;;  %v7819_v21 = vld [vmem:[%s10141_s16 + $0x30] sm:$0xf]  ;;  %v1841_v36 = vshll.u32 %v7699_v20, 16  ;;  %v2425_v53 = vshll.u32 %v7820_v2, 16 }
 0x163   : > { %v1804_v51 = vor.u32 %v1803_v42, %v1800_v41  ;;  %v2399_v31 = vrot.slane %v2398_v13, 4  ;;  %v2409_v26 = vrot.slane %v2408_v17, 4  ;;  %v7740_v41 = vld [vmem:[%s10141_s16 + $0x30] sm:$0xe]  ;;  %v10388_v42 = vld [vmem:[%s10141_s16 + $0x54] sm:$0xff]   ;;  %v2419_v46 = vshll.u32 %v7819_v21, 16 }
 0x164   : > { %v2390_v39 = vsel %vm10159_vm14, %v2385_v30, %v2389_v12  ;;  %v1843_v45 = vrot.slane %v1841_v36, 5  ;;  %v2429_v54 = vshrl.u32 %v7820_v2, 16  ;;  %v2435_v59 = vshll.u32 %v7821_v28, 16  ;;  %v10418_v36 = vld [vmem:[%s10141_s16 + $0x78] sm:$0xff]  }
 0x165   : > { %v7843_v43 = vcombine.low %v2380_v35, %v2390_v39  ;;  %v1805_v63 = vrot.slane %v1804_v51, 4  ;;  %v2404_v33 = vsel %vm10159_vm14, %v2399_v31, %v2403_v4  ;;  %v2414_v37 = vsel %vm10159_vm14, %v2409_v26, %v2413_v10  ;;  %v7700_v4 = vld [vmem:[%s10141_s16 + $0x30] sm:$0xf] }
 0x166   : > { %3762 = vmatmul.mubr.bf16.vlgmr.msra.gmra.mrb[40].mxu0 %v7721_v49  ;;  %v1825_v49 = vshll.u32 %v7697_v5, 16  ;;  %v2421_v58 = vrot.slane %v2419_v46, 5  ;;  %v7764_v60 = vrot.slane %v7740_v41, 9  ;;  %v2431_v0 = vrot.slane %v2429_v54, 4  ;;  %v7743_v41 = vld [vmem:[%s10141_s16 + $0x3c] sm:$0xe] }
 0x167   : > { %8864 = vmatpush3.bf16.msra.mxu0 %v9147_v47  ;;  %3769 = vmatprep.mubr.bf16.mxu0 %v7772_v40  ;;  %v7738_v47 = vld [vmem:[%s10141_s16 + $0x28] sm:$0xf]  ;;  %v1810_v12 = vsel %vm10159_vm14, %v1805_v63, %v1809_v44  ;;  %v2416_v40 = vshrl.u32 %v7819_v21, 16  ;;  %v2427_v63 = vrot.slane %v2425_v53, 5  ;;  %v2146_v3 = vrot.slane %v7741_v48, 5  ;;  %v10407_v21 = vld [vmem:[%s10141_s16 + $0x6c] sm:$0xff]  }
 0x168   : > { %8865 = vmatprep.subr.bf16.mxu0 %v9150_v24  ;;  %3874 = vmatprep.mubr.bf16.mxu1 %v7843_v43  ;;  %v2139_v11 = vrot.slane %v7738_v47, 5  ;;  %v7722_v23 = vcombine.low %v1810_v12, %v1820_v16  ;;  %v1827_v35 = vrot.slane %v1825_v49, 5  ;;  %v7844_v43 = vcombine.low %v2404_v33, %v2414_v37  ;;  %v7742_v47 = vld [vmem:[%s10141_s16 + $0x38] sm:$0x1]  ;;  %v9159_v16 = vld [vmem:[#allocation8 + $0x228] sm:$0xff]  }
 0x169   : > { %3875 = vmatmul.mubr.bf16.vlgmr.msra.gmra.mrb[40].mxu1 %v10328_v55  ;;  %v7698_v55 = vld [vmem:[%s10141_s16 + $0x28] sm:$0xf]  ;;  %v2418_v52 = vrot.slane %v2416_v40, 4  ;;  %v2437_v9 = vrot.slane %v2435_v59, 5  ;;  %v2149_v10 = vrot.slane %v7742_v47, 5  ;;  %v1849_v20 = vshll.u32 %v7700_v4, 16 }
 0x16a   : > { %v2140_v18 = vsel %vm10150_vm13, %v7763_v61, %v2139_v11  ;;  %v2141_v19 = vrot.slane %v2139_v11, 4  ;;  %v1831_v29 = vshll.u32 %v7698_v55, 16  ;;  %v1835_v30 = vshrl.u32 %v7698_v55, 16  ;;  %3882 = vmatprep.mubr.bf16.mxu1 %v7844_v43  ;;  %v7701_v11 = vld [vmem:[%s10141_s16 + $0x34] sm:$0xf]  ;;  %v9161_v49 = vld [vmem:[#allocation8 + $0x230] sm:$0xff]  }
 0x16b   : > { %8866 = vmatpush3.bf16.msra.mxu0 %v9150_v24  ;;  %v1824_v24 = vrot.slane %v1822_v15, 4  ;;  %v2422_v6 = vor.u32 %v2421_v58, %v2418_v52  ;;  %v7702_v12 = vld [vmem:[%s10141_s16 + $0x38] sm:$0x1]  ;;  %v2148_v55 = vrot.slane %v2146_v3, 4  ;;  %v7822_v15 = vld [vmem:[%s10141_s16 + $0x3c] sm:$0xf] }
 0x16c   : > { %8867 = vmatprep.subr.bf16.mxu0 %v9152_v56  ;;  %v2143_v27 = vsel %vm10150_vm13, %v2141_v19, %v2142_v14  ;;  %v1833_v38 = vrot.slane %v1831_v29, 5  ;;  %v1837_v39 = vrot.slane %v1835_v30, 4  ;;  %v2147_v14 = vsel %vm10150_vm13, %v7764_v60, %v2146_v3  ;;  %v7823_v30 = vld [vmem:[%s10141_s16 + $0x40] sm:$0xf]  ;;  %v7703_v58 = vld [vmem:[%s10141_s16 + $0x3c] sm:$0xf] }
 0x16d   : > { %v7773_v34 = vcombine.low %v2140_v18, %v2143_v27  ;;  %v1828_v44 = vor.u32 %v1827_v35, %v1824_v24  ;;  %v2423_v18 = vrot.slane %v2422_v6, 4  ;;  %v1846_v19 = vshrl.u32 %v7700_v4, 16  ;;  %v7824_v35 = vld [vmem:[%s10141_s16 + $0x44] sm:$0x1]  ;;  %v7744_v43 = vld [vmem:[%s10141_s16 + $0x40] sm:$0xf] }
 0x16e   : > { %3770 = vmatmul.mubr.bf16.gmra.mrb[44].mxu0 %v7722_v23  ;;  %v1838_v51 = vor.u32 %v1837_v39, %v1833_v38  ;;  %v2150_v23 = vsel %vm10150_vm13, %v2148_v55, %v2149_v10  ;;  %v1855_v31 = vshll.u32 %v7701_v11, 16  ;;  %v1859_v24 = vshrl.u32 %v7701_v11, 16  ;;  %v9163_v52 = vld [vmem:[#allocation8 + $0x238] sm:$0xff]  }
 0x16f   : > { %8868 = vmatpush3.bf16.msra.mxu0 %v9152_v56  ;;  %3777 = vmatprep.mubr.bf16.mxu0 %v7773_v34  ;;  %v10393_v56 = vld [vmem:[%s10141_s16 + $0x60] sm:$0xff]   ;;  %v1829_v57 = vrot.slane %v1828_v44, 4  ;;  %v2428_v2 = vsel %vm10159_vm14, %v2423_v18, %v2427_v63  ;;  %v7774_v26 = vcombine.low %v2147_v14, %v2150_v23  ;;  %v1848_v27 = vrot.slane %v1846_v19, 4 }
 0x170   : > { %8869 = vmatprep.subr.bf16.mxu0 %v9154_v22  ;;  %v1839_v61 = vrot.slane %v1838_v51, 4  ;;  %v1851_v29 = vrot.slane %v1849_v20, 5  ;;  %v1861_v33 = vrot.slane %v1859_v24, 4  ;;  %v1865_v34 = vshll.u32 %v7702_v12, 16  ;;  %v7745_v51 = vld [vmem:[%s10141_s16 + $0x44] sm:$0x1] }
 0x171   : > { %3883 = vmatmul.mubr.bf16.gmra.mrb[44].mxu1 %v10333_v8  ;;  %v1834_v5 = vsel %vm10159_vm14, %v1829_v57, %v1833_v38  ;;  %v2432_v8 = vor.u32 %v2431_v0, %v2427_v63  ;;  %v2440_v39 = vshrl.u32 %v7822_v15, 16  ;;  %v2443_v40 = vshll.u32 %v7822_v15, 16  ;;  %v7704_v6 = vld [vmem:[%s10141_s16 + $0x40] sm:$0xf]  ;;  %v7825_v15 = vld [vmem:[%s10141_s16 + $0x48] sm:$0xf] }
 0x172   : > { %v1844_v13 = vsel %vm10159_vm14, %v1839_v61, %v1843_v45  ;;  %v1852_v38 = vor.u32 %v1851_v29, %v1848_v27  ;;  %v1867_v45 = vrot.slane %v1865_v34, 5  ;;  %v2449_v46 = vshll.u32 %v7823_v30, 16  ;;  %v7826_v20 = vld [vmem:[%s10141_s16 + $0x4c] sm:$0xf] }
 0x173   : > { %8870 = vmatpush3.bf16.msra.mxu0 %v9154_v22  ;;  %v7723_v17 = vcombine.low %v1834_v5, %v1844_v13  ;;  %v2433_v22 = vrot.slane %v2432_v8, 4  ;;  %v2453_v48 = vshrl.u32 %v7823_v30, 16  ;;  %v2442_v54 = vrot.slane %v2440_v39, 4 }
 0x174   : > { %8871 = vmatprep.subr.bf16.mxu0 %v9156_v32  ;;  %v1853_v53 = vrot.slane %v1852_v38, 4  ;;  %v2445_v47 = vrot.slane %v2443_v40, 5  ;;  %v2459_v57 = vshll.u32 %v7824_v35, 16  ;;  %v2451_v60 = vrot.slane %v2449_v46, 5 }
 0x175   : > { %v2438_v28 = vsel %vm10159_vm14, %v2433_v22, %v2437_v9  ;;  %v2455_v61 = vrot.slane %v2453_v48, 4  ;;  %v7765_v63 = vrot.slane %v7743_v41, 9  ;;  %v2153_v5 = vrot.slane %v7744_v43, 5  ;;  %v7705_v9 = vld [vmem:[%s10141_s16 + $0x44] sm:$0x1] }
 0x176   : > { %3778 = vmatmul.mubr.bf16.gmra.mrb[48].mxu0 %v7723_v17  ;;  %v7845_v37 = vcombine.low %v2428_v2, %v2438_v28  ;;  %v2446_v3 = vor.u32 %v2445_v47, %v2442_v54  ;;  %v2461_v4 = vrot.slane %v2459_v57, 5  ;;  %v2156_v11 = vrot.slane %v7745_v51, 5  ;;  %v7746_v2 = vld [vmem:[%s10141_s16 + $0x48] sm:$0xe]  ;;  %v7747_v28 = vld [vmem:[%s10141_s16 + $0x4c] sm:$0xf] }
 0x177   : > { %8872 = vmatpush3.bf16.msra.mxu0 %v9156_v32  ;;  %v1857_v32 = vrot.slane %v1855_v31, 5  ;;  %3785 = vmatprep.mubr.bf16.mxu0 %v7774_v26  ;;  %v1870_v12 = vshrl.u32 %v7703_v58, 16  ;;  %v2154_v14 = vsel %vm10150_vm13, %v7765_v63, %v2153_v5  ;;  %v2155_v55 = vrot.slane %v2153_v5, 4  ;;  %v7748_v43 = vld [vmem:[%s10141_s16 + $0x50] sm:$0x1] }
 0x178   : > { %8873 = vmatprep.subr.bf16.mxu0 %v9159_v16  ;;  %3890 = vmatprep.mubr.bf16.mxu1 %v7845_v37  ;;  %v2447_v8 = vrot.slane %v2446_v3, 4  ;;  %v1873_v18 = vshll.u32 %v7703_v58, 16  ;;  %v1879_v19 = vshll.u32 %v7704_v6, 16  ;;  %v1883_v31 = vshrl.u32 %v7704_v6, 16  ;;  %v10445_v37 = vld [vmem:[%s10141_s16 + $0x84] sm:$0xff]  }
 0x179   : > { %v1862_v44 = vor.u32 %v1861_v33, %v1857_v32  ;;  %3891 = vmatmul.mubr.bf16.gmra.mrb[48].mxu1 %v10357_v50  ;;  %v1858_v0 = vsel %vm10159_vm14, %v1853_v53, %v1857_v32  ;;  %v2456_v50 = vor.u32 %v2455_v61, %v2451_v60  ;;  %v1872_v17 = vrot.slane %v1870_v12, 4  ;;  %v7706_v51 = vld [vmem:[%s10141_s16 + $0x48] sm:$0xf]  ;;  %v7707_v3 = vld [vmem:[%s10141_s16 + $0x4c] sm:$0xf] }
 0x17a   : > { %v2452_v22 = vsel %vm10159_vm14, %v2447_v8, %v2451_v60  ;;  %v2157_v23 = vsel %vm10150_vm13, %v2155_v55, %v2156_v11  ;;  %v1889_v24 = vshll.u32 %v7705_v9, 16  ;;  %v1875_v29 = vrot.slane %v1873_v18, 5  ;;  %v7708_v9 = vld [vmem:[%s10141_s16 + $0x50] sm:$0x1]  ;;  %v7828_v8 = vld [vmem:[%s10141_s16 + $0x54] sm:$0xf] }
 0x17b   : > { %8874 = vmatpush3.bf16.msra.mxu0 %v9159_v16  ;;  %v1863_v59 = vrot.slane %v1862_v44, 4  ;;  %v2457_v16 = vrot.slane %v2456_v50, 4  ;;  %v7775_v27 = vcombine.low %v2154_v14, %v2157_v23  ;;  %v1881_v30 = vrot.slane %v1879_v19, 5  ;;  %v7830_v23 = vld [vmem:[%s10141_s16 + $0x5c] sm:$0x1] }
 0x17c   : > { %8875 = vmatprep.subr.bf16.mxu0 %v9161_v49  ;;  %v1885_v33 = vrot.slane %v1883_v31, 4  ;;  %v1891_v34 = vrot.slane %v1889_v24, 5  ;;  %v2464_v35 = vshrl.u32 %v7825_v15, 16  ;;  %v1876_v38 = vor.u32 %v1875_v29, %v1872_v17  ;;  %v7829_v17 = vld [vmem:[%s10141_s16 + $0x58] sm:$0xf] }
 0x17d   : > { %v1868_v10 = vsel %vm10159_vm14, %v1863_v59, %v1867_v45  ;;  %v2462_v26 = vsel %vm10159_vm14, %v2457_v16, %v2461_v4  ;;  %v2467_v39 = vshll.u32 %v7825_v15, 16  ;;  %v2473_v40 = vshll.u32 %v7826_v20, 16  ;;  %v7749_v31 = vld [vmem:[%s10141_s16 + $0x54] sm:$0xe]  ;;  %v7751_v29 = vld [vmem:[%s10141_s16 + $0x5c] sm:$0x1] }
 0x17e   : > { %v7724_v13 = vcombine.low %v1858_v0, %v1868_v10  ;;  %v7846_v32 = vcombine.low %v2452_v22, %v2462_v26  ;;  %v2477_v41 = vshrl.u32 %v7826_v20, 16  ;;  %v1886_v44 = vor.u32 %v1885_v33, %v1881_v30 }
 0x17f   : > { %8876 = vmatpush3.bf16.msra.mxu0 %v9161_v49  ;;  %v7827_v49 = vld [vmem:[%s10141_s16 + $0x50] sm:$0x1]  ;;  %v2466_v45 = vrot.slane %v2464_v35, 4  ;;  %v7766_v48 = vrot.slane %v7746_v2, 9  ;;  %v2469_v53 = vrot.slane %v2467_v39, 5  ;;  %v2475_v54 = vrot.slane %v2473_v40, 5 }
 0x180   : > { %8877 = vmatprep.subr.bf16.mxu0 %v9163_v52  ;;  %3786 = vmatmul.mubr.bf16.gmra.mrb[52].mxu0 %v7724_v13  ;;  %v2483_v46 = vshll.u32 %v7827_v49, 16  ;;  %v2479_v47 = vrot.slane %v2477_v41, 4  ;;  %v1887_v57 = vrot.slane %v1886_v44, 4  ;;  %v2160_v59 = vrot.slane %v7747_v28, 5  ;;  %v7710_v35 = vld [vmem:[%s10141_s16 + $0x58] sm:$0xf] }
 0x181   : > { %3793 = vmatprep.mubr.bf16.mxu0 %v7775_v27  ;;  %3898 = vmatprep.mubr.bf16.mxu1 %v7846_v32  ;;  %v2163_v60 = vrot.slane %v7748_v43, 5  ;;  %v2470_v63 = vor.u32 %v2469_v53, %v2466_v45  ;;  %v1894_v4 = vshrl.u32 %v7706_v51, 16  ;;  %v1897_v10 = vshll.u32 %v7706_v51, 16  ;;  %v7750_v27 = vld [vmem:[%s10141_s16 + $0x58] sm:$0xf] }
 0x182   : > { %3899 = vmatmul.mubr.bf16.gmra.mrb[52].mxu1 %v10362_v62  ;;  %v2485_v58 = vrot.slane %v2483_v46, 5  ;;  %v2480_v0 = vor.u32 %v2479_v47, %v2475_v54  ;;  %v1892_v62 = vsel %vm10159_vm14, %v1887_v57, %v1891_v34  ;;  %v2161_v5 = vsel %vm10150_vm13, %v7766_v48, %v2160_v59 }
 0x183   : > { %8878 = vmatpush3.bf16.msra.mxu0 %v9163_v52  ;;  %v1877_v52 = vrot.slane %v1876_v38, 4  ;;  %v2162_v6 = vrot.slane %v2160_v59, 4  ;;  %v2471_v11 = vrot.slane %v2470_v63, 4  ;;  %v1896_v13 = vrot.slane %v1894_v4, 4 }
 0x184   : > { %v2481_v12 = vrot.slane %v2480_v0, 4  ;;  %v1899_v55 = vrot.slane %v1897_v10, 5  ;;  %v1903_v15 = vshll.u32 %v7707_v3, 16  ;;  %v1907_v16 = vshrl.u32 %v7707_v3, 16 }
 0x185   : > { %v1882_v61 = vsel %vm10159_vm14, %v1877_v52, %v1881_v30  ;;  %v2164_v14 = vsel %vm10150_vm13, %v2162_v6, %v2163_v60  ;;  %v2476_v18 = vsel %vm10159_vm14, %v2471_v11, %v2475_v54  ;;  %v1913_v22 = vshll.u32 %v7708_v9, 16  ;;  %v7709_v30 = vld [vmem:[%s10141_s16 + $0x54] sm:$0xf]  ;;  %v7711_v60 = vld [vmem:[%s10141_s16 + $0x5c] sm:$0x1] }
 0x186   : > { %v7725_v50 = vcombine.low %v1882_v61, %v1892_v62  ;;  %v2486_v19 = vsel %vm10159_vm14, %v2481_v12, %v2485_v58  ;;  %v7776_v20 = vcombine.low %v2161_v5, %v2164_v14  ;;  %v1900_v49 = vor.u32 %v1899_v55, %v1896_v13  ;;  %v7831_v5 = vld [vmem:[%s10141_s16 + $0x60] sm:$0xf]  ;;  %v7832_v6 = vld [vmem:[%s10141_s16 + $0x64] sm:$0xf]  ;;  %v7833_v12 = vld [vmem:[%s10141_s16 + $0x68] sm:$0x1] }
 0x187   : > { %v7847_v24 = vcombine.low %v2476_v18, %v2486_v19  ;;  %v1905_v2 = vrot.slane %v1903_v15, 5  ;;  %v1909_v26 = vrot.slane %v1907_v16, 4  ;;  %v1915_v28 = vrot.slane %v1913_v22, 5  ;;  %v7752_v15 = vld [vmem:[%s10141_s16 + $0x60] sm:$0xe] }
 0x188   : > { %3794 = vmatmul.mubr.bf16.gmra.mrb[56].mxu0 %v7725_v50  ;;  %v2488_v32 = vshrl.u32 %v7828_v8, 16  ;;  %v2491_v33 = vshll.u32 %v7828_v8, 16  ;;  %v2497_v34 = vshll.u32 %v7829_v17, 16  ;;  %v1901_v38 = vrot.slane %v1900_v49, 4  ;;  %v7753_v16 = vld [vmem:[%s10141_s16 + $0x64] sm:$0xf] }
 0x189   : > { %3801 = vmatprep.mubr.bf16.mxu0 %v7776_v20  ;;  %3906 = vmatprep.mubr.bf16.mxu1 %v7847_v24  ;;  %v1910_v39 = vor.u32 %v1909_v26, %v1905_v2  ;;  %v2501_v40 = vshrl.u32 %v7829_v17, 16  ;;  %v2507_v41 = vshll.u32 %v7830_v23, 16  ;;  %v7767_v46 = vrot.slane %v7749_v31, 9  ;;  %v7754_v22 = vld [vmem:[%s10141_s16 + $0x68] sm:$0x1] }
 0x18a   : > { %3907 = vmatmul.mubr.bf16.gmra.mrb[56].mxu1 %v10377_v25  ;;  %v2490_v43 = vrot.slane %v2488_v32, 4  ;;  %v2493_v44 = vrot.slane %v2491_v33, 5  ;;  %v2499_v45 = vrot.slane %v2497_v34, 5  ;;  %v1906_v48 = vsel %vm10159_vm14, %v1901_v38, %v1905_v2  ;;  %v7712_v2 = vld [vmem:[%s10141_s16 + $0x60] sm:$0xf] }
 0x18b   : > { %v1911_v51 = vrot.slane %v1910_v39, 4  ;;  %v2503_v52 = vrot.slane %v2501_v40, 4  ;;  %v2509_v53 = vrot.slane %v2507_v41, 5  ;;  %v2167_v47 = vrot.slane %v7750_v27, 5  ;;  %v7713_v41 = vld [vmem:[%s10141_s16 + $0x64] sm:$0xf] }
 0x18c   : > { %v2494_v54 = vor.u32 %v2493_v44, %v2490_v43  ;;  %v2170_v57 = vrot.slane %v7751_v29, 5  ;;  %v1918_v58 = vshrl.u32 %v7709_v30, 16  ;;  %v1921_v61 = vshll.u32 %v7709_v30, 16 }
 0x18d   : > { %v1916_v25 = vsel %vm10159_vm14, %v1911_v51, %v1915_v28  ;;  %v2504_v59 = vor.u32 %v2503_v52, %v2499_v45  ;;  %v1927_v63 = vshll.u32 %v7710_v35, 16  ;;  %v2168_v4 = vsel %vm10150_vm13, %v7767_v46, %v2167_v47 }
 0x18e   : > { %v7726_v0 = vcombine.low %v1906_v48, %v1916_v25  ;;  %v2495_v3 = vrot.slane %v2494_v54, 4  ;;  %v2169_v62 = vrot.slane %v2167_v47, 4  ;;  %v1920_v10 = vrot.slane %v1918_v58, 4  ;;  %v7834_v25 = vld [vmem:[%s10141_s16 + $0x6c] sm:$0xf] }
 0x18f   : > { %v2505_v9 = vrot.slane %v2504_v59, 4  ;;  %v1923_v50 = vrot.slane %v1921_v61, 5  ;;  %v1929_v11 = vrot.slane %v1927_v63, 5  ;;  %v1931_v14 = vshrl.u32 %v7710_v35, 16 }
 0x190   : > { %3802 = vmatmul.mubr.bf16.gmra.mrb[60].mxu0 %v7726_v0  ;;  %v2500_v13 = vsel %vm10159_vm14, %v2495_v3, %v2499_v45  ;;  %v2171_v8 = vsel %vm10150_vm13, %v2169_v62, %v2170_v57  ;;  %v1937_v55 = vshll.u32 %v7711_v60, 16  ;;  %v2512_v20 = vshrl.u32 %v7831_v5, 16  ;;  %v7835_v0 = vld [vmem:[%s10141_s16 + $0x70] sm:$0xf]  ;;  %v7836_v3 = vld [vmem:[%s10141_s16 + $0x74] sm:$0x1] }
 0x191   : > { %v2510_v17 = vsel %vm10159_vm14, %v2505_v9, %v2509_v53  ;;  %v7777_v18 = vcombine.low %v2168_v4, %v2171_v8  ;;  %v1924_v19 = vor.u32 %v1923_v50, %v1920_v10  ;;  %v1933_v31 = vrot.slane %v1931_v14, 4  ;;  %v7755_v9 = vld [vmem:[%s10141_s16 + $0x6c] sm:$0xe]  ;;  %v7756_v10 = vld [vmem:[%s10141_s16 + $0x70] sm:$0xf] }
 0x192   : > { %v7848_v23 = vcombine.low %v2500_v13, %v2510_v17  ;;  %v1939_v24 = vrot.slane %v1937_v55, 5  ;;  %v2515_v49 = vshll.u32 %v7831_v5, 16  ;;  %v2514_v27 = vrot.slane %v2512_v20, 4  ;;  %v7757_v8 = vld [vmem:[%s10141_s16 + $0x74] sm:$0x1] }
 0x193   : > { %3809 = vmatprep.mubr.bf16.mxu0 %v7777_v18  ;;  %v1925_v26 = vrot.slane %v1924_v19, 4  ;;  %v2521_v29 = vshll.u32 %v7832_v6, 16  ;;  %v2525_v30 = vshrl.u32 %v7832_v6, 16  ;;  %v1934_v28 = vor.u32 %v1933_v31, %v1929_v11 }
 0x194   : > { %3914 = vmatprep.mubr.bf16.mxu1 %v7848_v23  ;;  %v2517_v32 = vrot.slane %v2515_v49, 5  ;;  %v2531_v33 = vshll.u32 %v7833_v12, 16  ;;  %v7768_v34 = vrot.slane %v7752_v15, 9  ;;  %v2174_v40 = vrot.slane %v7753_v16, 5  ;;  %v7715_v49 = vld [vmem:[%s10141_s16 + $0x6c] sm:$0xf] }
 0x195   : > { %3915 = vmatmul.mubr.bf16.gmra.mrb[60].mxu1 %v10388_v42  ;;  %v1930_v35 = vsel %vm10159_vm14, %v1925_v26, %v1929_v11  ;;  %v2523_v38 = vrot.slane %v2521_v29, 5  ;;  %v2527_v39 = vrot.slane %v2525_v30, 4  ;;  %v1935_v43 = vrot.slane %v1934_v28, 4  ;;  %v7714_v42 = vld [vmem:[%s10141_s16 + $0x68] sm:$0x1] }
 0x196   : > { %v2518_v44 = vor.u32 %v2517_v32, %v2514_v27  ;;  %v2533_v45 = vrot.slane %v2531_v33, 5  ;;  %v2177_v46 = vrot.slane %v7754_v22, 5  ;;  %v2175_v51 = vsel %vm10150_vm13, %v7768_v34, %v2174_v40  ;;  %v7716_v30 = vld [vmem:[%s10141_s16 + $0x70] sm:$0xf] }
 0x197   : > { %v2528_v48 = vor.u32 %v2527_v39, %v2523_v38  ;;  %v2176_v52 = vrot.slane %v2174_v40, 4  ;;  %v1942_v53 = vshrl.u32 %v7712_v2, 16  ;;  %v1940_v54 = vsel %vm10159_vm14, %v1935_v43, %v1939_v24 }
 0x198   : > { %v2519_v47 = vrot.slane %v2518_v44, 4  ;;  %v1945_v57 = vshll.u32 %v7712_v2, 16  ;;  %v1951_v58 = vshll.u32 %v7713_v41, 16  ;;  %v7727_v59 = vcombine.low %v1930_v35, %v1940_v54 }
 0x199   : > { %v2529_v60 = vrot.slane %v2528_v48, 4  ;;  %v2178_v61 = vsel %vm10150_vm13, %v2176_v52, %v2177_v46  ;;  %v1944_v63 = vrot.slane %v1942_v53, 4  ;;  %v1955_v11 = vshrl.u32 %v7713_v41, 16  ;;  %v7717_v41 = vld [vmem:[%s10141_s16 + $0x74] sm:$0x1] }
 0x19a   : > { %v2524_v4 = vsel %vm10159_vm14, %v2519_v47, %v2523_v38  ;;  %v7778_v62 = vcombine.low %v2175_v51, %v2178_v61  ;;  %v1947_v5 = vrot.slane %v1945_v57, 5  ;;  %v1953_v6 = vrot.slane %v1951_v58, 5  ;;  %3810 = vmatmul.mubr.bf16.gmra.mrb[64].mxu0 %v7727_v59  ;;  %v7838_v53 = vld [vmem:[%s10141_s16 + $0x7c] sm:$0xf] }
 0x19b   : > { %v2534_v50 = vsel %vm10159_vm14, %v2529_v60, %v2533_v45  ;;  %v1961_v12 = vshll.u32 %v7714_v42, 16  ;;  %v2536_v13 = vshrl.u32 %v7834_v25, 16  ;;  %v2539_v15 = vshll.u32 %v7834_v25, 16  ;;  %v7837_v42 = vld [vmem:[%s10141_s16 + $0x78] sm:$0xf] }
 0x19c   : > { %v7849_v14 = vcombine.low %v2524_v4, %v2534_v50  ;;  %3817 = vmatprep.mubr.bf16.mxu0 %v7778_v62  ;;  %v1948_v55 = vor.u32 %v1947_v5, %v1944_v63  ;;  %v2545_v16 = vshll.u32 %v7835_v0, 16  ;;  %v1957_v17 = vrot.slane %v1955_v11, 4  ;;  %v7839_v63 = vld [vmem:[%s10141_s16 + $0x80] sm:$0x1]  ;;  %v7758_v50 = vld [vmem:[%s10141_s16 + $0x78] sm:$0xe] }
 0x19d   : > { %v1963_v18 = vrot.slane %v1961_v12, 5  ;;  %v2538_v19 = vrot.slane %v2536_v13, 4  ;;  %v2549_v20 = vshrl.u32 %v7835_v0, 16  ;;  %v2541_v23 = vrot.slane %v2539_v15, 5  ;;  %v7759_v11 = vld [vmem:[%s10141_s16 + $0x7c] sm:$0xf] }
 0x19e   : > { %3922 = vmatprep.mubr.bf16.mxu1 %v7849_v14  ;;  %v1949_v22 = vrot.slane %v1948_v55, 4  ;;  %v2547_v31 = vrot.slane %v2545_v16, 5  ;;  %v2555_v24 = vshll.u32 %v7836_v3, 16  ;;  %v1958_v2 = vor.u32 %v1957_v17, %v1953_v6  ;;  %v7760_v55 = vld [vmem:[%s10141_s16 + $0x80] sm:$0x1] }
 0x19f   : > { %3923 = vmatmul.mubr.bf16.gmra.mrb[64].mxu1 %v10393_v56  ;;  %v2551_v26 = vrot.slane %v2549_v20, 4  ;;  %v7769_v27 = vrot.slane %v7755_v9, 9  ;;  %v2181_v29 = vrot.slane %v7756_v10, 5  ;;  %v2542_v32 = vor.u32 %v2541_v23, %v2538_v19  ;;  %v7718_v19 = vld [vmem:[%s10141_s16 + $0x78] sm:$0xf] }
 0x1a0   : > { %v1954_v28 = vsel %vm10159_vm14, %v1949_v22, %v1953_v6  ;;  %v2557_v33 = vrot.slane %v2555_v24, 5  ;;  %v2184_v34 = vrot.slane %v7757_v8, 5  ;;  %v1959_v35 = vrot.slane %v1958_v2, 4  ;;  %v7719_v24 = vld [vmem:[%s10141_s16 + $0x7c] sm:$0xf] }
 0x1a1   : > { %v2552_v38 = vor.u32 %v2551_v26, %v2547_v31  ;;  %v2182_v39 = vsel %vm10150_vm13, %v7769_v27, %v2181_v29  ;;  %v2183_v40 = vrot.slane %v2181_v29, 4  ;;  %v2543_v56 = vrot.slane %v2542_v32, 4 }
 0x1a2   : > { %v1966_v43 = vshrl.u32 %v7715_v49, 16  ;;  %v1969_v44 = vshll.u32 %v7715_v49, 16  ;;  %v1975_v45 = vshll.u32 %v7716_v30, 16  ;;  %v1964_v46 = vsel %vm10159_vm14, %v1959_v35, %v1963_v18 }
 0x1a3   : > { %v2553_v48 = vrot.slane %v2552_v38, 4  ;;  %v2185_v51 = vsel %vm10150_vm13, %v2183_v40, %v2184_v34  ;;  %v1979_v52 = vshrl.u32 %v7716_v30, 16  ;;  %v7728_v54 = vcombine.low %v1954_v28, %v1964_v46 }
 0x1a4   : > { %v2548_v47 = vsel %vm10159_vm14, %v2543_v56, %v2547_v31  ;;  %v7779_v57 = vcombine.low %v2182_v39, %v2185_v51  ;;  %v1968_v58 = vrot.slane %v1966_v43, 4  ;;  %v1971_v59 = vrot.slane %v1969_v44, 5  ;;  %v7840_v43 = vld [vmem:[%s10141_s16 + $0x84] sm:$0xf]  ;;  %v7841_v44 = vld [vmem:[%s10141_s16 + $0x88] sm:$0xf] }
 0x1a5   : > { %v2558_v25 = vsel %vm10159_vm14, %v2553_v48, %v2557_v33  ;;  %v1977_v60 = vrot.slane %v1975_v45, 5  ;;  %v1981_v61 = vrot.slane %v1979_v52, 4  ;;  %3818 = vmatmul.mubr.bf16.gmra.mrb[68].mxu0 %v7728_v54  ;;  %v1985_v3 = vshll.u32 %v7717_v41, 16  ;;  %v7842_v52 = vld [vmem:[%s10141_s16 + $0x8c] sm:$0x1] }
 0x1a6   : > { %v7850_v0 = vcombine.low %v2548_v47, %v2558_v25  ;;  %v2560_v4 = vshrl.u32 %v7837_v42, 16  ;;  %v2563_v62 = vshll.u32 %v7837_v42, 16  ;;  %3825 = vmatprep.mubr.bf16.mxu0 %v7779_v57  ;;  %v1972_v5 = vor.u32 %v1971_v59, %v1968_v58  ;;  %v7853_v42 = vld [vmem:[%s10141_s16 + $0x18] sm:$0xe]  ;;  %v7854_v58 = vld [vmem:[%s10141_s16 + $0x1c] sm:$0xf] }
 0x1a7   : > { %v1982_v6 = vor.u32 %v1981_v61, %v1977_v60  ;;  %v2569_v9 = vshll.u32 %v7838_v53, 16  ;;  %v2573_v10 = vshrl.u32 %v7838_v53, 16  ;;  %v1987_v12 = vrot.slane %v1985_v3, 5 }
 0x1a8   : > { %3930 = vmatprep.mubr.bf16.mxu1 %v7850_v0  ;;  %v2562_v13 = vrot.slane %v2560_v4, 4  ;;  %v2565_v8 = vrot.slane %v2563_v62, 5  ;;  %v2579_v14 = vshll.u32 %v7839_v63, 16  ;;  %v1973_v15 = vrot.slane %v1972_v5, 4  ;;  %v7855_v63 = vld [vmem:[%s10141_s16 + $0x20] sm:$0x1] }
 0x1a9   : > { %3931 = vmatmul.mubr.bf16.gmra.mrb[68].mxu1 %v10407_v21  ;;  %v1983_v16 = vrot.slane %v1982_v6, 4  ;;  %v2571_v17 = vrot.slane %v2569_v9, 5  ;;  %v2575_v18 = vrot.slane %v2573_v10, 4  ;;  %v7770_v23 = vrot.slane %v7758_v50, 9  ;;  %v7720_v21 = vld [vmem:[%s10141_s16 + $0x80] sm:$0x1] }
 0x1aa   : > { %v2566_v20 = vor.u32 %v2565_v8, %v2562_v13  ;;  %v2581_v22 = vrot.slane %v2579_v14, 5  ;;  %v2188_v31 = vrot.slane %v7759_v11, 5  ;;  %v1978_v49 = vsel %vm10159_vm14, %v1973_v15, %v1977_v60  ;;  %v7856_v5 = vld [vmem:[%s10141_s16 + $0x24] sm:$0xe]  ;;  %v7857_v11 = vld [vmem:[%s10141_s16 + $0x28] sm:$0xf] }
 0x1ab   : > { %v1988_v2 = vsel %vm10159_vm14, %v1983_v16, %v1987_v12  ;;  %v2576_v26 = vor.u32 %v2575_v18, %v2571_v17  ;;  %v2191_v27 = vrot.slane %v7760_v55, 5  ;;  %v1990_v34 = vshrl.u32 %v7718_v19, 16  ;;  %v7858_v55 = vld [vmem:[%s10141_s16 + $0x2c] sm:$0x1]  ;;  %v7859_v18 = vld [vmem:[%s10141_s16 + $0x30] sm:$0xe] }
 0x1ac   : > { %v7729_v29 = vcombine.low %v1978_v49, %v1988_v2  ;;  %v2567_v30 = vrot.slane %v2566_v20, 4  ;;  %v2189_v28 = vsel %vm10150_vm13, %v7770_v23, %v2188_v31  ;;  %v2190_v32 = vrot.slane %v2188_v31, 4  ;;  %v7862_v49 = vld [vmem:[%s10141_s16 + $0x3c] sm:$0xe] }
 0x1ad   : > { %v2577_v33 = vrot.slane %v2576_v26, 4  ;;  %v1993_v35 = vshll.u32 %v7718_v19, 16  ;;  %v1999_v38 = vshll.u32 %v7719_v24, 16  ;;  %v2003_v56 = vshrl.u32 %v7719_v24, 16  ;;  %v7860_v19 = vld [vmem:[%s10141_s16 + $0x34] sm:$0xf] }
 0x1ae   : > { %3826 = vmatmul.mubr.bf16.gmra.mrb[72].mxu0 %v7729_v29  ;;  %v2572_v39 = vsel %vm10159_vm14, %v2567_v30, %v2571_v17  ;;  %v2192_v40 = vsel %vm10150_vm13, %v2190_v32, %v2191_v27  ;;  %v2009_v41 = vshll.u32 %v7720_v21, 16  ;;  %v1992_v48 = vrot.slane %v1990_v34, 4  ;;  %v7861_v24 = vld [vmem:[%s10141_s16 + $0x38] sm:$0x1]  ;;  %v7863_v29 = vld [vmem:[%s10141_s16 + $0x40] sm:$0xf] }
 0x1af   : > { %v2582_v45 = vsel %vm10159_vm14, %v2577_v33, %v2581_v22  ;;  %v7780_v46 = vcombine.low %v2189_v28, %v2192_v40  ;;  %v1995_v51 = vrot.slane %v1993_v35, 5  ;;  %v2001_v54 = vrot.slane %v1999_v38, 5  ;;  %v7864_v34 = vld [vmem:[%s10141_s16 + $0x44] sm:$0x1] }
 0x1b0   : > { %v7851_v53 = vcombine.low %v2572_v39, %v2582_v45  ;;  %v2005_v47 = vrot.slane %v2003_v56, 4  ;;  %v2011_v57 = vrot.slane %v2009_v41, 5  ;;  %v2584_v59 = vshrl.u32 %v7840_v43, 16  ;;  %v7865_v56 = vld [vmem:[%s10141_s16 + $0x48] sm:$0xe] }
 0x1b1   : > { %3833 = vmatprep.mubr.bf16.mxu0 %v7780_v46  ;;  %v1996_v25 = vor.u32 %v1995_v51, %v1992_v48  ;;  %v2587_v60 = vshll.u32 %v7840_v43, 16  ;;  %v2593_v61 = vshll.u32 %v7841_v44, 16  ;;  %v2597_v3 = vshrl.u32 %v7841_v44, 16  ;;  %v7866_v41 = vld [vmem:[%s10141_s16 + $0x4c] sm:$0xf] }
 0x1b2   : > { %3938 = vmatprep.mubr.bf16.mxu1 %v7851_v53  ;;  %v2006_v0 = vor.u32 %v2005_v47, %v2001_v54  ;;  %v2603_v4 = vshll.u32 %v7842_v52, 16  ;;  %v7883_v62 = vrot.slane %v7853_v42, 9  ;;  %v2586_v9 = vrot.slane %v2584_v59, 4  ;;  %v7867_v48 = vld [vmem:[%s10141_s16 + $0x50] sm:$0x1] }
 0x1b3   : > { %3939 = vmatmul.mubr.bf16.gmra.mrb[72].mxu1 %v10418_v36  ;;  %v1997_v6 = vrot.slane %v1996_v25, 4  ;;  %v2589_v10 = vrot.slane %v2587_v60, 5  ;;  %v2595_v50 = vrot.slane %v2593_v61, 5  ;;  %v2599_v13 = vrot.slane %v2597_v3, 4  ;;  %v7868_v51 = vld [vmem:[%s10141_s16 + $0x54] sm:$0xe] }
 0x1b4   : > { %v2007_v12 = vrot.slane %v2006_v0, 4  ;;  %v2605_v8 = vrot.slane %v2603_v4, 5  ;;  %v2719_v14 = vrot.slane %v7854_v58, 5  ;;  %v2722_v17 = vrot.slane %v7855_v63, 5  ;;  %v7869_v47 = vld [vmem:[%s10141_s16 + $0x58] sm:$0xf] }
 0x1b5   : > { %v2002_v15 = vsel %vm10159_vm14, %v1997_v6, %v2001_v54  ;;  %v2590_v16 = vor.u32 %v2589_v10, %v2586_v9  ;;  %v7884_v36 = vrot.slane %v7856_v5, 9  ;;  %v2600_v22 = vor.u32 %v2599_v13, %v2595_v50  ;;  %v7871_v61 = vld [vmem:[%s10141_s16 + $0x60] sm:$0xe]  ;;  %v7872_v63 = vld [vmem:[%s10141_s16 + $0x64] sm:$0xf] }
 0x1b6   : > { %v2012_v20 = vsel %vm10159_vm14, %v2007_v12, %v2011_v57  ;;  %v2720_v23 = vsel %vm10150_vm13, %v7883_v62, %v2719_v14  ;;  %v2721_v31 = vrot.slane %v2719_v14, 4  ;;  %v2726_v27 = vrot.slane %v7857_v11, 5  ;;  %v7870_v57 = vld [vmem:[%s10141_s16 + $0x5c] sm:$0x1]  ;;  %v7873_v5 = vld [vmem:[%s10141_s16 + $0x68] sm:$0x1] }
 0x1b7   : > { %v7730_v2 = vcombine.low %v2002_v15, %v2012_v20  ;;  %v2591_v26 = vrot.slane %v2590_v16, 4  ;;  %v2729_v21 = vrot.slane %v7858_v55, 5  ;;  %v2601_v30 = vrot.slane %v2600_v22, 4  ;;  %v7874_v6 = vld [vmem:[%s10141_s16 + $0x6c] sm:$0xe] }
 0x1b8   : > { %v2723_v28 = vsel %vm10150_vm13, %v2721_v31, %v2722_v17  ;;  %v7885_v32 = vrot.slane %v7859_v18, 9  ;;  %v2733_v33 = vrot.slane %v7860_v19, 5  ;;  %v2727_v39 = vsel %vm10150_vm13, %v7884_v36, %v2726_v27  ;;  %v7875_v12 = vld [vmem:[%s10141_s16 + $0x70] sm:$0xf]  ;;  %v7876_v15 = vld [vmem:[%s10141_s16 + $0x74] sm:$0x1] }
 0x1b9   : > { %3834 = vmatmul.mubr.bf16.gmra.mrb[76].mxu0 %v7730_v2  ;;  %v2596_v35 = vsel %vm10159_vm14, %v2591_v26, %v2595_v50  ;;  %v7893_v38 = vcombine.low %v2720_v23, %v2723_v28  ;;  %v2728_v40 = vrot.slane %v2726_v27, 4  ;;  %v2606_v43 = vsel %vm10159_vm14, %v2601_v30, %v2605_v8  ;;  %v7877_v18 = vld [vmem:[%s10141_s16 + $0x78] sm:$0xe]  ;;  %v7878_v19 = vld [vmem:[%s10141_s16 + $0x7c] sm:$0xf] }
 0x1ba   : > { %v2734_v44 = vsel %vm10150_vm13, %v7885_v32, %v2733_v33  ;;  %v2735_v45 = vrot.slane %v2733_v33, 4  ;;  %v2736_v46 = vrot.slane %v7861_v24, 5  ;;  %v7852_v52 = vcombine.low %v2596_v35, %v2606_v43  ;;  %v7879_v24 = vld [vmem:[%s10141_s16 + $0x80] sm:$0x1] }
 0x1bb   : > { %8879 = vmatprep.mubr.bf16.mxu0 %v7893_v38  ;;  %v2730_v42 = vsel %vm10150_vm13, %v2728_v40, %v2729_v21  ;;  %v7886_v53 = vrot.slane %v7862_v49, 9  ;;  %v2740_v54 = vrot.slane %v7863_v29, 5  ;;  %v2743_v59 = vrot.slane %v7864_v34, 5  ;;  %v7880_v21 = vld [vmem:[%s10141_s16 + $0x84] sm:$0xe] }
 0x1bc   : > { %v7894_v58 = vcombine.low %v2727_v39, %v2730_v42  ;;  %v2737_v25 = vsel %vm10150_vm13, %v2735_v45, %v2736_v46  ;;  %v7887_v60 = vrot.slane %v7865_v56, 9  ;;  %3946 = vmatprep.mubr.bf16.mxu1 %v7852_v52  ;;  %v2747_v62 = vrot.slane %v7866_v41, 5  ;;  %v7881_v29 = vld [vmem:[%s10141_s16 + $0x88] sm:$0xf]  ;;  %v7882_v34 = vld [vmem:[%s10141_s16 + $0x8c] sm:$0x1] }
 0x1bd   : > { %v7895_v0 = vcombine.low %v2734_v44, %v2737_v25  ;;  %v2741_v3 = vsel %vm10150_vm13, %v7886_v53, %v2740_v54  ;;  %v2742_v4 = vrot.slane %v2740_v54, 4  ;;  %3947 = vmatmul.mubr.bf16.gmra.mrb[76].mxu1 %v10445_v37  ;;  %v2750_v9 = vrot.slane %v7867_v48, 5 }
 0x1be   : > { %v7888_v10 = vrot.slane %v7868_v51, 9  ;;  %v2754_v50 = vrot.slane %v7869_v47, 5  ;;  %v2757_v11 = vrot.slane %v7870_v57, 5  ;;  %v2748_v8 = vsel %vm10150_vm13, %v7887_v60, %v2747_v62 }
 0x1bf   : > { %v2744_v13 = vsel %vm10150_vm13, %v2742_v4, %v2743_v59  ;;  %v2749_v14 = vrot.slane %v2747_v62, 4  ;;  %v7889_v55 = vrot.slane %v7871_v61, 9  ;;  %v2761_v36 = vrot.slane %v7872_v63, 5 }
 0x1c0   : > { %v7896_v16 = vcombine.low %v2741_v3, %v2744_v13  ;;  %v2755_v37 = vsel %vm10150_vm13, %v7888_v10, %v2754_v50  ;;  %v2756_v17 = vrot.slane %v2754_v50, 4  ;;  %v2764_v22 = vrot.slane %v7873_v5, 5 }
 0x1c1   : > { %8880 = vmatmul.mubr.bf16.vlgmr.msra.gmra.mrb[80].mxu0 %v7894_v58  ;;  %v2751_v20 = vsel %vm10150_vm13, %v2749_v14, %v2750_v9  ;;  %v7890_v23 = vrot.slane %v7874_v6, 9  ;;  %v2768_v31 = vrot.slane %v7875_v12, 5  ;;  %v2762_v26 = vsel %vm10150_vm13, %v7889_v55, %v2761_v36 }
 0x1c2   : > { %8883 = vmatprep.mubr.bf16.mxu0 %v7895_v0  ;;  %v7897_v49 = vcombine.low %v2748_v8, %v2751_v20  ;;  %v2758_v2 = vsel %vm10150_vm13, %v2756_v17, %v2757_v11  ;;  %v2763_v27 = vrot.slane %v2761_v36, 4  ;;  %v2771_v33 = vrot.slane %v7876_v15, 5 }
 0x1c3   : > { %v7898_v30 = vcombine.low %v2755_v37, %v2758_v2  ;;  %v2769_v28 = vsel %vm10150_vm13, %v7890_v23, %v2768_v31  ;;  %v2770_v32 = vrot.slane %v2768_v31, 4  ;;  %v7891_v38 = vrot.slane %v7877_v18, 9 }
 0x1c4   : > { %v2765_v35 = vsel %vm10150_vm13, %v2763_v27, %v2764_v22  ;;  %v2775_v39 = vrot.slane %v7878_v19, 5  ;;  %v2778_v40 = vrot.slane %v7879_v24, 5  ;;  %v7892_v43 = vrot.slane %v7880_v21, 9 }
 0x1c5   : > { %v7899_v56 = vcombine.low %v2762_v26, %v2765_v35  ;;  %v2772_v41 = vsel %vm10150_vm13, %v2770_v32, %v2771_v33  ;;  %v2782_v44 = vrot.slane %v7881_v29, 5  ;;  %v2785_v51 = vrot.slane %v7882_v34, 5 }
 0x1c6   : > { %v7900_v45 = vcombine.low %v2769_v28, %v2772_v41  ;;  %v2776_v46 = vsel %vm10150_vm13, %v7891_v38, %v2775_v39  ;;  %v2777_v48 = vrot.slane %v2775_v39, 4 }
 0x1c7   : > { %v2783_v52 = vsel %vm10150_vm13, %v7892_v43, %v2782_v44  ;;  %v2784_v42 = vrot.slane %v2782_v44, 4 }
 0x1c8   : > { %v2779_v53 = vsel %vm10150_vm13, %v2777_v48, %v2778_v40 }
 0x1c9   : > { %8884 = vmatmul.mubr.bf16.gmra.mrb[84].mxu0 %v7896_v16  ;;  %v7901_v54 = vcombine.low %v2776_v46, %v2779_v53  ;;  %v2786_v47 = vsel %vm10150_vm13, %v2784_v42, %v2785_v51 }
 0x1ca   : > { %8887 = vmatprep.mubr.bf16.mxu0 %v7897_v49  ;;  %v7902_v57 = vcombine.low %v2783_v52, %v2786_v47 }
 0x1d1   : > { %8888 = vmatmul.mubr.bf16.gmra.mrb[88].mxu0 %v7898_v30 }
 0x1d2   : > { %8891 = vmatprep.mubr.bf16.mxu0 %v7899_v56 }
 0x1d9   : > { %8892 = vmatmul.mubr.bf16.gmra.mrb[92].mxu0 %v7900_v45 }
 0x1da   : > { %8895 = vmatprep.mubr.bf16.mxu0 %v7901_v54 }
 0x1e1   : > { %8896 = vmatmul.mubr.bf16.gmra.mrb[96].mxu0 %v7902_v57 }
 0x1e9   : > { %v8285_v25 = vpop.f32.mrb[0].mxu0 }
 0x1ea   : > { %v8361_v58 = vpop.f32.mrb[0].mxu1  ;;  %v8286_v60 = vpop.f32.mrb[1].mxu0 }
 0x1eb   : > { %v8362_v59 = vpop.f32.mrb[1].mxu1  ;;  %v8287_v0 = vadd.f32 %v8286_v60, %v8285_v25  ;;  %v8288_v3 = vpop.f32.mrb[2].mxu0 }
 0x1ec   : > { %v8363_v61 = vadd.f32 %v8362_v59, %v8361_v58  ;;  %v8364_v63 = vpop.f32.mrb[2].mxu1  ;;  %v8289_v62 = vpop.f32.mrb[3].mxu0 }
 0x1ed   : > { %v8365_v4 = vpop.f32.mrb[3].mxu1  ;;  %v8290_v9 = vadd.f32 %v8289_v62, %v8288_v3 }
 0x1ee   : > { %v8366_v5 = vadd.f32 %v8365_v4, %v8364_v63  ;;  %v10635_v6 = vadd.f32 %v8363_v61, %v8287_v0 }
 0x1f0   : > { %v10637_v10 = vadd.f32 %v8366_v5, %v8290_v9 }
 0x1f1   : > { %v8291_v11 = vpop.f32.mrb[4].mxu0 }
 0x1f2   : > { %v8367_v50 = vpop.f32.mrb[4].mxu1  ;;  %v8292_v13 = vpop.f32.mrb[5].mxu0 }
 0x1f3   : > { %v8368_v12 = vpop.f32.mrb[5].mxu1  ;;  %v8293_v55 = vadd.f32 %v8292_v13, %v8291_v11  ;;  %v8294_v15 = vpop.f32.mrb[6].mxu0 }
 0x1f4   : > { %v8369_v8 = vadd.f32 %v8368_v12, %v8367_v50  ;;  %v8370_v14 = vpop.f32.mrb[6].mxu1  ;;  %v8295_v37 = vpop.f32.mrb[7].mxu0 }
 0x1f5   : > { %v8371_v16 = vpop.f32.mrb[7].mxu1  ;;  %v8296_v18 = vadd.f32 %v8295_v37, %v8294_v15 }
 0x1f6   : > { %v8372_v17 = vadd.f32 %v8371_v16, %v8370_v14  ;;  %v10639_v36 = vadd.f32 %v8369_v8, %v8293_v55 }
 0x1f8   : > { %v10641_v19 = vadd.f32 %v8372_v17, %v8296_v18 }
 0x1f9   : > { %v8297_v22 = vpop.f32.mrb[8].mxu0 }
 0x1fa   : > { %v8373_v20 = vpop.f32.mrb[8].mxu1  ;;  %v8298_v31 = vpop.f32.mrb[9].mxu0 }
 0x1fb   : > { %v8374_v23 = vpop.f32.mrb[9].mxu1  ;;  %v8299_v2 = vadd.f32 %v8298_v31, %v8297_v22  ;;  %v8300_v26 = vpop.f32.mrb[10].mxu0 }
 0x1fc   : > { %v8375_v24 = vadd.f32 %v8374_v23, %v8373_v20  ;;  %v8376_v49 = vpop.f32.mrb[10].mxu1  ;;  %v8301_v21 = vpop.f32.mrb[11].mxu0 }
 0x1fd   : > { %v8377_v27 = vpop.f32.mrb[11].mxu1  ;;  %v8302_v28 = vadd.f32 %v8301_v21, %v8300_v26 }
 0x1fe   : > { %v8378_v29 = vadd.f32 %v8377_v27, %v8376_v49  ;;  %v10643_v30 = vadd.f32 %v8375_v24, %v8299_v2 }
 0x200   : > { %v10645_v32 = vadd.f32 %v8378_v29, %v8302_v28 }
 0x201   : > { %v8303_v34 = vpop.f32.mrb[12].mxu0 }
 0x202   : > { %v8379_v33 = vpop.f32.mrb[12].mxu1  ;;  %v8304_v38 = vpop.f32.mrb[13].mxu0 }
 0x203   : > { %v8380_v35 = vpop.f32.mrb[13].mxu1  ;;  %v8305_v56 = vadd.f32 %v8304_v38, %v8303_v34  ;;  %v8306_v41 = vpop.f32.mrb[14].mxu0 }
 0x204   : > { %v8381_v39 = vadd.f32 %v8380_v35, %v8379_v33  ;;  %v8382_v40 = vpop.f32.mrb[14].mxu1  ;;  %v8307_v44 = vpop.f32.mrb[15].mxu0 }
 0x205   : > { %v8383_v43 = vpop.f32.mrb[15].mxu1  ;;  %v8308_v48 = vadd.f32 %v8307_v44, %v8306_v41 }
 0x206   : > { %v8384_v45 = vadd.f32 %v8383_v43, %v8382_v40  ;;  %v10647_v46 = vadd.f32 %v8381_v39, %v8305_v56 }
 0x208   : > { %v10649_v51 = vadd.f32 %v8384_v45, %v8308_v48 }
 0x209   : > { %v8309_v42 = vpop.f32.mrb[16].mxu0 }
 0x20a   : > { %v8385_v52 = vpop.f32.mrb[16].mxu1  ;;  %v8310_v54 = vpop.f32.mrb[17].mxu0 }
 0x20b   : > { %v8386_v53 = vpop.f32.mrb[17].mxu1  ;;  %v8311_v58 = vadd.f32 %v8310_v54, %v8309_v42  ;;  %v8312_v25 = vpop.f32.mrb[18].mxu0 }
 0x20c   : > { %v8387_v47 = vadd.f32 %v8386_v53, %v8385_v52  ;;  %v8388_v57 = vpop.f32.mrb[18].mxu1  ;;  %v8313_v60 = vpop.f32.mrb[19].mxu0 }
 0x20d   : > { %v8389_v59 = vpop.f32.mrb[19].mxu1  ;;  %v8314_v0 = vadd.f32 %v8313_v60, %v8312_v25 }
 0x20e   : > { %v8390_v61 = vadd.f32 %v8389_v59, %v8388_v57  ;;  %v10651_v63 = vadd.f32 %v8387_v47, %v8311_v58 }
 0x210   : > { %v10653_v3 = vadd.f32 %v8390_v61, %v8314_v0 }
 0x211   : > { %v8315_v62 = vpop.f32.mrb[20].mxu0 }
 0x212   : > { %v8391_v4 = vpop.f32.mrb[20].mxu1  ;;  %v8316_v9 = vpop.f32.mrb[21].mxu0 }
 0x213   : > { %v8392_v5 = vpop.f32.mrb[21].mxu1  ;;  %v8317_v12 = vadd.f32 %v8316_v9, %v8315_v62  ;;  %v8318_v13 = vpop.f32.mrb[22].mxu0 }
 0x214   : > { %v8393_v50 = vadd.f32 %v8392_v5, %v8391_v4  ;;  %v8394_v11 = vpop.f32.mrb[22].mxu1  ;;  %v8319_v14 = vpop.f32.mrb[23].mxu0 }
 0x215   : > { %v8395_v8 = vpop.f32.mrb[23].mxu1  ;;  %v8320_v16 = vadd.f32 %v8319_v14, %v8318_v13 }
 0x216   : > { %v8396_v55 = vadd.f32 %v8395_v8, %v8394_v11  ;;  %v10655_v15 = vadd.f32 %v8393_v50, %v8317_v12 }
 0x218   : > { %v10657_v37 = vadd.f32 %v8396_v55, %v8320_v16 }
 0x219   : > { %v8321_v17 = vpop.f32.mrb[24].mxu0 }
 0x21a   : > { %v8397_v18 = vpop.f32.mrb[24].mxu1  ;;  %v8322_v20 = vpop.f32.mrb[25].mxu0 }
 0x21b   : > { %v8398_v22 = vpop.f32.mrb[25].mxu1  ;;  %v8323_v23 = vadd.f32 %v8322_v20, %v8321_v17  ;;  %v8324_v24 = vpop.f32.mrb[26].mxu0 }
 0x21c   : > { %v8399_v31 = vadd.f32 %v8398_v22, %v8397_v18  ;;  %v8400_v49 = vpop.f32.mrb[26].mxu1  ;;  %v8325_v2 = vpop.f32.mrb[27].mxu0 }
 0x21d   : > { %v8401_v26 = vpop.f32.mrb[27].mxu1  ;;  %v8326_v21 = vadd.f32 %v8325_v2, %v8324_v24 }
 0x21e   : > { %v10659_v27 = vadd.f32 %v8399_v31, %v8323_v23  ;;  %v8402_v29 = vadd.f32 %v8401_v26, %v8400_v49 }
 0x220   : > { %v10661_v28 = vadd.f32 %v8402_v29, %v8326_v21 }
 0x221   : > { %v8327_v34 = vpop.f32.mrb[28].mxu0 }
 0x222   : > { %v8403_v33 = vpop.f32.mrb[28].mxu1  ;;  %v8328_v38 = vpop.f32.mrb[29].mxu0 }
 0x223   : > { %v8404_v35 = vpop.f32.mrb[29].mxu1  ;;  %v8329_v56 = vadd.f32 %v8328_v38, %v8327_v34  ;;  %v8330_v41 = vpop.f32.mrb[30].mxu0 }
 0x224   : > { %v8405_v39 = vadd.f32 %v8404_v35, %v8403_v33  ;;  %v8406_v40 = vpop.f32.mrb[30].mxu1  ;;  %v8331_v44 = vpop.f32.mrb[31].mxu0 }
 0x225   : > { %v8407_v43 = vpop.f32.mrb[31].mxu1  ;;  %v8332_v52 = vadd.f32 %v8331_v44, %v8330_v41 }
 0x226   : > { %v8408_v45 = vadd.f32 %v8407_v43, %v8406_v40  ;;  %v10663_v48 = vadd.f32 %v8405_v39, %v8329_v56  ;;  %v4268_v39 = vld [vmem:[#allocation4 + $0xc] sm:$0x1] }
 0x228   : > { %v10665_v42 = vadd.f32 %v8408_v45, %v8332_v52  ;;  %v4265_v52 = vld [vmem:[#allocation4] sm:$0x1] }
 0x229   : > { %v8333_v53 = vpop.f32.mrb[32].mxu0 }
 0x22a   : > { %v8409_v54 = vpop.f32.mrb[32].mxu1  ;;  %v8334_v47 = vpop.f32.mrb[33].mxu0 }
 0x22b   : > { %v8335_v57 = vadd.f32 %v8334_v47, %v8333_v53  ;;  %v8410_v58 = vpop.f32.mrb[33].mxu1  ;;  %v8336_v25 = vpop.f32.mrb[34].mxu0  ;;  %v4300_v47 = vld [vmem:[#allocation4 + $0x14] sm:$0x1] }
 0x22c   : > { %v8411_v59 = vadd.f32 %v8410_v58, %v8409_v54  ;;  %v8412_v60 = vpop.f32.mrb[34].mxu1  ;;  %v8337_v61 = vpop.f32.mrb[35].mxu0  ;;  %v4266_v54 = vsel %vm10678_vm1, 0, %v4265_v52  ;;  %v4277_v52 = vld [vmem:[#allocation4 + $0x30] sm:$0x1] }
 0x22d   : > { %v8338_v0 = vadd.f32 %v8337_v61, %v8336_v25  ;;  %v8413_v4 = vpop.f32.mrb[35].mxu1  ;;  %4267 = vst [vmem:[#allocation4] sm:$0x1] %v4266_v54  ;;  %v4301_v25 = vsel %vm10685_vm3, 0, %v4300_v47  ;;  %v4278_v47 = vsel %vm10678_vm1, 0, %v4277_v52 }
 0x22e   : > { %v10667_v62 = vadd.f32 %v8411_v59, %v8335_v57  ;;  %v8414_v5 = vadd.f32 %v8413_v4, %v8412_v60  ;;  %v4297_v59 = vld [vmem:[#allocation4 + $0x8] sm:$0x1]  ;;  %4302 = vst [vmem:[#allocation4 + $0x14] sm:$0x1] %v4301_v25  ;;  %4279 = vst [vmem:[#allocation4 + $0x30] sm:$0x1] %v4278_v47 }
 0x230   : > { %v10669_v9 = vadd.f32 %v8414_v5, %v8338_v0  ;;  %v4298_v0 = vsel %vm10685_vm3, 0, %v4297_v59 }
 0x231   : > { %v8339_v50 = vpop.f32.mrb[36].mxu0  ;;  %4299 = vst [vmem:[#allocation4 + $0x8] sm:$0x1] %v4298_v0 }
 0x232   : > { %v8415_v11 = vpop.f32.mrb[36].mxu1  ;;  %v8340_v12 = vpop.f32.mrb[37].mxu0 }
 0x233   : > { %v8341_v13 = vadd.f32 %v8340_v12, %v8339_v50  ;;  %v8416_v8 = vpop.f32.mrb[37].mxu1  ;;  %v8342_v14 = vpop.f32.mrb[38].mxu0 }
 0x234   : > { %v8417_v55 = vadd.f32 %v8416_v8, %v8415_v11  ;;  %v8418_v16 = vpop.f32.mrb[38].mxu1  ;;  %v8343_v17 = vpop.f32.mrb[39].mxu0  ;;  %v4274_v8 = vld [vmem:[#allocation4 + $0x24] sm:$0x1] }
 0x235   : > { %v8344_v18 = vadd.f32 %v8343_v17, %v8342_v14  ;;  %v8419_v20 = vpop.f32.mrb[39].mxu1  ;;  %v4271_v17 = vld [vmem:[#allocation4 + $0x18] sm:$0x1] }
 0x236   : > { %v10671_v22 = vadd.f32 %v8417_v55, %v8341_v13  ;;  %v8420_v23 = vadd.f32 %v8419_v20, %v8418_v16  ;;  %v4275_v16 = vsel %vm10678_vm1, 0, %v4274_v8  ;;  %v4272_v20 = vsel %vm10678_vm1, 0, %v4271_v17 }
 0x237   : > { %4276 = vst [vmem:[#allocation4 + $0x24] sm:$0x1] %v4275_v16  ;;  %4273 = vst [vmem:[#allocation4 + $0x18] sm:$0x1] %v4272_v20 }
 0x238   : > { %v10673_v31 = vadd.f32 %v8420_v23, %v8344_v18 }
 0x239   : > { %v8437_v24 = vpop.f32.mrb[40].mxu0 }
 0x23a   : > { %v8438_v49 = vpop.f32.mrb[41].mxu0 }
 0x23b   : > { %v8439_v2 = vadd.f32 %v8438_v49, %v8437_v24  ;;  %v8440_v26 = vpop.f32.mrb[42].mxu0 }
 0x23c   : > { %v8441_v21 = vpop.f32.mrb[43].mxu0  ;;  %v8513_v34 = vpop.f32.mrb[40].mxu1 }
 0x23d   : > { %v3764_v29 = vadd.f32 %v8439_v2, %v10635_v6  ;;  %v8442_v33 = vadd.f32 %v8441_v21, %v8440_v26  ;;  %v8514_v38 = vpop.f32.mrb[41].mxu1  ;;  %v4269_v6 = vsel %vm10678_vm1, 0, %v4268_v39  ;;  %v4303_v2 = vld [vmem:[#allocation4 + $0x20] sm:$0x1] }
 0x23e   : > { %v8515_v40 = vadd.f32 %v8514_v38, %v8513_v34  ;;  %v8516_v56 = vpop.f32.mrb[42].mxu1  ;;  %4270 = vst [vmem:[#allocation4 + $0xc] sm:$0x1] %v4269_v6 }
 0x23f   : > { %v3767_v35 = vadd.f32 %v8442_v33, %v10637_v10  ;;  %v8517_v43 = vpop.f32.mrb[43].mxu1 }
 0x240   : > { %v8518_v44 = vadd.f32 %v8517_v43, %v8516_v56  ;;  %v10689_v45 = vadd.f32 %v8515_v40, %v3764_v29  ;;  %v4304_v29 = vsel %vm10685_vm3, 0, %v4303_v2  ;;  %v4280_v56 = vld [vmem:[#allocation4 + $0x3c] sm:$0x1] }
 0x241   : > { %v8443_v53 = vpop.f32.mrb[44].mxu0  ;;  %4305 = vst [vmem:[#allocation4 + $0x20] sm:$0x1] %v4304_v29 }
 0x242   : > { %v10693_v57 = vadd.f32 %v8518_v44, %v3767_v35  ;;  %v8444_v58 = vpop.f32.mrb[45].mxu0  ;;  %v4281_v44 = vsel %vm10678_vm1, 0, %v4280_v56 }
 0x243   : > { %v8445_v60 = vadd.f32 %v8444_v58, %v8443_v53  ;;  %v8446_v61 = vpop.f32.mrb[46].mxu0  ;;  %4282 = vst [vmem:[#allocation4 + $0x3c] sm:$0x1] %v4281_v44 }
 0x244   : > { %v8447_v4 = vpop.f32.mrb[47].mxu0  ;;  %v8519_v11 = vpop.f32.mrb[44].mxu1 }
 0x245   : > { %v3772_v5 = vadd.f32 %v8445_v60, %v10639_v36  ;;  %v8448_v50 = vadd.f32 %v8447_v4, %v8446_v61  ;;  %v8520_v13 = vpop.f32.mrb[45].mxu1  ;;  %v4306_v36 = vld [vmem:[#allocation4 + $0x2c] sm:$0x1] }
 0x246   : > { %v8521_v14 = vadd.f32 %v8520_v13, %v8519_v11  ;;  %v8522_v55 = vpop.f32.mrb[46].mxu1 }
 0x247   : > { %v3775_v12 = vadd.f32 %v8448_v50, %v10641_v19  ;;  %v8523_v18 = vpop.f32.mrb[47].mxu1  ;;  %v4307_v19 = vsel %vm10685_vm3, 0, %v4306_v36 }
 0x248   : > { %v8524_v23 = vadd.f32 %v8523_v18, %v8522_v55  ;;  %v10705_v24 = vadd.f32 %v8521_v14, %v3772_v5  ;;  %4308 = vst [vmem:[#allocation4 + $0x2c] sm:$0x1] %v4307_v19  ;;  %v4312_v5 = vld [vmem:[#allocation4 + $0x44] sm:$0x1]  ;;  %v4309_v55 = vld [vmem:[#allocation4 + $0x38] sm:$0x1] }
 0x249   : > { %v8449_v49 = vpop.f32.mrb[48].mxu0  ;;  %v4310_v18 = vsel %vm10685_vm3, 0, %v4309_v55  ;;  %v4286_v19 = vld [vmem:[#allocation4 + $0x54] sm:$0x1] }
 0x24a   : > { %v8450_v26 = vpop.f32.mrb[49].mxu0  ;;  %v10709_v21 = vadd.f32 %v8524_v23, %v3775_v12  ;;  %v4313_v12 = vsel %vm10685_vm3, 0, %v4312_v5  ;;  %4311 = vst [vmem:[#allocation4 + $0x38] sm:$0x1] %v4310_v18  ;;  %v4292_v18 = vld [vmem:[#allocation4 + $0x6c] sm:$0x1] }
 0x24b   : > { %v8451_v33 = vadd.f32 %v8450_v26, %v8449_v49  ;;  %v8452_v34 = vpop.f32.mrb[50].mxu0  ;;  %4314 = vst [vmem:[#allocation4 + $0x44] sm:$0x1] %v4313_v12  ;;  %v4283_v26 = vld [vmem:[#allocation4 + $0x48] sm:$0x1] }
 0x24c   : > { %v8453_v35 = vpop.f32.mrb[51].mxu0  ;;  %v8525_v40 = vpop.f32.mrb[48].mxu1 }
 0x24d   : > { %v3780_v38 = vadd.f32 %v8451_v33, %v10643_v30  ;;  %v8454_v39 = vadd.f32 %v8453_v35, %v8452_v34  ;;  %v8526_v6 = vpop.f32.mrb[49].mxu1  ;;  %v4284_v34 = vsel %vm10678_vm1, 0, %v4283_v26  ;;  %v4318_v35 = vld [vmem:[#allocation4 + $0x5c] sm:$0x1] }
 0x24e   : > { %v8527_v53 = vadd.f32 %v8526_v6, %v8525_v40  ;;  %v8528_v54 = vpop.f32.mrb[50].mxu1  ;;  %4285 = vst [vmem:[#allocation4 + $0x48] sm:$0x1] %v4284_v34  ;;  %v4321_v34 = vld [vmem:[#allocation4 + $0x68] sm:$0x1] }
 0x24f   : > { %v3783_v43 = vadd.f32 %v8454_v39, %v10645_v32  ;;  %v8529_v58 = vpop.f32.mrb[51].mxu1  ;;  %v4319_v39 = vsel %vm10685_vm3, 0, %v4318_v35 }
 0x250   : > { %v8530_v25 = vadd.f32 %v8529_v58, %v8528_v54  ;;  %v10719_v30 = vadd.f32 %v8527_v53, %v3780_v38  ;;  %4320 = vst [vmem:[#allocation4 + $0x5c] sm:$0x1] %v4319_v39 }
 0x252   : > { %v10721_v61 = vadd.f32 %v8530_v25, %v3783_v43 }
 0x253   : > { %v8455_v59 = vpop.f32.mrb[52].mxu0 }
 0x254   : > { %v8456_v60 = vpop.f32.mrb[53].mxu0 }
 0x255   : > { %v8457_v32 = vadd.f32 %v8456_v60, %v8455_v59  ;;  %v8458_v0 = vpop.f32.mrb[54].mxu0  ;;  %v8531_v13 = vpop.f32.mrb[52].mxu1 }
 0x256   : > { %v8459_v4 = vpop.f32.mrb[55].mxu0  ;;  %v8532_v14 = vpop.f32.mrb[53].mxu1 }
 0x257   : > { %v3788_v50 = vadd.f32 %v8457_v32, %v10647_v46  ;;  %v8460_v11 = vadd.f32 %v8459_v4, %v8458_v0  ;;  %v8533_v16 = vadd.f32 %v8532_v14, %v8531_v13  ;;  %v8534_v17 = vpop.f32.mrb[54].mxu1 }
 0x258   : > { %v8535_v20 = vpop.f32.mrb[55].mxu1 }
 0x259   : > { %v3791_v8 = vadd.f32 %v8460_v11, %v10649_v51  ;;  %v8536_v23 = vadd.f32 %v8535_v20, %v8534_v17  ;;  %v10729_v36 = vadd.f32 %v8533_v16, %v3788_v50  ;;  %v4287_v51 = vsel %vm10678_vm1, 0, %v4286_v19  ;;  %v4315_v11 = vld [vmem:[#allocation4 + $0x50] sm:$0x1] }
 0x25a   : > { %4288 = vst [vmem:[#allocation4 + $0x54] sm:$0x1] %v4287_v51  ;;  %v4316_v13 = vsel %vm10685_vm3, 0, %v4315_v11 }
 0x25b   : > { %v8461_v46 = vpop.f32.mrb[56].mxu0  ;;  %v10731_v49 = vadd.f32 %v8536_v23, %v3791_v8  ;;  %4317 = vst [vmem:[#allocation4 + $0x50] sm:$0x1] %v4316_v13 }
 0x25c   : > { %v8462_v2 = vpop.f32.mrb[57].mxu0 }
 0x25d   : > { %v8463_v29 = vadd.f32 %v8462_v2, %v8461_v46  ;;  %v8464_v33 = vpop.f32.mrb[58].mxu0  ;;  %v8537_v56 = vpop.f32.mrb[56].mxu1  ;;  %v4289_v46 = vld [vmem:[#allocation4 + $0x60] sm:$0x1]  ;;  %v4324_v2 = vld [vmem:[#allocation4 + $0x74] sm:$0x1] }
 0x25e   : > { %v8465_v38 = vpop.f32.mrb[59].mxu0  ;;  %v8538_v6 = vpop.f32.mrb[57].mxu1  ;;  %v4290_v19 = vsel %vm10678_vm1, 0, %v4289_v46 }
 0x25f   : > { %v3796_v40 = vadd.f32 %v8463_v29, %v10651_v63  ;;  %v8466_v43 = vadd.f32 %v8465_v38, %v8464_v33  ;;  %v8539_v52 = vadd.f32 %v8538_v6, %v8537_v56  ;;  %v8540_v53 = vpop.f32.mrb[58].mxu1  ;;  %4291 = vst [vmem:[#allocation4 + $0x60] sm:$0x1] %v4290_v19  ;;  %v4325_v29 = vsel %vm10685_vm3, 0, %v4324_v2 }
 0x260   : > { %v8541_v54 = vpop.f32.mrb[59].mxu1  ;;  %4326 = vst [vmem:[#allocation4 + $0x74] sm:$0x1] %v4325_v29 }
 0x261   : > { %v3799_v44 = vadd.f32 %v8466_v43, %v10653_v3  ;;  %v8542_v47 = vadd.f32 %v8541_v54, %v8540_v53  ;;  %v10741_v58 = vadd.f32 %v8539_v52, %v3796_v40  ;;  %v4322_v40 = vsel %vm10685_vm3, 0, %v4321_v34 }
 0x262   : > { %4323 = vst [vmem:[#allocation4 + $0x68] sm:$0x1] %v4322_v40 }
 0x263   : > { %v8467_v25 = vpop.f32.mrb[60].mxu0  ;;  %v10743_v59 = vadd.f32 %v8542_v47, %v3799_v44 }
 0x264   : > { %v8468_v60 = vpop.f32.mrb[61].mxu0 }
 0x265   : > { %v8469_v32 = vadd.f32 %v8468_v60, %v8467_v25  ;;  %v8470_v0 = vpop.f32.mrb[62].mxu0 }
 0x266   : > { %v8471_v4 = vpop.f32.mrb[63].mxu0 }
 0x267   : > { %v3804_v63 = vadd.f32 %v8469_v32, %v10655_v15  ;;  %v8472_v5 = vadd.f32 %v8471_v4, %v8470_v0  ;;  %v4293_v15 = vsel %vm10678_vm1, 0, %v4292_v18 }
 0x268   : > { %v8543_v50 = vpop.f32.mrb[60].mxu1  ;;  %4294 = vst [vmem:[#allocation4 + $0x6c] sm:$0x1] %v4293_v15 }
 0x269   : > { %v3807_v3 = vadd.f32 %v8472_v5, %v10657_v37  ;;  %v8544_v12 = vpop.f32.mrb[61].mxu1 }
 0x26a   : > { %v8545_v8 = vadd.f32 %v8544_v12, %v8543_v50  ;;  %v8546_v14 = vpop.f32.mrb[62].mxu1 }
 0x26b   : > { %v8547_v55 = vpop.f32.mrb[63].mxu1 }
 0x26c   : > { %v8548_v16 = vadd.f32 %v8547_v55, %v8546_v14  ;;  %v10749_v17 = vadd.f32 %v8545_v8, %v3804_v63 }
 0x26d   : > { %v8473_v20 = vpop.f32.mrb[64].mxu0 }
 0x26e   : > { %v10751_v23 = vadd.f32 %v8548_v16, %v3807_v3  ;;  %v8474_v37 = vpop.f32.mrb[65].mxu0 }
 0x26f   : > { %v8475_v51 = vadd.f32 %v8474_v37, %v8473_v20  ;;  %v8476_v26 = vpop.f32.mrb[66].mxu0 }
 0x270   : > { %v8477_v33 = vpop.f32.mrb[67].mxu0 }
 0x271   : > { %v3812_v35 = vadd.f32 %v8475_v51, %v10659_v27  ;;  %v8478_v39 = vadd.f32 %v8477_v33, %v8476_v26 }
 0x272   : > { %v8549_v38 = vpop.f32.mrb[64].mxu1 }
 0x273   : > { %v8550_v56 = vpop.f32.mrb[65].mxu1  ;;  %v3815_v43 = vadd.f32 %v8478_v39, %v10661_v28 }
 0x274   : > { %v8551_v6 = vadd.f32 %v8550_v56, %v8549_v38  ;;  %v8552_v44 = vpop.f32.mrb[66].mxu1 }
 0x275   : > { %v8553_v52 = vpop.f32.mrb[67].mxu1 }
 0x276   : > { %v8554_v53 = vadd.f32 %v8553_v52, %v8552_v44  ;;  %v10763_v54 = vadd.f32 %v8551_v6, %v3812_v35 }
 0x278   : > { %v10765_v47 = vadd.f32 %v8554_v53, %v3815_v43  ;;  %v8479_v25 = vpop.f32.mrb[68].mxu0 }
 0x279   : > { %v8480_v60 = vpop.f32.mrb[69].mxu0 }
 0x27a   : > { %v8481_v27 = vadd.f32 %v8480_v60, %v8479_v25  ;;  %v8482_v32 = vpop.f32.mrb[70].mxu0  ;;  %v10784_v60 = vld [vmem:[%s11576_s2] ss:$0 sm:$0xff] }
 0x27b   : > { %v8483_v4 = vpop.f32.mrb[71].mxu0 }
 0x27c   : > { %v8555_v0 = vpop.f32.mrb[68].mxu1  ;;  %v3820_v10 = vadd.f32 %v8481_v27, %v10663_v48  ;;  %v8484_v63 = vadd.f32 %v8483_v4, %v8482_v32 }
 0x27d   : > { %v8556_v5 = vpop.f32.mrb[69].mxu1 }
 0x27e   : > { %v8557_v50 = vadd.f32 %v8556_v5, %v8555_v0  ;;  %v8558_v28 = vpop.f32.mrb[70].mxu1  ;;  %v3823_v11 = vadd.f32 %v8484_v63, %v10665_v42 }
 0x27f   : > { %v8559_v3 = vpop.f32.mrb[71].mxu1 }
 0x280   : > { %v8560_v12 = vadd.f32 %v8559_v3, %v8558_v28  ;;  %v10769_v13 = vadd.f32 %v8557_v50, %v3820_v10 }
 0x281   : > { %v8485_v8 = vpop.f32.mrb[72].mxu0 }
 0x282   : > { %v8486_v14 = vpop.f32.mrb[73].mxu0  ;;  %v10771_v55 = vadd.f32 %v8560_v12, %v3823_v11 }
 0x283   : > { %v8487_v16 = vadd.f32 %v8486_v14, %v8485_v8  ;;  %v8488_v18 = vpop.f32.mrb[74].mxu0 }
 0x284   : > { %v8489_v20 = vpop.f32.mrb[75].mxu0 }
 0x285   : > { %v3828_v15 = vadd.f32 %v8487_v16, %v10667_v62  ;;  %v8490_v48 = vadd.f32 %v8489_v20, %v8488_v18 }
 0x286   : > { %v8561_v46 = vpop.f32.mrb[72].mxu1 }
 0x287   : > { %v3831_v37 = vadd.f32 %v8490_v48, %v10669_v9  ;;  %v8562_v19 = vpop.f32.mrb[73].mxu1 }
 0x288   : > { %v8563_v2 = vadd.f32 %v8562_v19, %v8561_v46  ;;  %v8564_v42 = vpop.f32.mrb[74].mxu1 }
 0x289   : > { %v8565_v51 = vpop.f32.mrb[75].mxu1 }
 0x28a   : > { %v8566_v26 = vadd.f32 %v8565_v51, %v8564_v42  ;;  %v10775_v29 = vadd.f32 %v8563_v2, %v3828_v15 }
 0x28c   : > { %v8491_v33 = vpop.f32.mrb[76].mxu0  ;;  %v10777_v34 = vadd.f32 %v8566_v26, %v3831_v37 }
 0x28d   : > { %v8492_v35 = vpop.f32.mrb[77].mxu0 }
 0x28e   : > { %v8493_v38 = vadd.f32 %v8492_v35, %v8491_v33  ;;  %v8494_v39 = vpop.f32.mrb[78].mxu0 }
 0x28f   : > { %v8495_v40 = vpop.f32.mrb[79].mxu0 }
 0x290   : > { %v3836_v62 = vadd.f32 %v8493_v38, %v10671_v22  ;;  %v8496_v56 = vadd.f32 %v8495_v40, %v8494_v39  ;;  %v8567_v43 = vpop.f32.mrb[76].mxu1  ;;  %v10792_v22 = vld [vmem:[%s11577_s3] ss:$0 sm:$0xff] }
 0x291   : > { %v8568_v6 = vpop.f32.mrb[77].mxu1 }
 0x292   : > { %v3839_v9 = vadd.f32 %v8496_v56, %v10673_v31  ;;  %v8569_v44 = vadd.f32 %v8568_v6, %v8567_v43  ;;  %v8570_v52 = vpop.f32.mrb[78].mxu1 }
 0x293   : > { %v8571_v53 = vpop.f32.mrb[79].mxu1 }
 0x294   : > { %v8881_v25 = vpop.f32.mrb[80].mxu0  ;;  %v8572_v27 = vadd.f32 %v8571_v53, %v8570_v52  ;;  %v10787_v4 = vadd.f32 %v8569_v44, %v3836_v62 }
 0x295   : > { %v3998_v32 = vadd.f32 %v8881_v25, %v10705_v24  ;;  %v3989_v0 = vpop.f32.mrb[81].mxu0 }
 0x296   : > { %v3990_v31 = vadd.f32 %v3989_v0, %v10689_v45  ;;  %v8882_v10 = vpop.f32.mrb[82].mxu0  ;;  %v10797_v28 = vadd.f32 %v8572_v27, %v3839_v9 }
 0x297   : > { %v4077_v63 = vmul.f32 %v10784_v60, %v3998_v32  ;;  %v4001_v5 = vadd.f32 %v8882_v10, %v10709_v21  ;;  %v3992_v50 = vpop.f32.mrb[83].mxu0 }
 0x298   : > { %v4075_v24 = vmul.f32 %v10784_v60, %v3990_v31  ;;  %v3993_v11 = vadd.f32 %v3992_v50, %v10693_v57 }
 0x299   : > { %v10802_v3 = vadd.f32 %v10792_v22, %v4077_v63  ;;  %v4078_v12 = vmul.f32 %v10784_v60, %v4001_v5 }
 0x29a   : > { %v10806_v8 = vadd.f32 %v10792_v22, %v4075_v24  ;;  %v4076_v45 = vmul.f32 %v10784_v60, %v3993_v11 }
 0x29b   : > { %v7979_v14 = vmul.f32 -1.442695, %v10802_v3  ;;  %v10811_v21 = vadd.f32 %v10792_v22, %v4078_v12 }
 0x29c   : > { %v7977_v16 = vmul.f32 -1.442695, %v10806_v8  ;;  %v10815_v18 = vadd.f32 %v10792_v22, %v4076_v45  ;;  %v8885_v57 = vpop.f32.mrb[84].mxu0 }
 0x29d   : > { %9165 = vpow2.f32 %v7979_v14  ;;  %v7980_v20 = vmul.f32 -1.442695, %v10811_v21  ;;  %v4014_v15 = vadd.f32 %v8885_v57, %v10729_v36  ;;  %v4005_v48 = vpop.f32.mrb[85].mxu0 }
 0x29e   : > { %9167 = vpow2.f32 %v7977_v16  ;;  %v7978_v46 = vmul.f32 -1.442695, %v10815_v18  ;;  %v4006_v37 = vadd.f32 %v4005_v48, %v10719_v30  ;;  %v8886_v19 = vpop.f32.mrb[86].mxu0 }
 0x29f   : > { %9169 = vpow2.f32 %v7980_v20  ;;  %v4081_v2 = vmul.f32 %v10784_v60, %v4014_v15  ;;  %v4017_v42 = vadd.f32 %v8886_v19, %v10731_v49  ;;  %v4008_v51 = vpop.f32.mrb[87].mxu0 }
 0x2a0   : > { %9171 = vpow2.f32 %v7978_v46  ;;  %v4079_v26 = vmul.f32 %v10784_v60, %v4006_v37  ;;  %v4009_v33 = vadd.f32 %v4008_v51, %v10721_v61 }
 0x2a1   : > { %v10826_v36 = vadd.f32 %v10792_v22, %v4081_v2  ;;  %v4082_v35 = vmul.f32 %v10784_v60, %v4017_v42 }
 0x2a2   : > { %v10830_v38 = vadd.f32 %v10792_v22, %v4079_v26  ;;  %v4080_v30 = vmul.f32 %v10784_v60, %v4009_v33 }
 0x2a3   : > { %v7983_v39 = vmul.f32 -1.442695, %v10826_v36  ;;  %v10835_v49 = vadd.f32 %v10792_v22, %v4082_v35 }
 0x2a4   : > { %v7981_v40 = vmul.f32 -1.442695, %v10830_v38  ;;  %v10839_v62 = vadd.f32 %v10792_v22, %v4080_v30  ;;  %v8889_v61 = vpop.f32.mrb[88].mxu0 }
 0x2a5   : > { %9173 = vpow2.f32 %v7983_v39  ;;  %v7984_v56 = vmul.f32 -1.442695, %v10835_v49  ;;  %v4030_v43 = vadd.f32 %v8889_v61, %v10749_v17  ;;  %v4021_v9 = vpop.f32.mrb[89].mxu0 }
 0x2a6   : > { %9175 = vpow2.f32 %v7981_v40  ;;  %v7982_v6 = vmul.f32 -1.442695, %v10839_v62  ;;  %v4022_v44 = vadd.f32 %v4021_v9, %v10741_v58  ;;  %v8890_v52 = vpop.f32.mrb[90].mxu0 }
 0x2a7   : > { %v9166_v53 = vpop.eup %9165  ;;  %9177 = vpow2.f32 %v7984_v56  ;;  %v4085_v25 = vmul.f32 %v10784_v60, %v4030_v43  ;;  %v4033_v27 = vadd.f32 %v8890_v52, %v10751_v23  ;;  %v4024_v32 = vpop.f32.mrb[91].mxu0 }
 0x2a8   : > { %v9168_v0 = vpop.eup %9167  ;;  %v4184_v31 = vadd.f32 1.0, %v9166_v53  ;;  %9179 = vpow2.f32 %v7982_v6  ;;  %v4083_v10 = vmul.f32 %v10784_v60, %v4022_v44  ;;  %v4025_v17 = vadd.f32 %v4024_v32, %v10743_v59 }
 0x2a9   : > { %v9170_v63 = vpop.eup %9169  ;;  %v4182_v5 = vadd.f32 1.0, %v9168_v0  ;;  %v10850_v50 = vadd.f32 %v10792_v22, %v4085_v25  ;;  %v4086_v58 = vmul.f32 %v10784_v60, %v4033_v27 }
 0x2aa   : > { %v9172_v24 = vpop.eup %9171  ;;  %9181 = vrcp.f32 %v4184_v31  ;;  %v4185_v11 = vadd.f32 1.0, %v9170_v63  ;;  %v10854_v23 = vadd.f32 %v10792_v22, %v4083_v10  ;;  %v4084_v12 = vmul.f32 %v10784_v60, %v4025_v17 }
 0x2ab   : > { %9183 = vrcp.f32 %v4182_v5  ;;  %v4183_v45 = vadd.f32 1.0, %v9172_v24  ;;  %v7987_v14 = vmul.f32 -1.442695, %v10850_v50  ;;  %v10859_v59 = vadd.f32 %v10792_v22, %v4086_v58 }
 0x2ac   : > { %9185 = vrcp.f32 %v4185_v11  ;;  %v7985_v16 = vmul.f32 -1.442695, %v10854_v23  ;;  %v10863_v57 = vadd.f32 %v10792_v22, %v4084_v12  ;;  %v8893_v20 = vpop.f32.mrb[92].mxu0 }
 0x2ad   : > { %9187 = vrcp.f32 %v4183_v45  ;;  %v7988_v15 = vmul.f32 -1.442695, %v10859_v59  ;;  %v4046_v48 = vadd.f32 %v8893_v20, %v10769_v13  ;;  %v4037_v46 = vpop.f32.mrb[93].mxu0 }
 0x2ae   : > { %9189 = vpow2.f32 %v7987_v14  ;;  %v7986_v37 = vmul.f32 -1.442695, %v10863_v57  ;;  %v4038_v19 = vadd.f32 %v4037_v46, %v10763_v54  ;;  %v8894_v2 = vpop.f32.mrb[94].mxu0 }
 0x2af   : > { %v9174_v42 = vpop.eup %9173  ;;  %9191 = vpow2.f32 %v7985_v16  ;;  %v4089_v51 = vmul.f32 %v10784_v60, %v4046_v48  ;;  %v4049_v26 = vadd.f32 %v8894_v2, %v10771_v55  ;;  %v4040_v33 = vpop.f32.mrb[95].mxu0 }
 0x2b0   : > { %v9176_v35 = vpop.eup %9175  ;;  %v4188_v30 = vadd.f32 1.0, %v9174_v42  ;;  %9193 = vpow2.f32 %v7988_v15  ;;  %v4087_v39 = vmul.f32 %v10784_v60, %v4038_v19  ;;  %v4041_v13 = vadd.f32 %v4040_v33, %v10765_v47 }
 0x2b1   : > { %v9178_v40 = vpop.eup %9177  ;;  %v4186_v61 = vadd.f32 1.0, %v9176_v35  ;;  %9195 = vpow2.f32 %v7986_v37  ;;  %v10874_v54 = vadd.f32 %v10792_v22, %v4089_v51  ;;  %v4090_v56 = vmul.f32 %v10784_v60, %v4049_v26 }
 0x2b2   : > { %v9180_v43 = vpop.eup %9179  ;;  %9197 = vrcp.f32 %v4188_v30  ;;  %v4189_v9 = vadd.f32 1.0, %v9178_v40  ;;  %v10878_v55 = vadd.f32 %v10792_v22, %v4087_v39  ;;  %v4088_v6 = vmul.f32 %v10784_v60, %v4041_v13  ;;  %v4598_v40 = vld [vmem:[#allocation4 + $0xc] sm:$0xf] }
 0x2b3   : > { %9199 = vrcp.f32 %v4186_v61  ;;  %v4187_v44 = vadd.f32 1.0, %v9180_v43  ;;  %v7991_v47 = vmul.f32 -1.442695, %v10874_v54  ;;  %v10883_v52 = vadd.f32 %v10792_v22, %v4090_v56 }
 0x2b4   : > { %v9182_v53 = vpop.eup %9181  ;;  %9201 = vrcp.f32 %v4189_v9  ;;  %v7989_v25 = vmul.f32 -1.442695, %v10878_v55  ;;  %v10887_v27 = vadd.f32 %v10792_v22, %v4088_v6  ;;  %v8897_v32 = vpop.f32.mrb[96].mxu0 }
 0x2b5   : > { %v9184_v0 = vpop.eup %9183  ;;  %v4244_v31 = vmul.f32 %v9182_v53, %v10802_v3  ;;  %9203 = vrcp.f32 %v4187_v44  ;;  %v7992_v10 = vmul.f32 -1.442695, %v10883_v52  ;;  %v4062_v17 = vadd.f32 %v8897_v32, %v10787_v4  ;;  %v4053_v63 = vpop.f32.mrb[97].mxu0 }
 0x2b6   : > { %v9186_v5 = vpop.eup %9185  ;;  %v4242_v58 = vmul.f32 %v9184_v0, %v10806_v8  ;;  %9205 = vpow2.f32 %v7991_v47  ;;  %v10894_v24 = vadd.f32 %v4053_v63, %v10775_v29  ;;  %v10896_v11 = vpop.f32.mrb[98].mxu0  ;;  %v10900_v14 = vmul.f32 -1.442695, %v10887_v27  ;;  %v4591_v47 = vld [vmem:[#allocation4] sm:$0xf] }
 0x2b7   : > { %v9188_v12 = vpop.eup %9187  ;;  %v8249_v45 = vpack.c.bf16 %v4244_v31, %v4244_v31  ;;  %v4245_v3 = vmul.f32 %v9186_v5, %v10811_v21  ;;  %9207 = vpow2.f32 %v7989_v25  ;;  %v10902_v4 = vpop.f32.mrb[99].mxu0  ;;  %v10906_v29 = vmul.f32 %v10784_v60, %v4062_v17  ;;  %v4602_v17 = vld [vmem:[#allocation4 + $0x14] sm:$0x1] }
 0x2b8   : > { %v9190_v16 = vpop.eup %9189  ;;  %v8247_v20 = vpack.c.bf16 %v4242_v58, %v4242_v58  ;;  %v4243_v8 = vmul.f32 %v9188_v12, %v10815_v18  ;;  %9209 = vpow2.f32 %v7992_v10 }
 0x2b9   : > { %v9192_v15 = vpop.eup %9191  ;;  %v4407_v48 = vshrl.u32 %v8249_v45, 16  ;;  %v4410_v46 = vshll.u32 %v8249_v45, 16  ;;  %v8250_v37 = vpack.c.bf16 %v4245_v3, %v4245_v3  ;;  %v4192_v19 = vadd.f32 1.0, %v9190_v16 }
 0x2ba   : > { %v9194_v21 = vpop.eup %9193  ;;  %v4390_v2 = vshrl.u32 %v8247_v20, 16  ;;  %v4393_v42 = vshll.u32 %v8247_v20, 16  ;;  %v8248_v51 = vpack.c.bf16 %v4243_v8, %v4243_v8  ;;  %v4190_v26 = vadd.f32 1.0, %v9192_v15 }
 0x2bb   : > { %v9196_v33 = vpop.eup %9195  ;;  %v4409_v35 = vrot.slane %v4407_v48, 7  ;;  %v4415_v30 = vshrl.u32 %v8250_v37, 16  ;;  %v4418_v39 = vshll.u32 %v8250_v37, 16  ;;  %9211 = vrcp.f32 %v4192_v19 }
 0x2bc   : > { %v9198_v18 = vpop.eup %9197  ;;  %v4392_v61 = vrot.slane %v4390_v2, 7  ;;  %v4398_v56 = vshrl.u32 %v8248_v51, 16  ;;  %v4401_v43 = vshll.u32 %v8248_v51, 16  ;;  %9213 = vrcp.f32 %v4190_v26 }
 0x2bd   : > { %v9200_v9 = vpop.eup %9199  ;;  %v4412_v6 = vor.u32 %v4410_v46, %v4409_v35  ;;  %v4413_v44 = vrot.slane %v4409_v35, 4  ;;  %v4417_v53 = vrot.slane %v4415_v30, 7  ;;  %v4248_v25 = vmul.f32 %v9198_v18, %v10826_v36  ;;  %v4595_v36 = vld [vmem:[#allocation4 + $0x8] sm:$0x1] }
 0x2be   : > { %v9202_v32 = vpop.eup %9201  ;;  %v4395_v0 = vor.u32 %v4393_v42, %v4392_v61  ;;  %v4396_v31 = vrot.slane %v4392_v61, 4  ;;  %v4400_v63 = vrot.slane %v4398_v56, 7  ;;  %v4246_v5 = vmul.f32 %v9200_v9, %v10830_v38  ;;  %v4612_v56 = vld [vmem:[#allocation4 + $0x24] sm:$0xf] }
 0x2bf   : > { %v9204_v58 = vpop.eup %9203  ;;  %v4599_v12 = vsel %vm10910_vm6, %v4412_v6, %v4598_v40  ;;  %v4420_v45 = vor.u32 %v4418_v39, %v4417_v53  ;;  %v4422_v3 = vrot.slane %v4417_v53, 4  ;;  %v8253_v16 = vpack.c.bf16 %v4248_v25, %v4248_v25  ;;  %v4605_v25 = vld [vmem:[#allocation4 + $0x18] sm:$0xf] }
 0x2c0   : > { %v9206_v20 = vpop.eup %9205  ;;  %4600 = vst [vmem:[#allocation4 + $0xc] sm:$0xf] %v4599_v12  ;;  %v4592_v8 = vsel %vm10910_vm6, %v4395_v0, %v4591_v47  ;;  %v4403_v15 = vor.u32 %v4401_v43, %v4400_v63  ;;  %v4405_v48 = vrot.slane %v4400_v63, 4  ;;  %v8251_v46 = vpack.c.bf16 %v4246_v5, %v4246_v5 }
 0x2c1   : > { %v9208_v37 = vpop.eup %9207  ;;  %4593 = vst [vmem:[#allocation4] sm:$0xf] %v4592_v8  ;;  %v4421_v38 = vsel %vm10917_vm7, %v4413_v44, %v4420_v45  ;;  %v4603_v19 = vsel %vm10678_vm1, %v4422_v3, %v4602_v17  ;;  %v4441_v2 = vshrl.u32 %v8253_v16, 16  ;;  %v10932_v42 = vmul.f32 %v10784_v60, %v10894_v24 }
 0x2c2   : > { %v9210_v51 = vpop.eup %9209  ;;  %4601 = vst [vmem:[#allocation4 + $0x10] sm:$0xf] %v4421_v38  ;;  %4604 = vst [vmem:[#allocation4 + $0x14] sm:$0x1] %v4603_v19  ;;  %v4404_v26 = vsel %vm10917_vm7, %v4396_v31, %v4403_v15  ;;  %v4596_v35 = vsel %vm10678_vm1, %v4405_v48, %v4595_v36  ;;  %v4444_v30 = vshll.u32 %v8253_v16, 16  ;;  %v4424_v39 = vshrl.u32 %v8251_v46, 16 }
 0x2c3   : > { %4594 = vst [vmem:[#allocation4 + $0x4] sm:$0xf] %v4404_v26  ;;  %4597 = vst [vmem:[#allocation4 + $0x8] sm:$0x1] %v4596_v35  ;;  %v4443_v18 = vrot.slane %v4441_v2, 7  ;;  %v4249_v40 = vmul.f32 %v9202_v32, %v10835_v49  ;;  %v4247_v61 = vmul.f32 %v9204_v58, %v10839_v62  ;;  %v4193_v24 = vadd.f32 1.0, %v9194_v21 }
 0x2c4   : > { %v4426_v43 = vrot.slane %v4424_v39, 7  ;;  %v4427_v9 = vshll.u32 %v8251_v46, 16  ;;  %v4191_v6 = vadd.f32 1.0, %v9196_v33  ;;  %v4196_v44 = vadd.f32 1.0, %v9206_v20  ;;  %v4609_v15 = vld [vmem:[#allocation4 + $0x20] sm:$0x1] }
 0x2c5   : > { %v9212_v47 = vpop.eup %9211  ;;  %v4446_v53 = vor.u32 %v4444_v30, %v4443_v18  ;;  %v8254_v0 = vpack.c.bf16 %v4249_v40, %v4249_v40  ;;  %v8252_v31 = vpack.c.bf16 %v4247_v61, %v4247_v61  ;;  %v4194_v17 = vadd.f32 1.0, %v9208_v37  ;;  %v4626_v61 = vld [vmem:[#allocation4 + $0x3c] sm:$0xf] }
 0x2c6   : > { %v9214_v63 = vpop.eup %9213  ;;  %v4447_v5 = vrot.slane %v4443_v18, 4  ;;  %v4429_v12 = vor.u32 %v4427_v9, %v4426_v43  ;;  %v4252_v45 = vmul.f32 %v9212_v47, %v10850_v50  ;;  %9215 = vrcp.f32 %v4193_v24  ;;  %v4616_v50 = vld [vmem:[#allocation4 + $0x2c] sm:$0x1]  ;;  %v4619_v9 = vld [vmem:[#allocation4 + $0x30] sm:$0xf] }
 0x2c7   : > { %v4613_v49 = vsel %vm10910_vm6, %v4446_v53, %v4612_v56  ;;  %v4430_v62 = vrot.slane %v4426_v43, 4  ;;  %v4449_v21 = vshrl.u32 %v8254_v0, 16  ;;  %v4432_v32 = vshrl.u32 %v8252_v31, 16 }
 0x2c8   : > { %4614 = vst [vmem:[#allocation4 + $0x24] sm:$0xf] %v4613_v49  ;;  %v4606_v33 = vsel %vm10910_vm6, %v4429_v12, %v4605_v25  ;;  %v4452_v58 = vshll.u32 %v8254_v0, 16  ;;  %v8257_v3 = vpack.c.bf16 %v4252_v45, %v4252_v45  ;;  %v4250_v36 = vmul.f32 %v9214_v63, %v10854_v23 }
 0x2c9   : > { %4607 = vst [vmem:[#allocation4 + $0x18] sm:$0xf] %v4606_v33  ;;  %v4451_v16 = vrot.slane %v4449_v21, 7  ;;  %v4434_v20 = vrot.slane %v4432_v32, 7  ;;  %v4435_v8 = vshll.u32 %v8252_v31, 16  ;;  %9217 = vrcp.f32 %v4191_v6 }
 0x2ca   : > { %v4475_v48 = vshrl.u32 %v8257_v3, 16  ;;  %v8255_v46 = vpack.c.bf16 %v4250_v36, %v4250_v36  ;;  %9219 = vrcp.f32 %v4196_v44  ;;  %v4197_v37 = vadd.f32 1.0, %v9210_v51 }
 0x2cb   : > { %v4454_v38 = vor.u32 %v4452_v58, %v4451_v16  ;;  %v4456_v19 = vrot.slane %v4451_v16, 4  ;;  %v4437_v2 = vor.u32 %v4435_v8, %v4434_v20  ;;  %v4439_v26 = vrot.slane %v4434_v20, 4 }
 0x2cc   : > { %v10946_v35 = vrot.slane %v4475_v48, 7  ;;  %v4478_v30 = vshll.u32 %v8257_v3, 16  ;;  %v4458_v39 = vshrl.u32 %v8255_v46, 16  ;;  %9221 = vrcp.f32 %v4194_v17 }
 0x2cd   : > { %v4455_v23 = vsel %vm10917_vm7, %v4447_v5, %v4454_v38  ;;  %v4617_v18 = vsel %vm10678_vm1, %v4456_v19, %v4616_v50  ;;  %v4438_v40 = vsel %vm10917_vm7, %v4430_v62, %v4437_v2  ;;  %v4610_v51 = vsel %vm10678_vm1, %v4439_v26, %v4609_v15  ;;  %v4623_v26 = vld [vmem:[#allocation4 + $0x38] sm:$0x1] }
 0x2ce   : > { %4615 = vst [vmem:[#allocation4 + $0x28] sm:$0xf] %v4455_v23  ;;  %4618 = vst [vmem:[#allocation4 + $0x2c] sm:$0x1] %v4617_v18  ;;  %v4480_v24 = vor.u32 %v4478_v30, %v10946_v35  ;;  %v10957_v56 = vrot.slane %v4458_v39, 7  ;;  %v4461_v43 = vshll.u32 %v8255_v46, 16  ;;  %9223 = vrcp.f32 %v4197_v37 }
 0x2cf   : > { %4608 = vst [vmem:[#allocation4 + $0x1c] sm:$0xf] %v4438_v40  ;;  %4611 = vst [vmem:[#allocation4 + $0x20] sm:$0x1] %v4610_v51  ;;  %9225 = vpow2.f32 %v10900_v14  ;;  %v10962_v6 = vadd.f32 %v10792_v22, %v10906_v29  ;;  %v10966_v44 = vadd.f32 %v10792_v22, %v10932_v42  ;;  %v4065_v47 = vadd.f32 %v10896_v11, %v10797_v28  ;;  %v4640_v40 = vld [vmem:[#allocation4 + $0x54] sm:$0xf] }
 0x2d0   : > { %v9216_v53 = vpop.eup %9215  ;;  %v4627_v25 = vsel %vm10910_vm6, %v4480_v24, %v4626_v61  ;;  %v4463_v0 = vor.u32 %v4461_v43, %v10957_v56  ;;  %v4057_v14 = vadd.f32 %v10902_v4, %v10777_v34  ;;  %v4481_v16 = vrot.slane %v10946_v35, 4 }
 0x2d1   : > { %4628 = vst [vmem:[#allocation4 + $0x3c] sm:$0xf] %v4627_v25  ;;  %v4253_v29 = vmul.f32 %v9216_v53, %v10859_v59  ;;  %v7995_v31 = vmul.f32 -1.442695, %v10962_v6  ;;  %v7993_v42 = vmul.f32 -1.442695, %v10966_v44  ;;  %v4094_v17 = vmul.f32 %v10784_v60, %v4065_v47 }
 0x2d2   : > { %v4620_v28 = vsel %vm10910_vm6, %v4463_v0, %v4619_v9  ;;  %v4092_v11 = vmul.f32 %v10784_v60, %v4057_v14  ;;  %v4464_v39 = vrot.slane %v10957_v56, 4  ;;  %v4633_v14 = vld [vmem:[#allocation4 + $0x48] sm:$0xf] }
 0x2d3   : > { %v9218_v63 = vpop.eup %9217  ;;  %4621 = vst [vmem:[#allocation4 + $0x30] sm:$0xf] %v4620_v28  ;;  %v8258_v5 = vpack.c.bf16 %v4253_v29, %v4253_v29  ;;  %9227 = vpow2.f32 %v7995_v31  ;;  %v10983_v34 = vadd.f32 %v10792_v22, %v4094_v17 }
 0x2d4   : > { %v9220_v4 = vpop.eup %9219  ;;  %v4251_v59 = vmul.f32 %v9218_v63, %v10863_v57  ;;  %9229 = vpow2.f32 %v7993_v42  ;;  %v10987_v12 = vadd.f32 %v10792_v22, %v4092_v11  ;;  %v4630_v22 = vld [vmem:[#allocation4 + $0x44] sm:$0x1] }
 0x2d5   : > { %v4483_v45 = vshrl.u32 %v8258_v5, 16  ;;  %v4256_v49 = vmul.f32 %v9220_v4, %v10874_v54  ;;  %v7996_v62 = vmul.f32 -1.442695, %v10983_v34  ;;  %v4486_v21 = vshll.u32 %v8258_v5, 16  ;;  %v4644_v4 = vld [vmem:[#allocation4 + $0x5c] sm:$0x1] }
 0x2d6   : > { %v9222_v60 = vpop.eup %9221  ;;  %v8256_v32 = vpack.c.bf16 %v4251_v59, %v4251_v59  ;;  %v7994_v33 = vmul.f32 -1.442695, %v10987_v12 }
 0x2d7   : > { %v4485_v58 = vrot.slane %v4483_v45, 7  ;;  %v8261_v3 = vpack.c.bf16 %v4256_v49, %v4256_v49  ;;  %v4254_v36 = vmul.f32 %v9222_v60, %v10878_v55  ;;  %9231 = vpow2.f32 %v7996_v62 }
 0x2d8   : > { %v9224_v57 = vpop.eup %9223  ;;  %v4466_v20 = vshrl.u32 %v8256_v32, 16  ;;  %9233 = vpow2.f32 %v7994_v33  ;;  %v4469_v15 = vshll.u32 %v8256_v32, 16 }
 0x2d9   : > { %v9226_v8 = vpop.eup %9225  ;;  %v4488_v54 = vor.u32 %v4486_v21, %v4485_v58  ;;  %v4490_v50 = vrot.slane %v4485_v58, 4  ;;  %v4509_v48 = vshrl.u32 %v8261_v3, 16  ;;  %v8259_v37 = vpack.c.bf16 %v4254_v36, %v4254_v36 }
 0x2da   : > { %v4468_v46 = vrot.slane %v4466_v20, 7  ;;  %v4257_v38 = vmul.f32 %v9224_v57, %v10883_v52  ;;  %v4195_v19 = vadd.f32 1.0, %v9226_v8  ;;  %v4512_v30 = vshll.u32 %v8261_v3, 16 }
 0x2db   : > { %v4489_v55 = vsel %vm10917_vm7, %v4481_v16, %v4488_v54  ;;  %v4631_v2 = vsel %vm10678_vm1, %v4490_v50, %v4630_v22  ;;  %v4511_v35 = vrot.slane %v4509_v48, 7  ;;  %v4492_v51 = vshrl.u32 %v8259_v37, 16 }
 0x2dc   : > { %4629 = vst [vmem:[#allocation4 + $0x40] sm:$0xf] %v4489_v55  ;;  %4632 = vst [vmem:[#allocation4 + $0x44] sm:$0x1] %v4631_v2  ;;  %v4471_v23 = vor.u32 %v4469_v15, %v4468_v46  ;;  %v4473_v18 = vrot.slane %v4468_v46, 4  ;;  %v4495_v24 = vshll.u32 %v8259_v37, 16  ;;  %v8262_v43 = vpack.c.bf16 %v4257_v38, %v4257_v38 }
 0x2dd   : > { %v9228_v61 = vpop.eup %9227  ;;  %v4514_v52 = vor.u32 %v4512_v30, %v4511_v35  ;;  %9235 = vrcp.f32 %v4195_v19  ;;  %v4494_v25 = vrot.slane %v4492_v51, 7  ;;  %v4515_v45 = vrot.slane %v4511_v35, 4  ;;  %v4637_v37 = vld [vmem:[#allocation4 + $0x50] sm:$0x1] }
 0x2de   : > { %v9230_v9 = vpop.eup %9229  ;;  %v4472_v47 = vsel %vm10917_vm7, %v4464_v39, %v4471_v23  ;;  %v4624_v53 = vsel %vm10678_vm1, %v4473_v18, %v4623_v26  ;;  %v4200_v56 = vadd.f32 1.0, %v9228_v61  ;;  %v4517_v29 = vshrl.u32 %v8262_v43, 16  ;;  %v4654_v18 = vld [vmem:[#allocation4 + $0x6c] sm:$0xf]  ;;  %v4647_v61 = vld [vmem:[#allocation4 + $0x60] sm:$0xf] }
 0x2df   : > { %4622 = vst [vmem:[#allocation4 + $0x34] sm:$0xf] %v4472_v47  ;;  %4625 = vst [vmem:[#allocation4 + $0x38] sm:$0x1] %v4624_v53  ;;  %v4641_v0 = vsel %vm10910_vm6, %v4514_v52, %v4640_v40  ;;  %v4198_v31 = vadd.f32 1.0, %v9230_v9  ;;  %v4497_v42 = vor.u32 %v4495_v24, %v4494_v25  ;;  %v4520_v11 = vshll.u32 %v8262_v43, 16 }
 0x2e0   : > { %4642 = vst [vmem:[#allocation4 + $0x54] sm:$0xf] %v4641_v0  ;;  %9237 = vrcp.f32 %v4200_v56  ;;  %v4519_v28 = vrot.slane %v4517_v29, 7  ;;  %v4498_v55 = vrot.slane %v4494_v25, 4  ;;  %v4658_v25 = vld [vmem:[#allocation4 + $0x74] sm:$0x1] }
 0x2e1   : > { %v9232_v17 = vpop.eup %9231  ;;  %9239 = vrcp.f32 %v4198_v31  ;;  %v4634_v5 = vsel %vm10910_vm6, %v4497_v42, %v4633_v14 }
 0x2e2   : > { %v9234_v63 = vpop.eup %9233  ;;  %v4201_v59 = vadd.f32 1.0, %v9232_v17  ;;  %4635 = vst [vmem:[#allocation4 + $0x48] sm:$0xf] %v4634_v5  ;;  %v4522_v49 = vor.u32 %v4520_v11, %v4519_v28  ;;  %v4524_v62 = vrot.slane %v4519_v28, 4  ;;  %v4651_v11 = vld [vmem:[#allocation4 + $0x68] sm:$0x1] }
 0x2e3   : > { %v4199_v60 = vadd.f32 1.0, %v9234_v63 }
 0x2e4   : > { %9241 = vrcp.f32 %v4201_v59  ;;  %v4523_v21 = vsel %vm10917_vm7, %v4515_v45, %v4522_v49  ;;  %v4645_v32 = vsel %vm10678_vm1, %v4524_v62, %v4644_v4  ;;  %v9627_v45 = vmov (!%p7584_p4), 0  }
 0x2e5   : > { %9243 = vrcp.f32 %v4199_v60  ;;  %4643 = vst [vmem:[#allocation4 + $0x58] sm:$0xf] %v4523_v21  ;;  %4646 = vst [vmem:[#allocation4 + $0x5c] sm:$0x1] %v4645_v32 }
 0x2e6   : > { %4664 = vst [vmem:[#allocation4] sm:$0xf] (!%p7584_p4), %v9627_v45  ;;  %4665 = vst [vmem:[#allocation4 + $0x4] sm:$0xf] (!%p7584_p4), %v9627_v45 }
 0x2e7   : > { %v9236_v33 = vpop.eup %9235  ;;  %4666 = vst [vmem:[#allocation4 + $0x8] sm:$0x1] (!%p7584_p4), %v9627_v45 }
 0x2e8   : > { %v4255_v58 = vmul.f32 %v9236_v33, %v10887_v27 }
 0x2ea   : > { %v9238_v3 = vpop.eup %9237  ;;  %v8260_v36 = vpack.c.bf16 %v4255_v58, %v4255_v58 }
 0x2eb   : > { %v9240_v57 = vpop.eup %9239  ;;  %v4260_v16 = vmul.f32 %v9238_v3, %v10962_v6 }
 0x2ec   : > { %v4500_v22 = vshrl.u32 %v8260_v36, 16  ;;  %v4258_v20 = vmul.f32 %v9240_v57, %v10966_v44  ;;  %v4503_v15 = vshll.u32 %v8260_v36, 16 }
 0x2ed   : > { %v8265_v8 = vpack.c.bf16 %v4260_v16, %v4260_v16 }
 0x2ee   : > { %v9242_v54 = vpop.eup %9241  ;;  %v4502_v50 = vrot.slane %v4500_v22, 7  ;;  %v8263_v48 = vpack.c.bf16 %v4258_v20, %v4258_v20 }
 0x2ef   : > { %v9244_v46 = vpop.eup %9243  ;;  %v4543_v38 = vshrl.u32 %v8265_v8, 16  ;;  %v4261_v19 = vmul.f32 %v9242_v54, %v10983_v34  ;;  %v4546_v30 = vshll.u32 %v8265_v8, 16 }
 0x2f0   : > { %v4505_v27 = vor.u32 %v4503_v15, %v4502_v50  ;;  %v4507_v2 = vrot.slane %v4502_v50, 4  ;;  %v4526_v26 = vshrl.u32 %v8263_v48, 16  ;;  %v4259_v39 = vmul.f32 %v9244_v46, %v10987_v12 }
 0x2f1   : > { %v4545_v35 = vrot.slane %v4543_v38, 7  ;;  %v8266_v6 = vpack.c.bf16 %v4261_v19, %v4261_v19  ;;  %v4529_v51 = vshll.u32 %v8263_v48, 16 }
 0x2f2   : > { %v4506_v44 = vsel %vm10917_vm7, %v4498_v55, %v4505_v27  ;;  %v4638_v23 = vsel %vm10678_vm1, %v4507_v2, %v4637_v37  ;;  %v4528_v40 = vrot.slane %v4526_v26, 7  ;;  %v8264_v43 = vpack.c.bf16 %v4259_v39, %v4259_v39 }
 0x2f3   : > { %4636 = vst [vmem:[#allocation4 + $0x4c] sm:$0xf] %v4506_v44  ;;  %4639 = vst [vmem:[#allocation4 + $0x50] sm:$0x1] %v4638_v23  ;;  %v4548_v34 = vor.u32 %v4546_v30, %v4545_v35  ;;  %v4551_v52 = vshrl.u32 %v8266_v6, 16  ;;  %v4554_v47 = vshll.u32 %v8266_v6, 16 }
 0x2f4   : > { %v4531_v24 = vor.u32 %v4529_v51, %v4528_v40  ;;  %v4534_v56 = vshrl.u32 %v8264_v43, 16  ;;  %v4549_v0 = vrot.slane %v4545_v35, 4  ;;  %v4537_v42 = vshll.u32 %v8264_v43, 16 }
 0x2f5   : > { %v4655_v9 = vsel %vm10910_vm6, %v4548_v34, %v4654_v18  ;;  %v4553_v12 = vrot.slane %v4551_v52, 7  ;;  %v4532_v63 = vrot.slane %v4528_v40, 4  ;;  %4663 = sbr.rel (%p7584_p4) target bundleno = 764 (0x2fc), region = 68 }
 0x2f6   : > { %4656 = vst [vmem:[#allocation4 + $0x6c] sm:$0xf] %v4655_v9  ;;  %v4648_v53 = vsel %vm10910_vm6, %v4531_v24, %v4647_v61  ;;  %v4536_v31 = vrot.slane %v4534_v56, 7 }
 0x2f7   : > { %4649 = vst [vmem:[#allocation4 + $0x60] sm:$0xf] %v4648_v53  ;;  %v4556_v14 = vor.u32 %v4554_v47, %v4553_v12  ;;  %v4558_v29 = vrot.slane %v4553_v12, 4 }
 0x2f8   : > { %v4539_v13 = vor.u32 %v4537_v42, %v4536_v31  ;;  %v4541_v5 = vrot.slane %v4536_v31, 4 }
 0x2f9   : > { %v4557_v17 = vsel %vm10917_vm7, %v4549_v0, %v4556_v14  ;;  %v4659_v28 = vsel %vm10678_vm1, %v4558_v29, %v4658_v25 }
 0x2fa   : > { %4657 = vst [vmem:[#allocation4 + $0x70] sm:$0xf] %v4557_v17  ;;  %4660 = vst [vmem:[#allocation4 + $0x74] sm:$0x1] %v4659_v28  ;;  %v4540_v4 = vsel %vm10917_vm7, %v4532_v63, %v4539_v13  ;;  %v4652_v59 = vsel %vm10678_vm1, %v4541_v5, %v4651_v11 }
 0x2fb   : > { %4650 = vst [vmem:[#allocation4 + $0x64] sm:$0xf] %v4540_v4  ;;  %4653 = vst [vmem:[#allocation4 + $0x68] sm:$0x1] %v4652_v59 }
 0x2fc PF: > { %p8018_p1 = scmp.ne.s32.totalorder %s9601_s30, 1 }
 0x2fd   : > { %v9628_v49 = vmov (!%p8018_p1), 0  }
 0x2fe   : > { %4670 = sbr.rel (%p8018_p1) target bundleno = 773 (0x305), region = 72  ;;  %4672 = vst [vmem:[#allocation4 + $0x6c] sm:$0xf] (!%p8018_p1), %v9628_v49  ;;  %4673 = vst [vmem:[#allocation4 + $0x70] sm:$0xf] (!%p8018_p1), %v9628_v49 }
 0x2ff   : > { %4674 = vst [vmem:[#allocation4 + $0x74] sm:$0x1] (!%p8018_p1), %v9628_v49 }
 0x305 PF: > { %v9245_v41 = vld [vmem:[#allocation10 + $0x40] sm:$0xff]   ;;  %v9249_v21 = vld [vmem:[#allocation10 + $0x48] sm:$0xff]   ;;  %v9253_v3 = vld [vmem:[#allocation10 + $0x50] sm:$0xff]   ;;  %s11638_s17 = sld [smem:[#allocation23_spill]]  ;;  %s8267_s24 = sshll.u32 %s9601_s30, 7 }
 0x306   : > { %v9246_v10 = vld [vmem:[#allocation10 + $0xc0] sm:$0xff]   ;;  %8591 = vmatprep.subr.bf16.mxu1 %v9245_v41  ;;  %v9250_v32 = vld [vmem:[#allocation10 + $0xc8] sm:$0xff]   ;;  %v9254_v36 = vld [vmem:[#allocation10 + $0xd0] sm:$0xff]   ;;  %s11433_s12 = scalar_lea.vmem %s9890_s13, %s8267_s24 [#allocation5]  ;;  %s11639_s13 = sld [smem:[#allocation16_spill]] }
 0x307   : > { %v9247_v62 = vld [vmem:[#allocation10] sm:$0xff]   ;;  %8655 = vmatprep.subr.bf16.mxu0 %v9246_v10  ;;  %v9251_v33 = vld [vmem:[#allocation10 + $0x8] sm:$0xff]   ;;  %v9255_v57 = vld [vmem:[#allocation10 + $0x10] sm:$0xff]   ;;  %s8268_s19 = sshll.u32 %s9601_s30, 4  ;;  %s7451_s15 = sshll.u32 %s9903_s6, 4  ;;  %s11506_s15 = int_to_ptr.vmem [resolvable:$true] %s7451_s15 }
 0x308   : > { %v9248_v60 = vld [vmem:[#allocation10 + $0x80] sm:$0xff]   ;;  %8592 = vmatpush3.bf16.msra.mxu1 %v9247_v62  ;;  %v9252_v58 = vld [vmem:[#allocation10 + $0x88] sm:$0xff]   ;;  %v9256_v16 = vld [vmem:[#allocation10 + $0x90] sm:$0xff]   ;;  %s11640_s18 = sld [smem:[#allocation18_spill]]  ;;  %s11641_s23 = sld [smem:[#allocation24_spill]] }
 0x309   : > { %8656 = vmatpush3.bf16.msra.mxu0 %v9248_v60  ;;  %8593 = vmatprep.subr.bf16.mxu1 %v9249_v21  ;;  %v9257_v22 = vld [vmem:[#allocation10 + $0x58] sm:$0xff]   ;;  %v9261_v50 = vld [vmem:[#allocation10 + $0x60] sm:$0xff]   ;;  %v9265_v37 = vld [vmem:[#allocation10 + $0x68] sm:$0xff]   ;;  %s11513_s22 = scalar_lea.sflag [#allocation7], %s337_s9  ;;  %s9491_s1 = scalar_lea.vmem %s11506_s15, 2048 }
 0x30a   : > { %8657 = vmatprep.subr.bf16.mxu0 %v9250_v32  ;;  %v9258_v20 = vld [vmem:[#allocation10 + $0xd8] sm:$0xff]   ;;  %v9262_v15 = vld [vmem:[#allocation10 + $0xe0] sm:$0xff]   ;;  %v9266_v38 = vld [vmem:[#allocation10 + $0xe8] sm:$0xff]   ;;  %p9492_p3 = scmp.ne.s32.totalorder %s11506_s15, %s9491_s1 }
 0x30b   : > { %v9259_v8 = vld [vmem:[#allocation10 + $0x18] sm:$0xff]   ;;  %v9263_v48 = vld [vmem:[#allocation10 + $0x20] sm:$0xff]   ;;  %v9267_v19 = vld [vmem:[#allocation10 + $0x28] sm:$0xff]  }
 0x30c   : > { %8594 = vmatpush3.bf16.msra.mxu1 %v9251_v33  ;;  %v9260_v54 = vld [vmem:[#allocation10 + $0x98] sm:$0xff]   ;;  %v9264_v46 = vld [vmem:[#allocation10 + $0xa0] sm:$0xff]   ;;  %v9268_v55 = vld [vmem:[#allocation10 + $0xa8] sm:$0xff]   ;;  %s8209_s14 = sshll.u32 %s11639_s13, 5 }
 0x30d   : > { %8658 = vmatpush3.bf16.msra.mxu0 %v9252_v58  ;;  %8595 = vmatprep.subr.bf16.mxu1 %v9253_v3  ;;  %v9269_v27 = vld [vmem:[#allocation10 + $0x70] sm:$0xff]   ;;  %v9273_v30 = vld [vmem:[#allocation10 + $0x78] sm:$0xff]   ;;  %v4747_v23 = vld [vmem:[#allocation4] sm:$0xf]  ;;  %s7448_s16 = sadd.s32 %s8268_s19, %s8209_s14 }
 0x30e   : > { %8659 = vmatprep.subr.bf16.mxu0 %v9254_v36  ;;  %v9270_v2 = vld [vmem:[#allocation10 + $0xf0] sm:$0xff]   ;;  %v9274_v6 = vld [vmem:[#allocation10 + $0xf8] sm:$0xff]   ;;  %v4748_v18 = vld [vmem:[#allocation4 + $0x4] sm:$0xf]  ;;  %v4772_v51 = vshrl.u32 %v4747_v23, 16  ;;  %v4775_v34 = vshll.u32 %v4747_v23, 16 }
 0x30f   : > { %v9271_v26 = vld [vmem:[#allocation10 + $0x30] sm:$0xff]   ;;  %v9275_v39 = vld [vmem:[#allocation10 + $0x38] sm:$0xff]   ;;  %v4781_v61 = vshll.u32 %v4748_v18, 16  ;;  %v4785_v52 = vshrl.u32 %v4748_v18, 16  ;;  %v9278_v56 = vld [vmem:[#allocation4] sm:$0xff]   ;;  %s8210_s30 = sshll.u32 %s7448_s16, 7 }
 0x310   : > { %8596 = vmatpush3.bf16.msra.mxu1 %v9255_v57  ;;  %v9272_v35 = vld [vmem:[#allocation10 + $0xb0] sm:$0xff]   ;;  %v9276_v44 = vld [vmem:[#allocation10 + $0xb8] sm:$0xff]   ;;  %v4774_v9 = vrot.slane %v4772_v51, 4  ;;  %v4777_v12 = vrot.slane %v4775_v34, 5  ;;  %v5003_v0 = vld [vmem:[#allocation4] sm:$0xe]  ;;  %s11504_s21 = scalar_lea.hbm %s11641_s23, %s8210_s30 }
 0x311   : > { %8660 = vmatpush3.bf16.msra.mxu0 %v9256_v16  ;;  %8597 = vmatprep.subr.bf16.mxu1 %v9257_v22  ;;  %v4749_v40 = vld [vmem:[#allocation4 + $0x8] sm:$0x1]  ;;  %v9277_v43 = vld [vmem:[#allocation4 + $0xc] sm:$0xff]   ;;  %v4783_v47 = vrot.slane %v4781_v61, 5  ;;  %v4787_v53 = vrot.slane %v4785_v52, 4  ;;  %v8035_v17 = vrot.slane %v5003_v0, 9 }
 0x312   : > { %8661 = vmatprep.subr.bf16.mxu0 %v9258_v20  ;;  %v4791_v24 = vshll.u32 %v4749_v40, 16  ;;  %6870 = vmatprep.mubr.bf16.mxu0 %v9277_v43  ;;  %v5004_v14 = vld [vmem:[#allocation4 + $0x4] sm:$0xf]  ;;  %v4778_v29 = vor.u32 %v4777_v12, %v4774_v9  ;;  %v5005_v42 = vld [vmem:[#allocation4 + $0x8] sm:$0x1]  ;;  %v9279_v63 = vld [vmem:[#allocation10 + $0x140] sm:$0xff]  }
 0x313   : > { %v4788_v31 = vor.u32 %v4787_v53, %v4783_v47  ;;  %v5053_v28 = vrot.slane %v5004_v14, 5  ;;  %v5056_v11 = vrot.slane %v5005_v42, 5  ;;  %v9280_v45 = vld [vmem:[#allocation10 + $0x100] sm:$0xff]   ;;  %v4750_v49 = vld [vmem:[#allocation4 + $0xc] sm:$0xf]  ;;  %v9285_v43 = vld [vmem:[#allocation4 + $0x24] sm:$0xff]  }
 0x314   : > { %8598 = vmatpush3.bf16.msra.mxu1 %v9259_v8  ;;  %v4793_v25 = vrot.slane %v4791_v24, 5  ;;  %v4779_v13 = vrot.slane %v4778_v29, 4  ;;  %v4751_v41 = vld [vmem:[#allocation4 + $0x10] sm:$0xf]  ;;  %v4752_v10 = vld [vmem:[#allocation4 + $0x14] sm:$0x1] }
 0x315   : > { %8662 = vmatpush3.bf16.msra.mxu0 %v9260_v54  ;;  %8599 = vmatprep.subr.bf16.mxu1 %v9261_v50  ;;  %v4789_v5 = vrot.slane %v4788_v31, 4  ;;  %v5054_v4 = vsel %vm10150_vm13, %v8035_v17, %v5053_v28  ;;  %v5055_v59 = vrot.slane %v5053_v28, 4  ;;  %v4796_v32 = vshrl.u32 %v4750_v49, 16  ;;  %v9281_v33 = vld [vmem:[#allocation4 + $0x18] sm:$0xff]   ;;  %v9282_v8 = vld [vmem:[#allocation4 + $0xc] sm:$0xff]   ;;  %p11642_p13 = scmp.ne.s32.totalorder %s11640_s18, 0 }
 0x316   : > { %8663 = vmatprep.subr.bf16.mxu0 %v9262_v15  ;;  %v4784_v62 = vsel %vm10159_vm14, %v4779_v13, %v4783_v47  ;;  %v4799_v36 = vshll.u32 %v4750_v49, 16  ;;  %v4805_v57 = vshll.u32 %v4751_v41, 16  ;;  %v4809_v22 = vshrl.u32 %v4751_v41, 16  ;;  %v5006_v54 = vld [vmem:[#allocation4 + $0xc] sm:$0xe]  ;;  %v9286_v29 = vld [vmem:[#allocation4 + $0x18] sm:$0xff]  }
 0x317   : > { %v4794_v60 = vsel %vm10159_vm14, %v4789_v5, %v4793_v25  ;;  %v5057_v21 = vsel %vm10150_vm13, %v5055_v59, %v5056_v11  ;;  %v4798_v16 = vrot.slane %v4796_v32, 4  ;;  %v4815_v20 = vshll.u32 %v4752_v10, 16  ;;  %v4754_v18 = vld [vmem:[#allocation4 + $0x1c] sm:$0xf]  ;;  %v4755_v40 = vld [vmem:[#allocation4 + $0x20] sm:$0x1]  ;;  %p9493_p7 = pnand %p9492_p3, %p11642_p13 }
 0x318   : > { %8600 = vmatpush3.bf16.msra.mxu1 %v9263_v48  ;;  %v8027_v58 = vcombine.low %v4784_v62, %v4794_v60  ;;  %v8043_v3 = vcombine.low %v5054_v4, %v5057_v21  ;;  %v4801_v50 = vrot.slane %v4799_v36, 5  ;;  %v4807_v15 = vrot.slane %v4805_v57, 5  ;;  %v5007_v48 = vld [vmem:[#allocation4 + $0x10] sm:$0xf]  ;;  %v5009_v17 = vld [vmem:[#allocation4 + $0x18] sm:$0xe] }
 0x319   : > { %8664 = vmatpush3.bf16.msra.mxu0 %v9264_v46  ;;  %8601 = vmatprep.subr.bf16.mxu1 %v9265_v37  ;;  %v5008_v46 = vld [vmem:[#allocation4 + $0x14] sm:$0x1]  ;;  %v4811_v37 = vrot.slane %v4809_v22, 4  ;;  %v4829_v24 = vshll.u32 %v4754_v18, 16  ;;  %v4833_v53 = vshrl.u32 %v4754_v18, 16  ;;  %v4839_v14 = vshll.u32 %v4755_v40, 16  ;;  %p9494_p9 = pneg %p9493_p7 }
 0x31a   : > { %8665 = vmatprep.subr.bf16.mxu0 %v9266_v38  ;;  %6773 = vmatprep.mubr.bf16.mxu1 %v8027_v58  ;;  %v4817_v38 = vrot.slane %v4815_v20, 5  ;;  %v5010_v28 = vld [vmem:[#allocation4 + $0x1c] sm:$0xf]  ;;  %v9287_v11 = vld [vmem:[#allocation10 + $0x150] sm:$0xff]   ;;  %v5011_v5 = vld [vmem:[#allocation4 + $0x20] sm:$0x1] }
 0x31b   : > { %v4831_v0 = vrot.slane %v4829_v24, 5  ;;  %v4835_v42 = vrot.slane %v4833_v53, 4  ;;  %v4841_v13 = vrot.slane %v4839_v14, 5  ;;  %v8037_v4 = vrot.slane %v5009_v17, 9  ;;  %v9289_v10 = vld [vmem:[#allocation4 + $0x30] sm:$0xff]  }
 0x31c   : > { %8602 = vmatpush3.bf16.msra.mxu1 %v9267_v19  ;;  %v8036_v19 = vrot.slane %v5006_v54, 9  ;;  %v5067_v59 = vrot.slane %v5010_v28, 5  ;;  %v5070_v41 = vrot.slane %v5011_v5, 5  ;;  %v4757_v58 = vld [vmem:[#allocation4 + $0x28] sm:$0xf] }
 0x31d   : > { %8666 = vmatpush3.bf16.msra.mxu0 %v9268_v55  ;;  %8603 = vmatprep.subr.bf16.mxu1 %v9269_v27  ;;  %v5060_v55 = vrot.slane %v5007_v48, 5  ;;  %v4802_v27 = vor.u32 %v4801_v50, %v4798_v16  ;;  %v4836_v49 = vor.u32 %v4835_v42, %v4831_v0  ;;  %v4758_v16 = vld [vmem:[#allocation4 + $0x2c] sm:$0x1]  ;;  %v4853_v50 = vshll.u32 %v4757_v58, 16 }
 0x31e   : > { %8667 = vmatprep.subr.bf16.mxu0 %v9270_v2  ;;  %v5063_v2 = vrot.slane %v5008_v46, 5  ;;  %v5068_v60 = vsel %vm10150_vm13, %v8037_v4, %v5067_v59  ;;  %v5069_v21 = vrot.slane %v5067_v59, 4 }
 0x31f   : > { %v4803_v23 = vrot.slane %v4802_v27, 4  ;;  %v4837_v32 = vrot.slane %v4836_v49, 4 }
 0x320   : > { %8604 = vmatpush3.bf16.msra.mxu1 %v9271_v26  ;;  %v9283_v26 = vld [vmem:[#allocation10 + $0x148] sm:$0xff]   ;;  %v5071_v57 = vsel %vm10150_vm13, %v5069_v21, %v5070_v41  ;;  %v5015_v41 = vld [vmem:[#allocation4 + $0x30] sm:$0xe] }
 0x321   : > { %8668 = vmatpush3.bf16.msra.mxu0 %v9272_v35  ;;  %8605 = vmatprep.subr.bf16.mxu1 %v9273_v30  ;;  %v4812_v35 = vor.u32 %v4811_v37, %v4807_v15  ;;  %v5061_v30 = vsel %vm10150_vm13, %v8036_v19, %v5060_v55  ;;  %v4808_v9 = vsel %vm10159_vm14, %v4803_v23, %v4807_v15  ;;  %v4857_v15 = vshrl.u32 %v4757_v58, 16  ;;  %v9291_v19 = vld [vmem:[#allocation10 + $0x158] sm:$0xff]   ;;  %v9297_v58 = vld [vmem:[#allocation10 + $0x160] sm:$0xff]  }
 0x322   : > { %8669 = vmatprep.subr.bf16.mxu0 %v9274_v6  ;;  %v5062_v6 = vrot.slane %v5060_v55, 4  ;;  %v8045_v54 = vcombine.low %v5068_v60, %v5071_v57  ;;  %v4855_v55 = vrot.slane %v4853_v50, 5  ;;  %v9292_v23 = vld [vmem:[#allocation10 + $0x118] sm:$0xff]   ;;  %v8039_v21 = vrot.slane %v5015_v41, 9  ;;  %v9298_v57 = vld [vmem:[#allocation10 + $0x120] sm:$0xff]  }
 0x323   : > { %v4813_v34 = vrot.slane %v4812_v35, 4  ;;  %v4859_v27 = vrot.slane %v4857_v15, 4  ;;  %v9300_v15 = vld [vmem:[#allocation10 + $0x188] sm:$0xff]  }
 0x324   : > { %8606 = vmatpush3.bf16.msra.mxu1 %v9275_v39  ;;  %v9284_v39 = vld [vmem:[#allocation10 + $0x108] sm:$0xff]   ;;  %v5064_v61 = vsel %vm10150_vm13, %v5062_v6, %v5063_v2  ;;  %v5014_v6 = vld [vmem:[#allocation4 + $0x2c] sm:$0x1] }
 0x325   : > { %8670 = vmatpush3.bf16.msra.mxu0 %v9276_v44  ;;  %8719 = vmatprep.subr.bf16.mxu1 %v9279_v63  ;;  %v4753_v44 = vld [vmem:[#allocation4 + $0x18] sm:$0xf]  ;;  %v8044_v12 = vcombine.low %v5061_v30, %v5064_v61  ;;  %v4818_v25 = vsel %vm10159_vm14, %v4813_v34, %v4817_v38  ;;  %v4863_v38 = vshll.u32 %v4758_v16, 16  ;;  %v5012_v2 = vld [vmem:[#allocation4 + $0x24] sm:$0xe]  ;;  %v4860_v18 = vor.u32 %v4859_v27, %v4855_v55 }
 0x326   : > { %v4820_v51 = vshrl.u32 %v4753_v44, 16  ;;  %v4823_v52 = vshll.u32 %v4753_v44, 16  ;;  %v8028_v31 = vcombine.low %v4808_v9, %v4818_v25  ;;  %v5077_v40 = vrot.slane %v5014_v6, 5 }
 0x327   : > { %6774 = vmatmul.mubr.bf16.vlgmr.msra.gmra.mrb[80].mxu1 %v9278_v56  ;;  %v4865_v30 = vrot.slane %v4863_v38, 5  ;;  %v4861_v24 = vrot.slane %v4860_v18, 4  ;;  %v4763_v38 = vld [vmem:[#allocation4 + $0x40] sm:$0xf] }
 0x328   : > { %6871 = vmatmul.mubr.bf16.vlgmr.msra.gmra.mrb[100].mxu0 %v8043_v3  ;;  %8720 = vmatpush3.bf16.msra.mxu1 %v9280_v45  ;;  %v4822_v47 = vrot.slane %v4820_v51, 4  ;;  %v4825_v56 = vrot.slane %v4823_v52, 5  ;;  %v9288_v45 = vld [vmem:[#allocation10 + $0x110] sm:$0xff]   ;;  %v9293_v51 = vld [vmem:[#allocation10 + $0x1c0] sm:$0xff]  }
 0x329   : > { %6878 = vmatprep.mubr.bf16.mxu0 %v9281_v33  ;;  %8721 = vmatprep.subr.bf16.mxu1 %v9283_v26  ;;  %v4756_v33 = vld [vmem:[#allocation4 + $0x24] sm:$0xf]  ;;  %v5013_v26 = vld [vmem:[#allocation4 + $0x28] sm:$0xf]  ;;  %v4866_v53 = vsel %vm10159_vm14, %v4861_v24, %v4865_v30 }
 0x32a   : > { %v4826_v63 = vor.u32 %v4825_v56, %v4822_v47  ;;  %6781 = vmatprep.mubr.bf16.mxu1 %v8028_v31  ;;  %v11054_v3 = vld [vmem:[#allocation4 + $0x24] sm:$0xff]   ;;  %v4844_v22 = vshrl.u32 %v4756_v33, 16  ;;  %v4847_v20 = vshll.u32 %v4756_v33, 16  ;;  %v5074_v44 = vrot.slane %v5013_v26, 5  ;;  %8783 = vmatprep.subr.bf16.mxu0 %v9293_v51  ;;  %v4759_v47 = vld [vmem:[#allocation4 + $0x30] sm:$0xf] }
 0x32b   : > { %v4760_v56 = vld [vmem:[#allocation4 + $0x34] sm:$0xf]  ;;  %v4868_v14 = vshrl.u32 %v4759_v47, 16  ;;  %v4905_v26 = vshrl.u32 %v4763_v38, 16  ;;  %v9301_v30 = vld [vmem:[#allocation4 + $0x48] sm:$0xff]  }
 0x32c   : > { %8722 = vmatpush3.bf16.msra.mxu1 %v9284_v39  ;;  %v4827_v62 = vrot.slane %v4826_v63, 4  ;;  %v4846_v46 = vrot.slane %v4844_v22, 4  ;;  %v4849_v37 = vrot.slane %v4847_v20, 5  ;;  %v8038_v39 = vrot.slane %v5012_v2, 9 }
 0x32d   : > { %8723 = vmatprep.subr.bf16.mxu1 %v9287_v11  ;;  %v5076_v52 = vrot.slane %v5074_v44, 4  ;;  %v4877_v42 = vshll.u32 %v4760_v56, 16  ;;  %v4881_v17 = vshrl.u32 %v4760_v56, 16  ;;  %v9295_v11 = vld [vmem:[#allocation4 + $0x3c] sm:$0xff]   ;;  %v4870_v63 = vrot.slane %v4868_v14, 4 }
 0x32e   : > { %v4832_v36 = vsel %vm10159_vm14, %v4827_v62, %v4831_v0  ;;  %v4850_v35 = vor.u32 %v4849_v37, %v4846_v46  ;;  %v5075_v61 = vsel %vm10150_vm13, %v8038_v39, %v5074_v44  ;;  %v4761_v0 = vld [vmem:[#allocation4 + $0x38] sm:$0x1]  ;;  %v4901_v2 = vshll.u32 %v4763_v38, 16  ;;  %v9311_v38 = vld [vmem:[#allocation10 + $0x170] sm:$0xff]  }
 0x32f   : > { %6782 = vmatmul.mubr.bf16.gmra.mrb[84].mxu1 %v9282_v8  ;;  %v4842_v8 = vsel %vm10159_vm14, %v4837_v32, %v4841_v13  ;;  %v4887_v28 = vshll.u32 %v4761_v0, 16  ;;  %v4879_v5 = vrot.slane %v4877_v42, 5  ;;  %v4883_v4 = vrot.slane %v4881_v17, 4  ;;  %v5017_v62 = vld [vmem:[#allocation4 + $0x38] sm:$0x1] }
 0x330   : > { %6879 = vmatmul.mubr.bf16.gmra.mrb[104].mxu0 %v8044_v12  ;;  %8724 = vmatpush3.bf16.msra.mxu1 %v9288_v45  ;;  %v8029_v48 = vcombine.low %v4832_v36, %v4842_v8  ;;  %v4851_v34 = vrot.slane %v4850_v35, 4  ;;  %v5078_v12 = vsel %vm10150_vm13, %v5076_v52, %v5077_v40  ;;  %v9296_v45 = vld [vmem:[#allocation4 + $0x30] sm:$0xff]   ;;  %v5084_v33 = vrot.slane %v5017_v62, 5  ;;  %v9302_v40 = vld [vmem:[#allocation4 + $0x3c] sm:$0xff]   ;;  %v5020_v52 = vld [vmem:[#allocation4 + $0x44] sm:$0x1] }
 0x331   : > { %6886 = vmatprep.mubr.bf16.mxu0 %v9285_v43  ;;  %8725 = vmatprep.subr.bf16.mxu1 %v9291_v19  ;;  %v9294_v43 = vld [vmem:[#allocation10 + $0x180] sm:$0xff]   ;;  %v8046_v25 = vcombine.low %v5075_v61, %v5078_v12  ;;  %v4889_v59 = vrot.slane %v4887_v28, 5  ;;  %v4884_v60 = vor.u32 %v4883_v4, %v4879_v5  ;;  %v4764_v19 = vld [vmem:[#allocation4 + $0x44] sm:$0x1]  ;;  %v4903_v44 = vrot.slane %v4901_v2, 5  ;;  %v9306_v28 = vld [vmem:[#allocation10 + $0x190] sm:$0xff]  }
 0x332   : > { %6789 = vmatprep.mubr.bf16.mxu1 %v8029_v48  ;;  %v4856_v9 = vsel %vm10159_vm14, %v4851_v34, %v4855_v55  ;;  %8784 = vmatpush3.bf16.msra.mxu0 %v9294_v43  ;;  %v4762_v48 = vld [vmem:[#allocation4 + $0x3c] sm:$0xf]  ;;  %v4911_v35 = vshll.u32 %v4764_v19, 16  ;;  %v5019_v61 = vld [vmem:[#allocation4 + $0x40] sm:$0xf]  ;;  %v5091_v12 = vrot.slane %v5020_v52, 5 }
 0x333   : > { %v8030_v31 = vcombine.low %v4856_v9, %v4866_v53  ;;  %v4885_v16 = vrot.slane %v4884_v60, 4  ;;  %v4892_v55 = vshrl.u32 %v4762_v48, 16  ;;  %v4895_v27 = vshll.u32 %v4762_v48, 16  ;;  %v5018_v34 = vld [vmem:[#allocation4 + $0x3c] sm:$0xe]  ;;  %v9308_v60 = vld [vmem:[#allocation4 + $0x54] sm:$0xff]  }
 0x334   : > { %8726 = vmatpush3.bf16.msra.mxu1 %v9292_v23  ;;  %v4907_v23 = vrot.slane %v4905_v26, 4  ;;  %v4913_v18 = vrot.slane %v4911_v35, 5  ;;  %v8040_v43 = vrot.slane %v5018_v34, 9  ;;  %v5088_v9 = vrot.slane %v5019_v61, 5  ;;  %v4766_v4 = vld [vmem:[#allocation4 + $0x4c] sm:$0xf] }
 0x335   : > { %8727 = vmatprep.subr.bf16.mxu1 %v9297_v58  ;;  %v4894_v6 = vrot.slane %v4892_v55, 4  ;;  %v4897_v39 = vrot.slane %v4895_v27, 5  ;;  %v4925_v41 = vshll.u32 %v4766_v4, 16  ;;  %v9312_v2 = vld [vmem:[#allocation10 + $0x130] sm:$0xff]   ;;  %v9313_v35 = vld [vmem:[#allocation10 + $0x1e0] sm:$0xff]  }
 0x336   : > { %v4908_v24 = vor.u32 %v4907_v23, %v4903_v44  ;;  %v5089_v0 = vsel %vm10150_vm13, %v8040_v43, %v5088_v9  ;;  %v5090_v14 = vrot.slane %v5088_v9, 4  ;;  %v9315_v23 = vld [vmem:[#allocation10 + $0x1e8] sm:$0xff]  }
 0x337   : > { %6790 = vmatmul.mubr.bf16.gmra.mrb[88].mxu1 %v9286_v29  ;;  %v4871_v29 = vshll.u32 %v4759_v47, 16  ;;  %v4898_v51 = vor.u32 %v4897_v39, %v4894_v6  ;;  %v9303_v47 = vld [vmem:[#allocation10 + $0x168] sm:$0xff]   ;;  %v9314_v39 = vld [vmem:[#allocation10 + $0x1a0] sm:$0xff]  }
 0x338   : > { %6887 = vmatmul.mubr.bf16.gmra.mrb[108].mxu0 %v8045_v54  ;;  %6797 = vmatprep.mubr.bf16.mxu1 %v8030_v31  ;;  %v9299_v54 = vld [vmem:[#allocation10 + $0x1c8] sm:$0xff]   ;;  %v4909_v56 = vrot.slane %v4908_v24, 4  ;;  %v9305_v31 = vld [vmem:[#allocation10 + $0x1d0] sm:$0xff]   ;;  %v5092_v17 = vsel %vm10150_vm13, %v5090_v14, %v5091_v12 }
 0x339   : > { %6894 = vmatprep.mubr.bf16.mxu0 %v9289_v10  ;;  %v4873_v13 = vrot.slane %v4871_v29, 5  ;;  %v5016_v10 = vld [vmem:[#allocation4 + $0x34] sm:$0xf]  ;;  %8728 = vmatpush3.bf16.msra.mxu1 %v9298_v57  ;;  %v4899_v53 = vrot.slane %v4898_v51, 4  ;;  %v4770_v51 = vld [vmem:[#allocation4 + $0x5c] sm:$0x1] }
 0x33a   : > { %v5081_v32 = vrot.slane %v5016_v10, 5  ;;  %8785 = vmatprep.subr.bf16.mxu0 %v9299_v54  ;;  %8729 = vmatprep.subr.bf16.mxu1 %v9303_v47  ;;  %v4914_v42 = vsel %vm10159_vm14, %v4909_v56, %v4913_v18  ;;  %v4929_v10 = vshrl.u32 %v4766_v4, 16  ;;  %v5022_v54 = vld [vmem:[#allocation4 + $0x4c] sm:$0xf]  ;;  %v4768_v18 = vld [vmem:[#allocation4 + $0x54] sm:$0xf] }
 0x33b   : > { %v4874_v49 = vor.u32 %v4873_v13, %v4870_v63  ;;  %8786 = vmatpush3.bf16.msra.mxu0 %v9300_v15  ;;  %v4904_v29 = vsel %vm10159_vm14, %v4899_v53, %v4903_v44  ;;  %v8048_v63 = vcombine.low %v5089_v0, %v5092_v17  ;;  %v9307_v13 = vld [vmem:[#allocation10 + $0x1d8] sm:$0xff]   ;;  %v5095_v48 = vrot.slane %v5022_v54, 5  ;;  %v9316_v9 = vld [vmem:[#allocation4 + $0x60] sm:$0xff]   ;;  %v5025_v17 = vld [vmem:[#allocation4 + $0x58] sm:$0xf] }
 0x33c   : > { %v5082_v22 = vsel %vm10150_vm13, %v8039_v21, %v5081_v32  ;;  %v5083_v20 = vrot.slane %v5081_v32, 4  ;;  %8787 = vmatprep.subr.bf16.mxu0 %v9305_v31  ;;  %v4931_v58 = vrot.slane %v4929_v10, 4  ;;  %v4940_v34 = vshrl.u32 %v4768_v18, 16  ;;  %v9317_v56 = vld [vmem:[#allocation10 + $0x1a8] sm:$0xff]   ;;  %v9320_v10 = vld [vmem:[#allocation10 + $0x138] sm:$0xff]  }
 0x33d   : > { %v4875_v36 = vrot.slane %v4874_v49, 4  ;;  %v5097_v27 = vrot.slane %v5095_v48, 4  ;;  %v4943_v61 = vshll.u32 %v4768_v18, 16  ;;  %v4959_v43 = vshll.u32 %v4770_v51, 16 }
 0x33e   : > { %v5085_v50 = vsel %vm10150_vm13, %v5083_v20, %v5084_v33  ;;  %v4927_v33 = vrot.slane %v4925_v41, 5  ;;  %v4942_v12 = vrot.slane %v4940_v34, 4 }
 0x33f   : > { %6798 = vmatmul.mubr.bf16.gmra.mrb[92].mxu1 %v11054_v3  ;;  %v4880_v8 = vsel %vm10159_vm14, %v4875_v36, %v4879_v5  ;;  %v4890_v3 = vsel %vm10159_vm14, %v4885_v16, %v4889_v59  ;;  %v8047_v37 = vcombine.low %v5082_v22, %v5085_v50  ;;  %v4765_v5 = vld [vmem:[#allocation4 + $0x48] sm:$0xf]  ;;  %8788 = vmatpush3.bf16.msra.mxu0 %v9306_v28  ;;  %v4767_v59 = vld [vmem:[#allocation4 + $0x50] sm:$0x1]  ;;  %v4945_v47 = vrot.slane %v4943_v61, 5 }
 0x340   : > { %6895 = vmatmul.mubr.bf16.gmra.mrb[112].mxu0 %v8046_v25  ;;  %v8031_v46 = vcombine.low %v4880_v8, %v4890_v3  ;;  %v9304_v25 = vld [vmem:[#allocation10 + $0x128] sm:$0xff]   ;;  %v4919_v49 = vshll.u32 %v4765_v5, 16  ;;  %v4935_v62 = vshll.u32 %v4767_v59, 16  ;;  %8789 = vmatprep.subr.bf16.mxu0 %v9307_v13  ;;  %v9309_v36 = vld [vmem:[#allocation10 + $0x198] sm:$0xff]   ;;  %v9310_v22 = vld [vmem:[#allocation4 + $0x48] sm:$0xff]   ;;  %v4932_v20 = vor.u32 %v4931_v58, %v4927_v33 }
 0x341   : > { %6902 = vmatprep.mubr.bf16.mxu0 %v9295_v11  ;;  %8730 = vmatpush3.bf16.msra.mxu1 %v9304_v25  ;;  %v8032_v11 = vcombine.low %v4904_v29, %v4914_v42  ;;  %v5021_v8 = vld [vmem:[#allocation4 + $0x48] sm:$0xe]  ;;  %v5023_v3 = vld [vmem:[#allocation4 + $0x50] sm:$0x1]  ;;  %v4946_v0 = vor.u32 %v4945_v47, %v4942_v12  ;;  %v4961_v14 = vrot.slane %v4959_v43, 5  ;;  %v9318_v29 = vld [vmem:[#allocation4 + $0x54] sm:$0xff]  }
 0x342   : > { %6805 = vmatprep.mubr.bf16.mxu1 %v8031_v46  ;;  %v4921_v32 = vrot.slane %v4919_v49, 5  ;;  %v4937_v16 = vrot.slane %v4935_v62, 5  ;;  %v8041_v15 = vrot.slane %v5021_v8, 9  ;;  %v5098_v46 = vrot.slane %v5023_v3, 5  ;;  %8731 = vmatprep.subr.bf16.mxu1 %v9311_v38  ;;  %v5024_v42 = vld [vmem:[#allocation4 + $0x54] sm:$0xe] }
 0x343   : > { %8790 = vmatpush3.bf16.msra.mxu0 %v9309_v36  ;;  %v5026_v28 = vld [vmem:[#allocation4 + $0x5c] sm:$0x1]  ;;  %v5102_v13 = vrot.slane %v5025_v17, 5  ;;  %v9319_v59 = vld [vmem:[#allocation10 + $0x178] sm:$0xff]   ;;  %v5695_v61 = vld [vmem:[#allocation4 + $0x20] sm:$0x1] }
 0x344   : > { %v5096_v55 = vsel %vm10150_vm13, %v8041_v15, %v5095_v48  ;;  %v5099_v6 = vsel %vm10150_vm13, %v5097_v27, %v5098_v46  ;;  %8791 = vmatprep.subr.bf16.mxu0 %v9313_v35  ;;  %v9323_v36 = vld [vmem:[#allocation10 + $0x1f8] sm:$0xff]   ;;  %v11107_v35 = vld [vmem:[#allocation4 + $0x18] sm:$0xff]   ;;  %v11112_v12 = vld [vmem:[#allocation4 + $0x24] sm:$0xff]  }
 0x345   : > { %8732 = vmatpush3.bf16.msra.mxu1 %v9312_v2  ;;  %v8049_v44 = vcombine.low %v5096_v55, %v5099_v6  ;;  %v5104_v41 = vrot.slane %v5102_v13, 4  ;;  %v9324_v8 = vld [vmem:[#allocation10 + $0x1b8] sm:$0xff]   ;;  %v11105_v55 = vld [vmem:[#allocation10 + $0x200] sm:$0xff]  }
 0x346   : > { %8733 = vmatprep.subr.bf16.mxu1 %v9319_v59  ;;  %v5221_v15 = vld [vmem:[#allocation4 + $0x10] sm:$0xf]  ;;  %v5222_v48 = vld [vmem:[#allocation4 + $0x14] sm:$0x1] }
 0x347   : > { %6806 = vmatmul.mubr.bf16.gmra.mrb[96].mxu1 %v9296_v45  ;;  %v4916_v45 = vshrl.u32 %v4765_v5, 16  ;;  %8792 = vmatpush3.bf16.msra.mxu0 %v9314_v39  ;;  %v5105_v5 = vrot.slane %v5026_v28, 5  ;;  %v5254_v27 = vshll.u32 %v5221_v15, 16  ;;  %v5258_v2 = vshrl.u32 %v5221_v15, 16 }
 0x348   : > { %6903 = vmatmul.mubr.bf16.gmra.mrb[116].mxu0 %v8047_v37  ;;  %6813 = vmatprep.mubr.bf16.mxu1 %v8032_v11  ;;  %v4933_v37 = vrot.slane %v4932_v20, 4  ;;  %v4947_v11 = vrot.slane %v4946_v0, 4 }
 0x349   : > { %6910 = vmatprep.mubr.bf16.mxu0 %v9301_v30  ;;  %v4918_v21 = vrot.slane %v4916_v45, 4  ;;  %8793 = vmatprep.subr.bf16.mxu0 %v9315_v23  ;;  %v5694_v23 = vld [vmem:[#allocation4 + $0x1c] sm:$0xf]  ;;  %v5260_v51 = vrot.slane %v5258_v2, 4 }
 0x34a   : > { %v4938_v26 = vsel %vm10159_vm14, %v4933_v37, %v4937_v16  ;;  %8734 = vmatpush3.bf16.msra.mxu1 %v9320_v10  ;;  %v5477_v16 = vld [vmem:[#allocation4 + $0x10] sm:$0xf]  ;;  %v9327_v10 = vld [vmem:[#allocation10 + $0x208] sm:$0xff]  }
 0x34b   : > { %v4922_v57 = vor.u32 %v4921_v32, %v4918_v21  ;;  %8794 = vmatpush3.bf16.msra.mxu0 %v9317_v56  ;;  %v5106_v32 = vsel %vm10150_vm13, %v5104_v41, %v5105_v5  ;;  %v5526_v54 = vrot.slane %v5477_v16, 5  ;;  %8899 = vmatprep.subr.bf16.mxu1 %v11105_v55  ;;  %v5479_v56 = vld [vmem:[#allocation4 + $0x18] sm:$0xe]  ;;  %v5224_v41 = vld [vmem:[#allocation4 + $0x1c] sm:$0xf] }
 0x34d   : > { %v4923_v50 = vrot.slane %v4922_v57, 4  ;;  %v5476_v57 = vld [vmem:[#allocation4 + $0xc] sm:$0xe]  ;;  %v5528_v37 = vrot.slane %v5526_v54, 4 }
 0x34e   : > { %v8067_v20 = vrot.slane %v5476_v57, 9 }
 0x34f   : > { %6814 = vmatmul.mubr.bf16.gmra.mrb[100].mxu1 %v9302_v40  ;;  %v4928_v19 = vsel %vm10159_vm14, %v4923_v50, %v4927_v33  ;;  %v4769_v40 = vld [vmem:[#allocation4 + $0x58] sm:$0xf]  ;;  %v9322_v33 = vld [vmem:[#allocation10 + $0x1b0] sm:$0xff]  }
 0x350   : > { %6911 = vmatmul.mubr.bf16.gmra.mrb[120].mxu0 %v8048_v63  ;;  %v8033_v30 = vcombine.low %v4928_v19, %v4938_v26  ;;  %v4949_v52 = vshll.u32 %v4769_v40, 16  ;;  %v4953_v24 = vshrl.u32 %v4769_v40, 16  ;;  %v8042_v63 = vrot.slane %v5024_v42, 9  ;;  %v5220_v50 = vld [vmem:[#allocation4 + $0xc] sm:$0xf] }
 0x351   : > { %6918 = vmatprep.mubr.bf16.mxu0 %v9308_v60  ;;  %v9321_v60 = vld [vmem:[#allocation10 + $0x1f0] sm:$0xff]   ;;  %v5527_v46 = vsel %vm10150_vm13, %v8067_v20, %v5526_v54  ;;  %v5245_v38 = vshrl.u32 %v5220_v50, 16  ;;  %v5248_v19 = vshll.u32 %v5220_v50, 16  ;;  %v5264_v26 = vshll.u32 %v5222_v48, 16  ;;  %v5480_v42 = vld [vmem:[#allocation4 + $0x1c] sm:$0xf] }
 0x352   : > { %6821 = vmatprep.mubr.bf16.mxu1 %v8033_v30  ;;  %v4951_v53 = vrot.slane %v4949_v52, 5  ;;  %v4955_v25 = vrot.slane %v4953_v24, 4  ;;  %v5103_v49 = vsel %vm10150_vm13, %v8042_v63, %v5102_v13  ;;  %8795 = vmatprep.subr.bf16.mxu0 %v9321_v60  ;;  %v5256_v40 = vrot.slane %v5254_v27, 5  ;;  %v5481_v63 = vld [vmem:[#allocation4 + $0x20] sm:$0x1] }
 0x353   : > { %v8050_v58 = vcombine.low %v5103_v49, %v5106_v32  ;;  %8796 = vmatpush3.bf16.msra.mxu0 %v9322_v33  ;;  %v5247_v6 = vrot.slane %v5245_v38, 4  ;;  %v5250_v39 = vrot.slane %v5248_v19, 5  ;;  %v5266_v34 = vrot.slane %v5264_v26, 5  ;;  %v5223_v49 = vld [vmem:[#allocation4 + $0x18] sm:$0xf] }
 0x354   : > { %v4956_v31 = vor.u32 %v4955_v25, %v4951_v53  ;;  %v4952_v45 = vsel %vm10159_vm14, %v4947_v11, %v4951_v53  ;;  %8797 = vmatprep.subr.bf16.mxu0 %v9323_v36  ;;  %v5261_v47 = vor.u32 %v5260_v51, %v5256_v40  ;;  %v5731_v53 = vshrl.u32 %v5694_v23, 16  ;;  %v5697_v50 = vld [vmem:[#allocation4 + $0x28] sm:$0xf]  ;;  %v5698_v38 = vld [vmem:[#allocation4 + $0x2c] sm:$0x1]  ;;  %v11127_v51 = vld [vmem:[#allocation4 + $0x30] sm:$0xff]  }
 0x355   : > { %v5251_v52 = vor.u32 %v5250_v39, %v5247_v6  ;;  %v5737_v25 = vshll.u32 %v5695_v61, 16  ;;  %v8068_v13 = vrot.slane %v5479_v56, 9  ;;  %v5533_v59 = vrot.slane %v5480_v42, 5  ;;  %v9329_v6 = vld [vmem:[#allocation10 + $0x210] sm:$0xff]   ;;  %v9331_v56 = vld [vmem:[#allocation10 + $0x218] sm:$0xff]  }
 0x356   : > { %v4957_v4 = vrot.slane %v4956_v31, 4  ;;  %v5262_v17 = vrot.slane %v5261_v47, 4  ;;  %v5733_v28 = vrot.slane %v5731_v53, 4  ;;  %v5269_v32 = vshrl.u32 %v5223_v49, 16  ;;  %v5227_v42 = vld [vmem:[#allocation4 + $0x28] sm:$0xf] }
 0x357   : > { %6822 = vmatmul.mubr.bf16.gmra.mrb[104].mxu1 %v9310_v22  ;;  %v5478_v22 = vld [vmem:[#allocation4 + $0x14] sm:$0x1]  ;;  %8798 = vmatpush3.bf16.msra.mxu0 %v9324_v8  ;;  %v5252_v0 = vrot.slane %v5251_v52, 4  ;;  %v5739_v11 = vrot.slane %v5737_v25, 5  ;;  %v5272_v33 = vshll.u32 %v5223_v49, 16  ;;  %v5534_v57 = vsel %vm10150_vm13, %v8068_v13, %v5533_v59 }
 0x358   : > { %6919 = vmatmul.mubr.bf16.gmra.mrb[124].mxu0 %v8049_v44  ;;  %v4962_v62 = vsel %vm10159_vm14, %v4957_v4, %v4961_v14  ;;  %v5529_v3 = vrot.slane %v5478_v22, 5  ;;  %v5693_v44 = vld [vmem:[#allocation4 + $0x18] sm:$0xf]  ;;  %v5535_v16 = vrot.slane %v5533_v59, 4  ;;  %v5696_v22 = vld [vmem:[#allocation4 + $0x24] sm:$0xf] }
 0x359   : > { %6926 = vmatprep.mubr.bf16.mxu0 %v9316_v9  ;;  %v8034_v21 = vcombine.low %v4952_v45, %v4962_v62  ;;  %v5718_v24 = vshrl.u32 %v5693_v44, 16  ;;  %v5721_v43 = vshll.u32 %v5693_v44, 16  ;;  %v5727_v9 = vshll.u32 %v5694_v23, 16  ;;  %v5226_v25 = vld [vmem:[#allocation4 + $0x24] sm:$0xf] }
 0x35a   : > { %v5530_v30 = vsel %vm10150_vm13, %v5528_v37, %v5529_v3  ;;  %v5257_v5 = vsel %vm10159_vm14, %v5252_v0, %v5256_v40  ;;  %v5536_v45 = vrot.slane %v5481_v63, 5  ;;  %v5267_v62 = vsel %vm10159_vm14, %v5262_v17, %v5266_v34  ;;  %v5483_v40 = vld [vmem:[#allocation4 + $0x28] sm:$0xf]  ;;  %v11132_v17 = vld [vmem:[#allocation4 + $0x3c] sm:$0xff]  }
 0x35b   : > { %6829 = vmatprep.mubr.bf16.mxu1 %v8034_v21  ;;  %v8075_v18 = vcombine.low %v5527_v46, %v5530_v30  ;;  %v5720_v14 = vrot.slane %v5718_v24, 4  ;;  %v5729_v31 = vrot.slane %v5727_v9, 5  ;;  %v5225_v21 = vld [vmem:[#allocation4 + $0x20] sm:$0x1]  ;;  %v5271_v8 = vrot.slane %v5269_v32, 4 }
 0x35c   : > { %v5274_v54 = vrot.slane %v5272_v33, 5  ;;  %v5278_v3 = vshll.u32 %v5224_v41, 16  ;;  %v5537_v48 = vsel %vm10150_vm13, %v5535_v16, %v5536_v45  ;;  %v5282_v46 = vshrl.u32 %v5224_v41, 16  ;;  %v5482_v30 = vld [vmem:[#allocation4 + $0x24] sm:$0xe]  ;;  %v9333_v16 = vld [vmem:[#allocation10 + $0x220] sm:$0xff]  }
 0x35d   : > { %v5734_v60 = vor.u32 %v5733_v28, %v5729_v31  ;;  %v5288_v37 = vshll.u32 %v5225_v21, 16  ;;  %v8076_v27 = vcombine.low %v5534_v57, %v5537_v48  ;;  %v5745_v61 = vshll.u32 %v5696_v22, 16  ;;  %v5700_v21 = vld [vmem:[#allocation4 + $0x34] sm:$0xf]  ;;  %v5701_v57 = vld [vmem:[#allocation4 + $0x38] sm:$0x1] }
 0x35e   : > { %v5275_v2 = vor.u32 %v5274_v54, %v5271_v8  ;;  %v5280_v26 = vrot.slane %v5278_v3, 5  ;;  %v5284_v44 = vrot.slane %v5282_v46, 4  ;;  %v5751_v52 = vshll.u32 %v5697_v50, 16  ;;  %v11140_v3 = vld [vmem:[#allocation4 + $0x48] sm:$0xff]  }
 0x35f   : > { %6830 = vmatmul.mubr.bf16.gmra.mrb[108].mxu1 %v9318_v29  ;;  %v5723_v29 = vrot.slane %v5721_v43, 5  ;;  %v5735_v20 = vrot.slane %v5734_v60, 4  ;;  %v5290_v23 = vrot.slane %v5288_v37, 5  ;;  %v5755_v24 = vshrl.u32 %v5697_v50, 16  ;;  %v5484_v43 = vld [vmem:[#allocation4 + $0x2c] sm:$0x1] }
 0x360   : > { %6927 = vmatmul.mubr.bf16.gmra.mrb[128].mxu0 %v8050_v58  ;;  %6967 = vmatprep.mubr.bf16.mxu1 %v8075_v18  ;;  %v8059_v58 = vcombine.low %v5257_v5, %v5267_v62  ;;  %v5742_v18 = vshrl.u32 %v5696_v22, 16  ;;  %v5276_v34 = vrot.slane %v5275_v2, 4  ;;  %v5761_v47 = vshll.u32 %v5698_v38, 16  ;;  %v5228_v5 = vld [vmem:[#allocation4 + $0x2c] sm:$0x1] }
 0x361   : > { %v5724_v4 = vor.u32 %v5723_v29, %v5720_v14  ;;  %v5740_v19 = vsel %vm10159_vm14, %v5735_v20, %v5739_v11  ;;  %v8069_v53 = vrot.slane %v5482_v30, 9  ;;  %v5747_v14 = vrot.slane %v5745_v61, 5  ;;  %v5699_v60 = vld [vmem:[#allocation4 + $0x30] sm:$0xf]  ;;  %v11146_v30 = vld [vmem:[#allocation10 + $0x228] sm:$0xff]  }
 0x362   : > { %v5744_v9 = vrot.slane %v5742_v18, 4  ;;  %v5281_v0 = vsel %vm10159_vm14, %v5276_v34, %v5280_v26  ;;  %v5753_v29 = vrot.slane %v5751_v52, 5  ;;  %v5763_v11 = vrot.slane %v5761_v47, 5  ;;  %v5485_v37 = vld [vmem:[#allocation4 + $0x30] sm:$0xe] }
 0x363   : > { %v5725_v36 = vrot.slane %v5724_v4, 4  ;;  %v5540_v63 = vrot.slane %v5483_v40, 5  ;;  %v5543_v13 = vrot.slane %v5484_v43, 5  ;;  %v5293_v45 = vshrl.u32 %v5226_v25, 16  ;;  %v5487_v18 = vld [vmem:[#allocation4 + $0x38] sm:$0x1] }
 0x364   : > { %v5748_v4 = vor.u32 %v5747_v14, %v5744_v9  ;;  %v5302_v62 = vshll.u32 %v5227_v42, 16  ;;  %v5306_v54 = vshrl.u32 %v5227_v42, 16  ;;  %v5312_v46 = vshll.u32 %v5228_v5, 16  ;;  %v11148_v43 = vld [vmem:[#allocation4 + $0x54] sm:$0xff]  }
 0x365   : > { %v5730_v15 = vsel %vm10159_vm14, %v5725_v36, %v5729_v31  ;;  %v5757_v31 = vrot.slane %v5755_v24, 4  ;;  %v5541_v41 = vsel %vm10150_vm13, %v8069_v53, %v5540_v63  ;;  %v5295_v36 = vrot.slane %v5293_v45, 4  ;;  %v5229_v24 = vld [vmem:[#allocation4 + $0x30] sm:$0xf]  ;;  %v5702_v45 = vld [vmem:[#allocation4 + $0x3c] sm:$0xf] }
 0x366   : > { %v8091_v39 = vcombine.low %v5730_v15, %v5740_v19  ;;  %v5749_v33 = vrot.slane %v5748_v4, 4  ;;  %v5304_v8 = vrot.slane %v5302_v62, 5  ;;  %v5766_v2 = vshrl.u32 %v5699_v60, 16 }
 0x367   : > { %6968 = vmatmul.mubr.bf16.vlgmr.msra.gmra.mrb[112].mxu1 %v8059_v58  ;;  %v5758_v59 = vor.u32 %v5757_v31, %v5753_v29  ;;  %v5785_v52 = vshll.u32 %v5701_v57, 16  ;;  %v8070_v53 = vrot.slane %v5485_v37, 9  ;;  %v5231_v31 = vld [vmem:[#allocation4 + $0x38] sm:$0x1] }
 0x368   : > { %8900 = vmatpush3.bf16.msra.mxu1 %v11105_v55  ;;  %6975 = vmatprep.mubr.bf16.mxu1 %v8076_v27  ;;  %v5285_v55 = vor.u32 %v5284_v44, %v5280_v26  ;;  %v5754_v50 = vsel %vm10159_vm14, %v5749_v33, %v5753_v29  ;;  %v5308_v27 = vrot.slane %v5306_v54, 4  ;;  %v5486_v26 = vld [vmem:[#allocation4 + $0x34] sm:$0xf]  ;;  %v5775_v44 = vshll.u32 %v5700_v21, 16 }
 0x369   : > { %8901 = vmatprep.subr.bf16.mxu1 %v9327_v10  ;;  %7064 = vmatprep.mubr.bf16.mxu0 %v8091_v39  ;;  %v5759_v58 = vrot.slane %v5758_v59, 4  ;;  %v5769_v39 = vshll.u32 %v5699_v60, 16  ;;  %v5768_v61 = vrot.slane %v5766_v2, 4  ;;  %v5787_v14 = vrot.slane %v5785_v52, 5  ;;  %v5704_v60 = vld [vmem:[#allocation4 + $0x44] sm:$0x1] }
 0x36a   : > { %7065 = vmatmul.mubr.bf16.vlgmr.msra.gmra.mrb[132].mxu0 %v11107_v35  ;;  %v5286_v28 = vrot.slane %v5285_v55, 4  ;;  %v5296_v35 = vshll.u32 %v5226_v25, 16  ;;  %v5309_v34 = vor.u32 %v5308_v27, %v5304_v8  ;;  %v5777_v9 = vrot.slane %v5775_v44, 5  ;;  %v5230_v25 = vld [vmem:[#allocation4 + $0x34] sm:$0xf] }
 0x36b   : > { %v5764_v15 = vsel %vm10159_vm14, %v5759_v58, %v5763_v11  ;;  %v5771_v55 = vrot.slane %v5769_v39, 5  ;;  %v5547_v29 = vrot.slane %v5486_v26, 5  ;;  %v5550_v11 = vrot.slane %v5487_v18, 5  ;;  %v9339_v54 = vld [vmem:[#allocation10 + $0x238] sm:$0xff]   ;;  %v5232_v39 = vld [vmem:[#allocation4 + $0x3c] sm:$0xf] }
 0x36c   : > { %8902 = vmatpush3.bf16.msra.mxu1 %v9327_v10  ;;  %v5291_v49 = vsel %vm10159_vm14, %v5286_v28, %v5290_v23  ;;  %v5542_v10 = vrot.slane %v5540_v63, 4  ;;  %v5298_v20 = vrot.slane %v5296_v35, 5  ;;  %v8092_v38 = vcombine.low %v5754_v50, %v5764_v15  ;;  %v5703_v35 = vld [vmem:[#allocation4 + $0x40] sm:$0xf]  ;;  %v11166_v50 = vld [vmem:[#allocation4 + $0x6c] sm:$0xff]  }
 0x36d   : > { %8903 = vmatprep.subr.bf16.mxu1 %v9329_v6  ;;  %v8060_v32 = vcombine.low %v5281_v0, %v5291_v49  ;;  %v5779_v23 = vshrl.u32 %v5700_v21, 16  ;;  %v5772_v42 = vor.u32 %v5771_v55, %v5768_v61  ;;  %v5317_v63 = vshrl.u32 %v5229_v24, 16  ;;  %v11158_v21 = vld [vmem:[#allocation4 + $0x60] sm:$0xff]  }
 0x36e   : > { %v5544_v22 = vsel %vm10150_vm13, %v5542_v10, %v5543_v13  ;;  %v5299_v19 = vor.u32 %v5298_v20, %v5295_v36  ;;  %7072 = vmatprep.mubr.bf16.mxu0 %v8092_v38  ;;  %v9337_v13 = vld [vmem:[#allocation10 + $0x230] sm:$0xff]   ;;  %v5548_v5 = vsel %vm10150_vm13, %v8070_v53, %v5547_v29  ;;  %v5549_v4 = vrot.slane %v5547_v29, 4  ;;  %v5489_v38 = vld [vmem:[#allocation4 + $0x40] sm:$0xf] }
 0x36f   : > { %6976 = vmatmul.mubr.bf16.gmra.mrb[116].mxu1 %v8060_v32  ;;  %v8077_v48 = vcombine.low %v5541_v41, %v5544_v22  ;;  %v5781_v47 = vrot.slane %v5779_v23, 4  ;;  %v5320_v59 = vshll.u32 %v5229_v24, 16  ;;  %v5773_v41 = vrot.slane %v5772_v42, 4 }
 0x370   : > { %8904 = vmatpush3.bf16.msra.mxu1 %v9329_v6  ;;  %v5314_v6 = vrot.slane %v5312_v46, 5  ;;  %v5300_v40 = vrot.slane %v5299_v19, 4  ;;  %v5319_v62 = vrot.slane %v5317_v63, 4  ;;  %v5551_v32 = vsel %vm10150_vm13, %v5549_v4, %v5550_v11  ;;  %v5490_v19 = vld [vmem:[#allocation4 + $0x44] sm:$0x1] }
 0x371   : > { %8905 = vmatprep.subr.bf16.mxu1 %v9331_v56  ;;  %6983 = vmatprep.mubr.bf16.mxu1 %v8077_v48  ;;  %v5782_v28 = vor.u32 %v5781_v47, %v5777_v9  ;;  %v5322_v33 = vrot.slane %v5320_v59, 5  ;;  %v5326_v58 = vshll.u32 %v5230_v25, 16  ;;  %v5330_v36 = vshrl.u32 %v5230_v25, 16  ;;  %v5705_v11 = vld [vmem:[#allocation4 + $0x48] sm:$0xf] }
 0x372   : > { %7073 = vmatmul.mubr.bf16.gmra.mrb[136].mxu0 %v11112_v12  ;;  %v5305_v0 = vsel %vm10159_vm14, %v5300_v40, %v5304_v8  ;;  %v5778_v57 = vsel %vm10159_vm14, %v5773_v41, %v5777_v9  ;;  %v8078_v22 = vcombine.low %v5548_v5, %v5551_v32  ;;  %v5336_v20 = vshll.u32 %v5231_v31, 16  ;;  %v5488_v8 = vld [vmem:[#allocation4 + $0x3c] sm:$0xe]  ;;  %v5234_v31 = vld [vmem:[#allocation4 + $0x44] sm:$0x1] }
 0x373   : > { %v5783_v10 = vrot.slane %v5782_v28, 4  ;;  %v5323_v48 = vor.u32 %v5322_v33, %v5319_v62  ;;  %v5328_v46 = vrot.slane %v5326_v58, 5  ;;  %v5332_v37 = vrot.slane %v5330_v36, 4  ;;  %v5707_v32 = vld [vmem:[#allocation4 + $0x50] sm:$0x1] }
 0x374   : > { %8906 = vmatpush3.bf16.msra.mxu1 %v9331_v56  ;;  %v5310_v56 = vrot.slane %v5309_v34, 4  ;;  %v5338_v27 = vrot.slane %v5336_v20, 5  ;;  %v5790_v2 = vshrl.u32 %v5702_v45, 16  ;;  %v5793_v26 = vshll.u32 %v5702_v45, 16  ;;  %v5233_v34 = vld [vmem:[#allocation4 + $0x40] sm:$0xf] }
 0x375   : > { %8907 = vmatprep.subr.bf16.mxu1 %v9333_v16  ;;  %v5324_v44 = vrot.slane %v5323_v48, 4  ;;  %v5333_v23 = vor.u32 %v5332_v37, %v5328_v46  ;;  %v5803_v18 = vshrl.u32 %v5703_v35, 16  ;;  %v5809_v40 = vshll.u32 %v5704_v60, 16  ;;  %v5491_v33 = vld [vmem:[#allocation4 + $0x48] sm:$0xe] }
 0x376   : > { %v5315_v12 = vsel %vm10159_vm14, %v5310_v56, %v5314_v6  ;;  %v5799_v6 = vshll.u32 %v5703_v35, 16  ;;  %v5792_v61 = vrot.slane %v5790_v2, 4  ;;  %v5795_v52 = vrot.slane %v5793_v26, 5  ;;  %v5493_v20 = vld [vmem:[#allocation4 + $0x50] sm:$0x1] }
 0x377   : > { %v8061_v49 = vcombine.low %v5305_v0, %v5315_v12  ;;  %v8071_v55 = vrot.slane %v5488_v8, 9  ;;  %v5334_v9 = vrot.slane %v5333_v23, 4  ;;  %v5805_v47 = vrot.slane %v5803_v18, 4 }
 0x378   : > { %8908 = vmatpush3.bf16.msra.mxu1 %v9333_v16  ;;  %v5788_v16 = vsel %vm10159_vm14, %v5783_v10, %v5787_v14  ;;  %v5801_v24 = vrot.slane %v5799_v6, 5  ;;  %v5811_v53 = vrot.slane %v5809_v40, 5  ;;  %v5796_v25 = vor.u32 %v5795_v52, %v5792_v61 }
 0x379   : > { %8909 = vmatprep.subr.bf16.mxu1 %v11146_v30  ;;  %6984 = vmatmul.mubr.bf16.gmra.mrb[120].mxu1 %v8061_v49  ;;  %v8093_v15 = vcombine.low %v5778_v57, %v5788_v16  ;;  %v5554_v0 = vrot.slane %v5489_v38, 5  ;;  %v5557_v56 = vrot.slane %v5490_v19, 5  ;;  %v5341_v14 = vshrl.u32 %v5232_v39, 16  ;;  %v5706_v49 = vld [vmem:[#allocation4 + $0x4c] sm:$0xf] }
 0x37a   : > { %6991 = vmatprep.mubr.bf16.mxu1 %v8078_v22  ;;  %v5339_v29 = vsel %vm10159_vm14, %v5334_v9, %v5338_v27  ;;  %v5344_v42 = vshll.u32 %v5232_v39, 16  ;;  %v5350_v28 = vshll.u32 %v5233_v34, 16  ;;  %v5797_v12 = vrot.slane %v5796_v25, 4  ;;  %v5492_v22 = vld [vmem:[#allocation4 + $0x4c] sm:$0xf] }
 0x37b   : > { %7080 = vmatprep.mubr.bf16.mxu0 %v8093_v15  ;;  %v5555_v5 = vsel %vm10150_vm13, %v8071_v55, %v5554_v0  ;;  %v5556_v4 = vrot.slane %v5554_v0, 4  ;;  %v5343_v59 = vrot.slane %v5341_v14, 4  ;;  %v5354_v62 = vshrl.u32 %v5233_v34, 16  ;;  %v5236_v34 = vld [vmem:[#allocation4 + $0x4c] sm:$0xf] }
 0x37c   : > { %8910 = vmatpush3.bf16.msra.mxu1 %v11146_v30  ;;  %7081 = vmatmul.mubr.bf16.gmra.mrb[140].mxu0 %v11127_v51  ;;  %v5329_v30 = vsel %vm10159_vm14, %v5324_v44, %v5328_v46  ;;  %v5806_v51 = vor.u32 %v5805_v47, %v5801_v24  ;;  %v5346_v45 = vrot.slane %v5344_v42, 5  ;;  %v5352_v35 = vrot.slane %v5350_v28, 5  ;;  %v5235_v46 = vld [vmem:[#allocation4 + $0x48] sm:$0xf]  ;;  %v5708_v0 = vld [vmem:[#allocation4 + $0x54] sm:$0xf] }
 0x37d   : > { %8911 = vmatprep.subr.bf16.mxu1 %v9337_v13  ;;  %v8062_v63 = vcombine.low %v5329_v30, %v5339_v29  ;;  %v5802_v41 = vsel %vm10159_vm14, %v5797_v12, %v5801_v24  ;;  %v5558_v10 = vsel %vm10150_vm13, %v5556_v4, %v5557_v56  ;;  %v5360_v60 = vshll.u32 %v5234_v31, 16  ;;  %v5237_v30 = vld [vmem:[#allocation4 + $0x50] sm:$0x1] }
 0x37e   : > { %v8079_v36 = vcombine.low %v5555_v5, %v5558_v10  ;;  %v5347_v57 = vor.u32 %v5346_v45, %v5343_v59  ;;  %v5814_v16 = vshrl.u32 %v5705_v11, 16  ;;  %v5817_v48 = vshll.u32 %v5705_v11, 16  ;;  %v5709_v11 = vld [vmem:[#allocation4 + $0x58] sm:$0xf]  ;;  %v5494_v59 = vld [vmem:[#allocation4 + $0x54] sm:$0xe] }
 0x37f   : > { %v5362_v15 = vrot.slane %v5360_v60, 5  ;;  %v5823_v19 = vshll.u32 %v5706_v49, 16  ;;  %v5827_v27 = vshrl.u32 %v5706_v49, 16  ;;  %v5833_v6 = vshll.u32 %v5707_v32, 16  ;;  %v5495_v10 = vld [vmem:[#allocation4 + $0x58] sm:$0xf] }
 0x380   : > { %8912 = vmatpush3.bf16.msra.mxu1 %v9337_v13  ;;  %v5807_v13 = vrot.slane %v5806_v51, 4  ;;  %v5348_v37 = vrot.slane %v5347_v57, 4  ;;  %v5816_v38 = vrot.slane %v5814_v16, 4  ;;  %v5819_v26 = vrot.slane %v5817_v48, 5  ;;  %v5238_v48 = vld [vmem:[#allocation4 + $0x54] sm:$0xf] }
 0x381   : > { %8913 = vmatprep.subr.bf16.mxu1 %v9339_v54  ;;  %6992 = vmatmul.mubr.bf16.gmra.mrb[124].mxu1 %v8062_v63  ;;  %v8072_v39 = vrot.slane %v5491_v33, 9  ;;  %v5825_v23 = vrot.slane %v5823_v19, 5  ;;  %v5829_v18 = vrot.slane %v5827_v27, 4  ;;  %v5561_v40 = vrot.slane %v5492_v22, 5  ;;  %v5239_v27 = vld [vmem:[#allocation4 + $0x58] sm:$0xf] }
 0x382   : > { %v5812_v58 = vsel %vm10159_vm14, %v5807_v13, %v5811_v53  ;;  %6999 = vmatprep.mubr.bf16.mxu1 %v8079_v36  ;;  %v5353_v44 = vsel %vm10159_vm14, %v5348_v37, %v5352_v35  ;;  %v5820_v52 = vor.u32 %v5819_v26, %v5816_v38  ;;  %v5835_v24 = vrot.slane %v5833_v6, 5  ;;  %v5710_v13 = vld [vmem:[#allocation4 + $0x5c] sm:$0x1] }
 0x383   : > { %v8094_v8 = vcombine.low %v5802_v41, %v5812_v58  ;;  %v5564_v55 = vrot.slane %v5493_v20, 5  ;;  %v5830_v9 = vor.u32 %v5829_v18, %v5825_v23  ;;  %v5562_v47 = vsel %vm10150_vm13, %v8072_v39, %v5561_v40  ;;  %v5496_v58 = vld [vmem:[#allocation4 + $0x5c] sm:$0x1] }
 0x384   : > { %8914 = vmatpush3.bf16.msra.mxu1 %v9339_v54  ;;  %v5356_v54 = vrot.slane %v5354_v62, 4  ;;  %v5563_v53 = vrot.slane %v5561_v40, 4  ;;  %v5365_v25 = vshrl.u32 %v5235_v46, 16  ;;  %v5821_v56 = vrot.slane %v5820_v52, 4 }
 0x385   : > { %7088 = vmatprep.mubr.bf16.mxu0 %v8094_v8  ;;  %v5368_v14 = vshll.u32 %v5235_v46, 16  ;;  %v5374_v29 = vshll.u32 %v5236_v34, 16  ;;  %v5831_v31 = vrot.slane %v5830_v9, 4  ;;  %v5384_v49 = vshll.u32 %v5237_v30, 16  ;;  %v5240_v9 = vld [vmem:[#allocation4 + $0x5c] sm:$0x1] }
 0x386   : > { %v5357_v2 = vor.u32 %v5356_v54, %v5352_v35  ;;  %7089 = vmatmul.mubr.bf16.gmra.mrb[144].mxu0 %v11132_v17  ;;  %v5565_v42 = vsel %vm10150_vm13, %v5563_v53, %v5564_v55  ;;  %v5367_v28 = vrot.slane %v5365_v25, 4  ;;  %v5826_v63 = vsel %vm10159_vm14, %v5821_v56, %v5825_v23  ;;  %v5711_v53 = vld [vmem:[#allocation4 + $0x60] sm:$0xf] }
 0x387   : > { %v8080_v12 = vcombine.low %v5562_v47, %v5565_v42  ;;  %v5370_v5 = vrot.slane %v5368_v14, 5  ;;  %v5376_v4 = vrot.slane %v5374_v29, 5  ;;  %v5836_v45 = vsel %vm10159_vm14, %v5831_v31, %v5835_v24  ;;  %v5712_v14 = vld [vmem:[#allocation4 + $0x64] sm:$0xf]  ;;  %v5713_v29 = vld [vmem:[#allocation4 + $0x68] sm:$0x1] }
 0x388   : > { %v5358_v61 = vrot.slane %v5357_v2, 4  ;;  %v5378_v35 = vshrl.u32 %v5236_v34, 16  ;;  %v5838_v41 = vshrl.u32 %v5708_v0, 16  ;;  %v8095_v62 = vcombine.low %v5826_v63, %v5836_v45 }
 0x389   : > { %v5371_v60 = vor.u32 %v5370_v5, %v5367_v28  ;;  %v5841_v32 = vshll.u32 %v5708_v0, 16  ;;  %v5847_v33 = vshll.u32 %v5709_v11, 16  ;;  %v5386_v57 = vrot.slane %v5384_v49, 5  ;;  %v5498_v49 = vld [vmem:[#allocation4 + $0x64] sm:$0xf] }
 0x38a   : > { %v5363_v17 = vsel %vm10159_vm14, %v5358_v61, %v5362_v15  ;;  %v5380_v36 = vrot.slane %v5378_v35, 4  ;;  %v5840_v16 = vrot.slane %v5838_v41, 4  ;;  %v5851_v22 = vshrl.u32 %v5709_v11, 16  ;;  %7096 = vmatprep.mubr.bf16.mxu0 %v8095_v62  ;;  %v5497_v11 = vld [vmem:[#allocation4 + $0x60] sm:$0xe] }
 0x38b   : > { %v8063_v51 = vcombine.low %v5353_v44, %v5363_v17  ;;  %v5372_v20 = vrot.slane %v5371_v60, 4  ;;  %v5843_v8 = vrot.slane %v5841_v32, 5  ;;  %v5849_v54 = vrot.slane %v5847_v33, 5  ;;  %v5499_v41 = vld [vmem:[#allocation4 + $0x68] sm:$0x1] }
 0x38c   : > { %v5857_v15 = vshll.u32 %v5710_v13, 16  ;;  %v5381_v46 = vor.u32 %v5380_v36, %v5376_v4  ;;  %v5853_v37 = vrot.slane %v5851_v22, 4  ;;  %v8073_v38 = vrot.slane %v5494_v59, 9  ;;  %v5241_v33 = vld [vmem:[#allocation4 + $0x60] sm:$0xf] }
 0x38d   : > { %7000 = vmatmul.mubr.bf16.gmra.mrb[128].mxu1 %v8063_v51  ;;  %v5568_v19 = vrot.slane %v5495_v10, 5  ;;  %v5377_v2 = vsel %vm10159_vm14, %v5372_v20, %v5376_v4  ;;  %v5844_v26 = vor.u32 %v5843_v8, %v5840_v16  ;;  %v5571_v39 = vrot.slane %v5496_v58, 5  ;;  %v5242_v58 = vld [vmem:[#allocation4 + $0x64] sm:$0xf] }
 0x38e   : > { %7007 = vmatprep.mubr.bf16.mxu1 %v8080_v12  ;;  %7097 = vmatmul.mubr.bf16.gmra.mrb[148].mxu0 %v11140_v3  ;;  %v5859_v6 = vrot.slane %v5857_v15, 5  ;;  %v5382_v44 = vrot.slane %v5381_v46, 4  ;;  %v5854_v23 = vor.u32 %v5853_v37, %v5849_v54  ;;  %v5389_v61 = vshrl.u32 %v5238_v48, 16 }
 0x38f   : > { %v5569_v18 = vsel %vm10150_vm13, %v8073_v38, %v5568_v19  ;;  %v5570_v40 = vrot.slane %v5568_v19, 4  ;;  %v5845_v34 = vrot.slane %v5844_v26, 4  ;;  %v5392_v3 = vshll.u32 %v5238_v48, 16  ;;  %v5243_v19 = vld [vmem:[#allocation4 + $0x68] sm:$0x1] }
 0x390   : > { %v5398_v52 = vshll.u32 %v5239_v27, 16  ;;  %v5387_v24 = vsel %vm10159_vm14, %v5382_v44, %v5386_v57  ;;  %v5855_v55 = vrot.slane %v5854_v23, 4  ;;  %v5402_v47 = vshrl.u32 %v5239_v27, 16 }
 0x391   : > { %v5572_v30 = vsel %vm10150_vm13, %v5570_v40, %v5571_v39  ;;  %v8064_v25 = vcombine.low %v5377_v2, %v5387_v24  ;;  %v5850_v0 = vsel %vm10159_vm14, %v5845_v34, %v5849_v54  ;;  %v5391_v56 = vrot.slane %v5389_v61, 4 }
 0x392   : > { %v8081_v17 = vcombine.low %v5569_v18, %v5572_v30  ;;  %v5860_v51 = vsel %vm10159_vm14, %v5855_v55, %v5859_v6  ;;  %v5394_v31 = vrot.slane %v5392_v3, 5  ;;  %v5400_v42 = vrot.slane %v5398_v52, 5  ;;  %v5714_v3 = vld [vmem:[#allocation4 + $0x6c] sm:$0xf]  ;;  %v5715_v52 = vld [vmem:[#allocation4 + $0x70] sm:$0xf] }
 0x393   : > { %v5404_v28 = vrot.slane %v5402_v47, 4  ;;  %v8096_v63 = vcombine.low %v5850_v0, %v5860_v51  ;;  %v5408_v12 = vshll.u32 %v5240_v9, 16  ;;  %v5862_v5 = vshrl.u32 %v5711_v53, 16  ;;  %v5716_v47 = vld [vmem:[#allocation4 + $0x74] sm:$0x1] }
 0x394   : > { %v5865_v4 = vshll.u32 %v5711_v53, 16  ;;  %v5395_v13 = vor.u32 %v5394_v31, %v5391_v56  ;;  %v5871_v45 = vshll.u32 %v5712_v14, 16  ;;  %v5875_v35 = vshrl.u32 %v5712_v14, 16  ;;  %v5949_v53 = vld [vmem:[#allocation4 + $0x18] sm:$0xe] }
 0x395   : > { %7008 = vmatmul.mubr.bf16.gmra.mrb[132].mxu1 %v8064_v25  ;;  %v5405_v59 = vor.u32 %v5404_v28, %v5400_v42  ;;  %7104 = vmatprep.mubr.bf16.mxu0 %v8096_v63  ;;  %v5410_v10 = vrot.slane %v5408_v12, 5  ;;  %v5864_v62 = vrot.slane %v5862_v5, 4  ;;  %v5881_v32 = vshll.u32 %v5713_v29, 16  ;;  %v5950_v14 = vld [vmem:[#allocation4 + $0x1c] sm:$0xf] }
 0x396   : > { %7015 = vmatprep.mubr.bf16.mxu1 %v8081_v17  ;;  %v5867_v60 = vrot.slane %v5865_v4, 5  ;;  %7105 = vmatmul.mubr.bf16.gmra.mrb[152].mxu0 %v11148_v43  ;;  %v5396_v36 = vrot.slane %v5395_v13, 4  ;;  %v5873_v16 = vrot.slane %v5871_v45, 5  ;;  %v5877_v22 = vrot.slane %v5875_v35, 4  ;;  %v5951_v28 = vld [vmem:[#allocation4 + $0x20] sm:$0x1] }
 0x397   : > { %v5406_v57 = vrot.slane %v5405_v59, 4  ;;  %v5883_v8 = vrot.slane %v5881_v32, 5  ;;  %v8074_v54 = vrot.slane %v5497_v11, 9  ;;  %v5575_v15 = vrot.slane %v5498_v49, 5  ;;  %v5952_v4 = vld [vmem:[#allocation4 + $0x24] sm:$0xe] }
 0x398   : > { %v5868_v20 = vor.u32 %v5867_v60, %v5864_v62  ;;  %v5401_v48 = vsel %vm10159_vm14, %v5396_v36, %v5400_v42  ;;  %v5878_v37 = vor.u32 %v5877_v22, %v5873_v16  ;;  %v5578_v38 = vrot.slane %v5499_v41, 5  ;;  %v5953_v49 = vld [vmem:[#allocation4 + $0x28] sm:$0xf]  ;;  %v5954_v32 = vld [vmem:[#allocation4 + $0x2c] sm:$0x1] }
 0x399   : > { %v5411_v46 = vsel %vm10159_vm14, %v5406_v57, %v5410_v10  ;;  %v5576_v43 = vsel %vm10150_vm13, %v8074_v54, %v5575_v15  ;;  %v5577_v26 = vrot.slane %v5575_v15, 4  ;;  %v5413_v39 = vshrl.u32 %v5241_v33, 16  ;;  %v5956_v22 = vld [vmem:[#allocation4 + $0x34] sm:$0xf]  ;;  %v5957_v15 = vld [vmem:[#allocation4 + $0x38] sm:$0x1] }
 0x39a   : > { %v8065_v27 = vcombine.low %v5401_v48, %v5411_v46  ;;  %v5869_v2 = vrot.slane %v5868_v20, 4  ;;  %v5879_v6 = vrot.slane %v5878_v37, 4  ;;  %v5416_v44 = vshll.u32 %v5241_v33, 16  ;;  %v5958_v48 = vld [vmem:[#allocation4 + $0x3c] sm:$0xe] }
 0x39b   : > { %v5422_v23 = vshll.u32 %v5242_v58, 16  ;;  %v5579_v40 = vsel %vm10150_vm13, %v5577_v26, %v5578_v38  ;;  %v5426_v34 = vshrl.u32 %v5242_v58, 16  ;;  %v5432_v61 = vshll.u32 %v5243_v19, 16 }
 0x39c   : > { %v5874_v18 = vsel %vm10159_vm14, %v5869_v2, %v5873_v16  ;;  %v5884_v24 = vsel %vm10159_vm14, %v5879_v6, %v5883_v8  ;;  %v8082_v55 = vcombine.low %v5576_v43, %v5579_v40  ;;  %v5415_v30 = vrot.slane %v5413_v39, 4  ;;  %v5955_v16 = vld [vmem:[#allocation4 + $0x30] sm:$0xe]  ;;  %v5960_v39 = vld [vmem:[#allocation4 + $0x44] sm:$0x1] }
 0x39d   : > { %7016 = vmatmul.mubr.bf16.gmra.mrb[136].mxu1 %v8065_v27  ;;  %v5418_v9 = vrot.slane %v5416_v44, 5  ;;  %v8097_v25 = vcombine.low %v5874_v18, %v5884_v24  ;;  %v5424_v0 = vrot.slane %v5422_v23, 5  ;;  %v5428_v17 = vrot.slane %v5426_v34, 4  ;;  %v5959_v27 = vld [vmem:[#allocation4 + $0x40] sm:$0xf] }
 0x39e   : > { %v5434_v56 = vrot.slane %v5432_v61, 5  ;;  %7023 = vmatprep.mubr.bf16.mxu1 %v8082_v55  ;;  %v5886_v51 = vshrl.u32 %v5714_v3, 16  ;;  %v5889_v31 = vshll.u32 %v5714_v3, 16  ;;  %v5895_v42 = vshll.u32 %v5715_v52, 16  ;;  %v5961_v34 = vld [vmem:[#allocation4 + $0x48] sm:$0xe] }
 0x39f   : > { %v5419_v29 = vor.u32 %v5418_v9, %v5415_v30  ;;  %7112 = vmatprep.mubr.bf16.mxu0 %v8097_v25  ;;  %v5429_v11 = vor.u32 %v5428_v17, %v5424_v0  ;;  %v5899_v63 = vshrl.u32 %v5715_v52, 16  ;;  %v5905_v12 = vshll.u32 %v5716_v47, 16  ;;  %v5962_v61 = vld [vmem:[#allocation4 + $0x4c] sm:$0xf]  ;;  %v5963_v30 = vld [vmem:[#allocation4 + $0x50] sm:$0x1] }
 0x3a0   : > { %v8099_v5 = vrot.slane %v5949_v53, 9  ;;  %7113 = vmatmul.mubr.bf16.gmra.mrb[156].mxu0 %v11158_v21  ;;  %v5888_v59 = vrot.slane %v5886_v51, 4  ;;  %v5891_v45 = vrot.slane %v5889_v31, 5  ;;  %v5897_v35 = vrot.slane %v5895_v42, 5  ;;  %v5964_v9 = vld [vmem:[#allocation4 + $0x54] sm:$0xe] }
 0x3a1   : > { %v5420_v13 = vrot.slane %v5419_v29, 4  ;;  %v5430_v41 = vrot.slane %v5429_v11, 4  ;;  %v5901_v10 = vrot.slane %v5899_v63, 4  ;;  %v5907_v62 = vrot.slane %v5905_v12, 5  ;;  %v5965_v17 = vld [vmem:[#allocation4 + $0x58] sm:$0xf] }
 0x3a2   : > { %v5999_v60 = vrot.slane %v5950_v14, 5  ;;  %v5892_v58 = vor.u32 %v5891_v45, %v5888_v59  ;;  %v6002_v36 = vrot.slane %v5951_v28, 5  ;;  %v8100_v57 = vrot.slane %v5952_v4, 9  ;;  %v5967_v31 = vld [vmem:[#allocation4 + $0x60] sm:$0xe] }
 0x3a3   : > { %v5425_v33 = vsel %vm10159_vm14, %v5420_v13, %v5424_v0  ;;  %v5435_v21 = vsel %vm10159_vm14, %v5430_v41, %v5434_v56  ;;  %v5902_v20 = vor.u32 %v5901_v10, %v5897_v35  ;;  %v6006_v38 = vrot.slane %v5953_v49, 5  ;;  %v5966_v56 = vld [vmem:[#allocation4 + $0x5c] sm:$0x1]  ;;  %v5968_v42 = vld [vmem:[#allocation4 + $0x64] sm:$0xf] }
 0x3a4   : > { %v6000_v8 = vsel %vm10150_vm13, %v8099_v5, %v5999_v60  ;;  %v6001_v54 = vrot.slane %v5999_v60, 4  ;;  %v8066_v46 = vcombine.low %v5425_v33, %v5435_v21  ;;  %v5893_v37 = vrot.slane %v5892_v58, 4  ;;  %v5969_v5 = vld [vmem:[#allocation4 + $0x68] sm:$0x1]  ;;  %v5970_v4 = vld [vmem:[#allocation4 + $0x6c] sm:$0xe] }
 0x3a5   : > { %v6009_v19 = vrot.slane %v5954_v32, 5  ;;  %v5903_v2 = vrot.slane %v5902_v20, 4  ;;  %v8101_v26 = vrot.slane %v5955_v16, 9  ;;  %v6013_v6 = vrot.slane %v5956_v22, 5  ;;  %v5971_v49 = vld [vmem:[#allocation4 + $0x70] sm:$0xf] }
 0x3a6   : > { %v6003_v43 = vsel %vm10150_vm13, %v6001_v54, %v6002_v36  ;;  %7024 = vmatmul.mubr.bf16.gmra.mrb[140].mxu1 %v8066_v46  ;;  %v5898_v44 = vsel %vm10159_vm14, %v5893_v37, %v5897_v35  ;;  %v6007_v18 = vsel %vm10150_vm13, %v8100_v57, %v6006_v38  ;;  %v6008_v40 = vrot.slane %v6006_v38, 4 }
 0x3a7   : > { %v8107_v23 = vcombine.low %v6000_v8, %v6003_v43  ;;  %v5908_v3 = vsel %vm10159_vm14, %v5903_v2, %v5907_v62  ;;  %v6014_v52 = vsel %vm10150_vm13, %v8101_v26, %v6013_v6  ;;  %v6015_v24 = vrot.slane %v6013_v6, 4 }
 0x3a8   : > { %v6016_v55 = vrot.slane %v5957_v15, 5  ;;  %v8098_v47 = vcombine.low %v5898_v44, %v5908_v3  ;;  %v6010_v53 = vsel %vm10150_vm13, %v6008_v40, %v6009_v19  ;;  %v8102_v25 = vrot.slane %v5958_v48, 9 }
 0x3a9   : > { %8915 = vmatprep.mubr.bf16.mxu1 %v8107_v23  ;;  %v6020_v0 = vrot.slane %v5959_v27, 5  ;;  %v8108_v14 = vcombine.low %v6007_v18, %v6010_v53  ;;  %v6023_v29 = vrot.slane %v5960_v39, 5  ;;  %v8103_v51 = vrot.slane %v5961_v34, 9 }
 0x3aa   : > { %v6017_v7 = vsel %vm10150_vm13, %v6015_v24, %v6016_v55  ;;  %7120 = vmatprep.mubr.bf16.mxu0 %v8098_v47  ;;  %v6027_v12 = vrot.slane %v5962_v61, 5  ;;  %v6030_v13 = vrot.slane %v5963_v30, 5  ;;  %v8104_v59 = vrot.slane %v5964_v9, 9 }
 0x3ab   : > { %v8109_v28 = vcombine.low %v6014_v52, %v6017_v7  ;;  %v6021_v11 = vsel %vm10150_vm13, %v8102_v25, %v6020_v0  ;;  %v6022_v63 = vrot.slane %v6020_v0, 4  ;;  %7121 = vmatmul.mubr.bf16.gmra.mrb[160].mxu0 %v11166_v50  ;;  %v6034_v45 = vrot.slane %v5965_v17, 5  ;;  %v5972_v50 = vld [vmem:[#allocation4 + $0x74] sm:$0x1] }
 0x3ac   : > { %v6037_v35 = vrot.slane %v5966_v56, 5  ;;  %v6028_v10 = vsel %vm10150_vm13, %v8103_v51, %v6027_v12  ;;  %v6029_v62 = vrot.slane %v6027_v12, 4  ;;  %v8105_v60 = vrot.slane %v5967_v31, 9 }
 0x3ad   : > { %v6024_v41 = vsel %vm10150_vm13, %v6022_v63, %v6023_v29  ;;  %v6035_v33 = vsel %vm10150_vm13, %v8104_v59, %v6034_v45  ;;  %v6036_v58 = vrot.slane %v6034_v45, 4  ;;  %v6041_v36 = vrot.slane %v5968_v42, 5 }
 0x3ae   : > { %v8110_v32 = vcombine.low %v6021_v11, %v6024_v41  ;;  %8916 = vmatmul.mubr.bf16.vlgmr.msra.gmra.mrb[144].mxu1 %v8108_v14  ;;  %v6031_v57 = vsel %vm10150_vm13, %v6029_v62, %v6030_v13  ;;  %v6044_v16 = vrot.slane %v5969_v5, 5  ;;  %v8106_v22 = vrot.slane %v5970_v4, 9 }
 0x3af   : > { %v6048_v21 = vrot.slane %v5971_v49, 5  ;;  %8919 = vmatprep.mubr.bf16.mxu1 %v8109_v28  ;;  %v8111_v20 = vcombine.low %v6028_v10, %v6031_v57  ;;  %v6038_v8 = vsel %vm10150_vm13, %v6036_v58, %v6037_v35  ;;  %v6042_v54 = vsel %vm10150_vm13, %v8105_v60, %v6041_v36 }
 0x3b0   : > { %v6043_v15 = vrot.slane %v6041_v36, 4  ;;  %v8112_v48 = vcombine.low %v6035_v33, %v6038_v8  ;;  %v6051_v38 = vrot.slane %v5972_v50, 5 }
 0x3b1   : > { %v6049_v46 = vsel %vm10150_vm13, %v8106_v22, %v6048_v21  ;;  %v6050_v37 = vrot.slane %v6048_v21, 4 }
 0x3b2   : > { %v6045_v19 = vsel %vm10150_vm13, %v6043_v15, %v6044_v16 }
 0x3b3   : > { %v8113_v27 = vcombine.low %v6042_v54, %v6045_v19  ;;  %v6052_v2 = vsel %vm10150_vm13, %v6050_v37, %v6051_v38 }
 0x3b4   : > { %v8114_v43 = vcombine.low %v6049_v46, %v6052_v2 }
 0x3b6   : > { %8920 = vmatmul.mubr.bf16.gmra.mrb[148].mxu1 %v8110_v32 }
 0x3b7   : > { %8923 = vmatprep.mubr.bf16.mxu1 %v8111_v20 }
 0x3be   : > { %8924 = vmatmul.mubr.bf16.gmra.mrb[152].mxu1 %v8112_v48 }
 0x3bf   : > { %8927 = vmatprep.mubr.bf16.mxu1 %v8113_v27 }
 0x3c6   : > { %8928 = vmatmul.mubr.bf16.gmra.mrb[156].mxu1 %v8114_v43 }
 0x3fa   : > { %v8607_v6 = vpop.f32.mrb[80].mxu1 }
 0x3fb   : > { %v8671_v26 = vpop.f32.mrb[100].mxu0  ;;  %v8608_v44 = vpop.f32.mrb[81].mxu1 }
 0x3fc   : > { %v8672_v39 = vpop.f32.mrb[101].mxu0  ;;  %v8609_v40 = vadd.f32 %v8608_v44, %v8607_v6  ;;  %v8610_v34 = vpop.f32.mrb[82].mxu1 }
 0x3fd   : > { %v8673_v23 = vadd.f32 %v8672_v39, %v8671_v26  ;;  %v8674_v18 = vpop.f32.mrb[102].mxu0  ;;  %v8611_v3 = vpop.f32.mrb[83].mxu1 }
 0x3fe   : > { %v8675_v61 = vpop.f32.mrb[103].mxu0  ;;  %v8612_v1 = vadd.f32 %v8611_v3, %v8610_v34 }
 0x3ff   : > { %v8676_v52 = vadd.f32 %v8675_v61, %v8674_v18  ;;  %v11263_v24 = vadd.f32 %v8673_v23, %v8609_v40 }
 0x401   : > { %v11265_v55 = vadd.f32 %v8676_v52, %v8612_v1 }
 0x402   : > { %v8613_v25 = vpop.f32.mrb[84].mxu1 }
 0x403   : > { %v8677_v30 = vpop.f32.mrb[104].mxu0  ;;  %v8614_v17 = vpop.f32.mrb[85].mxu1 }
 0x404   : > { %v8678_v9 = vpop.f32.mrb[105].mxu0  ;;  %v8615_v14 = vadd.f32 %v8614_v17, %v8613_v25  ;;  %v8616_v7 = vpop.f32.mrb[86].mxu1 }
 0x405   : > { %v8679_v47 = vadd.f32 %v8678_v9, %v8677_v30  ;;  %v8680_v53 = vpop.f32.mrb[106].mxu0  ;;  %v8617_v29 = vpop.f32.mrb[87].mxu1 }
 0x406   : > { %v8681_v0 = vpop.f32.mrb[107].mxu0  ;;  %v8618_v31 = vadd.f32 %v8617_v29, %v8616_v7 }
 0x407   : > { %v8682_v56 = vadd.f32 %v8681_v0, %v8680_v53  ;;  %v11267_v51 = vadd.f32 %v8679_v47, %v8615_v14 }
 0x409   : > { %v11269_v28 = vadd.f32 %v8682_v56, %v8618_v31 }
 0x40a   : > { %v8619_v5 = vpop.f32.mrb[88].mxu1 }
 0x40b   : > { %v8683_v42 = vpop.f32.mrb[108].mxu0  ;;  %v8620_v13 = vpop.f32.mrb[89].mxu1 }
 0x40c   : > { %v8684_v11 = vpop.f32.mrb[109].mxu0  ;;  %v8621_v45 = vadd.f32 %v8620_v13, %v8619_v5  ;;  %v8622_v35 = vpop.f32.mrb[90].mxu1 }
 0x40d   : > { %v8685_v63 = vadd.f32 %v8684_v11, %v8683_v42  ;;  %v8686_v12 = vpop.f32.mrb[110].mxu0  ;;  %v8623_v49 = vpop.f32.mrb[91].mxu1 }
 0x40e   : > { %v8687_v4 = vpop.f32.mrb[111].mxu0  ;;  %v8624_v10 = vadd.f32 %v8623_v49, %v8622_v35 }
 0x40f   : > { %v8688_v59 = vadd.f32 %v8687_v4, %v8686_v12  ;;  %v11271_v41 = vadd.f32 %v8685_v63, %v8621_v45 }
 0x411   : > { %v11273_v60 = vadd.f32 %v8688_v59, %v8624_v10 }
 0x412   : > { %v8625_v36 = vpop.f32.mrb[92].mxu1 }
 0x413   : > { %v8689_v62 = vpop.f32.mrb[112].mxu0  ;;  %v8626_v57 = vpop.f32.mrb[93].mxu1 }
 0x414   : > { %v8690_v32 = vpop.f32.mrb[113].mxu0  ;;  %v8627_v22 = vadd.f32 %v8626_v57, %v8625_v36  ;;  %v8628_v21 = vpop.f32.mrb[94].mxu1 }
 0x415   : > { %v8691_v33 = vadd.f32 %v8690_v32, %v8689_v62  ;;  %v8692_v58 = vpop.f32.mrb[114].mxu0  ;;  %v8629_v20 = vpop.f32.mrb[95].mxu1 }
 0x416   : > { %v8693_v50 = vpop.f32.mrb[115].mxu0  ;;  %v8630_v54 = vadd.f32 %v8629_v20, %v8628_v21 }
 0x417   : > { %v8694_v16 = vadd.f32 %v8693_v50, %v8692_v58  ;;  %v11275_v8 = vadd.f32 %v8691_v33, %v8627_v22 }
 0x419   : > { %v11277_v15 = vadd.f32 %v8694_v16, %v8630_v54 }
 0x41a   : > { %v8631_v46 = vpop.f32.mrb[96].mxu1 }
 0x41b   : > { %v8695_v48 = vpop.f32.mrb[116].mxu0  ;;  %v8632_v38 = vpop.f32.mrb[97].mxu1 }
 0x41c   : > { %v8696_v37 = vpop.f32.mrb[117].mxu0  ;;  %v8633_v2 = vadd.f32 %v8632_v38, %v8631_v46  ;;  %v8634_v43 = vpop.f32.mrb[98].mxu1 }
 0x41d   : > { %v8697_v19 = vadd.f32 %v8696_v37, %v8695_v48  ;;  %v8698_v27 = vpop.f32.mrb[118].mxu0  ;;  %v8635_v6 = vpop.f32.mrb[99].mxu1 }
 0x41e   : > { %v8699_v26 = vpop.f32.mrb[119].mxu0  ;;  %v8636_v23 = vadd.f32 %v8635_v6, %v8634_v43 }
 0x41f   : > { %v8700_v39 = vadd.f32 %v8699_v26, %v8698_v27  ;;  %v11279_v44 = vadd.f32 %v8697_v19, %v8633_v2 }
 0x421   : > { %v11281_v18 = vadd.f32 %v8700_v39, %v8636_v23 }
 0x422   : > { %v8637_v34 = vpop.f32.mrb[100].mxu1 }
 0x423   : > { %v8701_v40 = vpop.f32.mrb[120].mxu0  ;;  %v8638_v3 = vpop.f32.mrb[101].mxu1 }
 0x424   : > { %v8702_v61 = vpop.f32.mrb[121].mxu0  ;;  %v8639_v30 = vadd.f32 %v8638_v3, %v8637_v34  ;;  %v8640_v9 = vpop.f32.mrb[102].mxu1 }
 0x425   : > { %v8703_v52 = vadd.f32 %v8702_v61, %v8701_v40  ;;  %v8704_v1 = vpop.f32.mrb[122].mxu0  ;;  %v8641_v53 = vpop.f32.mrb[103].mxu1 }
 0x426   : > { %v8705_v47 = vpop.f32.mrb[123].mxu0  ;;  %v8642_v17 = vadd.f32 %v8641_v53, %v8640_v9 }
 0x427   : > { %v8706_v25 = vadd.f32 %v8705_v47, %v8704_v1  ;;  %v11283_v0 = vadd.f32 %v8703_v52, %v8639_v30 }
 0x429   : > { %v11285_v56 = vadd.f32 %v8706_v25, %v8642_v17 }
 0x42a   : > { %v8643_v14 = vpop.f32.mrb[104].mxu1 }
 0x42b   : > { %v8707_v7 = vpop.f32.mrb[124].mxu0  ;;  %v8644_v29 = vpop.f32.mrb[105].mxu1 }
 0x42c   : > { %v8708_v31 = vpop.f32.mrb[125].mxu0  ;;  %v8645_v42 = vadd.f32 %v8644_v29, %v8643_v14  ;;  %v8646_v63 = vpop.f32.mrb[106].mxu1 }
 0x42d   : > { %v8709_v11 = vadd.f32 %v8708_v31, %v8707_v7  ;;  %v8710_v12 = vpop.f32.mrb[126].mxu0  ;;  %v8647_v5 = vpop.f32.mrb[107].mxu1 }
 0x42e   : > { %v8711_v4 = vpop.f32.mrb[127].mxu0  ;;  %v8648_v59 = vadd.f32 %v8647_v5, %v8646_v63 }
 0x42f   : > { %v11287_v13 = vadd.f32 %v8709_v11, %v8645_v42  ;;  %v8712_v45 = vadd.f32 %v8711_v4, %v8710_v12 }
 0x431   : > { %v11289_v35 = vadd.f32 %v8712_v45, %v8648_v59 }
 0x432   : > { %v8649_v49 = vpop.f32.mrb[108].mxu1 }
 0x433   : > { %v8713_v10 = vpop.f32.mrb[128].mxu0  ;;  %v8650_v62 = vpop.f32.mrb[109].mxu1 }
 0x434   : > { %v8714_v32 = vpop.f32.mrb[129].mxu0  ;;  %v8651_v33 = vadd.f32 %v8650_v62, %v8649_v49  ;;  %v8652_v36 = vpop.f32.mrb[110].mxu1 }
 0x435   : > { %v8715_v58 = vadd.f32 %v8714_v32, %v8713_v10  ;;  %v8716_v50 = vpop.f32.mrb[130].mxu0  ;;  %v8653_v57 = vpop.f32.mrb[111].mxu1 }
 0x436   : > { %v8717_v16 = vpop.f32.mrb[131].mxu0  ;;  %v8654_v21 = vadd.f32 %v8653_v57, %v8652_v36 }
 0x437   : > { %v11291_v22 = vadd.f32 %v8715_v58, %v8651_v33  ;;  %v8718_v20 = vadd.f32 %v8717_v16, %v8716_v50 }
 0x439   : > { %v11293_v54 = vadd.f32 %v8718_v20, %v8654_v21 }
 0x43a   : > { %v8735_v48 = vpop.f32.mrb[112].mxu1 }
 0x43b   : > { %v8736_v46 = vpop.f32.mrb[113].mxu1 }
 0x43c   : > { %v8737_v37 = vadd.f32 %v8736_v46, %v8735_v48  ;;  %v8738_v38 = vpop.f32.mrb[114].mxu1 }
 0x43d   : > { %v8739_v19 = vpop.f32.mrb[115].mxu1  ;;  %v8799_v43 = vpop.f32.mrb[132].mxu0 }
 0x43e   : > { %v6970_v27 = vadd.f32 %v8737_v37, %v11263_v24  ;;  %v8740_v2 = vadd.f32 %v8739_v19, %v8738_v38  ;;  %v8800_v6 = vpop.f32.mrb[133].mxu0 }
 0x43f   : > { %v8801_v39 = vadd.f32 %v8800_v6, %v8799_v43  ;;  %v8802_v23 = vpop.f32.mrb[134].mxu0 }
 0x440   : > { %v6973_v26 = vadd.f32 %v8740_v2, %v11265_v55  ;;  %v8803_v40 = vpop.f32.mrb[135].mxu0 }
 0x441   : > { %v8804_v34 = vadd.f32 %v8803_v40, %v8802_v23  ;;  %v11297_v61 = vadd.f32 %v8801_v39, %v6970_v27 }
 0x442   : > { %v8741_v3 = vpop.f32.mrb[116].mxu1 }
 0x443   : > { %v11299_v52 = vadd.f32 %v8804_v34, %v6973_v26  ;;  %v8742_v1 = vpop.f32.mrb[117].mxu1 }
 0x444   : > { %v8743_v30 = vadd.f32 %v8742_v1, %v8741_v3  ;;  %v8744_v9 = vpop.f32.mrb[118].mxu1 }
 0x445   : > { %v8745_v47 = vpop.f32.mrb[119].mxu1  ;;  %v8805_v53 = vpop.f32.mrb[136].mxu0 }
 0x446   : > { %v6978_v24 = vadd.f32 %v8743_v30, %v11267_v51  ;;  %v8746_v25 = vadd.f32 %v8745_v47, %v8744_v9  ;;  %v8806_v17 = vpop.f32.mrb[137].mxu0 }
 0x447   : > { %v8807_v14 = vadd.f32 %v8806_v17, %v8805_v53  ;;  %v8808_v7 = vpop.f32.mrb[138].mxu0 }
 0x448   : > { %v6981_v55 = vadd.f32 %v8746_v25, %v11269_v28  ;;  %v8809_v29 = vpop.f32.mrb[139].mxu0 }
 0x449   : > { %v8810_v31 = vadd.f32 %v8809_v29, %v8808_v7  ;;  %v11303_v42 = vadd.f32 %v8807_v14, %v6978_v24 }
 0x44b   : > { %v11305_v63 = vadd.f32 %v8810_v31, %v6981_v55 }
 0x44c   : > { %v8747_v11 = vpop.f32.mrb[120].mxu1 }
 0x44d   : > { %v8748_v12 = vpop.f32.mrb[121].mxu1 }
 0x44e   : > { %v8749_v5 = vadd.f32 %v8748_v12, %v8747_v11  ;;  %v8750_v4 = vpop.f32.mrb[122].mxu1 }
 0x44f   : > { %v8751_v59 = vpop.f32.mrb[123].mxu1  ;;  %v8811_v45 = vpop.f32.mrb[140].mxu0 }
 0x450   : > { %v6986_v51 = vadd.f32 %v8749_v5, %v11271_v41  ;;  %v8752_v49 = vadd.f32 %v8751_v59, %v8750_v4  ;;  %v8812_v10 = vpop.f32.mrb[141].mxu0 }
 0x451   : > { %v8813_v62 = vadd.f32 %v8812_v10, %v8811_v45  ;;  %v8814_v32 = vpop.f32.mrb[142].mxu0 }
 0x452   : > { %v6989_v28 = vadd.f32 %v8752_v49, %v11273_v60  ;;  %v8815_v33 = vpop.f32.mrb[143].mxu0 }
 0x453   : > { %v8816_v58 = vadd.f32 %v8815_v33, %v8814_v32  ;;  %v11309_v36 = vadd.f32 %v8813_v62, %v6986_v51 }
 0x454   : > { %v8753_v50 = vpop.f32.mrb[124].mxu1 }
 0x455   : > { %v11311_v57 = vadd.f32 %v8816_v58, %v6989_v28  ;;  %v8754_v16 = vpop.f32.mrb[125].mxu1 }
 0x456   : > { %v8755_v21 = vadd.f32 %v8754_v16, %v8753_v50  ;;  %v8756_v20 = vpop.f32.mrb[126].mxu1 }
 0x457   : > { %v8757_v48 = vpop.f32.mrb[127].mxu1 }
 0x458   : > { %v6994_v41 = vadd.f32 %v8755_v21, %v11275_v8  ;;  %v8758_v46 = vadd.f32 %v8757_v48, %v8756_v20 }
 0x459   : > { %v8817_v37 = vpop.f32.mrb[144].mxu0 }
 0x45a   : > { %v6997_v38 = vadd.f32 %v8758_v46, %v11277_v15  ;;  %v8818_v60 = vpop.f32.mrb[145].mxu0 }
 0x45b   : > { %v8819_v19 = vadd.f32 %v8818_v60, %v8817_v37  ;;  %v8820_v27 = vpop.f32.mrb[146].mxu0 }
 0x45c   : > { %v8821_v2 = vpop.f32.mrb[147].mxu0 }
 0x45d   : > { %v8822_v43 = vadd.f32 %v8821_v2, %v8820_v27  ;;  %v11315_v26 = vadd.f32 %v8819_v19, %v6994_v41 }
 0x45f   : > { %v11317_v39 = vadd.f32 %v8822_v43, %v6997_v38 }
 0x460   : > { %v8759_v6 = vpop.f32.mrb[128].mxu1 }
 0x461   : > { %v8760_v23 = vpop.f32.mrb[129].mxu1  ;;  %v8823_v1 = vpop.f32.mrb[148].mxu0 }
 0x462   : > { %v8761_v40 = vadd.f32 %v8760_v23, %v8759_v6  ;;  %v8762_v34 = vpop.f32.mrb[130].mxu1  ;;  %v8824_v9 = vpop.f32.mrb[149].mxu0 }
 0x463   : > { %v8763_v3 = vpop.f32.mrb[131].mxu1  ;;  %v8825_v47 = vadd.f32 %v8824_v9, %v8823_v1  ;;  %v8826_v24 = vpop.f32.mrb[150].mxu0  ;;  %v11342_v9 = vld [vmem:[%s11579_s5] ss:$0 sm:$0xff] }
 0x464   : > { %v7002_v8 = vadd.f32 %v8761_v40, %v11279_v44  ;;  %v8764_v30 = vadd.f32 %v8763_v3, %v8762_v34  ;;  %v8827_v53 = vpop.f32.mrb[151].mxu0 }
 0x465   : > { %v8828_v25 = vadd.f32 %v8827_v53, %v8826_v24 }
 0x466   : > { %v7005_v15 = vadd.f32 %v8764_v30, %v11281_v18  ;;  %v11321_v17 = vadd.f32 %v8825_v47, %v7002_v8 }
 0x468   : > { %v11323_v55 = vadd.f32 %v8828_v25, %v7005_v15  ;;  %v8765_v14 = vpop.f32.mrb[132].mxu1 }
 0x469   : > { %v8766_v7 = vpop.f32.mrb[133].mxu1  ;;  %v8829_v11 = vpop.f32.mrb[152].mxu0 }
 0x46a   : > { %v8767_v29 = vadd.f32 %v8766_v7, %v8765_v14  ;;  %v8768_v31 = vpop.f32.mrb[134].mxu1  ;;  %v8830_v4 = vpop.f32.mrb[153].mxu0 }
 0x46b   : > { %v8769_v12 = vpop.f32.mrb[135].mxu1  ;;  %v8831_v59 = vadd.f32 %v8830_v4, %v8829_v11  ;;  %v8832_v18 = vpop.f32.mrb[154].mxu0 }
 0x46c   : > { %v7010_v44 = vadd.f32 %v8767_v29, %v11283_v0  ;;  %v8770_v5 = vadd.f32 %v8769_v12, %v8768_v31  ;;  %v8833_v45 = vpop.f32.mrb[155].mxu0 }
 0x46d   : > { %v8834_v49 = vadd.f32 %v8833_v45, %v8832_v18 }
 0x46e   : > { %v7013_v51 = vadd.f32 %v8770_v5, %v11285_v56  ;;  %v11327_v10 = vadd.f32 %v8831_v59, %v7010_v44 }
 0x470   : > { %v8771_v28 = vpop.f32.mrb[136].mxu1  ;;  %v11329_v32 = vadd.f32 %v8834_v49, %v7013_v51 }
 0x471   : > { %v8772_v62 = vpop.f32.mrb[137].mxu1 }
 0x472   : > { %v8773_v33 = vadd.f32 %v8772_v62, %v8771_v28  ;;  %v8774_v58 = vpop.f32.mrb[138].mxu1 }
 0x473   : > { %v8775_v50 = vpop.f32.mrb[139].mxu1  ;;  %v8835_v21 = vpop.f32.mrb[156].mxu0 }
 0x474   : > { %v7018_v16 = vadd.f32 %v8773_v33, %v11287_v13  ;;  %v8776_v0 = vadd.f32 %v8775_v50, %v8774_v58  ;;  %v8836_v48 = vpop.f32.mrb[157].mxu0 }
 0x475   : > { %v8837_v41 = vadd.f32 %v8836_v48, %v8835_v21  ;;  %v8838_v56 = vpop.f32.mrb[158].mxu0 }
 0x476   : > { %v7021_v20 = vadd.f32 %v8776_v0, %v11289_v35  ;;  %v8839_v46 = vpop.f32.mrb[159].mxu0 }
 0x477   : > { %v8840_v37 = vadd.f32 %v8839_v46, %v8838_v56  ;;  %v11333_v38 = vadd.f32 %v8837_v41, %v7018_v16 }
 0x479   : > { %v8777_v60 = vpop.f32.mrb[140].mxu1  ;;  %v11335_v19 = vadd.f32 %v8840_v37, %v7021_v20 }
 0x47a   : > { %v8778_v27 = vpop.f32.mrb[141].mxu1 }
 0x47b   : > { %v8779_v2 = vadd.f32 %v8778_v27, %v8777_v60  ;;  %v8780_v43 = vpop.f32.mrb[142].mxu1 }
 0x47c   : > { %v8781_v6 = vpop.f32.mrb[143].mxu1 }
 0x47d   : > { %v7026_v13 = vadd.f32 %v8779_v2, %v11291_v22  ;;  %v8782_v23 = vadd.f32 %v8781_v6, %v8780_v43  ;;  %v11350_v22 = vld [vmem:[%s11638_s17] ss:$0 sm:$0xff]  ;;  %s9629_s17 = smov [#allocation11]  }
 0x47e   : > { %v8841_v40 = vpop.f32.mrb[160].mxu0  ;;  %s9495_s24 = sshll.u32 %s9629_s17, 4  ;;  %s9496_s24 = int_to_ptr.vmem [resolvable:$false] %s9495_s24 }
 0x47f   : > { %v7029_v35 = vadd.f32 %v8782_v23, %v11293_v54  ;;  %v8842_v34 = vpop.f32.mrb[161].mxu0  ;;  %p9498_p11 = scmp.lt.s32.totalorder %s11506_s15, %s9496_s24 }
 0x480   : > { %v8843_v3 = vadd.f32 %v8842_v34, %v8841_v40  ;;  %v8844_v8 = vpop.f32.mrb[162].mxu0 }
 0x481   : > { %v8845_v1 = vpop.f32.mrb[163].mxu0  ;;  %v8917_v30 = vpop.f32.mrb[144].mxu1 }
 0x482   : > { %v8846_v15 = vadd.f32 %v8845_v1, %v8844_v8  ;;  %v7172_v47 = vadd.f32 %v8917_v30, %v11303_v42  ;;  %v7163_v24 = vpop.f32.mrb[145].mxu1  ;;  %v11345_v53 = vadd.f32 %v8843_v3, %v7026_v13 }
 0x483   : > { %v7164_v54 = vadd.f32 %v7163_v24, %v11297_v61  ;;  %v8918_v25 = vpop.f32.mrb[146].mxu1 }
 0x484   : > { %v7235_v14 = vmul.f32 %v11342_v9, %v7172_v47  ;;  %v7175_v7 = vadd.f32 %v8918_v25, %v11305_v63  ;;  %v7166_v29 = vpop.f32.mrb[147].mxu1  ;;  %v11355_v31 = vadd.f32 %v8846_v15, %v7029_v35 }
 0x485   : > { %v7233_v42 = vmul.f32 %v11342_v9, %v7164_v54  ;;  %v7167_v11 = vadd.f32 %v7166_v29, %v11299_v52 }
 0x486   : > { %v11360_v12 = vadd.f32 %v11350_v22, %v7235_v14  ;;  %v7236_v44 = vmul.f32 %v11342_v9, %v7175_v7 }
 0x487   : > { %v11364_v5 = vadd.f32 %v11350_v22, %v7233_v42  ;;  %v7234_v61 = vmul.f32 %v11342_v9, %v7167_v11 }
 0x488   : > { %v8191_v4 = vmul.f32 -1.442695, %v11360_v12  ;;  %v11369_v63 = vadd.f32 %v11350_v22, %v7236_v44 }
 0x489   : > { %v8189_v59 = vmul.f32 -1.442695, %v11364_v5  ;;  %v11373_v18 = vadd.f32 %v11350_v22, %v7234_v61  ;;  %v8921_v52 = vpop.f32.mrb[148].mxu1 }
 0x48a   : > { %9341 = vpow2.f32 %v8191_v4  ;;  %v8192_v51 = vmul.f32 -1.442695, %v11369_v63  ;;  %v7188_v45 = vadd.f32 %v8921_v52, %v11315_v26  ;;  %v7179_v49 = vpop.f32.mrb[149].mxu1 }
 0x48b   : > { %9343 = vpow2.f32 %v8189_v59  ;;  %v8190_v28 = vmul.f32 -1.442695, %v11373_v18  ;;  %v7180_v62 = vadd.f32 %v7179_v49, %v11309_v36  ;;  %v8922_v33 = vpop.f32.mrb[150].mxu1 }
 0x48c   : > { %9345 = vpow2.f32 %v8192_v51  ;;  %v7239_v58 = vmul.f32 %v11342_v9, %v7188_v45  ;;  %v7191_v50 = vadd.f32 %v8922_v33, %v11317_v39  ;;  %v7182_v16 = vpop.f32.mrb[151].mxu1 }
 0x48d   : > { %9347 = vpow2.f32 %v8190_v28  ;;  %v7237_v0 = vmul.f32 %v11342_v9, %v7180_v62  ;;  %v7183_v21 = vadd.f32 %v7182_v16, %v11311_v57 }
 0x48e   : > { %v11384_v26 = vadd.f32 %v11350_v22, %v7239_v58  ;;  %v7240_v20 = vmul.f32 %v11342_v9, %v7191_v50 }
 0x48f   : > { %v11388_v48 = vadd.f32 %v11350_v22, %v7237_v0  ;;  %v7238_v36 = vmul.f32 %v11342_v9, %v7183_v21 }
 0x490   : > { %v8195_v41 = vmul.f32 -1.442695, %v11384_v26  ;;  %v11393_v39 = vadd.f32 %v11350_v22, %v7240_v20 }
 0x491   : > { %v8193_v56 = vmul.f32 -1.442695, %v11388_v48  ;;  %v11397_v46 = vadd.f32 %v11350_v22, %v7238_v36  ;;  %v8925_v57 = vpop.f32.mrb[152].mxu1 }
 0x492   : > { %9349 = vpow2.f32 %v8195_v41  ;;  %v8196_v37 = vmul.f32 -1.442695, %v11393_v39  ;;  %v7204_v60 = vadd.f32 %v8925_v57, %v11327_v10  ;;  %v7195_v27 = vpop.f32.mrb[153].mxu1 }
 0x493   : > { %9351 = vpow2.f32 %v8193_v56  ;;  %v8194_v2 = vmul.f32 -1.442695, %v11397_v46  ;;  %v7196_v43 = vadd.f32 %v7195_v27, %v11321_v17  ;;  %v8926_v6 = vpop.f32.mrb[154].mxu1 }
 0x494   : > { %v9342_v13 = vpop.eup %9341  ;;  %9353 = vpow2.f32 %v8196_v37  ;;  %v7243_v23 = vmul.f32 %v11342_v9, %v7204_v60  ;;  %v7207_v40 = vadd.f32 %v8926_v6, %v11329_v32  ;;  %v7198_v35 = vpop.f32.mrb[155].mxu1  ;;  %v7388_v37 = vld [vmem:[%s11433_s12 + $0x10] sm:$0xff] }
 0x495   : > { %v9344_v34 = vpop.eup %9343  ;;  %v7322_v3 = vadd.f32 1.0, %v9342_v13  ;;  %9355 = vpow2.f32 %v8194_v2  ;;  %v7241_v8 = vmul.f32 %v11342_v9, %v7196_v43  ;;  %v7199_v10 = vadd.f32 %v7198_v35, %v11323_v55  ;;  %v7386_v43 = vld [vmem:[%s11433_s12] sm:$0xff] }
 0x496   : > { %v9346_v1 = vpop.eup %9345  ;;  %v7320_v30 = vadd.f32 1.0, %v9344_v34  ;;  %v11408_v15 = vadd.f32 %v11350_v22, %v7243_v23  ;;  %v7244_v17 = vmul.f32 %v11342_v9, %v7207_v40  ;;  %v7389_v40 = vld [vmem:[%s11433_s12 + $0x18] sm:$0xff] }
 0x497   : > { %v9348_v47 = vpop.eup %9347  ;;  %9357 = vrcp.f32 %v7322_v3  ;;  %v7323_v24 = vadd.f32 1.0, %v9346_v1  ;;  %v11412_v32 = vadd.f32 %v11350_v22, %v7241_v8  ;;  %v7242_v54 = vmul.f32 %v11342_v9, %v7199_v10  ;;  %v7387_v8 = vld [vmem:[%s11433_s12 + $0x8] sm:$0xff] }
 0x498   : > { %9359 = vrcp.f32 %v7320_v30  ;;  %v7321_v25 = vadd.f32 1.0, %v9348_v47  ;;  %v8199_v55 = vmul.f32 -1.442695, %v11408_v15  ;;  %v11417_v14 = vadd.f32 %v11350_v22, %v7244_v17 }
 0x499   : > { %9361 = vrcp.f32 %v7323_v24  ;;  %v8197_v7 = vmul.f32 -1.442695, %v11412_v32  ;;  %v11421_v29 = vadd.f32 %v11350_v22, %v7242_v54  ;;  %v8929_v42 = vpop.f32.mrb[156].mxu1 }
 0x49a   : > { %9363 = vrcp.f32 %v7321_v25  ;;  %v8200_v11 = vmul.f32 -1.442695, %v11417_v14  ;;  %v7220_v44 = vadd.f32 %v8929_v42, %v11345_v53  ;;  %v7211_v61 = vpop.f32.mrb[157].mxu1 }
 0x49b   : > { %9365 = vpow2.f32 %v8199_v55  ;;  %v8198_v4 = vmul.f32 -1.442695, %v11421_v29  ;;  %v7212_v59 = vadd.f32 %v7211_v61, %v11333_v38  ;;  %v8930_v52 = vpop.f32.mrb[158].mxu1 }
 0x49c   : > { %v9350_v51 = vpop.eup %9349  ;;  %9367 = vpow2.f32 %v8197_v7  ;;  %v7247_v45 = vmul.f32 %v11342_v9, %v7220_v44  ;;  %v7223_v49 = vadd.f32 %v8930_v52, %v11355_v31  ;;  %v7214_v28 = vpop.f32.mrb[159].mxu1  ;;  %v7390_v44 = vld [vmem:[%s11433_s12 + $0x20] sm:$0xff] }
 0x49d   : > { %v9352_v62 = vpop.eup %9351  ;;  %v7326_v33 = vadd.f32 1.0, %v9350_v51  ;;  %9369 = vpow2.f32 %v8200_v11  ;;  %v7245_v53 = vmul.f32 %v11342_v9, %v7212_v59  ;;  %v7215_v58 = vadd.f32 %v7214_v28, %v11335_v19  ;;  %v7393_v59 = vld [vmem:[%s11433_s12 + $0x38] sm:$0xff] }
 0x49e   : > { %v9354_v50 = vpop.eup %9353  ;;  %v7324_v38 = vadd.f32 1.0, %v9352_v62  ;;  %9371 = vpow2.f32 %v8198_v4  ;;  %v11436_v16 = vadd.f32 %v11350_v22, %v7247_v45  ;;  %v7248_v0 = vmul.f32 %v11342_v9, %v7223_v49  ;;  %v7391_v49 = vld [vmem:[%s11433_s12 + $0x28] sm:$0xff] }
 0x49f   : > { %v9356_v31 = vpop.eup %9355  ;;  %9373 = vrcp.f32 %v7326_v33  ;;  %v7327_v21 = vadd.f32 1.0, %v9354_v50  ;;  %v11440_v20 = vadd.f32 %v11350_v22, %v7245_v53  ;;  %v7246_v19 = vmul.f32 %v11342_v9, %v7215_v58 }
 0x4a0   : > { %9375 = vrcp.f32 %v7324_v38  ;;  %v7325_v36 = vadd.f32 1.0, %v9356_v31  ;;  %v8203_v41 = vmul.f32 -1.442695, %v11436_v16  ;;  %v11445_v56 = vadd.f32 %v11350_v22, %v7248_v0 }
 0x4a1   : > { %v9358_v57 = vpop.eup %9357  ;;  %9377 = vrcp.f32 %v7327_v21  ;;  %v8201_v60 = vmul.f32 -1.442695, %v11440_v20  ;;  %v11450_v27 = vadd.f32 %v11350_v22, %v7246_v19  ;;  %v7396_v21 = vld [vmem:[%s11433_s12 + $0x50] sm:$0xff] }
 0x4a2   : > { %v9360_v2 = vpop.eup %9359  ;;  %v7370_v9 = vmul.f32 %v9358_v57, %v11360_v12  ;;  %9379 = vrcp.f32 %v7325_v36  ;;  %v8204_v6 = vmul.f32 -1.442695, %v11445_v56 }
 0x4a3   : > { %v9362_v13 = vpop.eup %9361  ;;  %v7368_v23 = vmul.f32 %v9360_v2, %v11364_v5  ;;  %9381 = vpow2.f32 %v8203_v41  ;;  %v8202_v35 = vmul.f32 -1.442695, %v11450_v27  ;;  %v7394_v41 = vld [vmem:[%s11433_s12 + $0x40] sm:$0xff] }
 0x4a4   : > { %v9364_v34 = vpop.eup %9363  ;;  %v7404_v3 = vadd.f32 %v7388_v37, %v7370_v9  ;;  %v7371_v22 = vmul.f32 %v9362_v13, %v11369_v63  ;;  %9383 = vpow2.f32 %v8201_v60  ;;  %v7397_v60 = vld [vmem:[%s11433_s12 + $0x58] sm:$0xff] }
 0x4a5   : > { %v9366_v12 = vpop.eup %9365  ;;  %v7402_v10 = vadd.f32 %v7386_v43, %v7368_v23  ;;  %v7369_v1 = vmul.f32 %v9364_v34, %v11373_v18  ;;  %9385 = vpow2.f32 %v8204_v6  ;;  %v7392_v18 = vld [vmem:[%s11433_s12 + $0x30] sm:$0xff]  ;;  %v7395_v6 = vld [vmem:[%s11433_s12 + $0x48] sm:$0xff] }
 0x4a6   : > { %v9368_v5 = vpop.eup %9367  ;;  %7420 = vst [vmem:[%s9903_s6 + $0x10] sm:$0xff] %v7404_v3  ;;  %v7405_v30 = vadd.f32 %v7389_v40, %v7371_v22  ;;  %v7330_v17 = vadd.f32 1.0, %v9366_v12  ;;  %9387 = vpow2.f32 %v8202_v35  ;;  %v7398_v3 = vld [vmem:[%s11433_s12 + $0x60] sm:$0xff] }
 0x4a7   : > { %v9370_v47 = vpop.eup %9369  ;;  %7418 = vst [vmem:[%s9903_s6] sm:$0xff] %v7402_v10  ;;  %v7403_v24 = vadd.f32 %v7387_v8, %v7369_v1  ;;  %v7328_v63 = vadd.f32 1.0, %v9368_v5  ;;  %v7401_v8 = vld [vmem:[%s11433_s12 + $0x78] sm:$0xff]  ;;  %v7399_v5 = vld [vmem:[%s11433_s12 + $0x68] sm:$0xff] }
 0x4a8   : > { %v9372_v54 = vpop.eup %9371  ;;  %7421 = vst [vmem:[%s9903_s6 + $0x18] sm:$0xff] %v7405_v30  ;;  %9389 = vrcp.f32 %v7330_v17  ;;  %v7331_v25 = vadd.f32 1.0, %v9370_v47 }
 0x4a9   : > { %v9374_v55 = vpop.eup %9373  ;;  %7419 = vst [vmem:[%s9903_s6 + $0x8] sm:$0xff] %v7403_v24  ;;  %9391 = vrcp.f32 %v7328_v63  ;;  %v7329_v7 = vadd.f32 1.0, %v9372_v54 }
 0x4aa   : > { %v9376_v42 = vpop.eup %9375  ;;  %v7374_v11 = vmul.f32 %v9374_v55, %v11384_v26  ;;  %9393 = vrcp.f32 %v7331_v25 }
 0x4ab   : > { %v9378_v61 = vpop.eup %9377  ;;  %v7372_v4 = vmul.f32 %v9376_v42, %v11388_v48  ;;  %9395 = vrcp.f32 %v7329_v7 }
 0x4ac   : > { %v9380_v52 = vpop.eup %9379  ;;  %v7408_v51 = vadd.f32 %v7392_v18, %v7374_v11  ;;  %v7375_v45 = vmul.f32 %v9378_v61, %v11393_v39 }
 0x4ad   : > { %v9382_v28 = vpop.eup %9381  ;;  %v7406_v62 = vadd.f32 %v7390_v44, %v7372_v4  ;;  %v7373_v33 = vmul.f32 %v9380_v52, %v11397_v46 }
 0x4ae   : > { %v9384_v26 = vpop.eup %9383  ;;  %7424 = vst [vmem:[%s9903_s6 + $0x30] sm:$0xff] %v7408_v51  ;;  %v7409_v53 = vadd.f32 %v7393_v59, %v7375_v45  ;;  %v7334_v58 = vadd.f32 1.0, %v9382_v28 }
 0x4af   : > { %v9386_v50 = vpop.eup %9385  ;;  %7422 = vst [vmem:[%s9903_s6 + $0x20] sm:$0xff] %v7406_v62  ;;  %v7407_v48 = vadd.f32 %v7391_v49, %v7373_v33  ;;  %v7332_v38 = vadd.f32 1.0, %v9384_v26 }
 0x4b0   : > { %v9388_v0 = vpop.eup %9387  ;;  %7425 = vst [vmem:[%s9903_s6 + $0x38] sm:$0xff] %v7409_v53  ;;  %9397 = vrcp.f32 %v7334_v58  ;;  %v7335_v39 = vadd.f32 1.0, %v9386_v50 }
 0x4b1   : > { %7423 = vst [vmem:[%s9903_s6 + $0x28] sm:$0xff] %v7407_v48  ;;  %9399 = vrcp.f32 %v7332_v38  ;;  %v7333_v31 = vadd.f32 1.0, %v9388_v0 }
 0x4b2   : > { %v9390_v46 = vpop.eup %9389  ;;  %9401 = vrcp.f32 %v7335_v39 }
 0x4b3   : > { %v9392_v19 = vpop.eup %9391  ;;  %v7378_v36 = vmul.f32 %v9390_v46, %v11408_v15  ;;  %9403 = vrcp.f32 %v7333_v31 }
 0x4b4   : > { %v9394_v57 = vpop.eup %9393  ;;  %v7376_v37 = vmul.f32 %v9392_v19, %v11412_v32 }
 0x4b5   : > { %v9396_v2 = vpop.eup %9395  ;;  %v7412_v9 = vadd.f32 %v7396_v21, %v7378_v36  ;;  %v7379_v43 = vmul.f32 %v9394_v57, %v11417_v14  ;;  %v7400_v14 = vld [vmem:[%s11433_s12 + $0x70] sm:$0xff]  ;;  %s9497_s12 = scalar_lea.vmem %s9496_s24, 4096 }
 0x4b6   : > { %v7410_v13 = vadd.f32 %v7394_v41, %v7376_v37  ;;  %v7377_v23 = vmul.f32 %v9396_v2, %v11421_v29  ;;  %p9499_p5 = scmp.lt.s32.totalorder %s9497_s12, %s9491_s1 }
 0x4b7   : > { %7428 = vst [vmem:[%s9903_s6 + $0x50] sm:$0xff] %v7412_v9  ;;  %v7413_v15 = vadd.f32 %v7397_v60, %v7379_v43 }
 0x4b8   : > { %7426 = vst [vmem:[%s9903_s6 + $0x40] sm:$0xff] %v7410_v13  ;;  %v7411_v32 = vadd.f32 %v7395_v6, %v7377_v23  ;;  %p9500_p8 = por %p9499_p5, %p9498_p11 }
 0x4b9   : > { %7429 = vst [vmem:[%s9903_s6 + $0x58] sm:$0xff] %v7413_v15 }
 0x4ba   : > { %v9398_v40 = vpop.eup %9397  ;;  %7427 = vst [vmem:[%s9903_s6 + $0x48] sm:$0xff] %v7411_v32  ;;  %p9501_p12 = pnand %p9500_p8, %p9494_p9 }
 0x4bb   : > { %v9400_v35 = vpop.eup %9399  ;;  %v7382_v34 = vmul.f32 %v9398_v40, %v11436_v16 }
 0x4bc   : > { %v9402_v29 = vpop.eup %9401  ;;  %v7380_v22 = vmul.f32 %v9400_v35, %v11440_v20 }
 0x4bd   : > { %v9404_v12 = vpop.eup %9403  ;;  %v7416_v10 = vadd.f32 %v7400_v14, %v7382_v34  ;;  %v7383_v1 = vmul.f32 %v9402_v29, %v11445_v56 }
 0x4be   : > { %v7414_v30 = vadd.f32 %v7398_v3, %v7380_v22  ;;  %v7381_v16 = vmul.f32 %v9404_v12, %v11450_v27 }
 0x4bf   : > { %7432 = vst [vmem:[%s9903_s6 + $0x70] sm:$0xff] %v7416_v10  ;;  %v7417_v17 = vadd.f32 %v7401_v8, %v7383_v1 }
 0x4c0   : > { %7430 = vst [vmem:[%s9903_s6 + $0x60] sm:$0xff] %v7414_v30  ;;  %v7415_v20 = vadd.f32 %v7399_v5, %v7381_v16 }
 0x4c1   : > { %7433 = vst [vmem:[%s9903_s6 + $0x78] sm:$0xff] %v7417_v17 }
 0x4c2   : > { %7431 = vst [vmem:[%s9903_s6 + $0x68] sm:$0xff] %v7415_v20 }
 0x4c3   : > { %9504 = shalt.err (!%p9501_p12)
}
 0x4c4   : > { %s9505_s9 = scalar_lea.hbm %s11504_s21, 2048  ;;  %s9509_s19 = scalar_lea.hbm %s11641_s23, 8192 }
 0x4c5   : > { %p9506_p2 = scmp.ne.s32.totalorder %s11504_s21, %s9505_s9  ;;  %p9510_p0 = scmp.lt.u32.totalorder %s11504_s21, %s11641_s23 }
 0x4c6   : > { %p9511_p4 = scmp.lt.u32.totalorder %s9509_s19, %s9505_s9  ;;  %p9513_p3 = scmp.lt.u32.totalorder %s9505_s9, %s11504_s21 }
 0x4c7   : > { %p9507_p6 = pnand %p9506_p2, %p11642_p13 }
 0x4c8   : > { %p9512_p1 = por %p9511_p4, %p9510_p0 }
 0x4c9   : > { %p9508_p10 = pneg %p9507_p6 }
 0x4ca   : > { %p9514_p7 = por %p9513_p3, %p9512_p1 }
 0x4cc   : > { %p9515_p9 = pnand %p9514_p7, %p9508_p10 }
 0x4ce   : > { %9518 = shalt.err (!%p9515_p9)
}
 0x4cf   : > { %s9630_s30 = smov 128   ;;  %s9631_s27 = smov 8  }
 0x4d0   : > { %8941 = dma.vmem_to_hbm [thread:$0]  (%p11642_p13), %s11506_s15, 2048, %s11504_s21, %s11513_s22, %s9630_s30, %s9630_s30, %s9631_s27  }
 0x4d1 PF: > { %s11643_s20 = sld [smem:[#allocation15_spill]]  ;;  %s11644_s1 = sld [smem:[#allocation19_spill]] }
 0x4d2   : > { %p8963_p11 = scmp.ge.s32.totalorder %s9617_s11, 2 }
 0x4d7   : > { %s7466_s17 = sand.u32 1, %s11643_s20   ;;  %p11645_p5 = scmp.ne.s32.totalorder %s11644_s1, 0 }
 0x4d8   : > { %s7467_s24 = scalar_lea.sflag [#allocation7], %s7466_s17 }
 0x4d9   : > { %p8955_p8 = pnand %p8963_p11, %p11645_p5 }
 0x4db   : > { %9572 = dma.done.wait (!%p8955_p8), %s7467_s24, 2048  }
 0x4dc   : > { %9574 = vsyncadd (!%p8955_p8), %s7467_s24, 4294965248  ;;  %s24_s11 = sadd.s32 1, %s9617_s11   ;;  %s11646_s30 = sld [smem:[#allocation17_spill]] }
 0x4dd   : > { %p21_p12 = scmp.ge.s32.totalorder %s24_s11, 6   ;;  %s11647_s9 = sld [smem:[#allocation20_spill]] }
 0x4de   : > { %s11648_s24 = smov %s9581_s25  ;;  %s11649_s25 = smov %s9585_s26 }
 0x4df   : > { %s11650_s26 = smov %s9847_s4  ;;  %s11651_s27 = smov %s9593_s28 }
 0x4e0   : > { %s11652_s28 = smov %s9597_s29  ;;  %s11653_s29 = smov %s9842_s8 }
 0x4e1   : > { %s11654_s8 = smov %s9613_s10  ;;  %s11655_s10 = smov %s11661_s7 }
 0x4e2   :  { %23 = sbr.rel (!%p21_p12) target bundleno = 15 (0xf), region = 122 }
 0x4e9   :  { %7472 = vsyncpa [#allocation6], 1 }
 0x4ea   :  { %7474 = vsyncpa [#allocation6 + $0x1], 1 }
 0x4eb   :  { %7475 = vsyncpa [#allocation9], 1 }
 0x4ec   :  { %7476 = vsyncpa [#allocation7], 1 }
 0x4ed   :  { %7478 = vsyncpa [#allocation7 + $0x1], 1 }

</bundles_post_ra>
